<compile_context>
chip_gen: v5e
topology: v5e:2x2
jax: 0.10.0
libtpu: 0.0.40
codegen_flags: <defaults>
</compile_context>

<pallas_src>
import functools

import jax
import jax.numpy as jnp
from jax import lax
from jax.experimental import pallas as pl
from jax.experimental.pallas import tpu as pltpu


def _round_up(x, m):
    return (x + m - 1) // m * m


# ----------------------------------------------------------------------------
# Pallas kernels
# ----------------------------------------------------------------------------
def _build_tap_slab(src, slab_ref, ho, wo, stride, c):
    """Pack the 9 shifted 3x3 taps of `src` into slab_ref as (ho*wo, 9*c).

    `src` may be a VMEM value or a Ref; slices are static. Tap t occupies the
    lane block [t*c, (t+1)*c), matching the (9*c, cout) weight layout.
    """
    for dy in range(3):
        for dx in range(3):
            if stride == 1:
                tap = src[dy:dy + ho, dx:dx + wo, :]
            else:
                # strided taps for stride > 1 (untested path, see TODO above)
                tap = lax.slice(src, (dy, dx, 0),
                                (dy + (ho - 1) * stride + 1,
                                 dx + (wo - 1) * stride + 1, c),
                                (stride, stride, 1))
            t = dy * 3 + dx
            slab_ref[:, t * c:(t + 1) * c] = tap.reshape(ho * wo, c)


def _conv_stack(x_ref, w1_ref, b1_ref, w2_ref, b2_ref,
                slab1, y1pad, slab2, *, ho, wo, stride):
    """conv1(3x3,stride)+bn1+relu -> conv2(3x3,1)+bn2, all in VMEM.

    Returns (xb_bf16, y2_f32) where y2 has shape (ho*wo, cout_p).
    """
    cin_p = x_ref.shape[-1]
    cout_p = w1_ref.shape[-1]
    xb = x_ref[0].astype(jnp.bfloat16)                       # (hp, wp, cin_p)

    # ---- conv1 + bn1 + relu : one K-concatenated MXU matmul ---------------
    _build_tap_slab(xb, slab1, ho, wo, stride, cin_p)
    y1 = jnp.dot(slab1[...], w1_ref[...], preferred_element_type=jnp.float32)
    y1 = jnp.maximum(y1 + b1_ref[...], 0.0)

    # keep conv1 activation in VMEM; zero 1-px border (conv2 padding=1)
    y1pad[...] = jnp.zeros_like(y1pad)
    y1pad[1:ho + 1, 1:wo + 1, :] = (
        y1.reshape(ho, wo, cout_p).astype(jnp.bfloat16))

    # ---- conv2 + bn2 : one K-concatenated MXU matmul -----------------------
    _build_tap_slab(y1pad, slab2, ho, wo, 1, cout_p)
    y2 = jnp.dot(slab2[...], w2_ref[...], preferred_element_type=jnp.float32)
    return xb, y2 + b2_ref[...]


def _fused_ds_kernel(x_ref, w1_ref, b1_ref, w2_ref, b2_ref, wd_ref, bd_ref,
                     o_ref, slab1, y1pad, slab2, *, ho, wo, stride):
    # conv stack + (1x1 downsample conv + bn) residual + relu, fully fused
    cin_p = x_ref.shape[-1]
    cout_p = o_ref.shape[-1]
    xb, y2 = _conv_stack(x_ref, w1_ref, b1_ref, w2_ref, b2_ref,
                         slab1, y1pad, slab2, ho=ho, wo=wo, stride=stride)

    # downsample identity from the x tile already resident in VMEM
    if stride == 1:
        xs = xb[1:ho + 1, 1:wo + 1, :]
    else:
        xs = lax.slice(xb, (1, 1, 0),
                       (1 + (ho - 1) * stride + 1,
                        1 + (wo - 1) * stride + 1, cin_p),
                       (stride, stride, 1))
    ident = jnp.dot(xs.reshape(ho * wo, cin_p), wd_ref[...],
                    preferred_element_type=jnp.float32) + bd_ref[...]

    o_ref[0] = jnp.maximum(y2 + ident, 0.0).reshape(
        ho, wo, cout_p).astype(o_ref.dtype)


def _fused_id_kernel(x_ref, w1_ref, b1_ref, w2_ref, b2_ref,
                     o_ref, slab1, y1pad, slab2, *, ho, wo):
    # conv stack + f32 identity residual + relu, fully fused
    cin_p = x_ref.shape[-1]
    cout_p = o_ref.shape[-1]
    _, y2 = _conv_stack(x_ref, w1_ref, b1_ref, w2_ref, b2_ref,
                        slab1, y1pad, slab2, ho=ho, wo=wo, stride=1)

    # identity residual added in full f32 precision from the f32 x tile
    ident = x_ref[0, 1:ho + 1, 1:wo + 1, :].reshape(ho * wo, cin_p)
    o_ref[0] = jnp.maximum(y2 + ident, 0.0).reshape(
        ho, wo, cout_p).astype(o_ref.dtype)


# ----------------------------------------------------------------------------
# Pallas wrapper
# ----------------------------------------------------------------------------
def _vmem_limit_bytes(per_step_bytes):
    # actual per-step working set + headroom, capped below v7x's 64 MiB VMEM
    return int(min(48 * 2 ** 20, max(16 * 2 ** 20, 2 * per_step_bytes)))


def _basic_block_call(xpad, w1, b1, w2, b2, wd, bd, *,
                      ho, wo, stride, cin, cout):
    n, hp, wp, cin_p = xpad.shape
    cout_p = w1.shape[-1]
    has_ds = wd is not None

    scratch = [
        pltpu.VMEM((ho * wo, 9 * cin_p), jnp.bfloat16),      # conv1 tap slab
        pltpu.VMEM((ho + 2, wo + 2, cout_p), jnp.bfloat16),  # conv1 act (pad)
        pltpu.VMEM((ho * wo, 9 * cout_p), jnp.bfloat16),     # conv2 tap slab
    ]

    in_specs = [
        pl.BlockSpec((1, hp, wp, cin_p), lambda i: (i, 0, 0, 0)),
        pl.BlockSpec((9 * cin_p, cout_p), lambda i: (0, 0)),
        pl.BlockSpec((1, cout_p), lambda i: (0, 0)),
        pl.BlockSpec((9 * cout_p, cout_p), lambda i: (0, 0)),
        pl.BlockSpec((1, cout_p), lambda i: (0, 0)),
    ]
    args = [xpad, w1, b1, w2, b2]
    if has_ds:
        in_specs += [pl.BlockSpec((cin_p, cout_p), lambda i: (0, 0)),
                     pl.BlockSpec((1, cout_p), lambda i: (0, 0))]
        args += [wd, bd]
        kern = functools.partial(_fused_ds_kernel, ho=ho, wo=wo, stride=stride)
    else:
        kern = functools.partial(_fused_id_kernel, ho=ho, wo=wo)

    # real (unpadded-channel) arithmetic for the scheduler hint
    flops = 2 * n * ho * wo * (9 * cin * cout + 9 * cout * cout
                               + (cin * cout if has_ds else 0))
    weight_bytes = sum(int(a.size) * a.dtype.itemsize for a in args[1:])
    bytes_acc = int(xpad.size) * 4 + weight_bytes + n * ho * wo * cout_p * 4

    per_step = (2 * hp * wp * cin_p * 4          # double-buffered x block
                + 2 * ho * wo * cout_p * 4       # double-buffered out block
                + 2 * weight_bytes               # (conservatively) buffered
                + ho * wo * 9 * cin_p * 2        # slab1
                + (ho + 2) * (wo + 2) * cout_p * 2  # y1pad
                + ho * wo * 9 * cout_p * 2)      # slab2

    return pl.pallas_call(
        kern,
        out_shape=jax.ShapeDtypeStruct((n, ho, wo, cout_p), jnp.float32),
        grid=(n,),
        in_specs=in_specs,
        out_specs=pl.BlockSpec((1, ho, wo, cout_p), lambda i: (i, 0, 0, 0)),
        scratch_shapes=scratch,
        compiler_params=pltpu.CompilerParams(
            dimension_semantics=("parallel",),
            vmem_limit_bytes=_vmem_limit_bytes(per_step)),
        cost_estimate=pl.CostEstimate(flops=flops, transcendentals=0,
                                      bytes_accessed=bytes_acc),
    )(*args)


# ----------------------------------------------------------------------------
# Parameter folding (tiny tensors; done once in JAX)
# ----------------------------------------------------------------------------
def _fold_bn(gamma, beta, mean, var, eps=1e-5):
    scale = gamma / jnp.sqrt(var + eps)
    bias = beta - mean * scale
    return scale, bias


def _prep_w3x3(w_oihw, scale, cin_p, cout_p):
    # (Cout, Cin, 3, 3) -> (9*Cin_p, Cout_p) bf16, BN scale folded in.
    # Row t*cin_p + c holds tap t (dy*3+dx), input channel c -> matches slab.
    cout, cin = w_oihw.shape[0], w_oihw.shape[1]
    w = jnp.transpose(w_oihw, (2, 3, 1, 0)).reshape(9, cin, cout)
    w = w * scale.reshape(1, 1, cout)
    w = jnp.pad(w, ((0, 0), (0, cin_p - cin), (0, cout_p - cout)))
    return w.reshape(9 * cin_p, cout_p).astype(jnp.bfloat16)


def _prep_w1x1(w_oihw, scale, cin_p, cout_p):
    cout, cin = w_oihw.shape[0], w_oihw.shape[1]
    w = jnp.transpose(w_oihw[:, :, 0, 0], (1, 0)) * scale.reshape(1, cout)
    w = jnp.pad(w, ((0, cin_p - cin), (0, cout_p - cout)))
    return w.astype(jnp.bfloat16)


def _prep_bias(bias, cout_p):
    return jnp.pad(bias, (0, cout_p - bias.shape[0])).reshape(
        1, cout_p).astype(jnp.float32)


# ----------------------------------------------------------------------------
# BasicBlock forward (matches the PyTorch module semantics, inference BN)
# ----------------------------------------------------------------------------
@functools.partial(jax.jit, static_argnames=("stride",))
def basic_block_forward(x_nchw, params, stride=1):
    x = jnp.transpose(x_nchw, (0, 2, 3, 1)).astype(jnp.float32)  # NCHW -> NHWC
    n, h, w, cin = x.shape
    cout = params["w1"].shape[0]
    has_ds = (cout != cin) or (stride != 1)
    ho = (h - 1) // stride + 1
    wo = (w - 1) // stride + 1
    cin_p = _round_up(cin, 128)
    cout_p = _round_up(cout, 128)

    s1, b1 = _fold_bn(*params["bn1"])
    s2, b2 = _fold_bn(*params["bn2"])
    w1 = _prep_w3x3(params["w1"], s1, cin_p, cout_p)
    w2 = _prep_w3x3(params["w2"], s2, cout_p, cout_p)
    b1p = _prep_bias(b1, cout_p)
    b2p = _prep_bias(b2, cout_p)

    # channel lane-pad + 1-px spatial zero pad (conv padding=1). Stays f32 so
    # the identity residual is added at full precision inside the kernel; the
    # kernel casts to bf16 in VMEM for the MXU matmuls.
    xpad = jnp.pad(x, ((0, 0), (1, 1), (1, 1), (0, cin_p - cin)))

    if has_ds:
        sd, bd = _fold_bn(*params["bnd"])
        wd = _prep_w1x1(params["wd"], sd, cin_p, cout_p)
        bdp = _prep_bias(bd, cout_p)
    else:
        wd = bdp = None

    out = _basic_block_call(xpad, w1, b1p, w2, b2p, wd, bdp,
                            ho=ho, wo=wo, stride=stride, cin=cin, cout=cout)
    out = out[..., :cout]
    return jnp.transpose(out, (0, 3, 1, 2))                      # back to NCHW


# ----------------------------------------------------------------------------
# Pure-JAX reference (for correctness check)
# ----------------------------------------------------------------------------
def _ref_basic_block(x_nchw, params, stride=1, eps=1e-5):
    x = jnp.transpose(x_nchw, (0, 2, 3, 1)).astype(jnp.float32)

    def conv(inp, w_oihw, st, pad):
        w_hwio = jnp.transpose(w_oihw, (2, 3, 1, 0))
        return lax.conv_general_dilated(
            inp, w_hwio, (st, st), pad,
            dimension_numbers=("NHWC", "HWIO", "NHWC"))

    def bn(inp, g, b, m, v):
        return (inp - m) / jnp.sqrt(v + eps) * g + b

    cin = x.shape[-1]
    cout = params["w1"].shape[0]
    out = conv(x, params["w1"], stride, [(1, 1), (1, 1)])
    out = jax.nn.relu(bn(out, *params["bn1"]))
    out = conv(out, params["w2"], 1, [(1, 1), (1, 1)])
    out = bn(out, *params["bn2"])
    if cout != cin or stride != 1:
        ident = bn(conv(x, params["wd"], stride, [(0, 0), (0, 0)]),
                   *params["bnd"])
    else:
        ident = x
    out = jax.nn.relu(out + ident)
    return jnp.transpose(out, (0, 3, 1, 2))


def _init_params(key, in_channels, out_channels):
    ks = jax.random.split(key, 6)

    def bn_params(k, c):
        k1, k2, k3, k4 = jax.random.split(k, 4)
        gamma = 1.0 + 0.1 * jax.random.normal(k1, (c,), jnp.float32)
        beta = 0.1 * jax.random.normal(k2, (c,), jnp.float32)
        mean = 0.1 * jax.random.normal(k3, (c,), jnp.float32)
        var = jnp.abs(jax.random.normal(k4, (c,), jnp.float32)) + 0.5
        return (gamma, beta, mean, var)

    return {
        "w1": 0.1 * jax.random.normal(
            ks[0], (out_channels, in_channels, 3, 3), jnp.float32),
        "bn1": bn_params(ks[1], out_channels),
        "w2": 0.1 * jax.random.normal(
            ks[2], (out_channels, out_channels, 3, 3), jnp.float32),
        "bn2": bn_params(ks[3], out_channels),
        "wd": 0.1 * jax.random.normal(
            ks[4], (out_channels, in_channels, 1, 1), jnp.float32),
        "bnd": bn_params(ks[5], out_channels),
    }


if __name__ == "__main__":
    key = jax.random.PRNGKey(0)
    k_x1, k_x2, k_p1, k_p2 = jax.random.split(key, 4)

    N, C_IN, C_OUT, H, W = 2, 4, 8, 16, 16

    # Config 1: in_channels != out_channels -> downsample (1x1 conv + BN).
    x1 = jax.random.normal(k_x1, (N, C_IN, H, W), jnp.float32)
    p1 = _init_params(k_p1, C_IN, C_OUT)
    out1 = jax.block_until_ready(basic_block_forward(x1, p1, stride=1))
    ref1 = jax.block_until_ready(_ref_basic_block(x1, p1, stride=1))
    assert out1.shape == ref1.shape == (N, C_OUT, H, W)
    # bf16 matmul operands (f32 accumulation) -> slightly looser tolerance.
    assert jnp.allclose(out1, ref1, atol=5e-2, rtol=8e-2), \
        float(jnp.max(jnp.abs(out1 - ref1)))

    # Config 2: in_channels == out_channels, stride=1 -> identity residual.
    x2 = jax.random.normal(k_x2, (N, C_OUT, H, W), jnp.float32)
    p2 = _init_params(k_p2, C_OUT, C_OUT)
    out2 = jax.block_until_ready(basic_block_forward(x2, p2, stride=1))
    ref2 = jax.block_until_ready(_ref_basic_block(x2, p2, stride=1))
    assert out2.shape == ref2.shape == (N, C_OUT, H, W)
    assert jnp.allclose(out2, ref2, atol=5e-2, rtol=8e-2), \
        float(jnp.max(jnp.abs(out2 - ref2)))

    print("KERNEL_OK")
</pallas_src>

<mosaic_0001>
module attributes {stable_mosaic.version = 11 : i64} {
  func.func @_fused_ds_kernel(%arg0: i32, %arg1: memref<1x18x18x128xf32, #tpu.memory_space<vmem>>, %arg2: memref<1152x128xbf16, #tpu.memory_space<vmem>>, %arg3: memref<1x128xf32, #tpu.memory_space<vmem>>, %arg4: memref<1152x128xbf16, #tpu.memory_space<vmem>>, %arg5: memref<1x128xf32, #tpu.memory_space<vmem>>, %arg6: memref<128x128xbf16, #tpu.memory_space<vmem>>, %arg7: memref<1x128xf32, #tpu.memory_space<vmem>>, %arg8: memref<1x16x16x128xf32, #tpu.memory_space<vmem>>, %arg9: memref<256x1152xbf16, #tpu.memory_space<vmem>>, %arg10: memref<18x18x128xbf16, #tpu.memory_space<vmem>>, %arg11: memref<256x1152xbf16, #tpu.memory_space<vmem>>) attributes {dimension_semantics = [#tpu.dimension_semantics<parallel>], iteration_bounds = array<i64: 2>, scalar_prefetch = 0 : i64, scratch_operands = 3 : i64, tpu.core_type = #tpu.core_type<tc>, window_params = [{transform_indices = @transform_0, window_bounds = array<i64: 1, 18, 18, 128>}, {pipeline_mode = #tpu.pipeline_mode<synchronous>, transform_indices = @transform_1, window_bounds = array<i64: 1152, 128>}, {pipeline_mode = #tpu.pipeline_mode<synchronous>, transform_indices = @transform_2, window_bounds = array<i64: 1, 128>}, {pipeline_mode = #tpu.pipeline_mode<synchronous>, transform_indices = @transform_3, window_bounds = array<i64: 1152, 128>}, {pipeline_mode = #tpu.pipeline_mode<synchronous>, transform_indices = @transform_4, window_bounds = array<i64: 1, 128>}, {pipeline_mode = #tpu.pipeline_mode<synchronous>, transform_indices = @transform_5, window_bounds = array<i64: 128, 128>}, {pipeline_mode = #tpu.pipeline_mode<synchronous>, transform_indices = @transform_6, window_bounds = array<i64: 1, 128>}, {transform_indices = @transform_7, window_bounds = array<i64: 1, 16, 16, 128>}]} {
    %c0 = arith.constant 0 : index
    %c0_0 = arith.constant 0 : index
    %c0_1 = arith.constant 0 : index
    %c0_2 = arith.constant 0 : index
    %0 = vector.load %arg1[%c0, %c0_0, %c0_1, %c0_2] : memref<1x18x18x128xf32, #tpu.memory_space<vmem>>, vector<1x18x18x128xf32>
    %1 = vector.shape_cast %0 : vector<1x18x18x128xf32> to vector<18x18x128xf32>
    %2 = arith.truncf %1 : vector<18x18x128xf32> to vector<18x18x128xbf16>
    %3 = vector.extract_strided_slice %2 {offsets = [0, 0, 0], sizes = [16, 16, 128], strides = [1, 1, 1]} : vector<18x18x128xbf16> to vector<16x16x128xbf16>
    %4 = vector.shape_cast %3 : vector<16x16x128xbf16> to vector<256x128xbf16>
    %c0_3 = arith.constant 0 : index
    %c0_4 = arith.constant 0 : index
    %5 = vector.load %arg9[%c0_3, %c0_4] : memref<256x1152xbf16, #tpu.memory_space<vmem>>, vector<256x128xbf16>
    tpu.vector_store %arg9[%c0_3, %c0_4], %4 {strides = array<i32>} : memref<256x1152xbf16, #tpu.memory_space<vmem>>, vector<256x128xbf16>,
    %6 = vector.extract_strided_slice %2 {offsets = [0, 1, 0], sizes = [16, 16, 128], strides = [1, 1, 1]} : vector<18x18x128xbf16> to vector<16x16x128xbf16>
    %7 = vector.shape_cast %6 : vector<16x16x128xbf16> to vector<256x128xbf16>
    %c0_5 = arith.constant 0 : index
    %c128 = arith.constant 128 : index
    %8 = vector.load %arg9[%c0_5, %c128] : memref<256x1152xbf16, #tpu.memory_space<vmem>>, vector<256x128xbf16>
    tpu.vector_store %arg9[%c0_5, %c128], %7 {strides = array<i32>} : memref<256x1152xbf16, #tpu.memory_space<vmem>>, vector<256x128xbf16>,
    %9 = vector.extract_strided_slice %2 {offsets = [0, 2, 0], sizes = [16, 16, 128], strides = [1, 1, 1]} : vector<18x18x128xbf16> to vector<16x16x128xbf16>
    %10 = vector.shape_cast %9 : vector<16x16x128xbf16> to vector<256x128xbf16>
    %c0_6 = arith.constant 0 : index
    %c256 = arith.constant 256 : index
    %11 = vector.load %arg9[%c0_6, %c256] : memref<256x1152xbf16, #tpu.memory_space<vmem>>, vector<256x128xbf16>
    tpu.vector_store %arg9[%c0_6, %c256], %10 {strides = array<i32>} : memref<256x1152xbf16, #tpu.memory_space<vmem>>, vector<256x128xbf16>,
    %12 = vector.extract_strided_slice %2 {offsets = [1, 0, 0], sizes = [16, 16, 128], strides = [1, 1, 1]} : vector<18x18x128xbf16> to vector<16x16x128xbf16>
    %13 = vector.shape_cast %12 : vector<16x16x128xbf16> to vector<256x128xbf16>
    %c0_7 = arith.constant 0 : index
    %c384 = arith.constant 384 : index
    %14 = vector.load %arg9[%c0_7, %c384] : memref<256x1152xbf16, #tpu.memory_space<vmem>>, vector<256x128xbf16>
    tpu.vector_store %arg9[%c0_7, %c384], %13 {strides = array<i32>} : memref<256x1152xbf16, #tpu.memory_space<vmem>>, vector<256x128xbf16>,
    %15 = vector.extract_strided_slice %2 {offsets = [1, 1, 0], sizes = [16, 16, 128], strides = [1, 1, 1]} : vector<18x18x128xbf16> to vector<16x16x128xbf16>
    %16 = vector.shape_cast %15 : vector<16x16x128xbf16> to vector<256x128xbf16>
    %c0_8 = arith.constant 0 : index
    %c512 = arith.constant 512 : index
    %17 = vector.load %arg9[%c0_8, %c512] : memref<256x1152xbf16, #tpu.memory_space<vmem>>, vector<256x128xbf16>
    tpu.vector_store %arg9[%c0_8, %c512], %16 {strides = array<i32>} : memref<256x1152xbf16, #tpu.memory_space<vmem>>, vector<256x128xbf16>,
    %18 = vector.extract_strided_slice %2 {offsets = [1, 2, 0], sizes = [16, 16, 128], strides = [1, 1, 1]} : vector<18x18x128xbf16> to vector<16x16x128xbf16>
    %19 = vector.shape_cast %18 : vector<16x16x128xbf16> to vector<256x128xbf16>
    %c0_9 = arith.constant 0 : index
    %c640 = arith.constant 640 : index
    %20 = vector.load %arg9[%c0_9, %c640] : memref<256x1152xbf16, #tpu.memory_space<vmem>>, vector<256x128xbf16>
    tpu.vector_store %arg9[%c0_9, %c640], %19 {strides = array<i32>} : memref<256x1152xbf16, #tpu.memory_space<vmem>>, vector<256x128xbf16>,
    %21 = vector.extract_strided_slice %2 {offsets = [2, 0, 0], sizes = [16, 16, 128], strides = [1, 1, 1]} : vector<18x18x128xbf16> to vector<16x16x128xbf16>
    %22 = vector.shape_cast %21 : vector<16x16x128xbf16> to vector<256x128xbf16>
    %c0_10 = arith.constant 0 : index
    %c768 = arith.constant 768 : index
    %23 = vector.load %arg9[%c0_10, %c768] : memref<256x1152xbf16, #tpu.memory_space<vmem>>, vector<256x128xbf16>
    tpu.vector_store %arg9[%c0_10, %c768], %22 {strides = array<i32>} : memref<256x1152xbf16, #tpu.memory_space<vmem>>, vector<256x128xbf16>,
    %24 = vector.extract_strided_slice %2 {offsets = [2, 1, 0], sizes = [16, 16, 128], strides = [1, 1, 1]} : vector<18x18x128xbf16> to vector<16x16x128xbf16>
    %25 = vector.shape_cast %24 : vector<16x16x128xbf16> to vector<256x128xbf16>
    %c0_11 = arith.constant 0 : index
    %c896 = arith.constant 896 : index
    %26 = vector.load %arg9[%c0_11, %c896] : memref<256x1152xbf16, #tpu.memory_space<vmem>>, vector<256x128xbf16>
    tpu.vector_store %arg9[%c0_11, %c896], %25 {strides = array<i32>} : memref<256x1152xbf16, #tpu.memory_space<vmem>>, vector<256x128xbf16>,
    %27 = vector.extract_strided_slice %2 {offsets = [2, 2, 0], sizes = [16, 16, 128], strides = [1, 1, 1]} : vector<18x18x128xbf16> to vector<16x16x128xbf16>
    %28 = vector.shape_cast %27 : vector<16x16x128xbf16> to vector<256x128xbf16>
    %c0_12 = arith.constant 0 : index
    %c1024 = arith.constant 1024 : index
    %29 = vector.load %arg9[%c0_12, %c1024] : memref<256x1152xbf16, #tpu.memory_space<vmem>>, vector<256x128xbf16>
    tpu.vector_store %arg9[%c0_12, %c1024], %28 {strides = array<i32>} : memref<256x1152xbf16, #tpu.memory_space<vmem>>, vector<256x128xbf16>,
    %c0_13 = arith.constant 0 : index
    %c0_14 = arith.constant 0 : index
    %30 = vector.load %arg9[%c0_13, %c0_14] : memref<256x1152xbf16, #tpu.memory_space<vmem>>, vector<256x1152xbf16>
    %c0_15 = arith.constant 0 : index
    %c0_16 = arith.constant 0 : index
    %31 = vector.load %arg2[%c0_15, %c0_16] : memref<1152x128xbf16, #tpu.memory_space<vmem>>, vector<1152x128xbf16>
    %cst = arith.constant dense<0.000000e+00> : vector<256x128xf32>
    %32 = tpu.matmul %30, %31, %cst {dimension_numbers = #tpu.dot_dimension_numbers<[1], [0], [0], [1], [0, 0, 1, 1], [], []>} : vector<256x1152xbf16>, vector<1152x128xbf16>, vector<256x128xf32> -> vector<256x128xf32>
    %c0_17 = arith.constant 0 : index
    %c0_18 = arith.constant 0 : index
    %33 = vector.load %arg3[%c0_17, %c0_18] : memref<1x128xf32, #tpu.memory_space<vmem>>, vector<1x128xf32>
    %34 = vector.broadcast %33 : vector<1x128xf32> to vector<256x128xf32>
    %35 = arith.addf %32, %34 : vector<256x128xf32>
    %cst_19 = arith.constant 0.000000e+00 : f32
    %36 = vector.broadcast %cst_19 : f32 to vector<256x128xf32>
    %37 = arith.maximumf %35, %36 : vector<256x128xf32>
    %cst_20 = arith.constant 0.000000e+00 : bf16
    %38 = vector.broadcast %cst_20 : bf16 to vector<18x18x128xbf16>
    %c0_21 = arith.constant 0 : index
    %c0_22 = arith.constant 0 : index
    %c0_23 = arith.constant 0 : index
    %39 = vector.load %arg10[%c0_21, %c0_22, %c0_23] : memref<18x18x128xbf16, #tpu.memory_space<vmem>>, vector<18x18x128xbf16>
    tpu.vector_store %arg10[%c0_21, %c0_22, %c0_23], %38 {strides = array<i32>} : memref<18x18x128xbf16, #tpu.memory_space<vmem>>, vector<18x18x128xbf16>,
    %40 = vector.shape_cast %37 : vector<256x128xf32> to vector<16x16x128xf32>
    %41 = arith.truncf %40 : vector<16x16x128xf32> to vector<16x16x128xbf16>
    %c1 = arith.constant 1 : index
    %c1_24 = arith.constant 1 : index
    %c0_25 = arith.constant 0 : index
    %42 = vector.load %arg10[%c1, %c1_24, %c0_25] : memref<18x18x128xbf16, #tpu.memory_space<vmem>>, vector<16x16x128xbf16>
    tpu.vector_store %arg10[%c1, %c1_24, %c0_25], %41 {strides = array<i32>} : memref<18x18x128xbf16, #tpu.memory_space<vmem>>, vector<16x16x128xbf16>,
    %c0_26 = arith.constant 0 : index
    %c0_27 = arith.constant 0 : index
    %c0_28 = arith.constant 0 : index
    %43 = vector.load %arg10[%c0_26, %c0_27, %c0_28] : memref<18x18x128xbf16, #tpu.memory_space<vmem>>, vector<16x16x128xbf16>
    %44 = vector.shape_cast %43 : vector<16x16x128xbf16> to vector<256x128xbf16>
    %c0_29 = arith.constant 0 : index
    %c0_30 = arith.constant 0 : index
    %45 = vector.load %arg11[%c0_29, %c0_30] : memref<256x1152xbf16, #tpu.memory_space<vmem>>, vector<256x128xbf16>
    tpu.vector_store %arg11[%c0_29, %c0_30], %44 {strides = array<i32>} : memref<256x1152xbf16, #tpu.memory_space<vmem>>, vector<256x128xbf16>,
    %c0_31 = arith.constant 0 : index
    %c1_32 = arith.constant 1 : index
    %c0_33 = arith.constant 0 : index
    %46 = vector.load %arg10[%c0_31, %c1_32, %c0_33] : memref<18x18x128xbf16, #tpu.memory_space<vmem>>, vector<16x16x128xbf16>
    %47 = vector.shape_cast %46 : vector<16x16x128xbf16> to vector<256x128xbf16>
    %c0_34 = arith.constant 0 : index
    %c128_35 = arith.constant 128 : index
    %48 = vector.load %arg11[%c0_34, %c128_35] : memref<256x1152xbf16, #tpu.memory_space<vmem>>, vector<256x128xbf16>
    tpu.vector_store %arg11[%c0_34, %c128_35], %47 {strides = array<i32>} : memref<256x1152xbf16, #tpu.memory_space<vmem>>, vector<256x128xbf16>,
    %c0_36 = arith.constant 0 : index
    %c2 = arith.constant 2 : index
    %c0_37 = arith.constant 0 : index
    %49 = vector.load %arg10[%c0_36, %c2, %c0_37] : memref<18x18x128xbf16, #tpu.memory_space<vmem>>, vector<16x16x128xbf16>
    %50 = vector.shape_cast %49 : vector<16x16x128xbf16> to vector<256x128xbf16>
    %c0_38 = arith.constant 0 : index
    %c256_39 = arith.constant 256 : index
    %51 = vector.load %arg11[%c0_38, %c256_39] : memref<256x1152xbf16, #tpu.memory_space<vmem>>, vector<256x128xbf16>
    tpu.vector_store %arg11[%c0_38, %c256_39], %50 {strides = array<i32>} : memref<256x1152xbf16, #tpu.memory_space<vmem>>, vector<256x128xbf16>,
    %c1_40 = arith.constant 1 : index
    %c0_41 = arith.constant 0 : index
    %c0_42 = arith.constant 0 : index
    %52 = vector.load %arg10[%c1_40, %c0_41, %c0_42] : memref<18x18x128xbf16, #tpu.memory_space<vmem>>, vector<16x16x128xbf16>
    %53 = vector.shape_cast %52 : vector<16x16x128xbf16> to vector<256x128xbf16>
    %c0_43 = arith.constant 0 : index
    %c384_44 = arith.constant 384 : index
    %54 = vector.load %arg11[%c0_43, %c384_44] : memref<256x1152xbf16, #tpu.memory_space<vmem>>, vector<256x128xbf16>
    tpu.vector_store %arg11[%c0_43, %c384_44], %53 {strides = array<i32>} : memref<256x1152xbf16, #tpu.memory_space<vmem>>, vector<256x128xbf16>,
    %c1_45 = arith.constant 1 : index
    %c1_46 = arith.constant 1 : index
    %c0_47 = arith.constant 0 : index
    %55 = vector.load %arg10[%c1_45, %c1_46, %c0_47] : memref<18x18x128xbf16, #tpu.memory_space<vmem>>, vector<16x16x128xbf16>
    %56 = vector.shape_cast %55 : vector<16x16x128xbf16> to vector<256x128xbf16>
    %c0_48 = arith.constant 0 : index
    %c512_49 = arith.constant 512 : index
    %57 = vector.load %arg11[%c0_48, %c512_49] : memref<256x1152xbf16, #tpu.memory_space<vmem>>, vector<256x128xbf16>
    tpu.vector_store %arg11[%c0_48, %c512_49], %56 {strides = array<i32>} : memref<256x1152xbf16, #tpu.memory_space<vmem>>, vector<256x128xbf16>,
    %c1_50 = arith.constant 1 : index
    %c2_51 = arith.constant 2 : index
    %c0_52 = arith.constant 0 : index
    %58 = vector.load %arg10[%c1_50, %c2_51, %c0_52] : memref<18x18x128xbf16, #tpu.memory_space<vmem>>, vector<16x16x128xbf16>
    %59 = vector.shape_cast %58 : vector<16x16x128xbf16> to vector<256x128xbf16>
    %c0_53 = arith.constant 0 : index
    %c640_54 = arith.constant 640 : index
    %60 = vector.load %arg11[%c0_53, %c640_54] : memref<256x1152xbf16, #tpu.memory_space<vmem>>, vector<256x128xbf16>
    tpu.vector_store %arg11[%c0_53, %c640_54], %59 {strides = array<i32>} : memref<256x1152xbf16, #tpu.memory_space<vmem>>, vector<256x128xbf16>,
    %c2_55 = arith.constant 2 : index
    %c0_56 = arith.constant 0 : index
    %c0_57 = arith.constant 0 : index
    %61 = vector.load %arg10[%c2_55, %c0_56, %c0_57] : memref<18x18x128xbf16, #tpu.memory_space<vmem>>, vector<16x16x128xbf16>
    %62 = vector.shape_cast %61 : vector<16x16x128xbf16> to vector<256x128xbf16>
    %c0_58 = arith.constant 0 : index
    %c768_59 = arith.constant 768 : index
    %63 = vector.load %arg11[%c0_58, %c768_59] : memref<256x1152xbf16, #tpu.memory_space<vmem>>, vector<256x128xbf16>
    tpu.vector_store %arg11[%c0_58, %c768_59], %62 {strides = array<i32>} : memref<256x1152xbf16, #tpu.memory_space<vmem>>, vector<256x128xbf16>,
    %c2_60 = arith.constant 2 : index
    %c1_61 = arith.constant 1 : index
    %c0_62 = arith.constant 0 : index
    %64 = vector.load %arg10[%c2_60, %c1_61, %c0_62] : memref<18x18x128xbf16, #tpu.memory_space<vmem>>, vector<16x16x128xbf16>
    %65 = vector.shape_cast %64 : vector<16x16x128xbf16> to vector<256x128xbf16>
    %c0_63 = arith.constant 0 : index
    %c896_64 = arith.constant 896 : index
    %66 = vector.load %arg11[%c0_63, %c896_64] : memref<256x1152xbf16, #tpu.memory_space<vmem>>, vector<256x128xbf16>
    tpu.vector_store %arg11[%c0_63, %c896_64], %65 {strides = array<i32>} : memref<256x1152xbf16, #tpu.memory_space<vmem>>, vector<256x128xbf16>,
    %c2_65 = arith.constant 2 : index
    %c2_66 = arith.constant 2 : index
    %c0_67 = arith.constant 0 : index
    %67 = vector.load %arg10[%c2_65, %c2_66, %c0_67] : memref<18x18x128xbf16, #tpu.memory_space<vmem>>, vector<16x16x128xbf16>
    %68 = vector.shape_cast %67 : vector<16x16x128xbf16> to vector<256x128xbf16>
    %c0_68 = arith.constant 0 : index
    %c1024_69 = arith.constant 1024 : index
    %69 = vector.load %arg11[%c0_68, %c1024_69] : memref<256x1152xbf16, #tpu.memory_space<vmem>>, vector<256x128xbf16>
    tpu.vector_store %arg11[%c0_68, %c1024_69], %68 {strides = array<i32>} : memref<256x1152xbf16, #tpu.memory_space<vmem>>, vector<256x128xbf16>,
    %c0_70 = arith.constant 0 : index
    %c0_71 = arith.constant 0 : index
    %70 = vector.load %arg11[%c0_70, %c0_71] : memref<256x1152xbf16, #tpu.memory_space<vmem>>, vector<256x1152xbf16>
    %c0_72 = arith.constant 0 : index
    %c0_73 = arith.constant 0 : index
    %71 = vector.load %arg4[%c0_72, %c0_73] : memref<1152x128xbf16, #tpu.memory_space<vmem>>, vector<1152x128xbf16>
    %cst_74 = arith.constant dense<0.000000e+00> : vector<256x128xf32>
    %72 = tpu.matmul %70, %71, %cst_74 {dimension_numbers = #tpu.dot_dimension_numbers<[1], [0], [0], [1], [0, 0, 1, 1], [], []>} : vector<256x1152xbf16>, vector<1152x128xbf16>, vector<256x128xf32> -> vector<256x128xf32>
    %c0_75 = arith.constant 0 : index
    %c0_76 = arith.constant 0 : index
    %73 = vector.load %arg5[%c0_75, %c0_76] : memref<1x128xf32, #tpu.memory_space<vmem>>, vector<1x128xf32>
    %74 = vector.broadcast %73 : vector<1x128xf32> to vector<256x128xf32>
    %75 = arith.addf %72, %74 : vector<256x128xf32>
    %76 = vector.extract_strided_slice %2 {offsets = [1, 1, 0], sizes = [16, 16, 128], strides = [1, 1, 1]} : vector<18x18x128xbf16> to vector<16x16x128xbf16>
    %77 = vector.shape_cast %76 : vector<16x16x128xbf16> to vector<256x128xbf16>
    %c0_77 = arith.constant 0 : index
    %c0_78 = arith.constant 0 : index
    %78 = vector.load %arg6[%c0_77, %c0_78] : memref<128x128xbf16, #tpu.memory_space<vmem>>, vector<128x128xbf16>
    %cst_79 = arith.constant dense<0.000000e+00> : vector<256x128xf32>
    %79 = tpu.matmul %77, %78, %cst_79 {dimension_numbers = #tpu.dot_dimension_numbers<[1], [0], [0], [1], [0, 0, 1, 1], [], []>} : vector<256x128xbf16>, vector<128x128xbf16>, vector<256x128xf32> -> vector<256x128xf32>
    %c0_80 = arith.constant 0 : index
    %c0_81 = arith.constant 0 : index
    %80 = vector.load %arg7[%c0_80, %c0_81] : memref<1x128xf32, #tpu.memory_space<vmem>>, vector<1x128xf32>
    %81 = vector.broadcast %80 : vector<1x128xf32> to vector<256x128xf32>
    %82 = arith.addf %79, %81 : vector<256x128xf32>
    %83 = arith.addf %75, %82 : vector<256x128xf32>
    %cst_82 = arith.constant 0.000000e+00 : f32
    %84 = vector.broadcast %cst_82 : f32 to vector<256x128xf32>
    %85 = arith.maximumf %83, %84 : vector<256x128xf32>
    %86 = vector.shape_cast %85 : vector<256x128xf32> to vector<16x16x128xf32>
    %c0_83 = arith.constant 0 : index
    %c0_84 = arith.constant 0 : index
    %c0_85 = arith.constant 0 : index
    %c0_86 = arith.constant 0 : index
    %87 = vector.load %arg8[%c0_83, %c0_84, %c0_85, %c0_86] : memref<1x16x16x128xf32, #tpu.memory_space<vmem>>, vector<1x16x16x128xf32>
    %88 = vector.shape_cast %87 : vector<1x16x16x128xf32> to vector<16x16x128xf32>
    %89 = vector.shape_cast %86 : vector<16x16x128xf32> to vector<1x16x16x128xf32>
    tpu.vector_store %arg8[%c0_83, %c0_84, %c0_85, %c0_86], %89 {strides = array<i32>} : memref<1x16x16x128xf32, #tpu.memory_space<vmem>>, vector<1x16x16x128xf32>,
    return
  }
  func.func @transform_0(%arg0: i32) -> (i32, i32, i32, i32) {
    %c0_i32 = arith.constant 0 : i32
    %c0_i32_0 = arith.constant 0 : i32
    %c0_i32_1 = arith.constant 0 : i32
    %c0_i32_2 = arith.constant 0 : i32
    return %arg0, %c0_i32, %c0_i32_0, %c0_i32_1 : i32, i32, i32, i32
  }
  func.func @transform_1(%arg0: i32) -> (i32, i32) {
    %c0_i32 = arith.constant 0 : i32
    %c0_i32_0 = arith.constant 0 : i32
    %c0_i32_1 = arith.constant 0 : i32
    return %c0_i32, %c0_i32_0 : i32, i32
  }
  func.func @transform_2(%arg0: i32) -> (i32, i32) {
    %c0_i32 = arith.constant 0 : i32
    %c0_i32_0 = arith.constant 0 : i32
    %c0_i32_1 = arith.constant 0 : i32
    return %c0_i32, %c0_i32_0 : i32, i32
  }
  func.func @transform_3(%arg0: i32) -> (i32, i32) {
    %c0_i32 = arith.constant 0 : i32
    %c0_i32_0 = arith.constant 0 : i32
    %c0_i32_1 = arith.constant 0 : i32
    return %c0_i32, %c0_i32_0 : i32, i32
  }
  func.func @transform_4(%arg0: i32) -> (i32, i32) {
    %c0_i32 = arith.constant 0 : i32
    %c0_i32_0 = arith.constant 0 : i32
    %c0_i32_1 = arith.constant 0 : i32
    return %c0_i32, %c0_i32_0 : i32, i32
  }
  func.func @transform_5(%arg0: i32) -> (i32, i32) {
    %c0_i32 = arith.constant 0 : i32
    %c0_i32_0 = arith.constant 0 : i32
    %c0_i32_1 = arith.constant 0 : i32
    return %c0_i32, %c0_i32_0 : i32, i32
  }
  func.func @transform_6(%arg0: i32) -> (i32, i32) {
    %c0_i32 = arith.constant 0 : i32
    %c0_i32_0 = arith.constant 0 : i32
    %c0_i32_1 = arith.constant 0 : i32
    return %c0_i32, %c0_i32_0 : i32, i32
  }
  func.func @transform_7(%arg0: i32) -> (i32, i32, i32, i32) {
    %c0_i32 = arith.constant 0 : i32
    %c0_i32_0 = arith.constant 0 : i32
    %c0_i32_1 = arith.constant 0 : i32
    %c0_i32_2 = arith.constant 0 : i32
    return %arg0, %c0_i32, %c0_i32_0, %c0_i32_1 : i32, i32, i32, i32
  }
}

</mosaic_0001>

<bundles_post_ra>
// kernel: basic_block_forward.1
= control target key start
LH: loop header
LB: loop body
LE: loop exit
PB: predicated region body
PF: predicated region fallthrough
CT: control target
= control target key end

     0   :  { %s11716_s24 = smov 0   ;;  %s14790_s0 = inlined_call_operand.vmem [shape: f32[2,18,18,128], index: 0, kind: input, shape index: {}]   ;;  %s14791_s1 = inlined_call_operand.vmem [shape: bf16[1152,128], index: 1, kind: input, shape index: {}]   ;;  %s14792_s2 = inlined_call_operand.vmem [shape: f32[1,128], index: 2, kind: input, shape index: {}]   ;;  %s14793_s3 = inlined_call_operand.vmem [shape: bf16[1152,128], index: 3, kind: input, shape index: {}]   ;;  %s14794_s4 = inlined_call_operand.vmem [shape: f32[1,128], index: 4, kind: input, shape index: {}]   ;;  %s14795_s5 = inlined_call_operand.vmem [shape: bf16[128,128], index: 5, kind: input, shape index: {}]   ;;  %s14796_s6 = inlined_call_operand.vmem [shape: f32[1,128], index: 6, kind: input, shape index: {}]   ;;  %s14797_s7 = inlined_call_operand.vmem [shape: f32[2,16,16,128], index: 7, kind: output, shape index: {}]  }
   0x1 LB: > { %s9348_s25 = sadd.s32 4294967295, %s11673_s24   ;;  %p9352_p0 = scmp.ge.s32.totalorder %s11673_s24, 1  ;;  %s11673_s24 = sphi %s11716_s24, %s17_s24  }
   0x2   : > { %p237_p1 = scmp.lt.s32.totalorder %s11673_s24, 3 }
   0x4   : > { %p238_p2 = pnand %p9352_p0, %p237_p1 }
   0x6   : > { %241 = sbr.rel (%p238_p2) target bundleno = 1677 (0x68d), region = 48 }
   0xb   : > { %v11336_v0 = vld [vmem:[%s14791_s1 + $0x38] sm:$0xff]  ;;  %p269_p3 = scmp.lt.s32.totalorder %s9348_s25, 1  ;;  %v11335_v3 = vld [vmem:[%s14791_s1 + $0x30] sm:$0xff]  ;;  %v11334_v6 = vld [vmem:[%s14791_s1 + $0x28] sm:$0xff]  ;;  %vm919_vm0 = vcmask 1042432   ;;  %vm920_vm2 = vcmask 1046532  }
   0xc   : > { %v11730_v1 = vld [vmem:[%s14791_s1 + $0xb8] sm:$0xff]  ;;  %2842 = vmatpush.bf16.msra.mxu0 %v11336_v0  ;;  %11625 = vmatpush.bf16.msra.mxu3 %v11336_v0  ;;  %v11747_v4 = vld [vmem:[%s14791_s1 + $0xb0] sm:$0xff]  ;;  %v11768_v7 = vld [vmem:[%s14791_s1 + $0xa8] sm:$0xff]  ;;  %vm420_vm1 = vsmask.f32 3328  ;;  %vm4085_vm6 = vcmask 1043456  }
   0xd   : > { %v11735_v2 = vld [vmem:[%s14791_s1 + $0x78] sm:$0xff]  ;;  %s15009_s25 = smov (!%p269_p3, %s9348_s25), 1  ;;  %3020 = vmatpush.bf16.msra.mxu2 %v11730_v1  ;;  %v11752_v5 = vld [vmem:[%s14791_s1 + $0x70] sm:$0xff]  ;;  %v11773_v8 = vld [vmem:[%s14791_s1 + $0x68] sm:$0xff]  ;;  %vm421_vm3 = vsmask.f32 7440 }
   0xe   : > { %2931 = vmatpush.bf16.msra.mxu1 %v11735_v2  ;;  %s11649_s15 = smul.u32 432, %s15009_s25  ;;  %v11333_v12 = vld [vmem:[%s14791_s1 + $0x20] sm:$0xff]  ;;  %vm11803_vm4 = vmor %vm919_vm0, %vm920_vm2  ;;  %v11332_v36 = vld [vmem:[%s14791_s1 + $0x18] sm:$0xff]  ;;  %vm4086_vm7 = vsmask.f32 7938  ;;  %vm4092_vm11 = vcmask 1040384  }
   0xf   : > { %v11788_v18 = vld [vmem:[%s14791_s1 + $0xa0] sm:$0xff]  ;;  %v11819_v40 = vld [vmem:[%s14791_s1 + $0x98] sm:$0xff]  ;;  %vm11832_vm5 = vmor %vm420_vm1, %vm421_vm3  ;;  %vm3761_vm9 = vsmask.f32 256  ;;  %vm3762_vm10 = vsmask.f32 4368 }
  0x10   : > { %2843 = vmatpush.bf16.msra.mxu0 %v11335_v3  ;;  %11626 = vmatpush.bf16.msra.mxu3 %v11335_v3  ;;  %s11761_s20 = scalar_lea.vmem %s14790_s0, %s11649_s15  ;;  %v11793_v19 = vld [vmem:[%s14791_s1 + $0x60] sm:$0xff]  ;;  %v11824_v41 = vld [vmem:[%s14791_s1 + $0x58] sm:$0xff]  ;;  %v11331_v51 = vld [vmem:[%s14791_s1 + $0x10] sm:$0xff]  ;;  %s11184_s21 = sshll.u32 %s15009_s25, 8 }
  0x11   : > { %3021 = vmatpush.bf16.msra.mxu2 %v11747_v4  ;;  %v280_v9 = vld [vmem:[%s11761_s20] sm:$0xff]  ;;  %v281_v10 = vld [vmem:[%s11761_s20 + $0x8] sm:$0xff]  ;;  %v282_v17 = vld [vmem:[%s11761_s20 + $0x10] sm:$0x3]  ;;  %s14624_s26 = scalar_lea.vmem %s14797_s7, %s11184_s21 }
  0x12   : > { %2932 = vmatpush.bf16.msra.mxu1 %v11752_v5  ;;  %v316_v11 = vld [vmem:[%s11761_s20 + $0x120] sm:$0xff]  ;;  %v334_v13 = vpack.c.bf16 %v280_v9, %v280_v9  ;;  %v335_v14 = vpack.c.bf16 %v281_v10, %v281_v10  ;;  %v317_v15 = vld [vmem:[%s11761_s20 + $0x128] sm:$0xff]  ;;  %v336_v21 = vpack.c.bf16 %v282_v17, %v282_v17  ;;  %v283_v22 = vld [vmem:[%s11761_s20 + $0x18] sm:$0xff] }
  0x13   : > { %v11782_v16 = vpack.c.bf16 %v316_v11, %v316_v11  ;;  %v11795_v20 = vpack.c.bf16 %v317_v15, %v317_v15  ;;  %v284_v35 = vld [vmem:[%s11761_s20 + $0x20] sm:$0xff]  ;;  %v11812_v39 = vpack.c.bf16 %v283_v22, %v283_v22  ;;  %v285_v50 = vld [vmem:[%s11761_s20 + $0x28] sm:$0x3]  ;;  %v11852_v54 = vld [vmem:[%s14791_s1 + $0x90] sm:$0xff] }
  0x14   : > { %2844 = vmatpush.bf16.msra.mxu0 %v11334_v6  ;;  %11627 = vmatpush.bf16.msra.mxu3 %v11334_v6  ;;  %388 = vst [vmem:[#allocation2] sm:$0xf] %v334_v13  ;;  %v9356_v23 = vrot.slane %v334_v13, 9  ;;  %v924_v24 = vrot.slane %v335_v14, 5  ;;  %v424_v25 = vshrl.u32 %v334_v13, 16  ;;  %v427_v26 = vshll.u32 %v334_v13, 16  ;;  %vm12939_vm8 = vmand %vm4085_vm6, %vm4086_vm7 }
  0x15   : > { %3022 = vmatpush.bf16.msra.mxu2 %v11768_v7  ;;  %389 = vst [vmem:[#allocation2 + $0x24] sm:$0xf] %v335_v14  ;;  %v927_v27 = vrot.slane %v336_v21, 5  ;;  %v433_v28 = vshll.u32 %v335_v14, 16  ;;  %v437_v29 = vshrl.u32 %v335_v14, 16  ;;  %v443_v30 = vshll.u32 %v336_v21, 16  ;;  %vm12959_vm12 = vmor %vm3761_vm9, %vm3762_vm10 }
  0x16   : > { %2933 = vmatpush.bf16.msra.mxu1 %v11773_v8  ;;  %412 = vst [vmem:[#allocation2 + $0x360] sm:$0xf] %v11782_v16  ;;  %v926_v32 = vrot.slane %v924_v24, 4  ;;  %v426_v33 = vrot.slane %v424_v25, 4  ;;  %v429_v34 = vrot.slane %v427_v26, 5  ;;  %v925_v43 = vsel %vm11803_vm4, %v9356_v23, %v924_v24  ;;  %v11857_v55 = vld [vmem:[%s14791_s1 + $0x50] sm:$0xff]  ;;  %vm12984_vm13 = vmand %vm4092_vm11, %vm3761_vm9 }
  0x17   : > { %413 = vst [vmem:[#allocation2 + $0x384] sm:$0xf] %v11795_v20  ;;  %v435_v37 = vrot.slane %v433_v28, 5  ;;  %v439_v38 = vrot.slane %v437_v29, 4  ;;  %v445_v46 = vrot.slane %v443_v30, 5  ;;  %v11836_v47 = vpack.c.bf16 %v284_v35, %v284_v35  ;;  %v319_v58 = vld [vmem:[%s11761_s20 + $0x138] sm:$0xff] }
  0x18   : > { %2845 = vmatpush.bf16.msra.mxu0 %v11333_v12  ;;  %11628 = vmatpush.bf16.msra.mxu3 %v11333_v12  ;;  %1120 = vst [vmem:[#allocation2 + $0x324] sm:$0xf] %v11782_v16  ;;  %v430_v42 = vor.u32 %v429_v34, %v426_v33  ;;  %v928_v48 = vsel %vm11803_vm4, %v926_v32, %v927_v27  ;;  %v448_v53 = vshrl.u32 %v11812_v39, 16  ;;  %v451_v60 = vshll.u32 %v11812_v39, 16  ;;  %v320_v62 = vld [vmem:[%s11761_s20 + $0x140] sm:$0xff]  ;;  %v11330_v0 = vld [vmem:[%s14791_s1 + $0x8] sm:$0xff] }
  0x19   : > { %3023 = vmatpush.bf16.msra.mxu2 %v11788_v18  ;;  %1121 = vst [vmem:[#allocation2 + $0x348] sm:$0xf] %v11795_v20  ;;  %v440_v45 = vor.u32 %v439_v38, %v435_v37  ;;  %v11864_v59 = vpack.c.bf16 %v285_v50, %v285_v50  ;;  %v457_v61 = vshll.u32 %v11836_v47, 16  ;;  %v461_v63 = vshrl.u32 %v11836_v47, 16  ;;  %v11879_v10 = vld [vmem:[%s14791_s1 + $0x88] sm:$0xff]  ;;  %v11329_v15 = vld [vmem:[%s14791_s1] sm:$0xff] }
  0x1a   : > { %2934 = vmatpush.bf16.msra.mxu1 %v11793_v19  ;;  %1252 = vst [vmem:[#allocation2 + $0x2e8] sm:$0xf] %v11782_v16  ;;  %v431_v49 = vrot.slane %v430_v42, 4  ;;  %v931_v3 = vrot.slane %v11836_v47, 5  ;;  %v450_v6 = vrot.slane %v448_v53, 4  ;;  %v453_v9 = vrot.slane %v451_v60, 5 }
  0x1b   : > { %1253 = vst [vmem:[#allocation2 + $0x30c] sm:$0xf] %v11795_v20  ;;  %v441_v52 = vrot.slane %v440_v45, 4  ;;  %v11884_v11 = vld [vmem:[%s14791_s1 + $0x48] sm:$0xff]  ;;  %v11887_v12 = vpack.c.bf16 %v319_v58, %v319_v58  ;;  %v459_v13 = vrot.slane %v457_v61, 5  ;;  %v463_v14 = vrot.slane %v461_v63, 4 }
  0x1c   : > { %2846 = vmatpush.bf16.msra.mxu0 %v11332_v36  ;;  %11629 = vmatpush.bf16.msra.mxu3 %v11332_v36  ;;  %1066 = vst [vmem:[#allocation2 + $0x8] sm:$0xf] %v925_v43  ;;  %v436_v56 = vsel %vm11832_vm5, %v431_v49, %v435_v37  ;;  %v9376_v17 = vld [vmem:[#allocation2] sm:$0xf]  ;;  %v11893_v21 = vpack.c.bf16 %v320_v62, %v320_v62  ;;  %v9357_v22 = vrot.slane %v11812_v39, 9  ;;  %v934_v23 = vrot.slane %v11864_v59, 5 }
  0x1d   : > { %3024 = vmatpush.bf16.msra.mxu2 %v11819_v40  ;;  %1067 = vst [vmem:[#allocation2 + $0x2c] sm:$0xf] %v928_v48  ;;  %v446_v57 = vsel %vm11832_vm5, %v441_v52, %v445_v46  ;;  %v11900_v24 = vld [vmem:[%s14791_s1 + $0x80] sm:$0xff]  ;;  %v933_v29 = vrot.slane %v931_v3, 4  ;;  %v454_v30 = vor.u32 %v453_v9, %v450_v6  ;;  %v467_v32 = vshll.u32 %v11864_v59, 16  ;;  %v11368_v37 = vld [vmem:[%s14791_s1 + $0x138] sm:$0xff] }
  0x1e   : > { %2935 = vmatpush.bf16.msra.mxu1 %v11824_v41  ;;  %839 = vst [vmem:[#allocation2 + $0x4] sm:$0xf] %v436_v56  ;;  %v11905_v25 = vld [vmem:[%s14791_s1 + $0x40] sm:$0xff]  ;;  %v464_v35 = vor.u32 %v463_v14, %v459_v13  ;;  %v932_v43 = vsel %vm11803_vm4, %v9357_v22, %v931_v3  ;;  %v287_v52 = vld [vmem:[%s11761_s20 + $0x38] sm:$0xff]  ;;  %v322_v59 = vld [vmem:[%s11761_s20 + $0x150] sm:$0xff] }
  0x1f   : > { %840 = vst [vmem:[#allocation2 + $0x28] sm:$0xf] %v446_v57  ;;  %v11189_v26 = vld [vmem:[#allocation2 + $0x20] sm:$0xf0]  ;;  %v9808_v27 = vld [vmem:[#allocation2 + $0x360] sm:$0xf]  ;;  %v935_v48 = vsel %vm11803_vm4, %v933_v29, %v934_v23  ;;  %v341_v58 = vpack.c.bf16 %v287_v52, %v287_v52  ;;  %v11950_v22 = vpack.c.bf16 %v322_v59, %v322_v59 }
  0x20   : > { %2847 = vmatpush.bf16.msra.mxu0 %v11331_v51  ;;  %11630 = vmatpush.bf16.msra.mxu3 %v11331_v51  ;;  %390 = vst [vmem:[#allocation2 + $0x48] sm:$0xf] %v11812_v39  ;;  %v11297_v28 = vld [vmem:[#allocation2 + $0x380] sm:$0xf0]  ;;  %v9377_v38 = vor.u32 %v11189_v26, %v9376_v17  ;;  %v465_v49 = vrot.slane %v464_v35, 4  ;;  %v469_v50 = vrot.slane %v467_v32, 5 }
  0x21   : > { %3025 = vmatpush.bf16.msra.mxu2 %v11852_v54  ;;  %391 = vst [vmem:[#allocation2 + $0x6c] sm:$0xf] %v11836_v47  ;;  %v286_v51 = vld [vmem:[%s11761_s20 + $0x30] sm:$0xff]  ;;  %v323_v60 = vld [vmem:[%s11761_s20 + $0x158] sm:$0xff]  ;;  %v288_v61 = vld [vmem:[%s11761_s20 + $0x40] sm:$0x3] }
  0x22   : > { %2936 = vmatpush.bf16.msra.mxu1 %v11857_v55  ;;  %1098 = vst [vmem:[#allocation2 + $0xc] sm:$0xf] %v11812_v39  ;;  %v9809_v39 = vor.u32 %v11297_v28, %v9808_v27  ;;  %v11939_v56 = vsel %vm11832_vm5, %v465_v49, %v469_v50  ;;  %v340_v57 = vpack.c.bf16 %v286_v51, %v286_v51  ;;  %v938_v62 = vrot.slane %v341_v58, 5  ;;  %v289_v50 = vld [vmem:[%s11761_s20 + $0x48] sm:$0xff]  ;;  %v290_v51 = vld [vmem:[%s11761_s20 + $0x50] sm:$0xff] }
  0x23   : > { %1099 = vst [vmem:[#allocation2 + $0x30] sm:$0xf] %v11836_v47  ;;  %v9384_v33 = vld [vmem:[#allocation2 + $0x8] sm:$0xf]  ;;  %v455_v47 = vrot.slane %v454_v30, 4  ;;  %v485_v3 = vshrl.u32 %v341_v58, 16  ;;  %v342_v23 = vpack.c.bf16 %v288_v61, %v288_v61 }
  0x24   : > { %2848 = vmatpush.bf16.msra.mxu0 %v11330_v0  ;;  %11631 = vmatpush.bf16.msra.mxu3 %v11330_v0  ;;  %v11190_v34 = vld [vmem:[#allocation2 + $0x28] sm:$0xf0]  ;;  %414 = vst [vmem:[#allocation2 + $0x3a8] sm:$0xf] %v11887_v12  ;;  %v472_v63 = vshrl.u32 %v340_v57, 16  ;;  %v481_v0 = vshll.u32 %v341_v58, 16 }
  0x25   : > { %3026 = vmatpush.bf16.msra.mxu2 %v11879_v10  ;;  %v11185_v36 = vld [vmem:[#allocation2 + $0x4] sm:$0xf]  ;;  %415 = vst [vmem:[#allocation2 + $0x3cc] sm:$0xf] %v11893_v21  ;;  %v9385_v45 = vor.u32 %v11190_v34, %v9384_v33  ;;  %v11932_v53 = vsel %vm11832_vm5, %v455_v47, %v459_v13  ;;  %v487_v34 = vrot.slane %v485_v3, 4 }
  0x26   : > { %2937 = vmatpush.bf16.msra.mxu1 %v11884_v11  ;;  %v9378_v42 = vld [vmem:[#allocation2 + $0x24] sm:$0xf0]  ;;  %1122 = vst [vmem:[#allocation2 + $0x36c] sm:$0xf] %v11887_v12  ;;  %v474_v27 = vrot.slane %v472_v63, 4  ;;  %v483_v33 = vrot.slane %v481_v0, 5  ;;  %v344_v63 = vpack.c.bf16 %v290_v51, %v290_v51 }
  0x27   : > { %v9381_v46 = vor.u32 %v11185_v36, %v9378_v42  ;;  %1123 = vst [vmem:[#allocation2 + $0x390] sm:$0xf] %v11893_v21  ;;  %v9412_v6 = vld [vmem:[#allocation2 + $0x48] sm:$0xf]  ;;  %v291_v3 = vld [vmem:[%s11761_s20 + $0x58] sm:$0x3] }
  0x28   : > { %2849 = vmatpush.bf16.msra.mxu0 %v11329_v15  ;;  %11632 = vmatpush.bf16.msra.mxu3 %v11329_v15  ;;  %1254 = vst [vmem:[#allocation2 + $0x330] sm:$0xf] %v11887_v12  ;;  %v11198_v9 = vld [vmem:[#allocation2 + $0x68] sm:$0xf0]  ;;  %v488_v42 = vor.u32 %v487_v34, %v483_v33  ;;  %v721_v51 = vshll.u32 %v11795_v20, 16 }
  0x29   : > { %3027 = vmatpush.bf16.msra.mxu2 %v11900_v24  ;;  %1255 = vst [vmem:[#allocation2 + $0x354] sm:$0xf] %v11893_v21  ;;  %v9413_v29 = vor.u32 %v11198_v9, %v9412_v6  ;;  %v11366_v0 = vld [vmem:[%s14791_s1 + $0x128] sm:$0xff] }
  0x2a   : > { %2938 = vmatpush.bf16.msra.mxu1 %v11905_v25  ;;  %1068 = vst [vmem:[#allocation2 + $0x50] sm:$0xf] %v932_v43  ;;  %v489_v47 = vrot.slane %v488_v42, 4 }
  0x2b   : > { %2850 = vmatmul.bf16.vlgmr.msra.gmra.mxu0 %v9377_v38  ;;  %2910 = vmatmul.bf16.vlgmr.msra.gmra.mxu3 %v9809_v39  ;;  %1069 = vst [vmem:[#allocation2 + $0x74] sm:$0xf] %v935_v48  ;;  %v9844_v13 = vld [vmem:[#allocation2 + $0x3a8] sm:$0xf]  ;;  %v940_v38 = vrot.slane %v938_v62, 4  ;;  %v941_v39 = vrot.slane %v342_v23, 5 }
  0x2c   : > { %11633 = vmatpush.bf16.msrb.mxu3 %v11735_v2  ;;  %3198 = vmatpush.bf16.msrb.mxu0 %v11368_v37  ;;  %14834 = vst [vmem:[#allocation5_spill] sm:$0xff] %v11932_v53  ;;  %v11367_v2 = vld [vmem:[%s14791_s1 + $0x130] sm:$0xff]  ;;  %v11306_v14 = vld [vmem:[#allocation2 + $0x3c8] sm:$0xf0]  ;;  %v9358_v37 = vrot.slane %v340_v57, 9 }
  0x2d   : > { %3028 = vmatmul.bf16.vlgmr.msra.gmra.mxu2 %v9385_v45  ;;  %2939 = vmatmul.bf16.vlgmr.msra.gmra.mxu1 %v9381_v46  ;;  %1200 = vst [vmem:[#allocation2 + $0x14] sm:$0xf] %v932_v43  ;;  %v9845_v30 = vor.u32 %v11306_v14, %v9844_v13  ;;  %v491_v43 = vshll.u32 %v342_v23, 16  ;;  %v505_v13 = vshll.u32 %v344_v63, 16  ;;  %v509_v14 = vshrl.u32 %v344_v63, 16 }
  0x2e   : > { %14835 = vst [vmem:[#allocation6_spill] sm:$0xff] %v11939_v56  ;;  %v939_v45 = vsel %vm11803_vm4, %v9358_v37, %v938_v62 }
  0x2f   : > { %1201 = vst [vmem:[#allocation2 + $0x38] sm:$0xf] %v935_v48  ;;  %v493_v48 = vrot.slane %v491_v43, 5  ;;  %v511_v34 = vrot.slane %v509_v14, 4 }
  0x30   : > { %11634 = vmatpush.bf16.msrb.mxu3 %v11752_v5  ;;  %3199 = vmatpush.bf16.msrb.mxu0 %v11367_v2  ;;  %841 = vst [vmem:[#allocation2 + $0x4c] sm:$0xf] %v11932_v53  ;;  %v475_v5 = vshll.u32 %v340_v57, 16 }
  0x31   : > { %842 = vst [vmem:[#allocation2 + $0x70] sm:$0xf] %v11939_v56  ;;  %v9420_v15 = vld [vmem:[#allocation2 + $0x50] sm:$0xf] }
  0x32   : > { %1156 = vst [vmem:[#allocation2 + $0x10] sm:$0xf] %v11932_v53  ;;  %v11199_v17 = vld [vmem:[#allocation2 + $0x70] sm:$0xf0]  ;;  %v477_v28 = vrot.slane %v475_v5, 5 }
  0x33   : > { %1157 = vst [vmem:[#allocation2 + $0x34] sm:$0xf] %v11939_v56  ;;  %v9421_v35 = vor.u32 %v11199_v17, %v9420_v15 }
  0x34   : > { %11635 = vmatpush.bf16.msrb.mxu3 %v11773_v8  ;;  %392 = vst [vmem:[#allocation2 + $0x90] sm:$0xf] %v340_v57  ;;  %v11953_v8 = vpack.c.bf16 %v323_v60, %v323_v60  ;;  %v343_v60 = vpack.c.bf16 %v289_v50, %v289_v50  ;;  %3200 = vmatpush.bf16.msrb.mxu0 %v11366_v0  ;;  %v293_v0 = vld [vmem:[%s11761_s20 + $0x68] sm:$0xff] }
  0x35   : > { %393 = vst [vmem:[#allocation2 + $0xb4] sm:$0xf] %v341_v58 }
  0x36   : > { %1100 = vst [vmem:[#allocation2 + $0x54] sm:$0xf] %v340_v57  ;;  %v496_v6 = vshrl.u32 %v343_v60, 16  ;;  %v499_v9 = vshll.u32 %v343_v60, 16 }
  0x37   : > { %v11194_v26 = vld [vmem:[#allocation2 + $0x4c] sm:$0xf]  ;;  %1101 = vst [vmem:[#allocation2 + $0x78] sm:$0xf] %v341_v58 }
  0x38   : > { %11636 = vmatpush.bf16.msrb.mxu3 %v11793_v19  ;;  %v9414_v32 = vld [vmem:[#allocation2 + $0x6c] sm:$0xf0]  ;;  %1232 = vst [vmem:[#allocation2 + $0x18] sm:$0xf] %v340_v57  ;;  %v478_v19 = vor.u32 %v477_v28, %v474_v27  ;;  %v945_v27 = vrot.slane %v344_v63, 5 }
  0x39   : > { %v9417_v36 = vor.u32 %v11194_v26, %v9414_v32  ;;  %1233 = vst [vmem:[#allocation2 + $0x3c] sm:$0xf] %v341_v58  ;;  %v345_v26 = vpack.c.bf16 %v291_v3, %v291_v3  ;;  %v501_v32 = vrot.slane %v499_v9, 5 }
  0x3a   : > { %416 = vst [vmem:[#allocation2 + $0x3f0] sm:$0xf] %v11950_v22  ;;  %v479_v46 = vrot.slane %v478_v19, 4 }
  0x3b   : > { %417 = vst [vmem:[#allocation2 + $0x414] sm:$0xf] %v11953_v8  ;;  %2855 = vmatmul.bf16.gmra.mxu0 %v9413_v29  ;;  %2915 = vmatmul.bf16.gmra.mxu3 %v9845_v30  ;;  %v9448_v52 = vld [vmem:[#allocation2 + $0x90] sm:$0xf]  ;;  %v498_v30 = vrot.slane %v496_v6, 4 }
  0x3c   : > { %11637 = vmatpush.bf16.msrb.mxu3 %v11824_v41  ;;  %1124 = vst [vmem:[#allocation2 + $0x3b4] sm:$0xf] %v11950_v22  ;;  %v942_v41 = vsel %vm11803_vm4, %v940_v38, %v941_v39  ;;  %v11969_v49 = vsel %vm11832_vm5, %v479_v46, %v483_v33  ;;  %v11207_v2 = vld [vmem:[#allocation2 + $0xb0] sm:$0xf0]  ;;  %v507_v33 = vrot.slane %v505_v13, 5  ;;  %v515_v38 = vshll.u32 %v345_v26, 16 }
  0x3d   : > { %3033 = vmatmul.bf16.gmra.mxu2 %v9421_v35  ;;  %2944 = vmatmul.bf16.gmra.mxu1 %v9417_v36  ;;  %1125 = vst [vmem:[#allocation2 + $0x3d8] sm:$0xf] %v11953_v8  ;;  %v9359_v35 = vrot.slane %v343_v60, 9  ;;  %v948_v36 = vrot.slane %v345_v26, 5  ;;  %v502_v37 = vor.u32 %v501_v32, %v498_v30  ;;  %v712_v46 = vshrl.u32 %v11782_v16, 16 }
  0x3e   : > { %1256 = vst [vmem:[#allocation2 + $0x378] sm:$0xf] %v11950_v22  ;;  %v512_v39 = vor.u32 %v511_v34, %v507_v33 }
  0x3f   : > { %1257 = vst [vmem:[#allocation2 + $0x39c] sm:$0xf] %v11953_v8  ;;  %v946_v43 = vsel %vm11803_vm4, %v9359_v35, %v945_v27 }
  0x40   : > { %11638 = vmatpush.bf16.msrb.mxu3 %v11857_v55  ;;  %1070 = vst [vmem:[#allocation2 + $0x98] sm:$0xf] %v939_v45  ;;  %v11976_v55 = vsel %vm11832_vm5, %v489_v47, %v493_v48  ;;  %v715_v47 = vshll.u32 %v11782_v16, 16  ;;  %v513_v50 = vrot.slane %v512_v39, 4 }
  0x41   : > { %1071 = vst [vmem:[#allocation2 + $0xbc] sm:$0xf] %v942_v41  ;;  %v9880_v57 = vld [vmem:[#allocation2 + $0x3f0] sm:$0xf] }
  0x42   : > { %1334 = vst [vmem:[#allocation2 + $0x20] sm:$0xf] %v939_v45  ;;  %v11315_v58 = vld [vmem:[#allocation2 + $0x410] sm:$0xf0] }
  0x43   : > { %1335 = vst [vmem:[#allocation2 + $0x44] sm:$0xf] %v942_v41  ;;  %v9881_v61 = vor.u32 %v11315_v58, %v9880_v57 }
  0x44   : > { %14836 = vst [vmem:[#allocation7_spill] sm:$0xff] %v11969_v49  ;;  %11639 = vmatpush.bf16.msrb.mxu3 %v11884_v11  ;;  %v9449_v11 = vor.u32 %v11207_v2, %v9448_v52  ;;  %v318_v2 = vld [vmem:[%s11761_s20 + $0x130] sm:$0x3] }
  0x45   : > { %1202 = vst [vmem:[#allocation2 + $0x5c] sm:$0xf] %v939_v45  ;;  %v503_v45 = vrot.slane %v502_v37, 4 }
  0x46   : > { %14837 = vst [vmem:[#allocation8_spill] sm:$0xff] %v11976_v55 }
  0x47   : > { %1203 = vst [vmem:[#allocation2 + $0x80] sm:$0xf] %v942_v41  ;;  %v9456_v59 = vld [vmem:[#allocation2 + $0x98] sm:$0xf]  ;;  %v517_v41 = vrot.slane %v515_v38, 5 }
  0x48   : > { %843 = vst [vmem:[#allocation2 + $0x94] sm:$0xf] %v11969_v49  ;;  %11640 = vmatpush.bf16.msrb.mxu3 %v11905_v25  ;;  %v11208_v62 = vld [vmem:[#allocation2 + $0xb8] sm:$0xf0]  ;;  %v325_v25 = vld [vmem:[%s11761_s20 + $0x168] sm:$0xff] }
  0x49   : > { %844 = vst [vmem:[#allocation2 + $0xb8] sm:$0xf] %v11976_v55  ;;  %v9457_v5 = vor.u32 %v11208_v62, %v9456_v59  ;;  %v11993_v23 = vpack.c.bf16 %v325_v25, %v325_v25  ;;  %v12017_v59 = vsel %vm11832_vm5, %v503_v45, %v507_v33  ;;  %v292_v62 = vld [vmem:[%s11761_s20 + $0x60] sm:$0xff] }
  0x4a   : > { %1290 = vst [vmem:[#allocation2 + $0x1c] sm:$0xf] %v11969_v49  ;;  %v346_v25 = vpack.c.bf16 %v292_v62, %v292_v62  ;;  %v745_v62 = vshll.u32 %v11893_v21, 16 }
  0x4b   : > { %1291 = vst [vmem:[#allocation2 + $0x40] sm:$0xf] %v11976_v55  ;;  %2860 = vmatmul.bf16.gmra.mxu0 %v9449_v11  ;;  %2920 = vmatmul.bf16.gmra.mxu3 %v9881_v61  ;;  %v717_v11 = vrot.slane %v715_v47, 5  ;;  %v12021_v61 = vsel %vm11832_vm5, %v513_v50, %v517_v41 }
  0x4c   : > { %11641 = vmatpush.bf16.msra.mxu3 %v11730_v1  ;;  %1158 = vst [vmem:[#allocation2 + $0x58] sm:$0xf] %v11969_v49  ;;  %v326_v1 = vld [vmem:[%s11761_s20 + $0x170] sm:$0xff]  ;;  %v520_v26 = vshrl.u32 %v346_v25, 16 }
  0x4d   : > { %1159 = vst [vmem:[#allocation2 + $0x7c] sm:$0xf] %v11976_v55  ;;  %3038 = vmatmul.bf16.gmra.mxu2 %v9457_v5  ;;  %v11995_v29 = vpack.c.bf16 %v326_v1, %v326_v1  ;;  %v347_v1 = vpack.c.bf16 %v293_v0, %v293_v0  ;;  %v321_v0 = vld [vmem:[%s11761_s20 + $0x148] sm:$0x3] }
  0x4e   : > { %394 = vst [vmem:[#allocation2 + $0xd8] sm:$0xf] %v343_v60  ;;  %v522_v38 = vrot.slane %v520_v26, 4 }
  0x4f   : > { %v11203_v15 = vld [vmem:[#allocation2 + $0x94] sm:$0xf]  ;;  %395 = vst [vmem:[#allocation2 + $0xfc] sm:$0xf] %v344_v63  ;;  %v529_v32 = vshll.u32 %v347_v1, 16  ;;  %v533_v33 = vshrl.u32 %v347_v1, 16 }
  0x50   : > { %11642 = vmatpush.bf16.msra.mxu3 %v11747_v4  ;;  %v9450_v17 = vld [vmem:[#allocation2 + $0xb4] sm:$0xf0]  ;;  %1102 = vst [vmem:[#allocation2 + $0x9c] sm:$0xf] %v343_v60  ;;  %v947_v4 = vrot.slane %v945_v27, 4  ;;  %v523_v27 = vshll.u32 %v346_v25, 16 }
  0x51   : > { %v9453_v28 = vor.u32 %v11203_v15, %v9450_v17  ;;  %1103 = vst [vmem:[#allocation2 + $0xc0] sm:$0xf] %v344_v63  ;;  %v294_v17 = vld [vmem:[%s11761_s20 + $0x70] sm:$0x3] }
  0x52   : > { %1234 = vst [vmem:[#allocation2 + $0x60] sm:$0xf] %v343_v60  ;;  %v714_v60 = vrot.slane %v712_v46, 4  ;;  %v525_v39 = vrot.slane %v523_v27, 5  ;;  %v296_v27 = vld [vmem:[%s11761_s20 + $0x80] sm:$0xff] }
  0x53   : > { %2949 = vmatmul.bf16.gmra.mxu1 %v9453_v28  ;;  %1235 = vst [vmem:[#allocation2 + $0x84] sm:$0xf] %v344_v63  ;;  %v12024_v63 = vpack.c.bf16 %v318_v2, %v318_v2 }
  0x54   : > { %11643 = vmatpush.bf16.msra.mxu3 %v11768_v7  ;;  %418 = vst [vmem:[#allocation2 + $0x438] sm:$0xf] %v11993_v23  ;;  %v949_v7 = vsel %vm11803_vm4, %v947_v4, %v948_v36  ;;  %v718_v6 = vor.u32 %v717_v11, %v714_v60  ;;  %v348_v4 = vpack.c.bf16 %v294_v17, %v294_v17  ;;  %v952_v36 = vrot.slane %v347_v1, 5 }
  0x55   : > { %419 = vst [vmem:[#allocation2 + $0x45c] sm:$0xf] %v11995_v29  ;;  %v9484_v19 = vld [vmem:[#allocation2 + $0xd8] sm:$0xf]  ;;  %v731_v14 = vshll.u32 %v12024_v63, 16  ;;  %v526_v46 = vor.u32 %v525_v39, %v522_v38  ;;  %v12073_v17 = vpack.c.bf16 %v321_v0, %v321_v0 }
  0x56   : > { %1126 = vst [vmem:[#allocation2 + $0x3fc] sm:$0xf] %v11993_v23  ;;  %v11216_v42 = vld [vmem:[#allocation2 + $0xf8] sm:$0xf0]  ;;  %v955_v45 = vrot.slane %v348_v4, 5  ;;  %v539_v50 = vshll.u32 %v348_v4, 16 }
  0x57   : > { %1127 = vst [vmem:[#allocation2 + $0x420] sm:$0xf] %v11995_v29  ;;  %v9485_v48 = vor.u32 %v11216_v42, %v9484_v19  ;;  %v733_v30 = vrot.slane %v731_v14, 5  ;;  %v531_v42 = vrot.slane %v529_v32, 5  ;;  %v527_v2 = vrot.slane %v526_v46, 4 }
  0x58   : > { %11644 = vmatpush.bf16.msra.mxu3 %v11788_v18  ;;  %1258 = vst [vmem:[#allocation2 + $0x3c0] sm:$0xf] %v11993_v23  ;;  %v725_v18 = vshrl.u32 %v11795_v20, 16  ;;  %v541_v11 = vrot.slane %v539_v50, 5  ;;  %v755_v4 = vshll.u32 %v12073_v17, 16 }
  0x59   : > { %1259 = vst [vmem:[#allocation2 + $0x3e4] sm:$0xf] %v11995_v29 }
  0x5a   : > { %1072 = vst [vmem:[#allocation2 + $0xe0] sm:$0xf] %v946_v43  ;;  %v727_v5 = vrot.slane %v725_v18, 4 }
  0x5b   : > { %v9916_v52 = vld [vmem:[#allocation2 + $0x438] sm:$0xf]  ;;  %1073 = vst [vmem:[#allocation2 + $0x104] sm:$0xf] %v949_v7  ;;  %2865 = vmatmul.bf16.gmra.mxu0 %v9485_v48 }
  0x5c   : > { %11645 = vmatpush.bf16.msra.mxu3 %v11819_v40  ;;  %v11324_v57 = vld [vmem:[#allocation2 + $0x458] sm:$0xf0]  ;;  %1204 = vst [vmem:[#allocation2 + $0xa4] sm:$0xf] %v946_v43  ;;  %v723_v40 = vrot.slane %v721_v51, 5 }
  0x5d   : > { %v9917_v58 = vor.u32 %v11324_v57, %v9916_v52  ;;  %1205 = vst [vmem:[#allocation2 + $0xc8] sm:$0xf] %v949_v7  ;;  %v736_v57 = vshrl.u32 %v11887_v12, 16 }
  0x5e   : > { %14838 = vst [vmem:[#allocation9_spill] sm:$0xff] %v12017_v59  ;;  %v728_v13 = vor.u32 %v727_v5, %v723_v40 }
  0x5f   : > { %1336 = vst [vmem:[#allocation2 + $0x68] sm:$0xf] %v946_v43  ;;  %2925 = vmatmul.bf16.gmra.mxu3 %v9917_v58  ;;  %v535_v43 = vrot.slane %v533_v33, 4  ;;  %v739_v58 = vshll.u32 %v11887_v12, 16 }
  0x60   : > { %14839 = vst [vmem:[#allocation10_spill] sm:$0xff] %v12021_v61  ;;  %11646 = vmatpush.bf16.msra.mxu3 %v11852_v54  ;;  %v719_v54 = vrot.slane %v718_v6, 4  ;;  %v729_v28 = vrot.slane %v728_v13, 4  ;;  %v12063_v6 = vsel %vm11832_vm5, %v527_v2, %v531_v42  ;;  %v11365_v13 = vld [vmem:[%s14791_s1 + $0x120] sm:$0xff] }
  0x61   : > { %1337 = vst [vmem:[#allocation2 + $0x8c] sm:$0xf] %v949_v7  ;;  %v9492_v3 = vld [vmem:[#allocation2 + $0xe0] sm:$0xf]  ;;  %v9360_v7 = vrot.slane %v346_v25, 9  ;;  %v536_v48 = vor.u32 %v535_v43, %v531_v42  ;;  %3201 = vmatpush.bf16.msrb.mxu0 %v11365_v13 }
  0x62   : > { %845 = vst [vmem:[#allocation2 + $0xdc] sm:$0xf] %v12017_v59  ;;  %v11217_v9 = vld [vmem:[#allocation2 + $0x100] sm:$0xf0]  ;;  %v12040_v37 = vsel %vm11832_vm5, %v719_v54, %v723_v40  ;;  %v12044_v19 = vsel %vm11832_vm5, %v729_v28, %v733_v30  ;;  %v749_v40 = vshrl.u32 %v11893_v21, 16  ;;  %v747_v54 = vrot.slane %v745_v62, 5 }
  0x63   : > { %846 = vst [vmem:[#allocation2 + $0x100] sm:$0xf] %v12021_v61  ;;  %v9493_v15 = vor.u32 %v11217_v9, %v9492_v3  ;;  %v953_v18 = vsel %vm11803_vm4, %v9360_v7, %v952_v36  ;;  %v537_v60 = vrot.slane %v536_v48, 4  ;;  %v738_v9 = vrot.slane %v736_v57, 4 }
  0x64   : > { %1160 = vst [vmem:[#allocation2 + $0xa0] sm:$0xf] %v12017_v59  ;;  %11647 = vmatpush.bf16.msra.mxu3 %v11879_v10  ;;  %v751_v26 = vrot.slane %v749_v40, 4  ;;  %v757_v7 = vrot.slane %v755_v4, 5 }
  0x65   : > { %1161 = vst [vmem:[#allocation2 + $0xc4] sm:$0xf] %v12021_v61  ;;  %3043 = vmatmul.bf16.gmra.mxu2 %v9493_v15  ;;  %v12070_v14 = vsel %vm11832_vm5, %v537_v60, %v541_v11  ;;  %v295_v15 = vld [vmem:[%s11761_s20 + $0x78] sm:$0xff] }
  0x66   : > { %1292 = vst [vmem:[#allocation2 + $0x64] sm:$0xf] %v12017_v59  ;;  %v349_v30 = vpack.c.bf16 %v295_v15, %v295_v15 }
  0x67   : > { %1293 = vst [vmem:[#allocation2 + $0x88] sm:$0xf] %v12021_v61 }
  0x68   : > { %396 = vst [vmem:[#allocation2 + $0x120] sm:$0xf] %v346_v25  ;;  %11648 = vmatpush.bf16.msra.mxu3 %v11900_v24  ;;  %v954_v24 = vrot.slane %v952_v36, 4  ;;  %v544_v39 = vshrl.u32 %v349_v30, 16  ;;  %v547_v42 = vshll.u32 %v349_v30, 16  ;;  %v9361_v60 = vrot.slane %v349_v30, 9 }
  0x69   : > { %v11212_v34 = vld [vmem:[#allocation2 + $0xdc] sm:$0xf]  ;;  %397 = vst [vmem:[#allocation2 + $0x144] sm:$0xf] %v347_v1 }
  0x6a   : > { %v9486_v35 = vld [vmem:[#allocation2 + $0xfc] sm:$0xf0]  ;;  %1104 = vst [vmem:[#allocation2 + $0xe4] sm:$0xf] %v346_v25  ;;  %v956_v52 = vsel %vm11803_vm4, %v954_v24, %v955_v45 }
  0x6b   : > { %v9489_v10 = vor.u32 %v11212_v34, %v9486_v35  ;;  %1105 = vst [vmem:[#allocation2 + $0x108] sm:$0xf] %v347_v1  ;;  %v350_v34 = vpack.c.bf16 %v296_v27, %v296_v27  ;;  %v752_v35 = vor.u32 %v751_v26, %v747_v54  ;;  %v763_v26 = vshll.u32 %v11950_v22, 16 }
  0x6c   : > { %14840 = vst [vmem:[#allocation11_spill] sm:$0xff] %v12040_v37 }
  0x6d   : > { %1236 = vst [vmem:[#allocation2 + $0xa8] sm:$0xf] %v346_v25  ;;  %2954 = vmatmul.bf16.gmra.mxu1 %v9489_v10  ;;  %v297_v10 = vld [vmem:[%s11761_s20 + $0x88] sm:$0x3]  ;;  %v753_v43 = vrot.slane %v752_v35, 4  ;;  %v553_v24 = vshll.u32 %v350_v34, 16 }
  0x6e   : > { %14841 = vst [vmem:[#allocation12_spill] sm:$0xff] %v12044_v19  ;;  %v557_v45 = vshrl.u32 %v350_v34, 16  ;;  %v959_v48 = vrot.slane %v350_v34, 5 }
  0x6f   : > { %1237 = vst [vmem:[#allocation2 + $0xcc] sm:$0xf] %v347_v1  ;;  %v9520_v41 = vld [vmem:[#allocation2 + $0x120] sm:$0xf]  ;;  %v741_v1 = vrot.slane %v739_v58, 5  ;;  %v12090_v2 = vsel %vm11832_vm5, %v753_v43, %v757_v7  ;;  %v555_v57 = vrot.slane %v553_v24, 5 }
  0x70   : > { %863 = vst [vmem:[#allocation2 + $0x364] sm:$0xf] %v12040_v37  ;;  %v11225_v47 = vld [vmem:[#allocation2 + $0x140] sm:$0xf0]  ;;  %v559_v58 = vrot.slane %v557_v45, 4  ;;  %v961_v11 = vrot.slane %v959_v48, 4 }
  0x71   : > { %864 = vst [vmem:[#allocation2 + $0x388] sm:$0xf] %v12044_v19  ;;  %v9521_v51 = vor.u32 %v11225_v47, %v9520_v41  ;;  %v742_v32 = vor.u32 %v741_v1, %v738_v9  ;;  %v351_v47 = vpack.c.bf16 %v297_v10, %v297_v10  ;;  %v960_v1 = vsel %vm11803_vm4, %v9361_v60, %v959_v48  ;;  %v299_v45 = vld [vmem:[%s11761_s20 + $0x98] sm:$0xff]  ;;  %v300_v60 = vld [vmem:[%s11761_s20 + $0xa0] sm:$0x3] }
  0x72   : > { %1178 = vst [vmem:[#allocation2 + $0x328] sm:$0xf] %v12040_v37 }
  0x73   : > { %1179 = vst [vmem:[#allocation2 + $0x34c] sm:$0xf] %v12044_v19  ;;  %2870 = vmatmul.bf16.gmra.mxu0 %v9521_v51  ;;  %v743_v38 = vrot.slane %v742_v32, 4  ;;  %v962_v62 = vrot.slane %v351_v47, 5  ;;  %v773_v32 = vshrl.u32 %v11953_v8, 16 }
  0x74   : > { %1310 = vst [vmem:[#allocation2 + $0x2ec] sm:$0xf] %v12040_v37 }
  0x75   : > { %1311 = vst [vmem:[#allocation2 + $0x310] sm:$0xf] %v12044_v19  ;;  %v12086_v51 = vsel %vm11832_vm5, %v743_v38, %v747_v54  ;;  %v963_v13 = vsel %vm11803_vm4, %v961_v11, %v962_v62  ;;  %v760_v54 = vshrl.u32 %v11950_v22, 16  ;;  %v765_v38 = vrot.slane %v763_v26, 5 }
  0x76   : > { %1074 = vst [vmem:[#allocation2 + $0x128] sm:$0xf] %v953_v18  ;;  %v775_v24 = vrot.slane %v773_v32, 4 }
  0x77   : > { %v11293_v5 = vld [vmem:[#allocation2 + $0x364] sm:$0xf]  ;;  %1075 = vst [vmem:[#allocation2 + $0x14c] sm:$0xf] %v956_v52  ;;  %v762_v10 = vrot.slane %v760_v54, 4 }
  0x78   : > { %v9810_v3 = vld [vmem:[#allocation2 + $0x384] sm:$0xf0]  ;;  %1206 = vst [vmem:[#allocation2 + $0xec] sm:$0xf] %v953_v18 }
  0x79   : > { %v9813_v25 = vor.u32 %v11293_v5, %v9810_v3  ;;  %1207 = vst [vmem:[#allocation2 + $0x110] sm:$0xf] %v956_v52  ;;  %v560_v3 = vor.u32 %v559_v58, %v555_v57  ;;  %v11364_v58 = vld [vmem:[%s14791_s1 + $0x118] sm:$0xff] }
  0x7a   : > { %14842 = vst [vmem:[#allocation13_spill] sm:$0xff] %v12063_v6  ;;  %3202 = vmatpush.bf16.msrb.mxu0 %v11364_v58  ;;  %v797_v58 = vshrl.u32 %v11995_v29, 16 }
  0x7b   : > { %1338 = vst [vmem:[#allocation2 + $0xb0] sm:$0xf] %v953_v18  ;;  %2999 = vmatmul.bf16.vlgmr.msrb.gmra.mxu3 %v9813_v25  ;;  %v546_v18 = vrot.slane %v544_v39, 4  ;;  %v563_v25 = vshll.u32 %v351_v47, 16  ;;  %v561_v27 = vrot.slane %v560_v3, 4  ;;  %v766_v47 = vor.u32 %v765_v38, %v762_v10 }
  0x7c   : > { %14843 = vst [vmem:[#allocation14_spill] sm:$0xff] %v12070_v14 }
  0x7d   : > { %1339 = vst [vmem:[#allocation2 + $0xd4] sm:$0xf] %v956_v52  ;;  %v9528_v28 = vld [vmem:[#allocation2 + $0x128] sm:$0xf]  ;;  %v549_v52 = vrot.slane %v547_v42, 5  ;;  %v298_v42 = vld [vmem:[%s11761_s20 + $0x90] sm:$0xff] }
  0x7e   : > { %847 = vst [vmem:[#allocation2 + $0x124] sm:$0xf] %v12063_v6  ;;  %v11226_v33 = vld [vmem:[#allocation2 + $0x148] sm:$0xf0]  ;;  %v767_v11 = vrot.slane %v766_v47, 4 }
  0x7f   : > { %848 = vst [vmem:[#allocation2 + $0x148] sm:$0xf] %v12070_v14  ;;  %v9529_v36 = vor.u32 %v11226_v33, %v9528_v28  ;;  %v550_v5 = vor.u32 %v549_v52, %v546_v18  ;;  %v565_v28 = vrot.slane %v563_v25, 5 }
  0x80   : > { %1162 = vst [vmem:[#allocation2 + $0xe8] sm:$0xf] %v12063_v6 }
  0x81   : > { %1163 = vst [vmem:[#allocation2 + $0x10c] sm:$0xf] %v12070_v14  ;;  %3048 = vmatmul.bf16.gmra.mxu2 %v9529_v36  ;;  %v551_v15 = vrot.slane %v550_v5, 4  ;;  %v12113_v39 = vsel %vm11832_vm5, %v561_v27, %v565_v28 }
  0x82   : > { %1294 = vst [vmem:[#allocation2 + $0xac] sm:$0xf] %v12063_v6 }
  0x83   : > { %1295 = vst [vmem:[#allocation2 + $0xd0] sm:$0xf] %v12070_v14  ;;  %v12109_v36 = vsel %vm11832_vm5, %v551_v15, %v555_v57 }
  0x84   : > { %398 = vst [vmem:[#allocation2 + $0x168] sm:$0xf] %v349_v30 }
  0x85   : > { %v11221_v41 = vld [vmem:[#allocation2 + $0x124] sm:$0xf]  ;;  %399 = vst [vmem:[#allocation2 + $0x18c] sm:$0xf] %v350_v34 }
  0x86   : > { %v9522_v46 = vld [vmem:[#allocation2 + $0x144] sm:$0xf0]  ;;  %1106 = vst [vmem:[#allocation2 + $0x12c] sm:$0xf] %v349_v30 }
  0x87   : > { %v9525_v50 = vor.u32 %v11221_v41, %v9522_v46  ;;  %1107 = vst [vmem:[#allocation2 + $0x150] sm:$0xf] %v350_v34  ;;  %v352_v46 = vpack.c.bf16 %v298_v42, %v298_v42 }
  0x88   : > { %14844 = vst [vmem:[#allocation15_spill] sm:$0xff] %v12086_v51 }
  0x89   : > { %1238 = vst [vmem:[#allocation2 + $0xf0] sm:$0xf] %v349_v30  ;;  %2959 = vmatmul.bf16.gmra.mxu1 %v9525_v50  ;;  %v769_v30 = vshll.u32 %v11953_v8, 16  ;;  %v353_v50 = vpack.c.bf16 %v299_v45, %v299_v45  ;;  %v568_v62 = vshrl.u32 %v352_v46, 16 }
  0x8a   : > { %14845 = vst [vmem:[#allocation16_spill] sm:$0xff] %v12090_v2 }
  0x8b   : > { %1239 = vst [vmem:[#allocation2 + $0x114] sm:$0xf] %v350_v34  ;;  %v9556_v40 = vld [vmem:[#allocation2 + $0x168] sm:$0xf]  ;;  %v324_v34 = vld [vmem:[%s11761_s20 + $0x160] sm:$0x3] }
  0x8c   : > { %865 = vst [vmem:[#allocation2 + $0x3ac] sm:$0xf] %v12086_v51  ;;  %v11234_v0 = vld [vmem:[#allocation2 + $0x188] sm:$0xf0]  ;;  %v12116_v43 = vpack.c.bf16 %v324_v34, %v324_v34  ;;  %v771_v7 = vrot.slane %v769_v30, 5  ;;  %v577_v3 = vshll.u32 %v353_v50, 16 }
  0x8d   : > { %866 = vst [vmem:[#allocation2 + $0x3d0] sm:$0xf] %v12090_v2  ;;  %v9557_v9 = vor.u32 %v11234_v0, %v9556_v40  ;;  %v571_v40 = vshll.u32 %v352_v46, 16  ;;  %v581_v25 = vshrl.u32 %v353_v50, 16  ;;  %v966_v15 = vrot.slane %v353_v50, 5 }
  0x8e   : > { %1180 = vst [vmem:[#allocation2 + $0x370] sm:$0xf] %v12086_v51  ;;  %v776_v18 = vor.u32 %v775_v24, %v771_v7  ;;  %v779_v52 = vshll.u32 %v12116_v43, 16  ;;  %v12132_v26 = vsel %vm11832_vm5, %v767_v11, %v771_v7  ;;  %v570_v27 = vrot.slane %v568_v62, 4  ;;  %v327_v11 = vld [vmem:[%s11761_s20 + $0x178] sm:$0x3] }
  0x8f   : > { %1181 = vst [vmem:[#allocation2 + $0x394] sm:$0xf] %v12090_v2  ;;  %2875 = vmatmul.bf16.gmra.mxu0 %v9557_v9  ;;  %v573_v28 = vrot.slane %v571_v40, 5  ;;  %v579_v32 = vrot.slane %v577_v3, 5  ;;  %v9362_v34 = vrot.slane %v352_v46, 9 }
  0x90   : > { %1312 = vst [vmem:[#allocation2 + $0x334] sm:$0xf] %v12086_v51  ;;  %v777_v5 = vrot.slane %v776_v18, 4  ;;  %v781_v0 = vrot.slane %v779_v52, 5 }
  0x91   : > { %1313 = vst [vmem:[#allocation2 + $0x358] sm:$0xf] %v12090_v2  ;;  %v574_v38 = vor.u32 %v573_v28, %v570_v27  ;;  %v1022_v2 = vrot.slane %v11953_v8, 5  ;;  %v9370_v8 = vrot.slane %v11950_v22, 9 }
  0x92   : > { %1076 = vst [vmem:[#allocation2 + $0x170] sm:$0xf] %v960_v1  ;;  %v12136_v30 = vsel %vm11832_vm5, %v777_v5, %v781_v0 }
  0x93   : > { %v11302_v33 = vld [vmem:[#allocation2 + $0x3ac] sm:$0xf]  ;;  %1077 = vst [vmem:[#allocation2 + $0x194] sm:$0xf] %v963_v13  ;;  %v575_v47 = vrot.slane %v574_v38, 4  ;;  %v1023_v22 = vsel %vm11803_vm4, %v9370_v8, %v1022_v2  ;;  %v11361_v8 = vld [vmem:[%s14791_s1 + $0x100] sm:$0xff] }
  0x94   : > { %v9846_v35 = vld [vmem:[#allocation2 + $0x3cc] sm:$0xf0]  ;;  %1208 = vst [vmem:[#allocation2 + $0x134] sm:$0xf] %v960_v1  ;;  %v12173_v38 = vld [vmem:[%s14792_s2] ss:$0 sm:$0xff] }
  0x95   : > { %v9849_v4 = vor.u32 %v11302_v33, %v9846_v35  ;;  %1209 = vst [vmem:[#allocation2 + $0x158] sm:$0xf] %v963_v13  ;;  %v583_v33 = vrot.slane %v581_v25, 4  ;;  %v968_v35 = vrot.slane %v966_v15, 4  ;;  %v12155_v5 = vsel %vm11832_vm5, %v575_v47, %v579_v32 }
  0x96   : > { %14846 = vst [vmem:[#allocation17_spill] sm:$0xff] %v12109_v36 }
  0x97   : > { %1340 = vst [vmem:[#allocation2 + $0xf8] sm:$0xf] %v960_v1  ;;  %3004 = vmatmul.bf16.gmra.mxu3 %v9849_v4  ;;  %v584_v7 = vor.u32 %v583_v33, %v579_v32 }
  0x98   : > { %14847 = vst [vmem:[#allocation18_spill] sm:$0xff] %v12113_v39 }
  0x99   : > { %1341 = vst [vmem:[#allocation2 + $0x11c] sm:$0xf] %v963_v13  ;;  %v9564_v41 = vld [vmem:[#allocation2 + $0x170] sm:$0xf]  ;;  %v354_v13 = vpack.c.bf16 %v300_v60, %v300_v60  ;;  %v585_v18 = vrot.slane %v584_v7, 4 }
  0x9a   : > { %849 = vst [vmem:[#allocation2 + $0x16c] sm:$0xf] %v12109_v36  ;;  %v11235_v48 = vld [vmem:[#allocation2 + $0x190] sm:$0xf0] }
  0x9b   : > { %850 = vst [vmem:[#allocation2 + $0x190] sm:$0xf] %v12113_v39  ;;  %v9565_v57 = vor.u32 %v11235_v48, %v9564_v41  ;;  %v969_v4 = vrot.slane %v354_v13, 5  ;;  %v587_v24 = vshll.u32 %v354_v13, 16  ;;  %v967_v41 = vsel %vm11803_vm4, %v9362_v34, %v966_v15 }
  0x9c   : > { %1164 = vst [vmem:[#allocation2 + $0x130] sm:$0xf] %v12109_v36  ;;  %v784_v48 = vshrl.u32 %v11993_v23, 16  ;;  %v799_v15 = vrot.slane %v797_v58, 4 }
  0x9d   : > { %1165 = vst [vmem:[#allocation2 + $0x154] sm:$0xf] %v12113_v39  ;;  %3053 = vmatmul.bf16.gmra.mxu2 %v9565_v57  ;;  %v589_v52 = vrot.slane %v587_v24, 5  ;;  %v793_v57 = vshll.u32 %v11995_v29, 16 }
  0x9e   : > { %1296 = vst [vmem:[#allocation2 + $0xf4] sm:$0xf] %v12109_v36  ;;  %v786_v0 = vrot.slane %v784_v48, 4  ;;  %v11210_v36 = vld [vmem:[#allocation2 + $0xc8] sm:$0xf0] }
  0x9f   : > { %1297 = vst [vmem:[#allocation2 + $0x118] sm:$0xf] %v12113_v39  ;;  %v12159_v25 = vsel %vm11832_vm5, %v585_v18, %v589_v52  ;;  %v795_v13 = vrot.slane %v793_v57, 5 }
  0xa0   : > { %400 = vst [vmem:[#allocation2 + $0x1b0] sm:$0xf] %v352_v46 }
  0xa1   : > { %v11230_v9 = vld [vmem:[#allocation2 + $0x16c] sm:$0xf]  ;;  %401 = vst [vmem:[#allocation2 + $0x1d4] sm:$0xf] %v353_v50 }
  0xa2   : > { %v9558_v1 = vld [vmem:[#allocation2 + $0x18c] sm:$0xf0]  ;;  %1108 = vst [vmem:[#allocation2 + $0x174] sm:$0xf] %v352_v46 }
  0xa3   : > { %v9561_v54 = vor.u32 %v11230_v9, %v9558_v1  ;;  %1109 = vst [vmem:[#allocation2 + $0x198] sm:$0xf] %v353_v50  ;;  %v301_v9 = vld [vmem:[%s11761_s20 + $0xa8] sm:$0xff]  ;;  %v12162_v1 = vpack.c.bf16 %v327_v11, %v327_v11 }
  0xa4   : > { %14848 = vst [vmem:[#allocation19_spill] sm:$0xff] %v12132_v26  ;;  %v355_v28 = vpack.c.bf16 %v301_v9, %v301_v9 }
  0xa5   : > { %1240 = vst [vmem:[#allocation2 + $0x138] sm:$0xf] %v352_v46  ;;  %2964 = vmatmul.bf16.gmra.mxu1 %v9561_v54  ;;  %v970_v46 = vsel %vm11803_vm4, %v968_v35, %v969_v4  ;;  %v302_v54 = vld [vmem:[%s11761_s20 + $0xb0] sm:$0xff]  ;;  %v800_v35 = vor.u32 %v799_v15, %v795_v13  ;;  %v803_v4 = vshll.u32 %v12162_v1, 16 }
  0xa6   : > { %14849 = vst [vmem:[#allocation20_spill] sm:$0xff] %v12136_v30  ;;  %v356_v34 = vpack.c.bf16 %v302_v54, %v302_v54 }
  0xa7   : > { %1241 = vst [vmem:[#allocation2 + $0x15c] sm:$0xf] %v353_v50  ;;  %v9592_v10 = vld [vmem:[#allocation2 + $0x1b0] sm:$0xf]  ;;  %v787_v50 = vshll.u32 %v11993_v23, 16  ;;  %v801_v47 = vrot.slane %v800_v35, 4 }
  0xa8   : > { %867 = vst [vmem:[#allocation2 + $0x3f4] sm:$0xf] %v12132_v26  ;;  %v11243_v42 = vld [vmem:[#allocation2 + $0x1d0] sm:$0xf0]  ;;  %v2851_v7 = vpop.f32.mrf.mxu0  ;;  %v805_v48 = vrot.slane %v803_v4, 5  ;;  %v605_v18 = vshrl.u32 %v356_v34, 16 }
  0xa9   : > { %868 = vst [vmem:[#allocation2 + $0x418] sm:$0xf] %v12136_v30  ;;  %v9593_v45 = vor.u32 %v11243_v42, %v9592_v10  ;;  %v789_v3 = vrot.slane %v787_v50, 5  ;;  %v303_v42 = vld [vmem:[%s11761_s20 + $0xb8] sm:$0x3]  ;;  %v601_v50 = vshll.u32 %v356_v34, 16 }
  0xaa   : > { %1182 = vst [vmem:[#allocation2 + $0x3b8] sm:$0xf] %v12132_v26  ;;  %v2940_v52 = vpop.f32.mrf.mxu1  ;;  %v357_v11 = vpack.c.bf16 %v303_v42, %v303_v42  ;;  %v12187_v15 = vsel %vm11832_vm5, %v801_v47, %v805_v48 }
  0xab   : > { %1183 = vst [vmem:[#allocation2 + $0x3dc] sm:$0xf] %v12136_v30  ;;  %2880 = vmatmul.bf16.gmra.mxu0 %v9593_v45  ;;  %v790_v32 = vor.u32 %v789_v3, %v786_v0  ;;  %v592_v45 = vshrl.u32 %v355_v28, 16  ;;  %v603_v54 = vrot.slane %v601_v50, 5 }
  0xac   : > { %1314 = vst [vmem:[#allocation2 + $0x37c] sm:$0xf] %v12132_v26  ;;  %v976_v35 = vrot.slane %v357_v11, 5 }
  0xad   : > { %1315 = vst [vmem:[#allocation2 + $0x3a0] sm:$0xf] %v12136_v30  ;;  %v791_v24 = vrot.slane %v790_v32, 4  ;;  %v594_v3 = vrot.slane %v592_v45, 4  ;;  %v9363_v32 = vrot.slane %v355_v28, 9 }
  0xae   : > { %1078 = vst [vmem:[#allocation2 + $0x1b8] sm:$0xf] %v967_v41 }
  0xaf   : > { %v11311_v60 = vld [vmem:[#allocation2 + $0x3f4] sm:$0xf]  ;;  %1079 = vst [vmem:[#allocation2 + $0x1dc] sm:$0xf] %v970_v46  ;;  %v12183_v0 = vsel %vm11832_vm5, %v791_v24, %v795_v13 }
  0xb0   : > { %v9882_v62 = vld [vmem:[#allocation2 + $0x414] sm:$0xf0]  ;;  %1210 = vst [vmem:[#allocation2 + $0x17c] sm:$0xf] %v967_v41 }
  0xb1   : > { %v9885_v40 = vor.u32 %v11311_v60, %v9882_v62  ;;  %1211 = vst [vmem:[#allocation2 + $0x1a0] sm:$0xf] %v970_v46  ;;  %v973_v62 = vrot.slane %v356_v34, 5 }
  0xb2   : > { %14850 = vst [vmem:[#allocation21_spill] sm:$0xff] %v12155_v5 }
  0xb3   : > { %1342 = vst [vmem:[#allocation2 + $0x140] sm:$0xf] %v967_v41  ;;  %3009 = vmatmul.bf16.gmra.mxu3 %v9885_v40  ;;  %v595_v41 = vshll.u32 %v355_v28, 16 }
  0xb4   : > { %14851 = vst [vmem:[#allocation22_spill] sm:$0xff] %v12159_v25 }
  0xb5   : > { %1343 = vst [vmem:[#allocation2 + $0x164] sm:$0xf] %v970_v46  ;;  %v9600_v27 = vld [vmem:[#allocation2 + $0x1b8] sm:$0xf]  ;;  %v2852_v46 = vadd.f32 %v12173_v38, %v2851_v7  ;;  %v597_v9 = vrot.slane %v595_v41, 5  ;;  %v611_v7 = vshll.u32 %v357_v11, 16 }
  0xb6   : > { %851 = vst [vmem:[#allocation2 + $0x1b4] sm:$0xf] %v12155_v5  ;;  %v11244_v33 = vld [vmem:[#allocation2 + $0x1d8] sm:$0xf0] }
  0xb7   : > { %852 = vst [vmem:[#allocation2 + $0x1d8] sm:$0xf] %v12159_v25  ;;  %v9601_v10 = vor.u32 %v11244_v33, %v9600_v27  ;;  %v12179_v58 = vadd.f32 %v2940_v52, %v2852_v46  ;;  %v607_v27 = vrot.slane %v605_v18, 4  ;;  %v975_v33 = vrot.slane %v973_v62, 4  ;;  %v305_v52 = vld [vmem:[%s11761_s20 + $0xc8] sm:$0xff] }
  0xb8   : > { %1166 = vst [vmem:[#allocation2 + $0x178] sm:$0xf] %v12155_v5  ;;  %v598_v13 = vor.u32 %v597_v9, %v594_v3  ;;  %v613_v46 = vrot.slane %v611_v7, 5  ;;  %v359_v3 = vpack.c.bf16 %v305_v52, %v305_v52  ;;  %v12231_v7 = vpop.f32.mrf.mxu1 }
  0xb9   : > { %1167 = vst [vmem:[#allocation2 + $0x19c] sm:$0xf] %v12159_v25  ;;  %3058 = vmatmul.bf16.gmra.mxu2 %v9601_v10  ;;  %v608_v42 = vor.u32 %v607_v27, %v603_v54 }
  0xba   : > { %1298 = vst [vmem:[#allocation2 + $0x13c] sm:$0xf] %v12155_v5  ;;  %v599_v45 = vrot.slane %v598_v13, 4  ;;  %v11359_v13 = vld [vmem:[%s14791_s1 + $0xf0] sm:$0xff] }
  0xbb   : > { %1299 = vst [vmem:[#allocation2 + $0x160] sm:$0xf] %v12159_v25  ;;  %v609_v41 = vrot.slane %v608_v42, 4  ;;  %v12229_v42 = vpop.f32.mrf.mxu0 }
  0xbc   : > { %402 = vst [vmem:[#allocation2 + $0x1f8] sm:$0xf] %v355_v28  ;;  %v12201_v18 = vsel %vm11832_vm5, %v599_v45, %v603_v54 }
  0xbd   : > { %v11239_v57 = vld [vmem:[#allocation2 + $0x1b4] sm:$0xf]  ;;  %403 = vst [vmem:[#allocation2 + $0x21c] sm:$0xf] %v356_v34  ;;  %v12212_v11 = vsel %vm11832_vm5, %v609_v41, %v613_v46  ;;  %v625_v46 = vshll.u32 %v359_v3, 16 }
  0xbe   : > { %v9594_v60 = vld [vmem:[#allocation2 + $0x1d4] sm:$0xf0]  ;;  %1110 = vst [vmem:[#allocation2 + $0x1bc] sm:$0xf] %v355_v28 }
  0xbf   : > { %v9597_v40 = vor.u32 %v11239_v57, %v9594_v60  ;;  %1111 = vst [vmem:[#allocation2 + $0x1e0] sm:$0xf] %v356_v34  ;;  %v11360_v57 = vld [vmem:[%s14791_s1 + $0xf8] sm:$0xff]  ;;  %v11363_v60 = vld [vmem:[%s14791_s1 + $0x110] sm:$0xff] }
  0xc0   : > { %14852 = vst [vmem:[#allocation23_spill] sm:$0xff] %v12183_v0  ;;  %3203 = vmatpush.bf16.msrb.mxu0 %v11363_v60  ;;  %3109 = vmatpush.bf16.msrb.mxu3 %v11360_v57 }
  0xc1   : > { %1242 = vst [vmem:[#allocation2 + $0x180] sm:$0xf] %v355_v28  ;;  %2969 = vmatmul.bf16.gmra.mxu1 %v9597_v40  ;;  %v977_v28 = vsel %vm11803_vm4, %v975_v33, %v976_v35  ;;  %v306_v40 = vld [vmem:[%s11761_s20 + $0xd0] sm:$0x3]  ;;  %v980_v33 = vrot.slane %v359_v3, 5 }
  0xc2   : > { %14853 = vst [vmem:[#allocation24_spill] sm:$0xff] %v12187_v15 }
  0xc3   : > { %1243 = vst [vmem:[#allocation2 + $0x1a4] sm:$0xf] %v356_v34  ;;  %v9628_v4 = vld [vmem:[#allocation2 + $0x1f8] sm:$0xf]  ;;  %v974_v34 = vsel %vm11803_vm4, %v9363_v32, %v973_v62  ;;  %v304_v62 = vld [vmem:[%s11761_s20 + $0xc0] sm:$0xff]  ;;  %v12219_v32 = vpack.c.bf16 %v306_v40, %v306_v40  ;;  %v982_v45 = vrot.slane %v980_v33, 4 }
  0xc4   : > { %869 = vst [vmem:[#allocation2 + $0x43c] sm:$0xf] %v12183_v0  ;;  %v11252_v10 = vld [vmem:[#allocation2 + $0x218] sm:$0xf0]  ;;  %v358_v54 = vpack.c.bf16 %v304_v62, %v304_v62  ;;  %3110 = vmatpush.bf16.msrb.mxu3 %v11359_v13  ;;  %v2856_v13 = vpop.f32.mrf.mxu0 }
  0xc5   : > { %870 = vst [vmem:[#allocation2 + $0x460] sm:$0xf] %v12187_v15  ;;  %v9629_v24 = vor.u32 %v11252_v10, %v9628_v4  ;;  %v3029_v4 = vpop.f32.mrf.mxu2  ;;  %v983_v41 = vrot.slane %v12219_v32, 5 }
  0xc6   : > { %1184 = vst [vmem:[#allocation2 + $0x400] sm:$0xf] %v12183_v0  ;;  %v12227_v10 = vadd.f32 %v3029_v4, %v12179_v58 }
  0xc7   : > { %1185 = vst [vmem:[#allocation2 + $0x424] sm:$0xf] %v12187_v15  ;;  %2885 = vmatmul.bf16.gmra.mxu0 %v9629_v24  ;;  %v9364_v24 = vrot.slane %v358_v54, 9  ;;  %v984_v40 = vsel %vm11803_vm4, %v982_v45, %v983_v41  ;;  %v2945_v45 = vpop.f32.mrf.mxu1 }
  0xc8   : > { %1316 = vst [vmem:[#allocation2 + $0x3c4] sm:$0xf] %v12183_v0 }
  0xc9   : > { %1317 = vst [vmem:[#allocation2 + $0x3e8] sm:$0xf] %v12187_v15  ;;  %v981_v57 = vsel %vm11803_vm4, %v9364_v24, %v980_v33  ;;  %v2857_v24 = vadd.f32 %v12173_v38, %v2856_v13 }
  0xca   : > { %1080 = vst [vmem:[#allocation2 + $0x200] sm:$0xf] %v974_v34 }
  0xcb   : > { %v11320_v47 = vld [vmem:[#allocation2 + $0x43c] sm:$0xf]  ;;  %1081 = vst [vmem:[#allocation2 + $0x224] sm:$0xf] %v977_v28 }
  0xcc   : > { %v9918_v48 = vld [vmem:[#allocation2 + $0x45c] sm:$0xf0]  ;;  %1212 = vst [vmem:[#allocation2 + $0x1c4] sm:$0xf] %v974_v34 }
  0xcd   : > { %v9921_v50 = vor.u32 %v11320_v47, %v9918_v48  ;;  %1213 = vst [vmem:[#allocation2 + $0x1e8] sm:$0xf] %v977_v28  ;;  %v629_v47 = vshrl.u32 %v359_v3, 16 }
  0xce   : > { %14854 = vst [vmem:[#allocation25_spill] sm:$0xff] %v12201_v18 }
  0xcf   : > { %1344 = vst [vmem:[#allocation2 + $0x188] sm:$0xf] %v974_v34  ;;  %3014 = vmatmul.bf16.gmra.mxu3 %v9921_v50  ;;  %v616_v34 = vshrl.u32 %v358_v54, 16  ;;  %v1008_v50 = vrot.slane %v11795_v20, 5  ;;  %v1011_v20 = vrot.slane %v12024_v63, 5  ;;  %v2946_v63 = vadd.f32 %v2945_v45, %v2857_v24 }
  0xd0   : > { %14855 = vst [vmem:[#allocation26_spill] sm:$0xff] %v12212_v11 }
  0xd1   : > { %1345 = vst [vmem:[#allocation2 + $0x1ac] sm:$0xf] %v977_v28  ;;  %v9636_v9 = vld [vmem:[#allocation2 + $0x200] sm:$0xf]  ;;  %v619_v28 = vshll.u32 %v358_v54, 16  ;;  %v618_v60 = vrot.slane %v616_v34, 4 }
  0xd2   : > { %853 = vst [vmem:[#allocation2 + $0x1fc] sm:$0xf] %v12201_v18  ;;  %v11253_v27 = vld [vmem:[#allocation2 + $0x220] sm:$0xf0]  ;;  %v1010_v4 = vrot.slane %v1008_v50, 4 }
  0xd3   : > { %854 = vst [vmem:[#allocation2 + $0x220] sm:$0xf] %v12212_v11  ;;  %v9637_v35 = vor.u32 %v11253_v27, %v9636_v9  ;;  %v621_v62 = vrot.slane %v619_v28, 5  ;;  %v627_v9 = vrot.slane %v625_v46, 5  ;;  %v631_v27 = vrot.slane %v629_v47, 4 }
  0xd4   : > { %1168 = vst [vmem:[#allocation2 + $0x1c0] sm:$0xf] %v12201_v18  ;;  %v635_v28 = vshll.u32 %v12219_v32, 16  ;;  %v1012_v46 = vsel %vm11803_vm4, %v1010_v4, %v1011_v20  ;;  %v307_v4 = vld [vmem:[%s11761_s20 + $0xd8] sm:$0xff]  ;;  %v309_v20 = vld [vmem:[%s11761_s20 + $0xe8] sm:$0x3] }
  0xd5   : > { %1169 = vst [vmem:[#allocation2 + $0x1e4] sm:$0xf] %v12212_v11  ;;  %3063 = vmatmul.bf16.gmra.mxu2 %v9637_v35  ;;  %v9368_v35 = vrot.slane %v11782_v16, 9  ;;  %v622_v33 = vor.u32 %v621_v62, %v618_v60  ;;  %v632_v34 = vor.u32 %v631_v27, %v627_v9  ;;  %v308_v27 = vld [vmem:[%s11761_s20 + $0xe0] sm:$0xff] }
  0xd6   : > { %1300 = vst [vmem:[#allocation2 + $0x184] sm:$0xf] %v12201_v18  ;;  %v362_v13 = vpack.c.bf16 %v308_v27, %v308_v27 }
  0xd7   : > { %1301 = vst [vmem:[#allocation2 + $0x1a8] sm:$0xf] %v12212_v11  ;;  %v1009_v16 = vsel %vm11803_vm4, %v9368_v35, %v1008_v50  ;;  %v623_v47 = vrot.slane %v622_v33, 4  ;;  %v633_v32 = vrot.slane %v632_v34, 4  ;;  %v361_v33 = vpack.c.bf16 %v307_v4, %v307_v4 }
  0xd8   : > { %404 = vst [vmem:[#allocation2 + $0x240] sm:$0xf] %v358_v54  ;;  %v987_v34 = vrot.slane %v362_v13, 5  ;;  %v653_v4 = vshrl.u32 %v362_v13, 16  ;;  %v9371_v11 = vrot.slane %v11993_v23, 9  ;;  %v11378_v23 = vld [vmem:[%s14791_s1 + $0x188] sm:$0xff] }
  0xd9   : > { %v11248_v48 = vld [vmem:[#allocation2 + $0x1fc] sm:$0xf]  ;;  %405 = vst [vmem:[#allocation2 + $0x264] sm:$0xf] %v359_v3 }
  0xda   : > { %v9630_v58 = vld [vmem:[#allocation2 + $0x21c] sm:$0xf0]  ;;  %1112 = vst [vmem:[#allocation2 + $0x204] sm:$0xf] %v358_v54  ;;  %v655_v30 = vrot.slane %v653_v4, 4 }
  0xdb   : > { %v9633_v52 = vor.u32 %v11248_v48, %v9630_v58  ;;  %1113 = vst [vmem:[#allocation2 + $0x228] sm:$0xf] %v359_v3  ;;  %v12250_v58 = vpop.f32.mrf.mxu2 }
  0xdc   : > { %1244 = vst [vmem:[#allocation2 + $0x1c8] sm:$0xf] %v358_v54 }
  0xdd   : > { %2974 = vmatmul.bf16.gmra.mxu1 %v9633_v52  ;;  %1245 = vst [vmem:[#allocation2 + $0x1ec] sm:$0xf] %v359_v3  ;;  %v12246_v3 = vpop.f32.mrf.mxu3  ;;  %v637_v52 = vrot.slane %v635_v28, 5 }
  0xde   : > { %1082 = vst [vmem:[#allocation2 + $0x248] sm:$0xf] %v981_v57 }
  0xdf   : > { %v9664_v48 = vld [vmem:[#allocation2 + $0x240] sm:$0xf]  ;;  %1083 = vst [vmem:[#allocation2 + $0x26c] sm:$0xf] %v984_v40  ;;  %v12262_v35 = vsel %vm11832_vm5, %v633_v32, %v637_v52  ;;  %v12285_v32 = vpop.f32.mrf.mxu1  ;;  %v9365_v52 = vrot.slane %v361_v33, 9 }
  0xe0   : > { %v11261_v54 = vld [vmem:[#allocation2 + $0x260] sm:$0xf0]  ;;  %1214 = vst [vmem:[#allocation2 + $0x20c] sm:$0xf] %v981_v57 }
  0xe1   : > { %v9665_v41 = vor.u32 %v11261_v54, %v9664_v48  ;;  %1215 = vst [vmem:[#allocation2 + $0x230] sm:$0xf] %v984_v40  ;;  %v12271_v54 = vpack.c.bf16 %v309_v20, %v309_v20 }
  0xe2   : > { %1346 = vst [vmem:[#allocation2 + $0x1d0] sm:$0xf] %v981_v57  ;;  %v12254_v57 = vsel %vm11832_vm5, %v623_v47, %v627_v9  ;;  %v12283_v47 = vpop.f32.mrf.mxu0 }
  0xe3   : > { %2890 = vmatmul.bf16.gmra.mxu0 %v9665_v41  ;;  %1347 = vst [vmem:[#allocation2 + $0x1f4] sm:$0xf] %v984_v40  ;;  %v11358_v40 = vld [vmem:[%s14791_s1 + $0xe8] sm:$0xff]  ;;  %v3034_v45 = vpop.f32.mrf.mxu2  ;;  %v11357_v41 = vld [vmem:[%s14791_s1 + $0xe0] sm:$0xff]  ;;  %v990_v27 = vrot.slane %v12271_v54, 5 }
  0xe4   : > { %1090 = vst [vmem:[#allocation2 + $0x368] sm:$0xf] %v1009_v16  ;;  %3111 = vmatpush.bf16.msrb.mxu3 %v11358_v40  ;;  %v649_v40 = vshll.u32 %v362_v13, 16 }
  0xe5   : > { %v9672_v60 = vld [vmem:[#allocation2 + $0x248] sm:$0xf]  ;;  %1091 = vst [vmem:[#allocation2 + $0x38c] sm:$0xf] %v1012_v46  ;;  %v12268_v48 = vpop.f32.mrf.mxu3 }
  0xe6   : > { %v11262_v50 = vld [vmem:[#allocation2 + $0x268] sm:$0xf0]  ;;  %1222 = vst [vmem:[#allocation2 + $0x32c] sm:$0xf] %v1009_v16  ;;  %v651_v0 = vrot.slane %v649_v40, 5 }
  0xe7   : > { %v9673_v62 = vor.u32 %v11262_v50, %v9672_v60  ;;  %1223 = vst [vmem:[#allocation2 + $0x350] sm:$0xf] %v1012_v46  ;;  %v640_v60 = vshrl.u32 %v361_v33, 16  ;;  %v643_v50 = vshll.u32 %v361_v33, 16 }
  0xe8   : > { %14856 = vst [vmem:[#allocation27_spill] sm:$0xff] %v12254_v57  ;;  %3112 = vmatpush.bf16.msrb.mxu3 %v11357_v41  ;;  %v9369_v41 = vrot.slane %v11887_v12, 9 }
  0xe9   : > { %1354 = vst [vmem:[#allocation2 + $0x2f0] sm:$0xf] %v1009_v16  ;;  %3068 = vmatmul.bf16.gmra.mxu2 %v9673_v62  ;;  %v11362_v16 = vld [vmem:[%s14791_s1 + $0x108] sm:$0xff]  ;;  %v989_v62 = vrot.slane %v987_v34, 4 }
  0xea   : > { %14857 = vst [vmem:[#allocation28_spill] sm:$0xff] %v12262_v35  ;;  %3204 = vmatpush.bf16.msrb.mxu0 %v11362_v16  ;;  %v645_v16 = vrot.slane %v643_v50, 5  ;;  %v656_v50 = vor.u32 %v655_v30, %v651_v0 }
  0xeb   : > { %1355 = vst [vmem:[#allocation2 + $0x314] sm:$0xf] %v1012_v46  ;;  %v9816_v9 = vld [vmem:[#allocation2 + $0x368] sm:$0xf]  ;;  %v12281_v46 = vadd.f32 %v3034_v45, %v2946_v63  ;;  %v642_v45 = vrot.slane %v640_v60, 4  ;;  %v991_v15 = vsel %vm11803_vm4, %v989_v62, %v990_v27  ;;  %v659_v62 = vshll.u32 %v12271_v54, 16 }
  0xec   : > { %855 = vst [vmem:[#allocation2 + $0x244] sm:$0xf] %v12254_v57  ;;  %v11298_v24 = vld [vmem:[#allocation2 + $0x388] sm:$0xf0]  ;;  %v657_v30 = vrot.slane %v656_v50, 4 }
  0xed   : > { %856 = vst [vmem:[#allocation2 + $0x268] sm:$0xf] %v12262_v35  ;;  %v9817_v28 = vor.u32 %v11298_v24, %v9816_v9  ;;  %v1015_v9 = vrot.slane %v11893_v21, 5  ;;  %v12295_v26 = vpop.f32.mrf.mxu3  ;;  %v661_v54 = vrot.slane %v659_v62, 5 }
  0xee   : > { %14858 = vst [vmem:[#allocation29_spill] sm:$0xff] %v12268_v48  ;;  %3205 = vmatpush.bf16.msrb.mxu0 %v11361_v8 }
  0xef   : > { %1170 = vst [vmem:[#allocation2 + $0x208] sm:$0xf] %v12254_v57  ;;  %3088 = vmatmul.bf16.vlgmr.msra.gmra.mxu3 %v9817_v28  ;;  %v988_v28 = vsel %vm11803_vm4, %v9365_v52, %v987_v34  ;;  %v1017_v21 = vrot.slane %v1015_v9, 4  ;;  %v646_v52 = vor.u32 %v645_v16, %v642_v45  ;;  %v1016_v12 = vsel %vm11803_vm4, %v9369_v41, %v1015_v9  ;;  %v311_v9 = vld [vmem:[%s11761_s20 + $0xf8] sm:$0xff] }
  0xf0   : > { %1171 = vst [vmem:[#allocation2 + $0x22c] sm:$0xf] %v12262_v35 }
  0xf1   : > { %1302 = vst [vmem:[#allocation2 + $0x1cc] sm:$0xf] %v12254_v57  ;;  %v647_v4 = vrot.slane %v646_v52, 4  ;;  %v312_v52 = vld [vmem:[%s11761_s20 + $0x100] sm:$0x3] }
  0xf2   : > { %1303 = vst [vmem:[#allocation2 + $0x1f0] sm:$0xf] %v12262_v35  ;;  %v12325_v62 = vpack.c.bf16 %v312_v52, %v312_v52 }
  0xf3   : > { %406 = vst [vmem:[#allocation2 + $0x288] sm:$0xf] %v361_v33  ;;  %v11257_v63 = vld [vmem:[#allocation2 + $0x244] sm:$0xf] }
  0xf4   : > { %407 = vst [vmem:[#allocation2 + $0x2ac] sm:$0xf] %v362_v13  ;;  %v9666_v20 = vld [vmem:[#allocation2 + $0x264] sm:$0xf0]  ;;  %v997_v52 = vrot.slane %v12325_v62, 5 }
  0xf5   : > { %1114 = vst [vmem:[#allocation2 + $0x24c] sm:$0xf] %v361_v33  ;;  %v9669_v24 = vor.u32 %v11257_v63, %v9666_v20  ;;  %v1018_v63 = vrot.slane %v12073_v17, 5  ;;  %v2861_v20 = vpop.f32.mrf.mxu0 }
  0xf6   : > { %1115 = vst [vmem:[#allocation2 + $0x270] sm:$0xf] %v362_v13 }
  0xf7   : > { %1246 = vst [vmem:[#allocation2 + $0x210] sm:$0xf] %v361_v33  ;;  %2979 = vmatmul.bf16.gmra.mxu1 %v9669_v24  ;;  %v2862_v33 = vadd.f32 %v12173_v38, %v2861_v20  ;;  %v1019_v17 = vsel %vm11803_vm4, %v1017_v21, %v1018_v63  ;;  %v12304_v24 = vpop.f32.mrf.mxu2  ;;  %v11356_v21 = vld [vmem:[%s14791_s1 + $0xd8] sm:$0xff]  ;;  %v12318_v63 = vsel %vm11832_vm5, %v657_v30, %v661_v54  ;;  %v310_v20 = vld [vmem:[%s11761_s20 + $0xf0] sm:$0xff] }
  0xf8   : > { %1247 = vst [vmem:[#allocation2 + $0x234] sm:$0xf] %v362_v13  ;;  %v2950_v13 = vpop.f32.mrf.mxu1  ;;  %3113 = vmatpush.bf16.msrb.mxu3 %v11356_v21 }
  0xf9   : > { %1084 = vst [vmem:[#allocation2 + $0x290] sm:$0xf] %v988_v28  ;;  %v2951_v40 = vadd.f32 %v2950_v13, %v2862_v33  ;;  %v364_v33 = vpack.c.bf16 %v310_v20, %v310_v20  ;;  %v11383_v20 = vld [vmem:[%s14791_s1 + $0x1b0] sm:$0xff] }
  0xfa   : > { %v9700_v34 = vld [vmem:[#allocation2 + $0x288] sm:$0xf]  ;;  %1085 = vst [vmem:[#allocation2 + $0x2b4] sm:$0xf] %v991_v15 }
  0xfb   : > { %v11270_v60 = vld [vmem:[#allocation2 + $0x2a8] sm:$0xf0]  ;;  %1216 = vst [vmem:[#allocation2 + $0x254] sm:$0xf] %v988_v28  ;;  %v9366_v30 = vrot.slane %v364_v33, 9  ;;  %v667_v21 = vshll.u32 %v364_v33, 16 }
  0xfc   : > { %v9701_v27 = vor.u32 %v11270_v60, %v9700_v34  ;;  %1217 = vst [vmem:[#allocation2 + $0x278] sm:$0xf] %v991_v15  ;;  %v365_v34 = vpack.c.bf16 %v311_v9, %v311_v9 }
  0xfd   : > { %1348 = vst [vmem:[#allocation2 + $0x218] sm:$0xf] %v988_v28  ;;  %v12309_v28 = vsel %vm11832_vm5, %v647_v4, %v651_v0  ;;  %v11376_v4 = vld [vmem:[%s14791_s1 + $0x178] sm:$0xff] }
  0xfe   : > { %2895 = vmatmul.bf16.gmra.mxu0 %v9701_v27  ;;  %1349 = vst [vmem:[#allocation2 + $0x23c] sm:$0xf] %v991_v15  ;;  %v12311_v15 = vpop.f32.mrf.mxu3  ;;  %v994_v60 = vrot.slane %v365_v34, 5  ;;  %3287 = vmatpush.bf16.msrb.mxu1 %v11376_v4  ;;  %v11382_v4 = vld [vmem:[%s14791_s1 + $0x1a8] sm:$0xff] }
  0xff   : > { %1092 = vst [vmem:[#allocation2 + $0x3b0] sm:$0xf] %v1016_v12  ;;  %v3039_v27 = vpop.f32.mrf.mxu2 }
 0x100   : > { %v9708_v45 = vld [vmem:[#allocation2 + $0x290] sm:$0xf]  ;;  %1093 = vst [vmem:[#allocation2 + $0x3d4] sm:$0xf] %v1019_v17  ;;  %v12338_v54 = vadd.f32 %v3039_v27, %v2951_v40  ;;  %v996_v9 = vrot.slane %v994_v60, 4  ;;  %v673_v40 = vshll.u32 %v365_v34, 16  ;;  %v995_v19 = vsel %vm11803_vm4, %v9366_v30, %v994_v60 }
 0x101   : > { %v11271_v16 = vld [vmem:[#allocation2 + $0x2b0] sm:$0xf0]  ;;  %1224 = vst [vmem:[#allocation2 + $0x374] sm:$0xf] %v1016_v12  ;;  %v1024_v60 = vrot.slane %v1022_v2, 4  ;;  %v1025_v30 = vrot.slane %v12116_v43, 5 }
 0x102   : > { %v9709_v41 = vor.u32 %v11271_v16, %v9708_v45  ;;  %1225 = vst [vmem:[#allocation2 + $0x398] sm:$0xf] %v1019_v17  ;;  %v12340_v45 = vpop.f32.mrf.mxu0  ;;  %v12342_v16 = vpop.f32.mrf.mxu1 }
 0x103   : > { %14859 = vst [vmem:[#allocation30_spill] sm:$0xff] %v12309_v28 }
 0x104   : > { %14860 = vst [vmem:[#allocation31_spill] sm:$0xff] %v12311_v15  ;;  %3073 = vmatmul.bf16.gmra.mxu2 %v9709_v41  ;;  %v664_v41 = vshrl.u32 %v364_v33, 16 }
 0x105   : > { %1356 = vst [vmem:[#allocation2 + $0x338] sm:$0xf] %v1016_v12  ;;  %v11384_v12 = vld [vmem:[%s14791_s1 + $0x1b8] sm:$0xff] }
 0x106   : > { %14861 = vst [vmem:[#allocation32_spill] sm:$0xff] %v12318_v63  ;;  %v9852_v0 = vld [vmem:[#allocation2 + $0x3b0] sm:$0xf]  ;;  %3376 = vmatpush.bf16.msrb.mxu2 %v11384_v12  ;;  %v12352_v27 = vpop.f32.mrf.mxu3  ;;  %v666_v37 = vrot.slane %v664_v41, 4 }
 0x107   : > { %1357 = vst [vmem:[#allocation2 + $0x35c] sm:$0xf] %v1019_v17  ;;  %v11307_v50 = vld [vmem:[#allocation2 + $0x3d0] sm:$0xf0] }
 0x108   : > { %857 = vst [vmem:[#allocation2 + $0x28c] sm:$0xf] %v12309_v28  ;;  %v9853_v13 = vor.u32 %v11307_v50, %v9852_v0  ;;  %v11355_v17 = vld [vmem:[%s14791_s1 + $0xd0] sm:$0xff]  ;;  %v677_v0 = vshrl.u32 %v365_v34, 16 }
 0x109   : > { %858 = vst [vmem:[#allocation2 + $0x2b0] sm:$0xf] %v12318_v63  ;;  %3114 = vmatpush.bf16.msrb.mxu3 %v11355_v17  ;;  %v11375_v50 = vld [vmem:[%s14791_s1 + $0x170] sm:$0xff]  ;;  %v669_v17 = vrot.slane %v667_v21, 5 }
 0x10a   : > { %1172 = vst [vmem:[#allocation2 + $0x250] sm:$0xf] %v12309_v28  ;;  %3093 = vmatmul.bf16.gmra.mxu3 %v9853_v13  ;;  %3377 = vmatpush.bf16.msrb.mxu2 %v11383_v20  ;;  %v679_v35 = vrot.slane %v677_v0, 4  ;;  %v2866_v41 = vpop.f32.mrf.mxu0 }
 0x10b   : > { %1173 = vst [vmem:[#allocation2 + $0x274] sm:$0xf] %v12318_v63  ;;  %3288 = vmatpush.bf16.msrb.mxu1 %v11375_v50  ;;  %v670_v20 = vor.u32 %v669_v17, %v666_v37  ;;  %v1026_v37 = vsel %vm11803_vm4, %v1024_v60, %v1025_v30  ;;  %v313_v30 = vld [vmem:[%s11761_s20 + $0x108] sm:$0xff] }
 0x10c   : > { %1304 = vst [vmem:[#allocation2 + $0x214] sm:$0xf] %v12309_v28  ;;  %v675_v28 = vrot.slane %v673_v40, 5 }
 0x10d   : > { %1305 = vst [vmem:[#allocation2 + $0x238] sm:$0xf] %v12318_v63  ;;  %v998_v63 = vsel %vm11803_vm4, %v996_v9, %v997_v52  ;;  %v683_v52 = vshll.u32 %v12325_v62, 16  ;;  %v671_v40 = vrot.slane %v670_v20, 4  ;;  %v367_v20 = vpack.c.bf16 %v313_v30, %v313_v30 }
 0x10e   : > { %408 = vst [vmem:[#allocation2 + $0x2d0] sm:$0xf] %v364_v33  ;;  %3378 = vmatpush.bf16.msrb.mxu2 %v11382_v4  ;;  %v680_v9 = vor.u32 %v679_v35, %v675_v28  ;;  %v12370_v0 = vpop.f32.mrf.mxu3  ;;  %v12372_v35 = vpop.f32.mrf.mxu2  ;;  %v11354_v4 = vld [vmem:[%s14791_s1 + $0xc8] sm:$0xff] }
 0x10f   : > { %v11266_v13 = vld [vmem:[#allocation2 + $0x28c] sm:$0xf]  ;;  %409 = vst [vmem:[#allocation2 + $0x2f4] sm:$0xf] %v365_v34  ;;  %v685_v50 = vrot.slane %v683_v52, 5  ;;  %3115 = vmatpush.bf16.msrb.mxu3 %v11354_v4  ;;  %v691_v4 = vshll.u32 %v367_v20, 16 }
 0x110   : > { %v9702_v12 = vld [vmem:[#allocation2 + $0x2ac] sm:$0xf0]  ;;  %1116 = vst [vmem:[#allocation2 + $0x294] sm:$0xf] %v364_v33  ;;  %v681_v62 = vrot.slane %v680_v9, 4  ;;  %v11374_v52 = vld [vmem:[%s14791_s1 + $0x168] sm:$0xff] }
 0x111   : > { %v9705_v51 = vor.u32 %v11266_v13, %v9702_v12  ;;  %1117 = vst [vmem:[#allocation2 + $0x2b8] sm:$0xf] %v365_v34  ;;  %3289 = vmatpush.bf16.msrb.mxu1 %v11374_v52  ;;  %v1029_v52 = vrot.slane %v11995_v29, 5  ;;  %v693_v57 = vrot.slane %v691_v4, 5 }
 0x112   : > { %1248 = vst [vmem:[#allocation2 + $0x258] sm:$0xf] %v364_v33  ;;  %v2867_v33 = vadd.f32 %v12173_v38, %v2866_v41  ;;  %v12387_v60 = vsel %vm11832_vm5, %v681_v62, %v685_v50  ;;  %v12411_v50 = vpop.f32.mrf.mxu0 }
 0x113   : > { %2984 = vmatmul.bf16.gmra.mxu1 %v9705_v51  ;;  %1249 = vst [vmem:[#allocation2 + $0x27c] sm:$0xf] %v365_v34  ;;  %v2955_v51 = vpop.f32.mrf.mxu1 }
 0x114   : > { %1086 = vst [vmem:[#allocation2 + $0x2d8] sm:$0xf] %v995_v19  ;;  %v2956_v43 = vadd.f32 %v2955_v51, %v2867_v33  ;;  %v11381_v51 = vld [vmem:[%s14791_s1 + $0x1a0] sm:$0xff] }
 0x115   : > { %v9736_v21 = vld [vmem:[#allocation2 + $0x2d0] sm:$0xf]  ;;  %1087 = vst [vmem:[#allocation2 + $0x2fc] sm:$0xf] %v998_v63  ;;  %3379 = vmatpush.bf16.msrb.mxu2 %v11381_v51 }
 0x116   : > { %v11279_v13 = vld [vmem:[#allocation2 + $0x2f0] sm:$0xf0]  ;;  %1218 = vst [vmem:[#allocation2 + $0x29c] sm:$0xf] %v995_v19 }
 0x117   : > { %v9737_v34 = vor.u32 %v11279_v13, %v9736_v21  ;;  %1219 = vst [vmem:[#allocation2 + $0x2c0] sm:$0xf] %v998_v63  ;;  %v315_v21 = vld [vmem:[%s11761_s20 + $0x118] sm:$0x3] }
 0x118   : > { %1350 = vst [vmem:[#allocation2 + $0x260] sm:$0xf] %v995_v19  ;;  %v314_v19 = vld [vmem:[%s11761_s20 + $0x110] sm:$0xff]  ;;  %v12394_v9 = vpack.c.bf16 %v315_v21, %v315_v21 }
 0x119   : > { %2900 = vmatmul.bf16.gmra.mxu0 %v9737_v34  ;;  %1351 = vst [vmem:[#allocation2 + $0x284] sm:$0xf] %v998_v63  ;;  %v12377_v63 = vsel %vm11832_vm5, %v671_v40, %v675_v28  ;;  %v368_v41 = vpack.c.bf16 %v314_v19, %v314_v19  ;;  %v11353_v40 = vld [vmem:[%s14791_s1 + $0xc0] sm:$0xff]  ;;  %v11380_v19 = vld [vmem:[%s14791_s1 + $0x198] sm:$0xff] }
 0x11a   : > { %14862 = vst [vmem:[#allocation33_spill] sm:$0xff] %v12370_v0  ;;  %v1004_v30 = vrot.slane %v12394_v9, 5  ;;  %3116 = vmatpush.bf16.msrb.mxu3 %v11353_v40  ;;  %3380 = vmatpush.bf16.msrb.mxu2 %v11380_v19  ;;  %v9580_v0 = vld [vmem:[#allocation2 + $0x180] sm:$0xf] }
 0x11b   : > { %1094 = vst [vmem:[#allocation2 + $0x3f8] sm:$0xf] %v1023_v22  ;;  %v9744_v12 = vld [vmem:[#allocation2 + $0x2d8] sm:$0xf]  ;;  %v1001_v33 = vrot.slane %v368_v41, 5  ;;  %v697_v21 = vshll.u32 %v368_v41, 16 }
 0x11c   : > { %1095 = vst [vmem:[#allocation2 + $0x41c] sm:$0xf] %v1026_v37  ;;  %v11280_v2 = vld [vmem:[#allocation2 + $0x2f8] sm:$0xf0] }
 0x11d   : > { %1226 = vst [vmem:[#allocation2 + $0x3bc] sm:$0xf] %v1023_v22  ;;  %v9745_v17 = vor.u32 %v11280_v2, %v9744_v12  ;;  %v12413_v12 = vpop.f32.mrf.mxu1  ;;  %v11373_v2 = vld [vmem:[%s14791_s1 + $0x160] sm:$0xff]  ;;  %v1003_v8 = vrot.slane %v1001_v33, 4 }
 0x11e   : > { %1227 = vst [vmem:[#allocation2 + $0x3e0] sm:$0xf] %v1026_v37  ;;  %3290 = vmatpush.bf16.msrb.mxu1 %v11373_v2  ;;  %v699_v2 = vrot.slane %v697_v21, 5 }
 0x11f   : > { %14863 = vst [vmem:[#allocation34_spill] sm:$0xff] %v12377_v63  ;;  %3078 = vmatmul.bf16.gmra.mxu2 %v9745_v17  ;;  %v9367_v17 = vrot.slane %v367_v20, 9  ;;  %v1005_v29 = vsel %vm11803_vm4, %v1003_v8, %v1004_v30  ;;  %v707_v30 = vshll.u32 %v12394_v9, 16  ;;  %v11377_v9 = vld [vmem:[%s14791_s1 + $0x180] sm:$0xff] }
 0x120   : > { %1358 = vst [vmem:[#allocation2 + $0x380] sm:$0xf] %v1023_v22  ;;  %v12403_v22 = vpop.f32.mrf.mxu3 }
 0x121   : > { %14864 = vst [vmem:[#allocation35_spill] sm:$0xff] %v12387_v60  ;;  %v1002_v40 = vsel %vm11803_vm4, %v9367_v17, %v1001_v33  ;;  %v1032_v33 = vrot.slane %v12162_v1, 5 }
 0x122   : > { %1359 = vst [vmem:[#allocation2 + $0x3a4] sm:$0xf] %v1026_v37  ;;  %v9888_v28 = vld [vmem:[#allocation2 + $0x3f8] sm:$0xf]  ;;  %v3044_v37 = vpop.f32.mrf.mxu2 }
 0x123   : > { %859 = vst [vmem:[#allocation2 + $0x2d4] sm:$0xf] %v12377_v63  ;;  %v11316_v13 = vld [vmem:[#allocation2 + $0x418] sm:$0xf0]  ;;  %v12409_v62 = vadd.f32 %v3044_v37, %v2956_v43  ;;  %v688_v43 = vshrl.u32 %v367_v20, 16  ;;  %v11379_v37 = vld [vmem:[%s14791_s1 + $0x190] sm:$0xff] }
 0x124   : > { %860 = vst [vmem:[#allocation2 + $0x2f8] sm:$0xf] %v12387_v60  ;;  %v9889_v34 = vor.u32 %v11316_v13, %v9888_v28  ;;  %v701_v28 = vshrl.u32 %v368_v41, 16  ;;  %3381 = vmatpush.bf16.msrb.mxu2 %v11379_v37  ;;  %v2912_v37 = vadd.f32 %v12173_v38, %v12246_v3  ;;  %v11369_v3 = vld [vmem:[%s14791_s1 + $0x140] sm:$0xff] }
 0x125   : > { %1174 = vst [vmem:[#allocation2 + $0x298] sm:$0xf] %v12377_v63  ;;  %v2960_v17 = vpop.f32.mrf.mxu1 }
 0x126   : > { %1175 = vst [vmem:[#allocation2 + $0x2bc] sm:$0xf] %v12387_v60  ;;  %3098 = vmatmul.bf16.gmra.mxu3 %v9889_v34  ;;  %v11372_v34 = vld [vmem:[%s14791_s1 + $0x158] sm:$0xff]  ;;  %v703_v19 = vrot.slane %v701_v28, 4  ;;  %v1030_v28 = vsel %vm11803_vm4, %v9371_v11, %v1029_v52 }
 0x127   : > { %1306 = vst [vmem:[#allocation2 + $0x25c] sm:$0xf] %v12377_v63  ;;  %v690_v63 = vrot.slane %v688_v43, 4  ;;  %3291 = vmatpush.bf16.msrb.mxu1 %v11372_v34  ;;  %v11371_v43 = vld [vmem:[%s14791_s1 + $0x150] sm:$0xff]  ;;  %v11392_v34 = vld [vmem:[%s14791_s1 + $0x1f8] sm:$0xff] }
 0x128   : > { %1307 = vst [vmem:[#allocation2 + $0x280] sm:$0xf] %v12387_v60  ;;  %v12435_v18 = vpop.f32.mrf.mxu3  ;;  %v704_v1 = vor.u32 %v703_v19, %v699_v2  ;;  %3382 = vmatpush.bf16.msrb.mxu2 %v11378_v23  ;;  %3465 = vmatpush.bf16.msra.mxu3 %v11392_v34  ;;  %v709_v19 = vrot.slane %v707_v30, 5  ;;  %v9392_v30 = vld [vmem:[#allocation2 + $0x10] sm:$0xf] }
 0x129   : > { %410 = vst [vmem:[#allocation2 + $0x318] sm:$0xf] %v367_v20 }
 0x12a   : > { %v11275_v13 = vld [vmem:[#allocation2 + $0x2d4] sm:$0xf]  ;;  %411 = vst [vmem:[#allocation2 + $0x33c] sm:$0xf] %v368_v41  ;;  %v12437_v25 = vpop.f32.mrf.mxu2 }
 0x12b   : > { %v9738_v51 = vld [vmem:[#allocation2 + $0x2f4] sm:$0xf0]  ;;  %1118 = vst [vmem:[#allocation2 + $0x2dc] sm:$0xf] %v367_v20  ;;  %3292 = vmatpush.bf16.msrb.mxu1 %v11371_v43 }
 0x12c   : > { %v9741_v60 = vor.u32 %v11275_v13, %v9738_v51  ;;  %1119 = vst [vmem:[#allocation2 + $0x300] sm:$0xf] %v368_v41  ;;  %v1031_v13 = vrot.slane %v1029_v52, 4  ;;  %v11400_v52 = vld [vmem:[%s14791_s1 + $0x238] sm:$0xff]  ;;  %3383 = vmatpush.bf16.msrb.mxu2 %v11377_v9 }
 0x12d   : > { %1250 = vst [vmem:[#allocation2 + $0x2a0] sm:$0xf] %v367_v20  ;;  %v2871_v20 = vpop.f32.mrf.mxu0  ;;  %3554 = vmatpush.bf16.msra.mxu0 %v11400_v52 }
 0x12e   : > { %2989 = vmatmul.bf16.gmra.mxu1 %v9741_v60  ;;  %1251 = vst [vmem:[#allocation2 + $0x2c4] sm:$0xf] %v368_v41  ;;  %v694_v41 = vor.u32 %v693_v57, %v690_v63  ;;  %v2872_v4 = vadd.f32 %v12173_v38, %v2871_v20  ;;  %v1033_v57 = vsel %vm11803_vm4, %v1031_v13, %v1032_v33  ;;  %v11370_v63 = vld [vmem:[%s14791_s1 + $0x148] sm:$0xff] }
 0x12f   : > { %14865 = vst [vmem:[#allocation36_spill] sm:$0xff] %v12435_v18  ;;  %3293 = vmatpush.bf16.msrb.mxu1 %v11370_v63  ;;  %v11228_v18 = vld [vmem:[#allocation2 + $0x158] sm:$0xf0] }
 0x130   : > { %1088 = vst [vmem:[#allocation2 + $0x320] sm:$0xf] %v1002_v40  ;;  %v9772_v60 = vld [vmem:[#allocation2 + $0x318] sm:$0xf]  ;;  %v2961_v51 = vadd.f32 %v2960_v17, %v2872_v4  ;;  %v695_v11 = vrot.slane %v694_v41, 4  ;;  %v3000_v33 = vpop.f32.mrf.mxu3 }
 0x131   : > { %1089 = vst [vmem:[#allocation2 + $0x344] sm:$0xf] %v1005_v29  ;;  %v11288_v8 = vld [vmem:[#allocation2 + $0x338] sm:$0xf0] }
 0x132   : > { %1220 = vst [vmem:[#allocation2 + $0x2e4] sm:$0xf] %v1002_v40  ;;  %v9773_v21 = vor.u32 %v11288_v8, %v9772_v60  ;;  %v3049_v20 = vpop.f32.mrf.mxu2  ;;  %v12472_v60 = vpop.f32.mrf.mxu1  ;;  %v12479_v4 = vsel %vm11832_vm5, %v695_v11, %v699_v2 }
 0x133   : > { %1221 = vst [vmem:[#allocation2 + $0x308] sm:$0xf] %v1005_v29  ;;  %v12468_v43 = vadd.f32 %v3049_v20, %v2961_v51  ;;  %3294 = vmatpush.bf16.msrb.mxu1 %v11369_v3  ;;  %v11191_v51 = vld [vmem:[#allocation2 + $0x30] sm:$0xf0]  ;;  %v2917_v20 = vadd.f32 %v12173_v38, %v12295_v26 }
 0x134   : > { %1352 = vst [vmem:[#allocation2 + $0x2a8] sm:$0xf] %v1002_v40  ;;  %2905 = vmatmul.bf16.gmra.mxu0 %v9773_v21  ;;  %v705_v40 = vrot.slane %v704_v1, 4  ;;  %v9393_v9 = vor.u32 %v11191_v51, %v9392_v30 }
 0x135   : > { %1353 = vst [vmem:[#allocation2 + $0x2cc] sm:$0xf] %v1005_v29  ;;  %v12466_v29 = vadd.f32 %v3000_v33, %v2912_v37  ;;  %v12470_v23 = vpop.f32.mrf.mxu0 }
 0x136   : > { %1096 = vst [vmem:[#allocation2 + $0x440] sm:$0xf] %v1030_v28  ;;  %v12483_v8 = vsel %vm11832_vm5, %v705_v40, %v709_v19  ;;  %v9400_v19 = vld [vmem:[#allocation2 + $0x18] sm:$0xf] }
 0x137   : > { %v9780_v13 = vld [vmem:[#allocation2 + $0x320] sm:$0xf]  ;;  %1097 = vst [vmem:[#allocation2 + $0x464] sm:$0xf] %v1033_v57 }
 0x138   : > { %v11289_v17 = vld [vmem:[#allocation2 + $0x340] sm:$0xf0]  ;;  %1228 = vst [vmem:[#allocation2 + $0x404] sm:$0xf] %v1030_v28 }
 0x139   : > { %v9781_v41 = vor.u32 %v11289_v17, %v9780_v13  ;;  %1229 = vst [vmem:[#allocation2 + $0x428] sm:$0xf] %v1033_v57  ;;  %v11192_v13 = vld [vmem:[#allocation2 + $0x38] sm:$0xf0] }
 0x13a   : > { %14866 = vst [vmem:[#allocation37_spill] sm:$0xff] %v12479_v4  ;;  %v12491_v34 = vpop.f32.mrf.mxu2  ;;  %v2965_v63 = vpop.f32.mrf.mxu1  ;;  %v9401_v17 = vor.u32 %v11192_v13, %v9400_v19 }
 0x13b   : > { %1360 = vst [vmem:[#allocation2 + $0x3c8] sm:$0xf] %v1030_v28  ;;  %3083 = vmatmul.bf16.gmra.mxu2 %v9781_v41  ;;  %v12489_v28 = vpop.f32.mrf.mxu3 }
 0x13c   : > { %14867 = vst [vmem:[#allocation38_spill] sm:$0xff] %v12483_v8 }
 0x13d   : > { %1361 = vst [vmem:[#allocation2 + $0x3ec] sm:$0xf] %v1033_v57  ;;  %v9924_v1 = vld [vmem:[#allocation2 + $0x440] sm:$0xf]  ;;  %v2876_v57 = vpop.f32.mrf.mxu0 }
 0x13e   : > { %861 = vst [vmem:[#allocation2 + $0x31c] sm:$0xf] %v12479_v4  ;;  %v11325_v21 = vld [vmem:[#allocation2 + $0x460] sm:$0xf0]  ;;  %v2877_v11 = vadd.f32 %v12173_v38, %v2876_v57  ;;  %v9386_v57 = vld [vmem:[#allocation2 + $0x2c] sm:$0xf0] }
 0x13f   : > { %862 = vst [vmem:[#allocation2 + $0x340] sm:$0xf] %v12483_v8  ;;  %v9925_v2 = vor.u32 %v11325_v21, %v9924_v1  ;;  %v11187_v38 = vld [vmem:[#allocation2 + $0x14] sm:$0xf] }
 0x140   : > { %1176 = vst [vmem:[#allocation2 + $0x2e0] sm:$0xf] %v12479_v4  ;;  %v2966_v37 = vadd.f32 %v2965_v63, %v2877_v11  ;;  %v11200_v11 = vld [vmem:[#allocation2 + $0x78] sm:$0xf0] }
 0x141   : > { %1177 = vst [vmem:[#allocation2 + $0x304] sm:$0xf] %v12483_v8  ;;  %3103 = vmatmul.bf16.gmra.mxu3 %v9925_v2  ;;  %v11186_v2 = vld [vmem:[#allocation2 + $0xc] sm:$0xf] }
 0x142   : > { %14868 = vst [vmem:[#allocation39_spill] sm:$0xff] %v12489_v28  ;;  %v3054_v41 = vpop.f32.mrf.mxu2  ;;  %v12504_v51 = vpop.f32.mrf.mxu1  ;;  %v9389_v63 = vor.u32 %v11186_v2, %v9386_v57  ;;  %v9436_v57 = vld [vmem:[#allocation2 + $0x60] sm:$0xf] }
 0x143   : > { %1308 = vst [vmem:[#allocation2 + $0x2a4] sm:$0xf] %v12479_v4  ;;  %v3005_v3 = vpop.f32.mrf.mxu3  ;;  %v12500_v21 = vadd.f32 %v3054_v41, %v2966_v37 }
 0x144   : > { %1309 = vst [vmem:[#allocation2 + $0x2c8] sm:$0xf] %v12483_v8  ;;  %3206 = vmatmul.bf16.vlgmr.msrb.gmra.mxu0 %v9393_v9  ;;  %v12498_v1 = vadd.f32 %v3005_v3, %v2917_v20  ;;  %v9428_v9 = vld [vmem:[#allocation2 + $0x58] sm:$0xf]  ;;  %v11399_v3 = vld [vmem:[%s14791_s1 + $0x230] sm:$0xff] }
 0x145   : > { %v11284_v52 = vld [vmem:[#allocation2 + $0x31c] sm:$0xf]  ;;  %v12502_v30 = vpop.f32.mrf.mxu0  ;;  %v9429_v37 = vor.u32 %v11200_v11, %v9428_v9  ;;  %3555 = vmatpush.bf16.msra.mxu0 %v11399_v3 }
 0x146   : > { %v9774_v40 = vld [vmem:[#allocation2 + $0x33c] sm:$0xf0] }
 0x147   : > { %v9777_v33 = vor.u32 %v11284_v52, %v9774_v40  ;;  %v9394_v40 = vld [vmem:[#allocation2 + $0x34] sm:$0xf0] }
 0x148   : > { %v9397_v41 = vor.u32 %v11187_v38, %v9394_v40  ;;  %v11195_v38 = vld [vmem:[#allocation2 + $0x54] sm:$0xf]  ;;  %v9422_v40 = vld [vmem:[#allocation2 + $0x74] sm:$0xf0] }
 0x149   : > { %2994 = vmatmul.bf16.gmra.mxu1 %v9777_v33  ;;  %v12513_v33 = vld [vmem:[%s14792_s2] ss:$0 sm:$0xff] }
 0x14a   : > { %v12508_v26 = vpop.f32.mrf.mxu2  ;;  %v2970_v13 = vpop.f32.mrf.mxu1  ;;  %v2922_v9 = vadd.f32 %v12513_v33, %v12352_v27 }
 0x14b   : > { %3384 = vmatmul.bf16.vlgmr.msrb.gmra.mxu2 %v9401_v17  ;;  %v12506_v52 = vpop.f32.mrf.mxu3  ;;  %v11391_v17 = vld [vmem:[%s14791_s1 + $0x1f0] sm:$0xff] }
 0x14c   : > { %14869 = vst [vmem:[#allocation40_spill] sm:$0xff] %v12506_v52  ;;  %3466 = vmatpush.bf16.msra.mxu3 %v11391_v17  ;;  %v11209_v17 = vld [vmem:[#allocation2 + $0xc0] sm:$0xf0] }
 0x14d   : > { %v2881_v19 = vpop.f32.mrf.mxu0 }
 0x14e   : > { %v2882_v20 = vadd.f32 %v12513_v33, %v2881_v19 }
 0x150   : > { %v2971_v2 = vadd.f32 %v2970_v13, %v2882_v20  ;;  %v9425_v20 = vor.u32 %v11195_v38, %v9422_v40  ;;  %v2927_v38 = vadd.f32 %v12513_v33, %v12403_v22 }
 0x151   : > { %3117 = vmatmul.bf16.vlgmr.msrb.gmra.mxu3 %v9389_v63  ;;  %v11201_v63 = vld [vmem:[#allocation2 + $0x80] sm:$0xf0] }
 0x152   : > { %v9437_v11 = vor.u32 %v11201_v63, %v9436_v57  ;;  %v3059_v8 = vpop.f32.mrf.mxu2  ;;  %v12530_v13 = vpop.f32.mrf.mxu1  ;;  %v9430_v57 = vld [vmem:[#allocation2 + $0x7c] sm:$0xf0] }
 0x153   : > { %v3010_v19 = vpop.f32.mrf.mxu3  ;;  %v12526_v5 = vadd.f32 %v3059_v8, %v2971_v2 }
 0x154   : > { %3211 = vmatmul.bf16.gmra.mxu0 %v9429_v37  ;;  %v12524_v4 = vadd.f32 %v3010_v19, %v2922_v9  ;;  %v9464_v37 = vld [vmem:[#allocation2 + $0xa0] sm:$0xf]  ;;  %v9472_v19 = vld [vmem:[#allocation2 + $0xa8] sm:$0xf] }
 0x155   : > { %v12528_v39 = vpop.f32.mrf.mxu0  ;;  %v9465_v8 = vor.u32 %v11209_v17, %v9464_v37  ;;  %v9473_v40 = vor.u32 %v11210_v36, %v9472_v19  ;;  %v9458_v37 = vld [vmem:[#allocation2 + $0xbc] sm:$0xf0]  ;;  %v11390_v36 = vld [vmem:[%s14791_s1 + $0x1e8] sm:$0xff]  ;;  %v9508_v19 = vld [vmem:[#allocation2 + $0xf0] sm:$0xf] }
 0x156   : > { %3467 = vmatpush.bf16.msra.mxu3 %v11390_v36  ;;  %v11227_v36 = vld [vmem:[#allocation2 + $0x150] sm:$0xf0] }
 0x159   : > { %3295 = vmatmul.bf16.vlgmr.msrb.gmra.mxu1 %v9397_v41  ;;  %v11196_v41 = vld [vmem:[#allocation2 + $0x5c] sm:$0xf] }
 0x15a   : > { %v12534_v27 = vpop.f32.mrf.mxu2  ;;  %v9433_v9 = vor.u32 %v11196_v41, %v9430_v57  ;;  %v2975_v14 = vpop.f32.mrf.mxu1  ;;  %v9500_v57 = vld [vmem:[#allocation2 + $0xe8] sm:$0xf] }
 0x15b   : > { %3389 = vmatmul.bf16.gmra.mxu2 %v9437_v11  ;;  %v12532_v3 = vpop.f32.mrf.mxu3 }
 0x15c   : > { %14870 = vst [vmem:[#allocation41_spill] sm:$0xff] %v12532_v3  ;;  %v9572_v3 = vld [vmem:[#allocation2 + $0x178] sm:$0xf] }
 0x15d   : > { %v2886_v63 = vpop.f32.mrf.mxu0 }
 0x15e   : > { %v2887_v2 = vadd.f32 %v12513_v33, %v2886_v63  ;;  %v11218_v63 = vld [vmem:[#allocation2 + $0x108] sm:$0xf0] }
 0x15f   : > { %v9501_v22 = vor.u32 %v11218_v63, %v9500_v57  ;;  %v9494_v57 = vld [vmem:[#allocation2 + $0x104] sm:$0xf0] }
 0x160   : > { %v2976_v11 = vadd.f32 %v2975_v14, %v2887_v2  ;;  %v11205_v14 = vld [vmem:[#allocation2 + $0xa4] sm:$0xf]  ;;  %v11398_v2 = vld [vmem:[%s14791_s1 + $0x228] sm:$0xff] }
 0x161   : > { %3122 = vmatmul.bf16.gmra.mxu3 %v9425_v20  ;;  %v11204_v20 = vld [vmem:[#allocation2 + $0x9c] sm:$0xf]  ;;  %3556 = vmatpush.bf16.msra.mxu0 %v11398_v2 }
 0x162   : > { %v3064_v61 = vpop.f32.mrf.mxu2  ;;  %v9461_v41 = vor.u32 %v11204_v20, %v9458_v37 }
 0x163   : > { %v3015_v6 = vpop.f32.mrf.mxu3  ;;  %v12541_v55 = vadd.f32 %v3064_v61, %v2976_v11  ;;  %v11219_v11 = vld [vmem:[#allocation2 + $0x110] sm:$0xf0] }
 0x164   : > { %3216 = vmatmul.bf16.gmra.mxu0 %v9465_v8  ;;  %v12539_v59 = vadd.f32 %v3015_v6, %v2927_v38  ;;  %v9466_v8 = vld [vmem:[#allocation2 + $0xc4] sm:$0xf0]  ;;  %v12548_v6 = vpop.f32.mrf.mxu1  ;;  %v9509_v20 = vor.u32 %v11219_v11, %v9508_v19  ;;  %v9502_v19 = vld [vmem:[#allocation2 + $0x10c] sm:$0xf0] }
 0x165   : > { %v12543_v17 = vpop.f32.mrf.mxu0 }
 0x169   : > { %3300 = vmatmul.bf16.gmra.mxu1 %v9433_v9  ;;  %v9469_v9 = vor.u32 %v11205_v14, %v9466_v8  ;;  %v9536_v8 = vld [vmem:[#allocation2 + $0x130] sm:$0xf] }
 0x16a   : > { %v12555_v38 = vpop.f32.mrf.mxu2  ;;  %v9537_v11 = vor.u32 %v11227_v36, %v9536_v8  ;;  %v11223_v8 = vld [vmem:[#allocation2 + $0x134] sm:$0xf]  ;;  %v9538_v36 = vld [vmem:[#allocation2 + $0x154] sm:$0xf0] }
 0x16b   : > { %3394 = vmatmul.bf16.gmra.mxu2 %v9473_v40  ;;  %v12550_v61 = vpop.f32.mrf.mxu3 }
 0x16c   : > { %14871 = vst [vmem:[#allocation42_spill] sm:$0xff] %v12550_v61 }
 0x16d   : > { %v2891_v40 = vpop.f32.mrf.mxu0 }
 0x16e   : > { %v2892_v37 = vadd.f32 %v12513_v33, %v2891_v40 }
 0x171   : > { %3127 = vmatmul.bf16.gmra.mxu3 %v9461_v41  ;;  %v11213_v41 = vld [vmem:[#allocation2 + $0xe4] sm:$0xf] }
 0x172   : > { %v9497_v56 = vor.u32 %v11213_v41, %v9494_v57  ;;  %v3069_v61 = vpop.f32.mrf.mxu2 }
 0x173   : > { %v3089_v49 = vpop.f32.mrf.mxu3 }
 0x174   : > { %3221 = vmatmul.bf16.gmra.mxu0 %v9501_v22  ;;  %v2980_v63 = vpop.f32.mrf.mxu1  ;;  %v12559_v14 = vadd.f32 %v3089_v49, %v12466_v29  ;;  %v11222_v49 = vld [vmem:[#allocation2 + $0x12c] sm:$0xf]  ;;  %v9530_v29 = vld [vmem:[#allocation2 + $0x14c] sm:$0xf0] }
 0x175   : > { %v2981_v53 = vadd.f32 %v2980_v63, %v2892_v37  ;;  %v12563_v22 = vpop.f32.mrf.mxu0 }
 0x176   : > { %14872 = vst [vmem:[#allocation43_spill] sm:$0xff] %v12559_v14 }
 0x177   : > { %v12561_v2 = vadd.f32 %v3069_v61, %v2981_v53  ;;  %v9533_v61 = vor.u32 %v11222_v49, %v9530_v29  ;;  %v11237_v49 = vld [vmem:[#allocation2 + $0x1a0] sm:$0xf0] }
 0x179   : > { %3305 = vmatmul.bf16.gmra.mxu1 %v9469_v9  ;;  %v11214_v9 = vld [vmem:[#allocation2 + $0xec] sm:$0xf] }
 0x17a   : > { %v9505_v40 = vor.u32 %v11214_v9, %v9502_v19  ;;  %v12569_v53 = vpop.f32.mrf.mxu2 }
 0x17b   : > { %3399 = vmatmul.bf16.gmra.mxu2 %v9509_v20  ;;  %v9544_v20 = vld [vmem:[#allocation2 + $0x138] sm:$0xf]  ;;  %v12567_v63 = vpop.f32.mrf.mxu3 }
 0x17c   : > { %v9545_v37 = vor.u32 %v11228_v18, %v9544_v20  ;;  %v12565_v57 = vpop.f32.mrf.mxu1  ;;  %14873 = vst [vmem:[#allocation44_spill] sm:$0xff] %v12567_v63  ;;  %v11389_v18 = vld [vmem:[%s14791_s1 + $0x1e0] sm:$0xff] }
 0x17d   : > { %v2896_v41 = vpop.f32.mrf.mxu0  ;;  %3468 = vmatpush.bf16.msra.mxu3 %v11389_v18 }
 0x17e   : > { %v2897_v9 = vadd.f32 %v12513_v33, %v2896_v41 }
 0x181   : > { %3132 = vmatmul.bf16.gmra.mxu3 %v9497_v56  ;;  %v11236_v56 = vld [vmem:[#allocation2 + $0x198] sm:$0xf0] }
 0x182   : > { %v9573_v19 = vor.u32 %v11236_v56, %v9572_v3  ;;  %v11397_v3 = vld [vmem:[%s14791_s1 + $0x220] sm:$0xff]  ;;  %v9581_v56 = vor.u32 %v11237_v49, %v9580_v0  ;;  %v9616_v0 = vld [vmem:[#allocation2 + $0x1c8] sm:$0xf]  ;;  %v11246_v49 = vld [vmem:[#allocation2 + $0x1e8] sm:$0xf0] }
 0x183   : > { %3557 = vmatpush.bf16.msra.mxu0 %v11397_v3  ;;  %v9617_v3 = vor.u32 %v11246_v49, %v9616_v0  ;;  %v9610_v0 = vld [vmem:[#allocation2 + $0x1e4] sm:$0xf0] }
 0x184   : > { %3226 = vmatmul.bf16.gmra.mxu0 %v9537_v11  ;;  %v9541_v11 = vor.u32 %v11223_v8, %v9538_v36  ;;  %v11231_v8 = vld [vmem:[#allocation2 + $0x174] sm:$0xf]  ;;  %v9566_v36 = vld [vmem:[#allocation2 + $0x194] sm:$0xf0] }
 0x185   : > { %v9569_v18 = vor.u32 %v11231_v8, %v9566_v36  ;;  %v11240_v8 = vld [vmem:[#allocation2 + $0x1bc] sm:$0xf]  ;;  %v9602_v36 = vld [vmem:[#allocation2 + $0x1dc] sm:$0xf0] }
 0x186   : > { %v9605_v48 = vor.u32 %v11240_v8, %v9602_v36  ;;  %v9652_v8 = vld [vmem:[#allocation2 + $0x210] sm:$0xf] }
 0x187   : > { %v3074_v41 = vpop.f32.mrf.mxu2 }
 0x189   : > { %3310 = vmatmul.bf16.gmra.mxu1 %v9505_v40  ;;  %v12575_v40 = vpop.f32.mrf.mxu0 }
 0x18b   : > { %3404 = vmatmul.bf16.gmra.mxu2 %v9545_v37 }
 0x18d   : > { %v3094_v37 = vpop.f32.mrf.mxu3 }
 0x18e   : > { %v12578_v52 = vadd.f32 %v3094_v37, %v12498_v1  ;;  %v9574_v1 = vld [vmem:[#allocation2 + $0x19c] sm:$0xf0] }
 0x18f   : > { %v12585_v37 = vpop.f32.mrf.mxu2 }
 0x190   : > { %v2985_v20 = vpop.f32.mrf.mxu1  ;;  %14874 = vst [vmem:[#allocation45_spill] sm:$0xff] %v12578_v52 }
 0x191   : > { %3137 = vmatmul.bf16.gmra.mxu3 %v9533_v61  ;;  %v2986_v29 = vadd.f32 %v2985_v20, %v2897_v9  ;;  %v9608_v9 = vld [vmem:[#allocation2 + $0x1c0] sm:$0xf]  ;;  %v11232_v20 = vld [vmem:[#allocation2 + $0x17c] sm:$0xf]  ;;  %14875 = vst [vmem:[#allocation46_spill] sm:$0xff] %v12585_v37 }
 0x193   : > { %v12583_v61 = vadd.f32 %v3074_v41, %v2986_v29  ;;  %v9577_v29 = vor.u32 %v11232_v20, %v9574_v1  ;;  %v9644_v20 = vld [vmem:[#allocation2 + $0x208] sm:$0xf]  ;;  %v11254_v1 = vld [vmem:[#allocation2 + $0x228] sm:$0xf0] }
 0x194   : > { %3231 = vmatmul.bf16.gmra.mxu0 %v9573_v19  ;;  %v11245_v19 = vld [vmem:[#allocation2 + $0x1e0] sm:$0xf0]  ;;  %v9645_v49 = vor.u32 %v11254_v1, %v9644_v20 }
 0x195   : > { %v9609_v52 = vor.u32 %v11245_v19, %v9608_v9 }
 0x196   : > { %v2901_v15 = vpop.f32.mrf.mxu0 }
 0x198   : > { %v12587_v63 = vpop.f32.mrf.mxu1 }
 0x199   : > { %3315 = vmatmul.bf16.gmra.mxu1 %v9541_v11  ;;  %14876 = vst [vmem:[#allocation47_spill] sm:$0xff] %v12587_v63  ;;  %v12589_v11 = vpop.f32.mrf.mxu3 }
 0x19a   : > { %14877 = vst [vmem:[#allocation48_spill] sm:$0xff] %v12589_v11 }
 0x19b   : > { %3409 = vmatmul.bf16.gmra.mxu2 %v9581_v56  ;;  %v2902_v56 = vadd.f32 %v12513_v33, %v2901_v15  ;;  %v11388_v15 = vld [vmem:[%s14791_s1 + $0x1d8] sm:$0xff] }
 0x19c   : > { %3469 = vmatpush.bf16.msra.mxu3 %v11388_v15  ;;  %v11263_v15 = vld [vmem:[#allocation2 + $0x270] sm:$0xf0] }
 0x19e   : > { %v12591_v41 = vpop.f32.mrf.mxu0 }
 0x19f   : > { %14878 = vst [vmem:[#allocation49_spill] sm:$0xff] %v12591_v41  ;;  %v11264_v41 = vld [vmem:[#allocation2 + $0x278] sm:$0xf0] }
 0x1a1   : > { %3142 = vmatmul.bf16.gmra.mxu3 %v9569_v18 }
 0x1a2   : > { %v3079_v28 = vpop.f32.mrf.mxu2 }
 0x1a4   : > { %3236 = vmatmul.bf16.gmra.mxu0 %v9609_v52 }
 0x1a9   : > { %3320 = vmatmul.bf16.gmra.mxu1 %v9577_v29  ;;  %v3099_v9 = vpop.f32.mrf.mxu3  ;;  %v11241_v29 = vld [vmem:[#allocation2 + $0x1c4] sm:$0xf] }
 0x1aa   : > { %v12595_v11 = vadd.f32 %v3099_v9, %v12524_v4  ;;  %v9613_v14 = vor.u32 %v11241_v29, %v9610_v0  ;;  %v11255_v4 = vld [vmem:[#allocation2 + $0x230] sm:$0xf0]  ;;  %v11249_v9 = vld [vmem:[#allocation2 + $0x204] sm:$0xf]  ;;  %v9680_v0 = vld [vmem:[#allocation2 + $0x250] sm:$0xf] }
 0x1ab   : > { %3414 = vmatmul.bf16.gmra.mxu2 %v9617_v3  ;;  %v2990_v18 = vpop.f32.mrf.mxu1  ;;  %v9653_v36 = vor.u32 %v11255_v4, %v9652_v8  ;;  %v9681_v4 = vor.u32 %v11263_v15, %v9680_v0  ;;  %v9674_v0 = vld [vmem:[#allocation2 + $0x26c] sm:$0xf0] }
 0x1ac   : > { %v2991_v19 = vadd.f32 %v2990_v18, %v2902_v56  ;;  %14879 = vst [vmem:[#allocation50_spill] sm:$0xff] %v12595_v11  ;;  %v12602_v56 = vpop.f32.mrf.mxu2 }
 0x1ad   : > { %14881 = vst [vmem:[#allocation52_spill] sm:$0xff] %v12602_v56 }
 0x1ae   : > { %v12597_v52 = vadd.f32 %v3079_v28, %v2991_v19  ;;  %v9638_v19 = vld [vmem:[#allocation2 + $0x224] sm:$0xf0] }
 0x1af   : > { %v9641_v1 = vor.u32 %v11249_v9, %v9638_v19 }
 0x1b0   : > { %14880 = vst [vmem:[#allocation51_spill] sm:$0xff] %v12597_v52 }
 0x1b1   : > { %3147 = vmatmul.bf16.gmra.mxu3 %v9605_v48  ;;  %v2906_v3 = vpop.f32.mrf.mxu0  ;;  %v11396_v48 = vld [vmem:[%s14791_s1 + $0x218] sm:$0xff]  ;;  %v12609_v18 = vpop.f32.mrf.mxu3 }
 0x1b2   : > { %14883 = vst [vmem:[#allocation54_spill] sm:$0xff] %v12609_v18  ;;  %3558 = vmatpush.bf16.msra.mxu0 %v11396_v48  ;;  %v2907_v8 = vadd.f32 %v12513_v33, %v2906_v3  ;;  %v9688_v18 = vld [vmem:[#allocation2 + $0x258] sm:$0xf] }
 0x1b3   : > { %v12604_v28 = vpop.f32.mrf.mxu1  ;;  %v9689_v19 = vor.u32 %v11264_v41, %v9688_v18  ;;  %v11387_v18 = vld [vmem:[%s14791_s1 + $0x1d0] sm:$0xff] }
 0x1b4   : > { %3241 = vmatmul.bf16.gmra.mxu0 %v9645_v49  ;;  %14882 = vst [vmem:[#allocation53_spill] sm:$0xff] %v12604_v28  ;;  %v11250_v49 = vld [vmem:[#allocation2 + $0x20c] sm:$0xf]  ;;  %3470 = vmatpush.bf16.msra.mxu3 %v11387_v18 }
 0x1b9   : > { %3325 = vmatmul.bf16.gmra.mxu1 %v9613_v14  ;;  %v2908_v20 = vpop.f32.mrf.mxu0  ;;  %v9646_v14 = vld [vmem:[#allocation2 + $0x22c] sm:$0xf0] }
 0x1ba   : > { %v9649_v56 = vor.u32 %v11250_v49, %v9646_v14  ;;  %v2909_v3 = vadd.f32 %v12513_v33, %v2908_v20 }
 0x1bb   : > { %3419 = vmatmul.bf16.gmra.mxu2 %v9653_v36 }
 0x1be   : > { %v3084_v29 = vpop.f32.mrf.mxu2 }
 0x1c1   : > { %3152 = vmatmul.bf16.gmra.mxu3 %v9641_v1  ;;  %v3207_v11 = vpop.f32.mrf.mxu0  ;;  %v11258_v1 = vld [vmem:[#allocation2 + $0x24c] sm:$0xf] }
 0x1c4   : > { %v3104_v52 = vpop.f32.mrf.mxu3  ;;  %3246 = vmatmul.bf16.gmra.mxu0 %v9681_v4 }
 0x1c5   : > { %v12613_v36 = vadd.f32 %v3104_v52, %v12539_v59  ;;  %v9716_v59 = vld [vmem:[#allocation2 + $0x298] sm:$0xf]  ;;  %v11272_v52 = vld [vmem:[#allocation2 + $0x2b8] sm:$0xf0] }
 0x1c6   : > { %v2995_v28 = vpop.f32.mrf.mxu1  ;;  %v3086_v48 = vpop.f32.mrf.mxu2  ;;  %v9717_v41 = vor.u32 %v11272_v52, %v9716_v59 }
 0x1c7   : > { %v2996_v37 = vadd.f32 %v2995_v28, %v2907_v8  ;;  %14884 = vst [vmem:[#allocation55_spill] sm:$0xff] %v12613_v36  ;;  %v9677_v28 = vor.u32 %v11258_v1, %v9674_v0  ;;  %v2854_v1 = vadd.f32 %v12513_v33, %v12229_v42  ;;  %v11267_v42 = vld [vmem:[#allocation2 + $0x294] sm:$0xf] }
 0x1c9   : > { %v12615_v9 = vadd.f32 %v3084_v29, %v2996_v37  ;;  %3330 = vmatmul.bf16.gmra.mxu1 %v9649_v56  ;;  %v3209_v15 = vpop.f32.mrf.mxu0  ;;  %v11259_v37 = vld [vmem:[#allocation2 + $0x254] sm:$0xf]  ;;  %v9682_v29 = vld [vmem:[#allocation2 + $0x274] sm:$0xf0]  ;;  %v2943_v59 = vadd.f32 %v12231_v7, %v2854_v1  ;;  %v11281_v1 = vld [vmem:[#allocation2 + $0x300] sm:$0xf0] }
 0x1ca   : > { %v9685_v20 = vor.u32 %v11259_v37, %v9682_v29  ;;  %v11395_v37 = vld [vmem:[%s14791_s1 + $0x210] sm:$0xff]  ;;  %v9710_v29 = vld [vmem:[#allocation2 + $0x2b4] sm:$0xf0] }
 0x1cb   : > { %3424 = vmatmul.bf16.gmra.mxu2 %v9689_v19  ;;  %3559 = vmatpush.bf16.msra.mxu0 %v11395_v37  ;;  %v11552_v7 = vld [vmem:[%s14793_s3 + $0x38] sm:$0xff] }
 0x1cc   : > { %v12618_v14 = vpop.f32.mrf.mxu3  ;;  %8175 = vmatpush.bf16.msra.mxu1 %v11552_v7 }
 0x1cd   : > { %14885 = vst [vmem:[#allocation56_spill] sm:$0xff] %v12618_v14  ;;  %v9724_v14 = vld [vmem:[#allocation2 + $0x2a0] sm:$0xf] }
 0x1ce   : > { %v2997_v49 = vpop.f32.mrf.mxu1  ;;  %v3385_v8 = vpop.f32.mrf.mxu2 }
 0x1cf   : > { %v2998_v63 = vadd.f32 %v2997_v49, %v2909_v3  ;;  %v11273_v3 = vld [vmem:[#allocation2 + $0x2c0] sm:$0xf0] }
 0x1d1   : > { %v12620_v4 = vadd.f32 %v3086_v48, %v2998_v63  ;;  %3157 = vmatmul.bf16.gmra.mxu3 %v9677_v28  ;;  %v3212_v56 = vpop.f32.mrf.mxu0  ;;  %v11560_v48 = vld [vmem:[%s14793_s3 + $0x78] sm:$0xff]  ;;  %v9725_v28 = vor.u32 %v11273_v3, %v9724_v14  ;;  %v9752_v3 = vld [vmem:[#allocation2 + $0x2e0] sm:$0xf] }
 0x1d2   : > { %8264 = vmatpush.bf16.msra.mxu2 %v11560_v48  ;;  %v11268_v48 = vld [vmem:[#allocation2 + $0x29c] sm:$0xf] }
 0x1d4   : > { %v3118_v19 = vpop.f32.mrf.mxu3  ;;  %3251 = vmatmul.bf16.gmra.mxu0 %v9717_v41  ;;  %v3032_v41 = vadd.f32 %v12250_v58, %v2943_v59 }
 0x1d5   : > { %v3119_v63 = vadd.f32 %v3118_v19, %v12227_v10  ;;  %v9713_v19 = vor.u32 %v11267_v42, %v9710_v29  ;;  %v9760_v29 = vld [vmem:[#allocation2 + $0x2e8] sm:$0xf] }
 0x1d6   : > { %v3296_v36 = vpop.f32.mrf.mxu1  ;;  %v3387_v0 = vpop.f32.mrf.mxu2 }
 0x1d7   : > { %v3208_v49 = vadd.f32 %v3207_v11, %v3119_v63 }
 0x1d9   : > { %3335 = vmatmul.bf16.gmra.mxu1 %v9685_v20  ;;  %v3297_v52 = vadd.f32 %v3296_v36, %v3208_v49  ;;  %v3214_v10 = vpop.f32.mrf.mxu0  ;;  %v9718_v49 = vld [vmem:[#allocation2 + $0x2bc] sm:$0xf0] }
 0x1db   : > { %v12636_v18 = vadd.f32 %v3385_v8, %v3297_v52  ;;  %3429 = vmatmul.bf16.gmra.mxu2 %v9725_v28  ;;  %v9753_v8 = vor.u32 %v11281_v1, %v9752_v3  ;;  %v9721_v52 = vor.u32 %v11268_v48, %v9718_v49  ;;  %v9746_v3 = vld [vmem:[#allocation2 + $0x2fc] sm:$0xf0] }
 0x1dc   : > { %v3120_v11 = vpop.f32.mrf.mxu3 }
 0x1dd   : > { %14886 = vst [vmem:[#allocation57_spill] sm:$0xff] %v12636_v18  ;;  %v3121_v14 = vadd.f32 %v3120_v11, %v3032_v41  ;;  %v11282_v41 = vld [vmem:[#allocation2 + $0x308] sm:$0xf0]  ;;  %v2859_v11 = vadd.f32 %v12513_v33, %v12283_v47 }
 0x1de   : > { %v3298_v20 = vpop.f32.mrf.mxu1  ;;  %v3390_v36 = vpop.f32.mrf.mxu2 }
 0x1df   : > { %v3210_v63 = vadd.f32 %v3209_v15, %v3121_v14 }
 0x1e1   : > { %v3299_v58 = vadd.f32 %v3298_v20, %v3210_v63  ;;  %3162 = vmatmul.bf16.gmra.mxu3 %v9713_v19  ;;  %v3217_v28 = vpop.f32.mrf.mxu0  ;;  %v9761_v20 = vor.u32 %v11282_v41, %v9760_v29  ;;  %v2948_v19 = vadd.f32 %v12285_v32, %v2859_v11  ;;  %v9754_v29 = vld [vmem:[#allocation2 + $0x304] sm:$0xf0] }
 0x1e3   : > { %v12641_v59 = vadd.f32 %v3387_v0, %v3299_v58  ;;  %v11276_v0 = vld [vmem:[#allocation2 + $0x2dc] sm:$0xf]  ;;  %v3037_v63 = vadd.f32 %v12304_v24, %v2948_v19  ;;  %v11386_v24 = vld [vmem:[%s14791_s1 + $0x1c8] sm:$0xff]  ;;  %v9796_v19 = vld [vmem:[#allocation2 + $0x330] sm:$0xf] }
 0x1e4   : > { %v3123_v37 = vpop.f32.mrf.mxu3  ;;  %3256 = vmatmul.bf16.gmra.mxu0 %v9753_v8  ;;  %3471 = vmatpush.bf16.msra.mxu3 %v11386_v24  ;;  %v9824_v24 = vld [vmem:[#allocation2 + $0x370] sm:$0xf] }
 0x1e5   : > { %v3124_v18 = vadd.f32 %v3123_v37, %v12281_v46  ;;  %v9749_v46 = vor.u32 %v11276_v0, %v9746_v3  ;;  %v9788_v37 = vld [vmem:[#allocation2 + $0x328] sm:$0xf]  ;;  %v11559_v3 = vld [vmem:[%s14793_s3 + $0x70] sm:$0xff] }
 0x1e6   : > { %v3301_v42 = vpop.f32.mrf.mxu1  ;;  %v3392_v15 = vpop.f32.mrf.mxu2  ;;  %8265 = vmatpush.bf16.msra.mxu2 %v11559_v3 }
 0x1e7   : > { %v3213_v14 = vadd.f32 %v3212_v56, %v3124_v18  ;;  %v11290_v56 = vld [vmem:[#allocation2 + $0x348] sm:$0xf0] }
 0x1e9   : > { %3340 = vmatmul.bf16.gmra.mxu1 %v9721_v52  ;;  %v3302_v7 = vadd.f32 %v3301_v42, %v3213_v14  ;;  %v3219_v1 = vpop.f32.mrf.mxu0  ;;  %v11277_v52 = vld [vmem:[#allocation2 + $0x2e4] sm:$0xf]  ;;  %v9789_v42 = vor.u32 %v11290_v56, %v9788_v37  ;;  %v9782_v37 = vld [vmem:[#allocation2 + $0x344] sm:$0xf0] }
 0x1ea   : > { %v9757_v11 = vor.u32 %v11277_v52, %v9754_v29 }
 0x1eb   : > { %v12648_v48 = vadd.f32 %v3390_v36, %v3302_v7  ;;  %3434 = vmatmul.bf16.gmra.mxu2 %v9761_v20  ;;  %v11291_v7 = vld [vmem:[#allocation2 + $0x350] sm:$0xf0] }
 0x1ec   : > { %v3125_v49 = vpop.f32.mrf.mxu3 }
 0x1ed   : > { %v3126_v58 = vadd.f32 %v3125_v49, %v3037_v63 }
 0x1ee   : > { %v3303_v47 = vpop.f32.mrf.mxu1  ;;  %v3395_v8 = vpop.f32.mrf.mxu2 }
 0x1ef   : > { %v3215_v18 = vadd.f32 %v3214_v10, %v3126_v58  ;;  %v2864_v10 = vadd.f32 %v12513_v33, %v12340_v45  ;;  %v11285_v45 = vld [vmem:[#allocation2 + $0x324] sm:$0xf] }
 0x1f1   : > { %v3304_v32 = vadd.f32 %v3303_v47, %v3215_v18  ;;  %3167 = vmatmul.bf16.gmra.mxu3 %v9749_v46  ;;  %v3222_v41 = vpop.f32.mrf.mxu0  ;;  %v2953_v47 = vadd.f32 %v12342_v16, %v2864_v10  ;;  %v11394_v46 = vld [vmem:[%s14791_s1 + $0x208] sm:$0xff]  ;;  %v11551_v16 = vld [vmem:[%s14793_s3 + $0x30] sm:$0xff] }
 0x1f2   : > { %3560 = vmatpush.bf16.msra.mxu0 %v11394_v46  ;;  %8176 = vmatpush.bf16.msra.mxu1 %v11551_v16 }
 0x1f3   : > { %v12653_v36 = vadd.f32 %v3392_v15, %v3304_v32  ;;  %v9797_v15 = vor.u32 %v11291_v7, %v9796_v19  ;;  %v3042_v56 = vadd.f32 %v12372_v35, %v2953_v47  ;;  %v9785_v32 = vor.u32 %v11285_v45, %v9782_v37  ;;  %v9790_v19 = vld [vmem:[#allocation2 + $0x34c] sm:$0xf0]  ;;  %v11300_v47 = vld [vmem:[#allocation2 + $0x398] sm:$0xf0] }
 0x1f4   : > { %v3128_v14 = vpop.f32.mrf.mxu3  ;;  %3261 = vmatmul.bf16.gmra.mxu0 %v9789_v42 }
 0x1f5   : > { %v3129_v0 = vadd.f32 %v3128_v14, %v12338_v54 }
 0x1f6   : > { %v3306_v20 = vpop.f32.mrf.mxu1  ;;  %v3397_v63 = vpop.f32.mrf.mxu2 }
 0x1f7   : > { %v3218_v49 = vadd.f32 %v3217_v28, %v3129_v0 }
 0x1f9   : > { %3345 = vmatmul.bf16.gmra.mxu1 %v9757_v11  ;;  %v3307_v58 = vadd.f32 %v3306_v20, %v3218_v49  ;;  %v3224_v54 = vpop.f32.mrf.mxu0  ;;  %v11299_v11 = vld [vmem:[#allocation2 + $0x390] sm:$0xf0]  ;;  %v11286_v20 = vld [vmem:[#allocation2 + $0x32c] sm:$0xf] }
 0x1fa   : > { %v9793_v0 = vor.u32 %v11286_v20, %v9790_v19  ;;  %v11308_v20 = vld [vmem:[#allocation2 + $0x3d8] sm:$0xf0]  ;;  %v328_v19 = vld [vmem:[%s11761_s20 + $0x180] sm:$0xff] }
 0x1fb   : > { %v12666_v18 = vadd.f32 %v3395_v8, %v3307_v58  ;;  %3439 = vmatmul.bf16.gmra.mxu2 %v9797_v15  ;;  %v9825_v8 = vor.u32 %v11299_v11, %v9824_v24  ;;  %v9832_v15 = vld [vmem:[#allocation2 + $0x378] sm:$0xf]  ;;  %v2869_v58 = vadd.f32 %v12513_v33, %v12411_v50 }
 0x1fc   : > { %v3130_v28 = vpop.f32.mrf.mxu3  ;;  %v9833_v37 = vor.u32 %v11300_v47, %v9832_v15  ;;  %v9860_v11 = vld [vmem:[#allocation2 + $0x3b8] sm:$0xf]  ;;  %v9868_v47 = vld [vmem:[#allocation2 + $0x3c0] sm:$0xf] }
 0x1fd   : > { %v3131_v29 = vadd.f32 %v3130_v28, %v3042_v56  ;;  %v2958_v56 = vadd.f32 %v12413_v12, %v2869_v58  ;;  %v11294_v28 = vld [vmem:[#allocation2 + $0x36c] sm:$0xf]  ;;  %v11385_v58 = vld [vmem:[%s14791_s1 + $0x1c0] sm:$0xff] }
 0x1fe   : > { %v3308_v52 = vpop.f32.mrf.mxu1  ;;  %v3400_v42 = vpop.f32.mrf.mxu2  ;;  %v329_v12 = vld [vmem:[%s11761_s20 + $0x188] sm:$0xff]  ;;  %3472 = vmatpush.bf16.msra.mxu3 %v11385_v58 }
 0x1ff   : > { %v3220_v14 = vadd.f32 %v3219_v1, %v3131_v29 }
 0x201   : > { %v3309_v35 = vadd.f32 %v3308_v52, %v3220_v14  ;;  %3172 = vmatmul.bf16.gmra.mxu3 %v9785_v32  ;;  %v12671_v7 = vpop.f32.mrf.mxu0  ;;  %v9818_v52 = vld [vmem:[#allocation2 + $0x38c] sm:$0xf0]  ;;  %v3047_v32 = vadd.f32 %v12437_v25, %v2958_v56  ;;  %v9826_v25 = vld [vmem:[#allocation2 + $0x394] sm:$0xf0] }
 0x203   : > { %v12673_v10 = vadd.f32 %v3397_v63, %v3309_v35 }
 0x204   : > { %v3133_v3 = vpop.f32.mrf.mxu3  ;;  %3266 = vmatmul.bf16.gmra.mxu0 %v9825_v8  ;;  %v12686_v8 = vpack.c.bf16 %v328_v19, %v328_v19 }
 0x205   : > { %v3134_v1 = vadd.f32 %v3133_v3, %v12409_v62  ;;  %v11295_v3 = vld [vmem:[#allocation2 + $0x374] sm:$0xf] }
 0x206   : > { %v3311_v49 = vpop.f32.mrf.mxu1  ;;  %v3402_v46 = vpop.f32.mrf.mxu2  ;;  %1260 = vst [vmem:[#allocation2 + $0x408] sm:$0xf] %v12686_v8  ;;  %v1134_v56 = vshll.u32 %v12686_v8, 16 }
 0x207   : > { %v3223_v45 = vadd.f32 %v3222_v41, %v3134_v1  ;;  %v9821_v41 = vor.u32 %v11294_v28, %v9818_v52  ;;  %1128 = vst [vmem:[#allocation2 + $0x444] sm:$0xf] %v12686_v8 }
 0x209   : > { %3350 = vmatmul.bf16.gmra.mxu1 %v9793_v0  ;;  %v3312_v63 = vadd.f32 %v3311_v49, %v3223_v45  ;;  %v12679_v29 = vpop.f32.mrf.mxu0  ;;  %v12688_v0 = vpack.c.bf16 %v329_v12, %v329_v12  ;;  %v9861_v49 = vor.u32 %v11308_v20, %v9860_v11  ;;  %v9829_v45 = vor.u32 %v11295_v3, %v9826_v25  ;;  %v11558_v11 = vld [vmem:[%s14793_s3 + $0x68] sm:$0xff] }
 0x20a   : > { %v1136_v20 = vrot.slane %v1134_v56, 5  ;;  %8266 = vmatpush.bf16.msra.mxu2 %v11558_v11  ;;  %v11317_v11 = vld [vmem:[#allocation2 + $0x420] sm:$0xf0] }
 0x20b   : > { %v12682_v16 = vadd.f32 %v3400_v42, %v3312_v63  ;;  %3444 = vmatmul.bf16.gmra.mxu2 %v9833_v37  ;;  %1261 = vst [vmem:[#allocation2 + $0x42c] sm:$0xf] %v12688_v0  ;;  %v330_v37 = vld [vmem:[%s11761_s20 + $0x190] sm:$0x3]  ;;  %v1140_v63 = vshll.u32 %v12688_v0, 16 }
 0x20c   : > { %v3135_v62 = vpop.f32.mrf.mxu3  ;;  %1129 = vst [vmem:[#allocation2 + $0x468] sm:$0xf] %v12688_v0 }
 0x20d   : > { %v3136_v24 = vadd.f32 %v3135_v62, %v3047_v32  ;;  %v11309_v32 = vld [vmem:[#allocation2 + $0x3e0] sm:$0xf0]  ;;  %v12704_v62 = vpack.c.bf16 %v330_v37, %v330_v37  ;;  %v1142_v19 = vrot.slane %v1140_v63, 5  ;;  %v11303_v63 = vld [vmem:[#allocation2 + $0x3b4] sm:$0xf] }
 0x20e   : > { %v3313_v50 = vpop.f32.mrf.mxu1  ;;  %v3405_v14 = vpop.f32.mrf.mxu2  ;;  %v11393_v37 = vld [vmem:[%s14791_s1 + $0x200] sm:$0xff] }
 0x20f   : > { %v3225_v35 = vadd.f32 %v3224_v54, %v3136_v24  ;;  %v1131_v54 = vshrl.u32 %v12686_v8, 16  ;;  %v2874_v24 = vadd.f32 %v12513_v33, %v12470_v23  ;;  %v1150_v3 = vshll.u32 %v12704_v62, 16  ;;  %3561 = vmatpush.bf16.msra.mxu0 %v11393_v37 }
 0x210   : > { %v1196_v37 = vrot.slane %v12704_v62, 5 }
 0x211   : > { %v3314_v42 = vadd.f32 %v3313_v50, %v3225_v35  ;;  %3177 = vmatmul.bf16.gmra.mxu3 %v9821_v41  ;;  %v12690_v15 = vpop.f32.mrf.mxu0  ;;  %v1133_v50 = vrot.slane %v1131_v54, 4  ;;  %v2963_v58 = vadd.f32 %v12472_v60, %v2874_v24  ;;  %v11550_v24 = vld [vmem:[%s14793_s3 + $0x28] sm:$0xff] }
 0x212   : > { %8177 = vmatpush.bf16.msra.mxu1 %v11550_v24 }
 0x213   : > { %v12697_v1 = vadd.f32 %v3402_v46, %v3314_v42  ;;  %v1144_v46 = vshrl.u32 %v12688_v0, 16  ;;  %v9869_v42 = vor.u32 %v11309_v32, %v9868_v47  ;;  %v1137_v23 = vor.u32 %v1136_v20, %v1133_v50  ;;  %v331_v20 = vld [vmem:[%s11761_s20 + $0x198] sm:$0xff] }
 0x214   : > { %v3138_v28 = vpop.f32.mrf.mxu3  ;;  %3271 = vmatmul.bf16.gmra.mxu0 %v9861_v49  ;;  %v1152_v49 = vrot.slane %v1150_v3, 5 }
 0x215   : > { %14887 = vst [vmem:[#allocation58_spill] sm:$0xff] %v12697_v1  ;;  %v3139_v41 = vadd.f32 %v3138_v28, %v12468_v43  ;;  %v1146_v35 = vrot.slane %v1144_v46, 4  ;;  %v1138_v56 = vrot.slane %v1137_v23, 4  ;;  %v9854_v28 = vld [vmem:[#allocation2 + $0x3d4] sm:$0xf0]  ;;  %v1193_v23 = vrot.slane %v12688_v0, 5 }
 0x216   : > { %v3316_v52 = vpop.f32.mrf.mxu1  ;;  %v3407_v12 = vpop.f32.mrf.mxu2  ;;  %v11318_v0 = vld [vmem:[#allocation2 + $0x428] sm:$0xf0] }
 0x217   : > { %v3228_v25 = vadd.f32 %v12671_v7, %v3139_v41  ;;  %v1147_v43 = vor.u32 %v1146_v35, %v1142_v19  ;;  %v3052_v7 = vadd.f32 %v12491_v34, %v2963_v58  ;;  %v12727_v60 = vsel %vm11832_vm5, %v1138_v56, %v1142_v19  ;;  %v332_v19 = vld [vmem:[%s11761_s20 + $0x1a0] sm:$0xff] }
 0x218   : > { %14888 = vst [vmem:[#allocation59_spill] sm:$0xff] %v12727_v60  ;;  %v9857_v34 = vor.u32 %v11303_v63, %v9854_v28  ;;  %v12743_v35 = vpack.c.bf16 %v331_v20, %v331_v20  ;;  %v12745_v3 = vpack.c.bf16 %v332_v19, %v332_v19  ;;  %v11312_v20 = vld [vmem:[#allocation2 + $0x3fc] sm:$0xf]  ;;  %v9890_v19 = vld [vmem:[#allocation2 + $0x41c] sm:$0xf0] }
 0x219   : > { %3355 = vmatmul.bf16.gmra.mxu1 %v9829_v45  ;;  %v3317_v54 = vadd.f32 %v3316_v52, %v3228_v25  ;;  %v12720_v46 = vpop.f32.mrf.mxu0  ;;  %v1148_v1 = vrot.slane %v1147_v43, 4  ;;  %1186 = vst [vmem:[#allocation2 + $0x448] sm:$0xf] %v12727_v60  ;;  %v11304_v25 = vld [vmem:[#allocation2 + $0x3bc] sm:$0xf] }
 0x21a   : > { %1318 = vst [vmem:[#allocation2 + $0x40c] sm:$0xf] %v12727_v60 }
 0x21b   : > { %v12723_v47 = vadd.f32 %v3405_v14, %v3317_v54  ;;  %3449 = vmatmul.bf16.gmra.mxu2 %v9869_v42  ;;  %v12731_v32 = vsel %vm11832_vm5, %v1148_v1, %v1152_v49  ;;  %v9896_v14 = vld [vmem:[#allocation2 + $0x400] sm:$0xf]  ;;  %1262 = vst [vmem:[#allocation2 + $0x450] sm:$0xf] %v12743_v35  ;;  %v1195_v54 = vrot.slane %v1193_v23, 4 }
 0x21c   : > { %v3140_v45 = vpop.f32.mrf.mxu3  ;;  %14889 = vst [vmem:[#allocation60_spill] sm:$0xff] %v12731_v32  ;;  %v9862_v42 = vld [vmem:[#allocation2 + $0x3dc] sm:$0xf0]  ;;  %v9897_v49 = vor.u32 %v11317_v11, %v9896_v14 }
 0x21d   : > { %v3141_v50 = vadd.f32 %v3140_v45, %v3052_v7  ;;  %1187 = vst [vmem:[#allocation2 + $0x46c] sm:$0xf] %v12731_v32  ;;  %v9865_v63 = vor.u32 %v11304_v25, %v9862_v42  ;;  %v9904_v45 = vld [vmem:[#allocation2 + $0x408] sm:$0xf] }
 0x21e   : > { %v3318_v52 = vpop.f32.mrf.mxu1  ;;  %v3410_v41 = vpop.f32.mrf.mxu2  ;;  %1319 = vst [vmem:[#allocation2 + $0x430] sm:$0xf] %v12731_v32  ;;  %v9905_v14 = vor.u32 %v11318_v0, %v9904_v45 }
 0x21f   : > { %v3230_v1 = vadd.f32 %v12679_v29, %v3141_v50  ;;  %1263 = vst [vmem:[#allocation2 + $0x474] sm:$0xf] %v12745_v3  ;;  %v9372_v29 = vrot.slane %v12686_v8, 9  ;;  %v1197_v50 = vsel %vm11803_vm4, %v1195_v54, %v1196_v37  ;;  %v11313_v37 = vld [vmem:[#allocation2 + $0x404] sm:$0xf] }
 0x220   : > { %1231 = vst [vmem:[#allocation2 + $0x470] sm:$0xf] %v1197_v50 }
 0x221   : > { %v3319_v43 = vadd.f32 %v3318_v52, %v3230_v1  ;;  %3182 = vmatmul.bf16.gmra.mxu3 %v9857_v34  ;;  %v3237_v58 = vpop.f32.mrf.mxu0  ;;  %v1194_v52 = vsel %vm11803_vm4, %v9372_v29, %v1193_v23  ;;  %v2879_v34 = vadd.f32 %v12513_v33, %v12502_v30  ;;  %1363 = vst [vmem:[#allocation2 + $0x434] sm:$0xf] %v1197_v50 }
 0x222   : > { %1230 = vst [vmem:[#allocation2 + $0x44c] sm:$0xf] %v1194_v52 }
 0x223   : > { %v12752_v56 = vadd.f32 %v3407_v12, %v3319_v43  ;;  %1362 = vst [vmem:[#allocation2 + $0x410] sm:$0xf] %v1194_v52  ;;  %v2968_v24 = vadd.f32 %v12504_v51, %v2879_v34  ;;  %v9893_v43 = vor.u32 %v11312_v20, %v9890_v19  ;;  %v9898_v51 = vld [vmem:[#allocation2 + $0x424] sm:$0xf0]  ;;  %v9940_v52 = vld [vmem:[#allocation2 + $0x450] sm:$0xf]  ;;  %v2884_v34 = vadd.f32 %v12513_v33, %v12528_v39 }
 0x224   : > { %v3143_v28 = vpop.f32.mrf.mxu3  ;;  %3276 = vmatmul.bf16.gmra.mxu0 %v9897_v49  ;;  %v9932_v49 = vld [vmem:[#allocation2 + $0x448] sm:$0xf]  ;;  %v11326_v29 = vld [vmem:[#allocation2 + $0x468] sm:$0xf0]  ;;  %v11321_v20 = vld [vmem:[#allocation2 + $0x444] sm:$0xf] }
 0x225   : > { %v3144_v8 = vadd.f32 %v3143_v28, %v12500_v21  ;;  %v3057_v30 = vadd.f32 %v12508_v26, %v2968_v24  ;;  %v9933_v28 = vor.u32 %v11326_v29, %v9932_v49  ;;  %v9901_v26 = vor.u32 %v11313_v37, %v9898_v51  ;;  %v9926_v19 = vld [vmem:[#allocation2 + $0x464] sm:$0xf0]  ;;  %v9408_v49 = vld [vmem:[#allocation2 + $0x20] sm:$0xf] }
 0x226   : > { %v3321_v7 = vpop.f32.mrf.mxu1  ;;  %v3412_v62 = vpop.f32.mrf.mxu2  ;;  %v11327_v50 = vld [vmem:[#allocation2 + $0x470] sm:$0xf0]  ;;  %v2973_v24 = vadd.f32 %v12530_v13, %v2884_v34  ;;  %v11193_v13 = vld [vmem:[#allocation2 + $0x40] sm:$0xf0] }
 0x227   : > { %v3233_v12 = vadd.f32 %v12690_v15, %v3144_v8  ;;  %v9934_v37 = vld [vmem:[#allocation2 + $0x46c] sm:$0xf0] }
 0x228   : > { %v3062_v39 = vadd.f32 %v12534_v27, %v2973_v24  ;;  %v9409_v27 = vor.u32 %v11193_v13, %v9408_v49 }
 0x229   : > { %3360 = vmatmul.bf16.gmra.mxu1 %v9865_v63  ;;  %v3322_v11 = vadd.f32 %v3321_v7, %v3233_v12  ;;  %v3239_v1 = vpop.f32.mrf.mxu0 }
 0x22b   : > { %v12764_v25 = vadd.f32 %v3410_v41, %v3322_v11  ;;  %3454 = vmatmul.bf16.gmra.mxu2 %v9905_v14 }
 0x22c   : > { %v3145_v21 = vpop.f32.mrf.mxu3 }
 0x22d   : > { %v3146_v23 = vadd.f32 %v3145_v21, %v3057_v30 }
 0x22e   : > { %v3323_v42 = vpop.f32.mrf.mxu1  ;;  %v3415_v15 = vpop.f32.mrf.mxu2 }
 0x22f   : > { %v3235_v54 = vadd.f32 %v12720_v46, %v3146_v23  ;;  %v11557_v46 = vld [vmem:[%s14793_s3 + $0x60] sm:$0xff]  ;;  %v9929_v23 = vor.u32 %v11321_v20, %v9926_v19 }
 0x230   : > { %8267 = vmatpush.bf16.msra.mxu2 %v11557_v46 }
 0x231   : > { %v3324_v63 = vadd.f32 %v3323_v42, %v3235_v54  ;;  %3187 = vmatmul.bf16.gmra.mxu3 %v9893_v43  ;;  %v3242_v7 = vpop.f32.mrf.mxu0  ;;  %v11322_v54 = vld [vmem:[#allocation2 + $0x44c] sm:$0xf] }
 0x233   : > { %v12767_v45 = vadd.f32 %v3412_v62, %v3324_v63  ;;  %v9941_v62 = vor.u32 %v11327_v50, %v9940_v52 }
 0x234   : > { %v3148_v41 = vpop.f32.mrf.mxu3  ;;  %3281 = vmatmul.bf16.gmra.mxu0 %v9933_v28  ;;  %v9937_v28 = vor.u32 %v11322_v54, %v9934_v37 }
 0x235   : > { %v3149_v8 = vadd.f32 %v3148_v41, %v12526_v5 }
 0x236   : > { %v3326_v0 = vpop.f32.mrf.mxu1  ;;  %v3417_v12 = vpop.f32.mrf.mxu2 }
 0x237   : > { %v3238_v14 = vadd.f32 %v3237_v58, %v3149_v8  ;;  %v11549_v58 = vld [vmem:[%s14793_s3 + $0x20] sm:$0xff] }
 0x238   : > { %8178 = vmatpush.bf16.msra.mxu1 %v11549_v58 }
 0x239   : > { %3365 = vmatmul.bf16.gmra.mxu1 %v9901_v26  ;;  %v3327_v11 = vadd.f32 %v3326_v0, %v3238_v14  ;;  %v3244_v30 = vpop.f32.mrf.mxu0  ;;  %v12787_v0 = vld [vmem:[%s14792_s2] ss:$0 sm:$0xff] }
 0x23a   : > { %v9402_v14 = vld [vmem:[#allocation2 + $0x3c] sm:$0xf0] }
 0x23b   : > { %v12777_v33 = vadd.f32 %v3415_v15, %v3327_v11  ;;  %3459 = vmatmul.bf16.gmra.mxu2 %v9941_v62 }
 0x23c   : > { %v3150_v5 = vpop.f32.mrf.mxu3 }
 0x23d   : > { %v3151_v42 = vadd.f32 %v3150_v5, %v3062_v39 }
 0x23e   : > { %v3328_v21 = vpop.f32.mrf.mxu1  ;;  %v3420_v43 = vpop.f32.mrf.mxu2 }
 0x23f   : > { %v3240_v29 = vadd.f32 %v3239_v1, %v3151_v42  ;;  %v2889_v1 = vadd.f32 %v12787_v0, %v12543_v17 }
 0x241   : > { %v3329_v51 = vadd.f32 %v3328_v21, %v3240_v29  ;;  %3192 = vmatmul.bf16.gmra.mxu3 %v9929_v23  ;;  %v3247_v15 = vpop.f32.mrf.mxu0  ;;  %v2978_v8 = vadd.f32 %v12548_v6, %v2889_v1  ;;  %v11202_v21 = vld [vmem:[#allocation2 + $0x88] sm:$0xf0]  ;;  %v11556_v29 = vld [vmem:[%s14793_s3 + $0x58] sm:$0xff] }
 0x242   : > { %8268 = vmatpush.bf16.msra.mxu2 %v11556_v29 }
 0x243   : > { %v12782_v63 = vadd.f32 %v3417_v12, %v3329_v51  ;;  %v11188_v12 = vld [vmem:[#allocation2 + $0x1c] sm:$0xf]  ;;  %v3067_v24 = vadd.f32 %v12555_v38, %v2978_v8  ;;  %v2894_v38 = vadd.f32 %v12787_v0, %v12563_v22  ;;  %v9480_v8 = vld [vmem:[#allocation2 + $0xb0] sm:$0xf] }
 0x244   : > { %v3153_v26 = vpop.f32.mrf.mxu3  ;;  %3562 = vmatmul.bf16.vlgmr.msra.gmra.mxu0 %v9409_v27  ;;  %v9405_v17 = vor.u32 %v11188_v12, %v9402_v14  ;;  %v11197_v27 = vld [vmem:[#allocation2 + $0x64] sm:$0xf] }
 0x245   : > { %v3154_v52 = vadd.f32 %v3153_v26, %v12541_v55  ;;  %v9444_v55 = vld [vmem:[#allocation2 + $0x68] sm:$0xf]  ;;  %v2983_v37 = vadd.f32 %v12565_v57, %v2894_v38 }
 0x246   : > { %v3331_v41 = vpop.f32.mrf.mxu1  ;;  %v3422_v50 = vpop.f32.mrf.mxu2  ;;  %v9445_v23 = vor.u32 %v11202_v21, %v9444_v55  ;;  %v14890_v21 = vld [vmem:[#allocation47_spill] sm:$0xff] }
 0x247   : > { %v3243_v34 = vadd.f32 %v3242_v7, %v3154_v52 }
 0x249   : > { %3370 = vmatmul.bf16.gmra.mxu1 %v9937_v28  ;;  %v3332_v46 = vadd.f32 %v3331_v41, %v3243_v34  ;;  %v3249_v62 = vpop.f32.mrf.mxu0  ;;  %v9438_v28 = vld [vmem:[#allocation2 + $0x84] sm:$0xf0]  ;;  %v3072_v41 = vadd.f32 %v12569_v53, %v2983_v37  ;;  %v11548_v34 = vld [vmem:[%s14793_s3 + $0x18] sm:$0xff] }
 0x24a   : > { %8179 = vmatpush.bf16.msra.mxu1 %v11548_v34 }
 0x24b   : > { %v12794_v11 = vadd.f32 %v3420_v43, %v3332_v46  ;;  %v11211_v46 = vld [vmem:[#allocation2 + $0xd0] sm:$0xf0] }
 0x24c   : > { %v3155_v20 = vpop.f32.mrf.mxu3  ;;  %v9481_v14 = vor.u32 %v11211_v46, %v9480_v8  ;;  %v11555_v46 = vld [vmem:[%s14793_s3 + $0x50] sm:$0xff] }
 0x24d   : > { %v3156_v39 = vadd.f32 %v3155_v20, %v3067_v24  ;;  %8269 = vmatpush.bf16.msra.mxu2 %v11555_v46 }
 0x24e   : > { %v3333_v19 = vpop.f32.mrf.mxu1  ;;  %v3425_v5 = vpop.f32.mrf.mxu2 }
 0x24f   : > { %v3245_v42 = vadd.f32 %v3244_v30, %v3156_v39  ;;  %v2899_v39 = vadd.f32 %v12787_v0, %v12575_v40 }
 0x251   : > { %v3334_v7 = vadd.f32 %v3333_v19, %v3245_v42  ;;  %3473 = vmatmul.bf16.vlgmr.msra.gmra.mxu3 %v9405_v17  ;;  %v3252_v6 = vpop.f32.mrf.mxu0  ;;  %v2988_v42 = vadd.f32 %v14890_v21, %v2899_v39  ;;  %v9510_v39 = vld [vmem:[#allocation2 + $0x114] sm:$0xf0] }
 0x253   : > { %v12796_v58 = vadd.f32 %v3422_v50, %v3334_v7  ;;  %v9441_v50 = vor.u32 %v11197_v27, %v9438_v28  ;;  %v11206_v7 = vld [vmem:[#allocation2 + $0xac] sm:$0xf] }
 0x254   : > { %v3158_v49 = vpop.f32.mrf.mxu3  ;;  %3567 = vmatmul.bf16.gmra.mxu0 %v9445_v23  ;;  %v9474_v23 = vld [vmem:[#allocation2 + $0xcc] sm:$0xf0] }
 0x255   : > { %v3159_v43 = vadd.f32 %v3158_v49, %v12561_v2  ;;  %v9477_v37 = vor.u32 %v11206_v7, %v9474_v23 }
 0x256   : > { %v3336_v13 = vpop.f32.mrf.mxu1  ;;  %v3427_v54 = vpop.f32.mrf.mxu2 }
 0x257   : > { %v3248_v30 = vadd.f32 %v3247_v15, %v3159_v43 }
 0x259   : > { %v3337_v51 = vadd.f32 %v3336_v13, %v3248_v30  ;;  %v3254_v26 = vpop.f32.mrf.mxu0  ;;  %v14891_v13 = vld [vmem:[#allocation46_spill] sm:$0xff] }
 0x25a   : > { %v3077_v38 = vadd.f32 %v14891_v13, %v2988_v42  ;;  %v11547_v13 = vld [vmem:[%s14793_s3 + $0x10] sm:$0xff] }
 0x25b   : > { %v12806_v1 = vadd.f32 %v3425_v5, %v3337_v51  ;;  %v9516_v51 = vld [vmem:[#allocation2 + $0xf8] sm:$0xf]  ;;  %8180 = vmatpush.bf16.msra.mxu1 %v11547_v13 }
 0x25c   : > { %v3160_v22 = vpop.f32.mrf.mxu3  ;;  %v14897_v13 = vld [vmem:[#allocation29_spill] sm:$0xff] }
 0x25d   : > { %v3161_v52 = vadd.f32 %v3160_v22, %v3072_v41 }
 0x25e   : > { %v3338_v2 = vpop.f32.mrf.mxu1  ;;  %v3430_v15 = vpop.f32.mrf.mxu2 }
 0x25f   : > { %v3250_v57 = vadd.f32 %v3249_v62, %v3161_v52 }
 0x261   : > { %v3339_v12 = vadd.f32 %v3338_v2, %v3250_v57  ;;  %3478 = vmatmul.bf16.gmra.mxu3 %v9441_v50  ;;  %v3257_v24 = vpop.f32.mrf.mxu0  ;;  %v14892_v50 = vld [vmem:[#allocation49_spill] sm:$0xff] }
 0x262   : > { %v2904_v34 = vadd.f32 %v12787_v0, %v14892_v50  ;;  %v11224_v50 = vld [vmem:[#allocation2 + $0x13c] sm:$0xf] }
 0x263   : > { %v12811_v53 = vadd.f32 %v3427_v54, %v3339_v12  ;;  %v14894_v12 = vld [vmem:[#allocation53_spill] sm:$0xff] }
 0x264   : > { %v3163_v20 = vpop.f32.mrf.mxu3  ;;  %3572 = vmatmul.bf16.gmra.mxu0 %v9481_v14  ;;  %v2993_v14 = vadd.f32 %v14894_v12, %v2904_v34  ;;  %v9546_v34 = vld [vmem:[#allocation2 + $0x15c] sm:$0xf0] }
 0x265   : > { %v3164_v17 = vadd.f32 %v3163_v20, %v12583_v61  ;;  %v11220_v61 = vld [vmem:[#allocation2 + $0x118] sm:$0xf0]  ;;  %v9549_v12 = vor.u32 %v11224_v50, %v9546_v34 }
 0x266   : > { %v3341_v19 = vpop.f32.mrf.mxu1  ;;  %v3432_v5 = vpop.f32.mrf.mxu2 }
 0x267   : > { %v3253_v55 = vadd.f32 %v3252_v6, %v3164_v17  ;;  %v9517_v6 = vor.u32 %v11220_v61, %v9516_v51 }
 0x269   : > { %v3342_v62 = vadd.f32 %v3341_v19, %v3253_v55  ;;  %v3259_v49 = vpop.f32.mrf.mxu0  ;;  %v11215_v19 = vld [vmem:[#allocation2 + $0xf4] sm:$0xf] }
 0x26a   : > { %v9513_v23 = vor.u32 %v11215_v19, %v9510_v39 }
 0x26b   : > { %v12818_v43 = vadd.f32 %v3430_v15, %v3342_v62  ;;  %v14893_v15 = vld [vmem:[#allocation51_spill] sm:$0xff] }
 0x26c   : > { %v3165_v29 = vpop.f32.mrf.mxu3 }
 0x26d   : > { %v3166_v30 = vadd.f32 %v3165_v29, %v3077_v38  ;;  %v9552_v38 = vld [vmem:[#allocation2 + $0x140] sm:$0xf]  ;;  %v11229_v29 = vld [vmem:[#allocation2 + $0x160] sm:$0xf0] }
 0x26e   : > { %v3343_v54 = vpop.f32.mrf.mxu1  ;;  %v3435_v40 = vpop.f32.mrf.mxu2 }
 0x26f   : > { %v3255_v27 = vadd.f32 %v3254_v26, %v3166_v30 }
 0x271   : > { %v3344_v28 = vadd.f32 %v3343_v54, %v3255_v27  ;;  %3483 = vmatmul.bf16.gmra.mxu3 %v9477_v37  ;;  %v3262_v41 = vpop.f32.mrf.mxu0  ;;  %v9553_v37 = vor.u32 %v11229_v29, %v9552_v38  ;;  %v14898_v38 = vld [vmem:[#allocation39_spill] sm:$0xff] }
 0x273   : > { %v12820_v22 = vadd.f32 %v3432_v5, %v3344_v28  ;;  %v14895_v5 = vld [vmem:[#allocation52_spill] sm:$0xff] }
 0x274   : > { %v3168_v2 = vpop.f32.mrf.mxu3  ;;  %3577 = vmatmul.bf16.gmra.mxu0 %v9517_v6  ;;  %v3082_v55 = vadd.f32 %v14895_v5, %v2993_v14  ;;  %v9588_v14 = vld [vmem:[#allocation2 + $0x188] sm:$0xf] }
 0x275   : > { %v3169_v8 = vadd.f32 %v3168_v2, %v14893_v15 }
 0x276   : > { %v3346_v52 = vpop.f32.mrf.mxu1  ;;  %v3437_v57 = vpop.f32.mrf.mxu2 }
 0x277   : > { %v3258_v26 = vadd.f32 %v3257_v24, %v3169_v8 }
 0x279   : > { %v3347_v20 = vadd.f32 %v3346_v52, %v3258_v26  ;;  %v3264_v17 = vpop.f32.mrf.mxu0 }
 0x27b   : > { %v12830_v21 = vadd.f32 %v3435_v40, %v3347_v20  ;;  %v11238_v20 = vld [vmem:[#allocation2 + $0x1a8] sm:$0xf0] }
 0x27c   : > { %v3170_v42 = vpop.f32.mrf.mxu3 }
 0x27d   : > { %v3171_v7 = vadd.f32 %v3170_v42, %v3082_v55 }
 0x27e   : > { %v3348_v62 = vpop.f32.mrf.mxu1  ;;  %v3440_v24 = vpop.f32.mrf.mxu2 }
 0x27f   : > { %v3260_v54 = vadd.f32 %v3259_v49, %v3171_v7 }
 0x281   : > { %v3349_v30 = vadd.f32 %v3348_v62, %v3260_v54  ;;  %3488 = vmatmul.bf16.gmra.mxu3 %v9513_v23  ;;  %v3267_v51 = vpop.f32.mrf.mxu0  ;;  %v14896_v62 = vld [vmem:[#allocation43_spill] sm:$0xff] }
 0x283   : > { %v12835_v61 = vadd.f32 %v3437_v57, %v3349_v30  ;;  %v11233_v30 = vld [vmem:[#allocation2 + $0x184] sm:$0xf] }
 0x284   : > { %v3173_v40 = vpop.f32.mrf.mxu3  ;;  %3582 = vmatmul.bf16.gmra.mxu0 %v9553_v37  ;;  %v9582_v37 = vld [vmem:[#allocation2 + $0x1a4] sm:$0xf0] }
 0x285   : > { %v3174_v28 = vadd.f32 %v3173_v40, %v12615_v9  ;;  %v9589_v9 = vor.u32 %v11238_v20, %v9588_v14  ;;  %v9585_v34 = vor.u32 %v11233_v30, %v9582_v37  ;;  %v14903_v30 = vld [vmem:[#allocation48_spill] sm:$0xff] }
 0x286   : > { %v3351_v27 = vpop.f32.mrf.mxu1  ;;  %v3442_v6 = vpop.f32.mrf.mxu2 }
 0x287   : > { %v3263_v2 = vadd.f32 %v3262_v41, %v3174_v28 }
 0x289   : > { %v3352_v52 = vadd.f32 %v3351_v27, %v3263_v2  ;;  %v3269_v15 = vpop.f32.mrf.mxu0  ;;  %v14899_v27 = vld [vmem:[#allocation44_spill] sm:$0xff] }
 0x28b   : > { %v12838_v8 = vadd.f32 %v3440_v24, %v3352_v52  ;;  %v2914_v24 = vadd.f32 %v12787_v0, %v14897_v13 }
 0x28c   : > { %v3175_v49 = vpop.f32.mrf.mxu3 }
 0x28d   : > { %v3176_v26 = vadd.f32 %v3175_v49, %v12620_v4  ;;  %v11554_v4 = vld [vmem:[%s14793_s3 + $0x48] sm:$0xff]  ;;  %v3003_v29 = vadd.f32 %v14898_v38, %v2914_v24  ;;  %v14902_v24 = vld [vmem:[#allocation40_spill] sm:$0xff] }
 0x28e   : > { %v3353_v46 = vpop.f32.mrf.mxu1  ;;  %v3445_v57 = vpop.f32.mrf.mxu2  ;;  %8270 = vmatpush.bf16.msra.mxu2 %v11554_v4  ;;  %v11546_v49 = vld [vmem:[%s14793_s3 + $0x8] sm:$0xff] }
 0x28f   : > { %v3265_v19 = vadd.f32 %v3264_v17, %v3176_v26  ;;  %v3092_v28 = vadd.f32 %v14899_v27, %v3003_v29  ;;  %v11247_v26 = vld [vmem:[#allocation2 + $0x1f0] sm:$0xf0]  ;;  %8181 = vmatpush.bf16.msra.mxu1 %v11546_v49  ;;  %v11242_v38 = vld [vmem:[#allocation2 + $0x1cc] sm:$0xf]  ;;  %v9618_v29 = vld [vmem:[#allocation2 + $0x1ec] sm:$0xf0] }
 0x291   : > { %v3354_v39 = vadd.f32 %v3353_v46, %v3265_v19  ;;  %3493 = vmatmul.bf16.gmra.mxu3 %v9549_v12  ;;  %v3272_v5 = vpop.f32.mrf.mxu0  ;;  %v9624_v46 = vld [vmem:[#allocation2 + $0x1d0] sm:$0xf] }
 0x292   : > { %v9625_v20 = vor.u32 %v11247_v26, %v9624_v46 }
 0x293   : > { %v12841_v41 = vadd.f32 %v3442_v6, %v3354_v39 }
 0x294   : > { %v3178_v55 = vpop.f32.mrf.mxu3  ;;  %3587 = vmatmul.bf16.gmra.mxu0 %v9589_v9 }
 0x295   : > { %v3179_v7 = vadd.f32 %v3178_v55, %v14896_v62  ;;  %v14900_v55 = vld [vmem:[#allocation45_spill] sm:$0xff]  ;;  %v14901_v62 = vld [vmem:[#allocation31_spill] sm:$0xff] }
 0x296   : > { %v3356_v42 = vpop.f32.mrf.mxu1  ;;  %v3447_v23 = vpop.f32.mrf.mxu2 }
 0x297   : > { %v3268_v17 = vadd.f32 %v3267_v51, %v3179_v7  ;;  %v2919_v7 = vadd.f32 %v12787_v0, %v14901_v62 }
 0x299   : > { %v3357_v54 = vadd.f32 %v3356_v42, %v3268_v17  ;;  %v3274_v40 = vpop.f32.mrf.mxu0  ;;  %v3008_v17 = vadd.f32 %v14902_v24, %v2919_v7  ;;  %v11675_v7 = vmov 0  }
 0x29a   : > { %3678 = vst [vmem:[#allocation3 + $0xc] sm:$0xf] %v11675_v7 }
 0x29b   : > { %v12851_v6 = vadd.f32 %v3445_v57, %v3357_v54  ;;  %v3097_v37 = vadd.f32 %v14903_v30, %v3008_v17  ;;  %3675 = vst [vmem:[#allocation3] sm:$0xf] %v11675_v7  ;;  %v11251_v17 = vld [vmem:[#allocation2 + $0x214] sm:$0xf] }
 0x29c   : > { %v3180_v2 = vpop.f32.mrf.mxu3  ;;  %3676 = vst [vmem:[#allocation3 + $0x4] sm:$0xf] %v11675_v7 }
 0x29d   : > { %v3181_v50 = vadd.f32 %v3180_v2, %v3092_v28  ;;  %3677 = vst [vmem:[#allocation3 + $0x8] sm:$0x1] %v11675_v7 }
 0x29e   : > { %v3358_v52 = vpop.f32.mrf.mxu1  ;;  %v3450_v51 = vpop.f32.mrf.mxu2  ;;  %3679 = vst [vmem:[#allocation3 + $0x10] sm:$0xf] %v11675_v7 }
 0x29f   : > { %v3270_v12 = vadd.f32 %v3269_v15, %v3181_v50  ;;  %v9660_v50 = vld [vmem:[#allocation2 + $0x218] sm:$0xf]  ;;  %3680 = vst [vmem:[#allocation3 + $0x14] sm:$0x1] %v11675_v7 }
 0x2a0   : > { %3681 = vst [vmem:[#allocation3 + $0x18] sm:$0xf] %v11675_v7 }
 0x2a1   : > { %v3359_v14 = vadd.f32 %v3358_v52, %v3270_v12  ;;  %3498 = vmatmul.bf16.gmra.mxu3 %v9585_v34  ;;  %v3277_v19 = vpop.f32.mrf.mxu0  ;;  %v9621_v52 = vor.u32 %v11242_v38, %v9618_v29  ;;  %v11256_v34 = vld [vmem:[#allocation2 + $0x238] sm:$0xf0]  ;;  %v14907_v38 = vld [vmem:[#allocation54_spill] sm:$0xff]  ;;  %3682 = vst [vmem:[#allocation3 + $0x1c] sm:$0xf] %v11675_v7 }
 0x2a2   : > { %v9661_v26 = vor.u32 %v11256_v34, %v9660_v50  ;;  %v11265_v50 = vld [vmem:[#allocation2 + $0x280] sm:$0xf0]  ;;  %3683 = vst [vmem:[#allocation3 + $0x20] sm:$0x1] %v11675_v7 }
 0x2a3   : > { %v12856_v39 = vadd.f32 %v3447_v23, %v3359_v14  ;;  %3684 = vst [vmem:[#allocation3 + $0x24] sm:$0xf] %v11675_v7 }
 0x2a4   : > { %v3183_v57 = vpop.f32.mrf.mxu3  ;;  %3592 = vmatmul.bf16.gmra.mxu0 %v9625_v20  ;;  %3685 = vst [vmem:[#allocation3 + $0x28] sm:$0xf] %v11675_v7 }
 0x2a5   : > { %v3184_v42 = vadd.f32 %v3183_v57, %v14900_v55  ;;  %3686 = vst [vmem:[#allocation3 + $0x2c] sm:$0x1] %v11675_v7 }
 0x2a6   : > { %v3361_v9 = vpop.f32.mrf.mxu1  ;;  %v3452_v13 = vpop.f32.mrf.mxu2  ;;  %3687 = vst [vmem:[#allocation3 + $0x30] sm:$0xf] %v11675_v7 }
 0x2a7   : > { %v3273_v4 = vadd.f32 %v3272_v5, %v3184_v42  ;;  %3688 = vst [vmem:[#allocation3 + $0x34] sm:$0xf] %v11675_v7 }
 0x2a8   : > { %3689 = vst [vmem:[#allocation3 + $0x38] sm:$0x1] %v11675_v7 }
 0x2a9   : > { %v3362_v15 = vadd.f32 %v3361_v9, %v3273_v4  ;;  %v3279_v54 = vpop.f32.mrf.mxu0  ;;  %v14904_v9 = vld [vmem:[#allocation50_spill] sm:$0xff]  ;;  %3690 = vst [vmem:[#allocation3 + $0x3c] sm:$0xf] %v11675_v7 }
 0x2aa   : > { %3691 = vst [vmem:[#allocation3 + $0x40] sm:$0xf] %v11675_v7 }
 0x2ab   : > { %v12863_v23 = vadd.f32 %v3450_v51, %v3362_v15  ;;  %v14905_v51 = vld [vmem:[#allocation33_spill] sm:$0xff]  ;;  %3692 = vst [vmem:[#allocation3 + $0x44] sm:$0x1] %v11675_v7 }
 0x2ac   : > { %v3185_v27 = vpop.f32.mrf.mxu3  ;;  %v2924_v42 = vadd.f32 %v12787_v0, %v14905_v51  ;;  %v14909_v51 = vld [vmem:[#allocation36_spill] sm:$0xff]  ;;  %3693 = vst [vmem:[#allocation3 + $0x48] sm:$0xf] %v11675_v7 }
 0x2ad   : > { %v3186_v2 = vadd.f32 %v3185_v27, %v3097_v37  ;;  %3694 = vst [vmem:[#allocation3 + $0x4c] sm:$0xf] %v11675_v7 }
 0x2ae   : > { %v3363_v28 = vpop.f32.mrf.mxu1  ;;  %v3455_v5 = vpop.f32.mrf.mxu2  ;;  %3695 = vst [vmem:[#allocation3 + $0x50] sm:$0x1] %v11675_v7 }
 0x2af   : > { %v3275_v49 = vadd.f32 %v3274_v40, %v3186_v2  ;;  %v14906_v40 = vld [vmem:[#allocation41_spill] sm:$0xff]  ;;  %3696 = vst [vmem:[#allocation3 + $0x54] sm:$0xf] %v11675_v7 }
 0x2b0   : > { %v3013_v4 = vadd.f32 %v14906_v40, %v2924_v42  ;;  %v2929_v42 = vadd.f32 %v12787_v0, %v14909_v51  ;;  %v14910_v40 = vld [vmem:[#allocation42_spill] sm:$0xff]  ;;  %3697 = vst [vmem:[#allocation3 + $0x58] sm:$0xf] %v11675_v7 }
 0x2b1   : > { %v3364_v46 = vadd.f32 %v3363_v28, %v3275_v49  ;;  %3503 = vmatmul.bf16.gmra.mxu3 %v9621_v52  ;;  %v3282_v12 = vpop.f32.mrf.mxu0  ;;  %v9696_v52 = vld [vmem:[#allocation2 + $0x260] sm:$0xf]  ;;  %3698 = vst [vmem:[#allocation3 + $0x5c] sm:$0x1] %v11675_v7 }
 0x2b2   : > { %v3102_v29 = vadd.f32 %v14907_v38, %v3013_v4  ;;  %v3018_v4 = vadd.f32 %v14910_v40, %v2929_v42  ;;  %3699 = vst [vmem:[#allocation3 + $0x60] sm:$0xf] %v11675_v7  ;;  %v11269_v40 = vld [vmem:[#allocation2 + $0x2a4] sm:$0xf] }
 0x2b3   : > { %v12865_v14 = vadd.f32 %v3452_v13, %v3364_v46  ;;  %v9654_v13 = vld [vmem:[#allocation2 + $0x234] sm:$0xf0]  ;;  %v9697_v46 = vor.u32 %v11265_v50, %v9696_v52  ;;  %v11553_v52 = vld [vmem:[%s14793_s3 + $0x40] sm:$0xff]  ;;  %v11274_v50 = vld [vmem:[#allocation2 + $0x2c8] sm:$0xf0] }
 0x2b4   : > { %v3188_v20 = vpop.f32.mrf.mxu3  ;;  %3597 = vmatmul.bf16.gmra.mxu0 %v9661_v26  ;;  %v9657_v2 = vor.u32 %v11251_v17, %v9654_v13  ;;  %v11260_v17 = vld [vmem:[#allocation2 + $0x25c] sm:$0xf]  ;;  %v9690_v13 = vld [vmem:[#allocation2 + $0x27c] sm:$0xf0]  ;;  %8271 = vmatpush.bf16.msra.mxu2 %v11553_v52  ;;  %3700 = vst [vmem:[#allocation3 + $0x64] sm:$0xf] %v11675_v7 }
 0x2b5   : > { %v3189_v55 = vadd.f32 %v3188_v20, %v14904_v9  ;;  %v14908_v9 = vld [vmem:[#allocation55_spill] sm:$0xff]  ;;  %3701 = vst [vmem:[#allocation3 + $0x68] sm:$0x1] %v11675_v7 }
 0x2b6   : > { %v3366_v57 = vpop.f32.mrf.mxu1  ;;  %v3457_v37 = vpop.f32.mrf.mxu2  ;;  %3702 = vst [vmem:[#allocation3 + $0x6c] sm:$0xf] %v11675_v7 }
 0x2b7   : > { %v3278_v62 = vadd.f32 %v3277_v19, %v3189_v55  ;;  %3703 = vst [vmem:[#allocation3 + $0x70] sm:$0xf] %v11675_v7 }
 0x2b8   : > { %3704 = vst [vmem:[#allocation3 + $0x74] sm:$0x1] %v11675_v7 }
 0x2b9   : > { %v3367_v24 = vadd.f32 %v3366_v57, %v3278_v62  ;;  %v3284_v15 = vpop.f32.mrf.mxu0  ;;  %3705 = vst [vmem:[#allocation3 + $0x78] sm:$0xf] %v11675_v7 }
 0x2ba   : > { %3706 = vst [vmem:[#allocation3 + $0x7c] sm:$0xf] %v11675_v7 }
 0x2bb   : > { %v12875_v30 = vadd.f32 %v3455_v5, %v3367_v24  ;;  %3707 = vst [vmem:[#allocation3 + $0x80] sm:$0x1] %v11675_v7 }
 0x2bc   : > { %v3190_v19 = vpop.f32.mrf.mxu3  ;;  %3708 = vst [vmem:[#allocation3 + $0x84] sm:$0xf] %v11675_v7 }
 0x2bd   : > { %v3191_v28 = vadd.f32 %v3190_v19, %v3102_v29  ;;  %v14911_v29 = vld [vmem:[#allocation56_spill] sm:$0xff]  ;;  %3709 = vst [vmem:[#allocation3 + $0x88] sm:$0xf] %v11675_v7 }
 0x2be   : > { %v3368_v27 = vpop.f32.mrf.mxu1  ;;  %v3460_v55 = vpop.f32.mrf.mxu2  ;;  %3710 = vst [vmem:[#allocation3 + $0x8c] sm:$0x1] %v11675_v7 }
 0x2bf   : > { %v3280_v34 = vadd.f32 %v3279_v54, %v3191_v28  ;;  %v9732_v28 = vld [vmem:[#allocation2 + $0x2a8] sm:$0xf]  ;;  %3711 = vst [vmem:[#allocation3 + $0x90] sm:$0xf] %v11675_v7 }
 0x2c0   : > { %3712 = vst [vmem:[#allocation3 + $0x94] sm:$0xf] %v11675_v7 }
 0x2c1   : > { %v3369_v49 = vadd.f32 %v3368_v27, %v3280_v34  ;;  %3508 = vmatmul.bf16.gmra.mxu3 %v9657_v2  ;;  %v3563_v5 = vpop.f32.mrf.mxu0  ;;  %v9693_v27 = vor.u32 %v11260_v17, %v9690_v13  ;;  %3713 = vst [vmem:[#allocation3 + $0x98] sm:$0x1] %v11675_v7 }
 0x2c2   : > { %3714 = vst [vmem:[#allocation3 + $0x9c] sm:$0xf] %v11675_v7 }
 0x2c3   : > { %v12884_v26 = vadd.f32 %v3457_v37, %v3369_v49  ;;  %v3107_v37 = vadd.f32 %v14911_v29, %v3018_v4  ;;  %v11545_v49 = vld [vmem:[%s14793_s3] sm:$0xff]  ;;  %v9726_v4 = vld [vmem:[#allocation2 + $0x2c4] sm:$0xf0]  ;;  %3715 = vst [vmem:[#allocation3 + $0xa0] sm:$0xf] %v11675_v7 }
 0x2c4   : > { %v3193_v20 = vpop.f32.mrf.mxu3  ;;  %3602 = vmatmul.bf16.gmra.mxu0 %v9697_v46  ;;  %8182 = vmatpush.bf16.msra.mxu1 %v11545_v49  ;;  %3716 = vst [vmem:[#allocation3 + $0xa4] sm:$0x1] %v11675_v7 }
 0x2c5   : > { %v3194_v54 = vadd.f32 %v3193_v20, %v14908_v9  ;;  %3717 = vst [vmem:[#allocation3 + $0xa8] sm:$0xf] %v11675_v7 }
 0x2c6   : > { %v3371_v57 = vpop.f32.mrf.mxu1  ;;  %v3462_v46 = vpop.f32.mrf.mxu2  ;;  %3718 = vst [vmem:[#allocation3 + $0xac] sm:$0xf] %v11675_v7 }
 0x2c7   : > { %v3283_v62 = vadd.f32 %v3282_v12, %v3194_v54  ;;  %3719 = vst [vmem:[#allocation3 + $0xb0] sm:$0x1] %v11675_v7 }
 0x2c8   : > { %3720 = vst [vmem:[#allocation3 + $0xb4] sm:$0xf] %v11675_v7 }
 0x2c9   : > { %v3372_v24 = vadd.f32 %v3371_v57, %v3283_v62  ;;  %v3565_v38 = vpop.f32.mrf.mxu0  ;;  %v9733_v57 = vor.u32 %v11274_v50, %v9732_v28  ;;  %v4088_v50 = vld [vmem:[#allocation3 + $0xc] sm:$0xf]  ;;  %3721 = vst [vmem:[#allocation3 + $0xb8] sm:$0xf] %v11675_v7 }
 0x2ca   : > { %3722 = vst [vmem:[#allocation3 + $0xbc] sm:$0x1] %v11675_v7 }
 0x2cb   : > { %v12899_v19 = vadd.f32 %v3460_v55, %v3372_v24  ;;  %v14912_v55 = vld [vmem:[#allocation57_spill] sm:$0xff]  ;;  %3723 = vst [vmem:[#allocation3 + $0xc0] sm:$0xf] %v11675_v7 }
 0x2cc   : > { %v3195_v0 = vpop.f32.mrf.mxu3  ;;  %3724 = vst [vmem:[#allocation3 + $0xc4] sm:$0xf] %v11675_v7 }
 0x2cd   : > { %v3196_v12 = vadd.f32 %v3195_v0, %v3107_v37  ;;  %v9729_v37 = vor.u32 %v11269_v40, %v9726_v4  ;;  %v4266_v0 = vld [vmem:[#allocation3] sm:$0xf]  ;;  %3725 = vst [vmem:[#allocation3 + $0xc8] sm:$0x1] %v11675_v7 }
 0x2ce   : > { %v3373_v2 = vpop.f32.mrf.mxu1  ;;  %v4315_v49 = vshrl.u32 %v4266_v0, 16  ;;  %3726 = vst [vmem:[#allocation3 + $0xcc] sm:$0xf] %v11675_v7 }
 0x2cf   : > { %v3285_v34 = vadd.f32 %v3284_v15, %v3196_v12  ;;  %3727 = vst [vmem:[#allocation3 + $0xd0] sm:$0xf] %v11675_v7 }
 0x2d0   : > { %3728 = vst [vmem:[#allocation3 + $0xd4] sm:$0x1] %v11675_v7 }
 0x2d1   : > { %v3374_v20 = vadd.f32 %v3373_v2, %v3285_v34  ;;  %3513 = vmatmul.bf16.gmra.mxu3 %v9693_v27  ;;  %v12915_v9 = vpop.f32.mrf.mxu0  ;;  %v4267_v2 = vld [vmem:[#allocation3 + $0x4] sm:$0xf] }
 0x2d3   : > { %v12917_v15 = vadd.f32 %v3462_v46, %v3374_v20  ;;  %v9768_v46 = vld [vmem:[#allocation2 + $0x2f0] sm:$0xf]  ;;  %v4318_v20 = vshll.u32 %v4266_v0, 16 }
 0x2d4   : > { %v3474_v54 = vpop.f32.mrf.mxu3  ;;  %3607 = vmatmul.bf16.gmra.mxu0 %v9733_v57  ;;  %v4324_v57 = vshll.u32 %v4267_v2, 16 }
 0x2d5   : > { %v3475_v51 = vadd.f32 %v3474_v54, %v14912_v55  ;;  %v11283_v54 = vld [vmem:[#allocation2 + $0x310] sm:$0xf0] }
 0x2d7   : > { %v3564_v42 = vadd.f32 %v3563_v5, %v3475_v51 }
 0x2d9   : > { %v3643_v62 = vmax.f32 %v3564_v42, 0.0  ;;  %v12928_v24 = vpop.f32.mrf.mxu0  ;;  %v4328_v42 = vshrl.u32 %v4267_v2, 16 }
 0x2db   : > { %v3729_v17 = vpack.c.bf16 %v3643_v62, %v3643_v62  ;;  %v9769_v62 = vor.u32 %v11283_v54, %v9768_v46  ;;  %v4330_v2 = vrot.slane %v4328_v42, 4 }
 0x2dc   : > { %v3476_v5 = vpop.f32.mrf.mxu3 }
 0x2dd   : > { %v3765_v13 = vshrl.u32 %v3729_v17, 16  ;;  %v3477_v29 = vadd.f32 %v3476_v5, %v12641_v59  ;;  %v3768_v27 = vshll.u32 %v3729_v17, 16  ;;  %v4268_v5 = vld [vmem:[#allocation3 + $0x8] sm:$0x1] }
 0x2df   : > { %v12935_v12 = vrot.slane %v3765_v13, 7  ;;  %v3566_v28 = vadd.f32 %v3565_v38, %v3477_v29  ;;  %v4317_v13 = vrot.slane %v4315_v49, 4  ;;  %v4320_v29 = vrot.slane %v4318_v20, 5 }
 0x2e1   : > { %v3770_v59 = vor.u32 %v3768_v27, %v12935_v12  ;;  %v3644_v34 = vmax.f32 %v3566_v28, 0.0  ;;  %3518 = vmatmul.bf16.gmra.mxu3 %v9729_v37  ;;  %v12947_v38 = vpop.f32.mrf.mxu0  ;;  %v12955_v37 = vrot.slane %v4324_v57, 5  ;;  %v3771_v49 = vrot.slane %v12935_v12, 4 }
 0x2e2   : > { %v4321_v54 = vor.u32 %v4320_v29, %v4317_v13 }
 0x2e3   : > { %v4089_v55 = vsel %vm12939_vm8, %v3770_v59, %v4088_v50  ;;  %v3730_v51 = vpack.c.bf16 %v3644_v34, %v3644_v34  ;;  %v11278_v50 = vld [vmem:[#allocation2 + $0x2ec] sm:$0xf]  ;;  %v11568_v59 = vld [vmem:[%s14793_s3 + $0xb8] sm:$0xff] }
 0x2e4   : > { %4090 = vst [vmem:[#allocation3 + $0xc] sm:$0xf] %v4089_v55  ;;  %v3479_v40 = vpop.f32.mrf.mxu3  ;;  %3612 = vmatmul.bf16.gmra.mxu0 %v9769_v62  ;;  %v11592_v34 = vld [vmem:[%s14793_s3 + $0x178] sm:$0xff]  ;;  %v4334_v55 = vshll.u32 %v4268_v5, 16  ;;  %8353 = vmatpush.bf16.msrb.mxu3 %v11568_v59  ;;  %v4322_v59 = vrot.slane %v4321_v54, 4 }
 0x2e5   : > { %v3773_v4 = vshrl.u32 %v3730_v51, 16  ;;  %v3480_v17 = vadd.f32 %v3479_v40, %v12648_v48  ;;  %v3776_v28 = vshll.u32 %v3730_v51, 16  ;;  %v9762_v51 = vld [vmem:[#allocation2 + $0x30c] sm:$0xf0]  ;;  %8620 = vmatpush.bf16.msrb.mxu2 %v11592_v34  ;;  %v4094_v40 = vld [vmem:[#allocation3 + $0x14] sm:$0x1] }
 0x2e6   : > { %v4336_v34 = vrot.slane %v4334_v55, 5  ;;  %v9804_v54 = vld [vmem:[#allocation2 + $0x338] sm:$0xf]  ;;  %v4327_v55 = vsel %vm11832_vm5, %v4322_v59, %v12955_v37 }
 0x2e7   : > { %v3775_v27 = vrot.slane %v3773_v4, 7  ;;  %v3569_v48 = vadd.f32 %v12915_v9, %v3480_v17  ;;  %v11576_v9 = vld [vmem:[%s14793_s3 + $0xf8] sm:$0xff]  ;;  %v4331_v17 = vor.u32 %v4330_v2, %v12955_v37  ;;  %4730 = vst [vmem:[#allocation4 + $0x4] sm:$0xf] %v4327_v55 }
 0x2e8   : > { %8442 = vmatpush.bf16.msrb.mxu0 %v11576_v9  ;;  %v11584_v2 = vld [vmem:[%s14793_s3 + $0x138] sm:$0xff]  ;;  %v4203_v9 = vld [vmem:[#allocation3 + $0x4] sm:$0xf] }
 0x2e9   : > { %v3778_v46 = vor.u32 %v3776_v28, %v3775_v27  ;;  %v3645_v20 = vmax.f32 %v3569_v48, 0.0  ;;  %v3780_v57 = vrot.slane %v3775_v27, 4  ;;  %v12977_v42 = vpop.f32.mrf.mxu0  ;;  %v4202_v27 = vld [vmem:[#allocation3] sm:$0xf]  ;;  %v9765_v28 = vor.u32 %v11278_v50, %v9762_v51  ;;  %v4097_v50 = vld [vmem:[#allocation3 + $0x18] sm:$0xf]  ;;  %8531 = vmatpush.bf16.msrb.mxu1 %v11584_v2 }
 0x2ea   : > { %4234 = vst [vmem:[#allocation4] sm:$0xf] %v4202_v27 }
 0x2eb   : > { %v3779_v12 = vsel %vm12959_vm12, %v3771_v49, %v3778_v46  ;;  %v3731_v4 = vpack.c.bf16 %v3645_v20, %v3645_v20  ;;  %v4095_v48 = vsel %vm12984_vm13, %v3780_v57, %v4094_v40  ;;  %v11292_v40 = vld [vmem:[#allocation2 + $0x358] sm:$0xf0]  ;;  %4235 = vst [vmem:[#allocation4 + $0x24] sm:$0xf] %v4203_v9 }
 0x2ec   : > { %v3481_v5 = vpop.f32.mrf.mxu3  ;;  %4091 = vst [vmem:[#allocation3 + $0x10] sm:$0xf] %v3779_v12 }
 0x2ed   : > { %v3782_v13 = vshrl.u32 %v3731_v4, 16  ;;  %v3482_v29 = vadd.f32 %v3481_v5, %v12653_v36  ;;  %v3785_v46 = vshll.u32 %v3731_v4, 16  ;;  %v4332_v36 = vrot.slane %v4331_v17, 4  ;;  %4096 = vst [vmem:[#allocation3 + $0x14] sm:$0x1] %v4095_v48 }
 0x2ee   : > { %v9805_v17 = vor.u32 %v11292_v40, %v9804_v54  ;;  %v4269_v5 = vld [vmem:[#allocation3 + $0xc] sm:$0xf]  ;;  %v9798_v54 = vld [vmem:[#allocation2 + $0x354] sm:$0xf0] }
 0x2ef   : > { %v3784_v49 = vrot.slane %v3782_v13, 7  ;;  %v3571_v20 = vadd.f32 %v12928_v24, %v3482_v29  ;;  %v4337_v4 = vsel %vm11832_vm5, %v4332_v36, %v4336_v34  ;;  %v4339_v37 = vshrl.u32 %v4269_v5, 16  ;;  %v11287_v36 = vld [vmem:[#allocation2 + $0x334] sm:$0xf] }
 0x2f0   : > { %4731 = vst [vmem:[#allocation4 + $0x28] sm:$0xf] %v4337_v4  ;;  %v4342_v2 = vshll.u32 %v4269_v5, 16  ;;  %v4204_v4 = vld [vmem:[#allocation3 + $0xc] sm:$0xf] }
 0x2f1   : > { %v3787_v51 = vor.u32 %v3785_v46, %v3784_v49  ;;  %v3646_v57 = vmax.f32 %v3571_v20, 0.0  ;;  %3523 = vmatmul.bf16.gmra.mxu3 %v9765_v28  ;;  %v13003_v7 = vpop.f32.mrf.mxu0  ;;  %v4101_v46 = vld [vmem:[#allocation3 + $0x20] sm:$0x1]  ;;  %v3788_v20 = vrot.slane %v3784_v49, 4  ;;  %v10288_v34 = vld [vmem:[#allocation4] sm:$0xf] }
 0x2f2   : > { %4236 = vst [vmem:[#allocation4 + $0x48] sm:$0xf] %v4204_v4 }
 0x2f3   : > { %v4098_v24 = vsel %vm12939_vm8, %v3787_v51, %v4097_v50  ;;  %v3732_v12 = vpack.c.bf16 %v3646_v57, %v3646_v57  ;;  %v11405_v51 = vld [vmem:[#allocation4 + $0x20] sm:$0xf0] }
 0x2f4   : > { %4099 = vst [vmem:[#allocation3 + $0x18] sm:$0xf] %v4098_v24  ;;  %v3484_v13 = vpop.f32.mrf.mxu3  ;;  %3617 = vmatmul.bf16.gmra.mxu0 %v9805_v17  ;;  %v10289_v40 = vor.u32 %v11405_v51, %v10288_v34  ;;  %v4341_v24 = vrot.slane %v4339_v37, 4  ;;  %v11401_v17 = vld [vmem:[#allocation4 + $0x4] sm:$0xf]  ;;  %v11567_v34 = vld [vmem:[%s14793_s3 + $0xb0] sm:$0xff] }
 0x2f5   : > { %v3790_v29 = vshrl.u32 %v3732_v12, 16  ;;  %v3485_v27 = vadd.f32 %v3484_v13, %v12666_v18  ;;  %v3793_v48 = vshll.u32 %v3732_v12, 16  ;;  %v4344_v12 = vrot.slane %v4342_v2, 5  ;;  %8354 = vmatpush.bf16.msrb.mxu3 %v11567_v34 }
 0x2f6   : > { %8183 = vmatmul.bf16.vlgmr.msra.gmra.mxu1 %v10289_v40 }
 0x2f7   : > { %v3792_v28 = vrot.slane %v3790_v29, 7  ;;  %v3574_v59 = vadd.f32 %v12947_v38, %v3485_v27  ;;  %v10290_v5 = vld [vmem:[#allocation4 + $0x24] sm:$0xf0]  ;;  %v4205_v27 = vld [vmem:[#allocation3 + $0x10] sm:$0xf]  ;;  %v4345_v2 = vor.u32 %v4344_v12, %v4341_v24 }
 0x2f8   : > { %4237 = vst [vmem:[#allocation4 + $0x6c] sm:$0xf] %v4205_v27 }
 0x2f9   : > { %v3795_v50 = vor.u32 %v3793_v48, %v3792_v28  ;;  %v3797_v9 = vrot.slane %v3792_v28, 4  ;;  %v3647_v57 = vmax.f32 %v3574_v59, 0.0  ;;  %v13011_v55 = vpop.f32.mrf.mxu0  ;;  %v9801_v28 = vor.u32 %v11287_v36, %v9798_v54  ;;  %v4270_v59 = vld [vmem:[#allocation3 + $0x10] sm:$0xf]  ;;  %v4271_v36 = vld [vmem:[#allocation3 + $0x14] sm:$0x1] }
 0x2fa   : > { %v10293_v48 = vor.u32 %v11401_v17, %v10290_v5  ;;  %v4346_v24 = vrot.slane %v4345_v2, 4  ;;  %v4358_v4 = vshll.u32 %v4271_v36, 16  ;;  %v11591_v36 = vld [vmem:[%s14793_s3 + $0x170] sm:$0xff] }
 0x2fb   : > { %v3796_v18 = vsel %vm12959_vm12, %v3788_v20, %v3795_v50  ;;  %v4102_v49 = vsel %vm12984_vm13, %v3797_v9, %v4101_v46  ;;  %v3733_v13 = vpack.c.bf16 %v3647_v57, %v3647_v57  ;;  %v4348_v50 = vshll.u32 %v4270_v59, 16  ;;  %v4104_v57 = vld [vmem:[#allocation3 + $0x24] sm:$0xf]  ;;  %8621 = vmatpush.bf16.msrb.mxu2 %v11591_v36 }
 0x2fc   : > { %4100 = vst [vmem:[#allocation3 + $0x1c] sm:$0xf] %v3796_v18  ;;  %v3486_v38 = vpop.f32.mrf.mxu3  ;;  %8272 = vmatmul.bf16.vlgmr.msra.gmra.mxu2 %v10293_v48  ;;  %v4352_v46 = vshrl.u32 %v4270_v59, 16 }
 0x2fd   : > { %v3487_v29 = vadd.f32 %v3486_v38, %v12673_v10  ;;  %4103 = vst [vmem:[#allocation3 + $0x20] sm:$0x1] %v4102_v49  ;;  %v3799_v20 = vshrl.u32 %v3733_v13, 16  ;;  %v3802_v10 = vshll.u32 %v3733_v13, 16  ;;  %v4350_v54 = vrot.slane %v4348_v50, 5 }
 0x2fe   : > { %v4354_v12 = vrot.slane %v4352_v46, 4 }
 0x2ff   : > { %v3576_v37 = vadd.f32 %v12977_v42, %v3487_v29  ;;  %v3801_v9 = vrot.slane %v3799_v20, 7  ;;  %v4351_v13 = vsel %vm11832_vm5, %v4346_v24, %v4350_v54  ;;  %v4206_v29 = vld [vmem:[#allocation3 + $0x18] sm:$0xf]  ;;  %v11414_v2 = vld [vmem:[#allocation4 + $0x68] sm:$0xf0] }
 0x300   : > { %v4355_v46 = vor.u32 %v4354_v12, %v4350_v54  ;;  %4732 = vst [vmem:[#allocation4 + $0x4c] sm:$0xf] %v4351_v13  ;;  %v11301_v54 = vld [vmem:[#allocation2 + $0x3a0] sm:$0xf0] }
 0x301   : > { %v3648_v51 = vmax.f32 %v3576_v37, 0.0  ;;  %3528 = vmatmul.bf16.gmra.mxu3 %v9801_v28  ;;  %v13022_v18 = vpop.f32.mrf.mxu0  ;;  %v3804_v42 = vor.u32 %v3802_v10, %v3801_v9  ;;  %v3805_v27 = vrot.slane %v3801_v9, 4  ;;  %v4108_v28 = vld [vmem:[#allocation3 + $0x2c] sm:$0x1]  ;;  %v10324_v37 = vld [vmem:[#allocation4 + $0x48] sm:$0xf] }
 0x302   : > { %v10325_v34 = vor.u32 %v11414_v2, %v10324_v37  ;;  %v4360_v10 = vrot.slane %v4358_v4, 5  ;;  %v4356_v24 = vrot.slane %v4355_v46, 4  ;;  %4238 = vst [vmem:[#allocation4 + $0x90] sm:$0xf] %v4206_v29 }
 0x303   : > { %v3734_v40 = vpack.c.bf16 %v3648_v51, %v3648_v51  ;;  %v4105_v49 = vsel %vm12939_vm8, %v3804_v42, %v4104_v57  ;;  %v4207_v48 = vld [vmem:[#allocation3 + $0x1c] sm:$0xf] }
 0x304   : > { %v3489_v38 = vpop.f32.mrf.mxu3  ;;  %4106 = vst [vmem:[#allocation3 + $0x24] sm:$0xf] %v4105_v49  ;;  %v11296_v51 = vld [vmem:[#allocation2 + $0x37c] sm:$0xf] }
 0x305   : > { %v3807_v17 = vshrl.u32 %v3734_v40, 16  ;;  %v3490_v5 = vadd.f32 %v3489_v38, %v12682_v16  ;;  %v3810_v20 = vshll.u32 %v3734_v40, 16  ;;  %v9834_v16 = vld [vmem:[#allocation2 + $0x39c] sm:$0xf0]  ;;  %v11575_v40 = vld [vmem:[%s14793_s3 + $0xf0] sm:$0xff] }
 0x306   : > { %4239 = vst [vmem:[#allocation4 + $0xb4] sm:$0xf] %v4207_v48  ;;  %v4273_v13 = vld [vmem:[#allocation3 + $0x1c] sm:$0xf]  ;;  %8443 = vmatpush.bf16.msrb.mxu0 %v11575_v40  ;;  %8188 = vmatmul.bf16.gmra.mxu1 %v10325_v34  ;;  %v9837_v46 = vor.u32 %v11296_v51, %v9834_v16 }
 0x307   : > { %v3809_v59 = vrot.slane %v3807_v17, 7  ;;  %v3579_v50 = vadd.f32 %v13003_v7, %v3490_v5  ;;  %v9840_v7 = vld [vmem:[#allocation2 + $0x380] sm:$0xf]  ;;  %v4361_v17 = vsel %vm11832_vm5, %v4356_v24, %v4360_v10  ;;  %v4272_v5 = vld [vmem:[#allocation3 + $0x18] sm:$0xf]  ;;  %v11583_v10 = vld [vmem:[%s14793_s3 + $0x130] sm:$0xff] }
 0x308   : > { %v9841_v48 = vor.u32 %v11301_v54, %v9840_v7  ;;  %v4366_v37 = vshll.u32 %v4272_v5, 16  ;;  %4733 = vst [vmem:[#allocation4 + $0x70] sm:$0xf] %v4361_v17  ;;  %8532 = vmatpush.bf16.msrb.mxu1 %v11583_v10  ;;  %v4111_v54 = vld [vmem:[#allocation3 + $0x30] sm:$0xf] }
 0x309   : > { %v3812_v9 = vor.u32 %v3810_v20, %v3809_v59  ;;  %v3814_v57 = vrot.slane %v3809_v59, 4  ;;  %v3649_v42 = vmax.f32 %v3579_v50, 0.0  ;;  %v13036_v12 = vpop.f32.mrf.mxu0  ;;  %v4274_v59 = vld [vmem:[#allocation3 + $0x20] sm:$0x1]  ;;  %v4363_v20 = vshrl.u32 %v4272_v5, 16 }
 0x30a   : > { %3622 = vmatmul.bf16.gmra.mxu0 %v9841_v48 }
 0x30b   : > { %v3813_v38 = vsel %vm12959_vm12, %v3805_v27, %v3812_v9  ;;  %v4109_v4 = vsel %vm12984_vm13, %v3814_v57, %v4108_v28  ;;  %v3735_v49 = vpack.c.bf16 %v3649_v42, %v3649_v42  ;;  %v14919_v27 = vld [vmem:[#allocation58_spill] sm:$0xff]  ;;  %v4372_v28 = vshll.u32 %v4273_v13, 16 }
 0x30c   : > { %4107 = vst [vmem:[#allocation3 + $0x28] sm:$0xf] %v3813_v38  ;;  %v3491_v29 = vpop.f32.mrf.mxu3  ;;  %v4365_v36 = vrot.slane %v4363_v20, 4  ;;  %v4368_v9 = vrot.slane %v4366_v37, 5  ;;  %v4376_v57 = vshrl.u32 %v4273_v13, 16  ;;  %v4382_v42 = vshll.u32 %v4274_v59, 16 }
 0x30d   : > { %4110 = vst [vmem:[#allocation3 + $0x2c] sm:$0x1] %v4109_v4  ;;  %v3816_v2 = vshrl.u32 %v3735_v49, 16  ;;  %v3492_v50 = vadd.f32 %v3491_v29, %v14919_v27  ;;  %v3819_v40 = vshll.u32 %v3735_v49, 16  ;;  %v4374_v7 = vrot.slane %v4372_v28, 5 }
 0x30e   : > { %v4369_v51 = vor.u32 %v4368_v9, %v4365_v36  ;;  %v4378_v16 = vrot.slane %v4376_v57, 4  ;;  %v4208_v38 = vld [vmem:[#allocation3 + $0x24] sm:$0xf]  ;;  %v4384_v13 = vrot.slane %v4382_v42, 5  ;;  %v11423_v20 = vld [vmem:[#allocation4 + $0xb0] sm:$0xf0] }
 0x30f   : > { %v13048_v24 = vrot.slane %v3816_v2, 7  ;;  %v3581_v34 = vadd.f32 %v13011_v55, %v3492_v50  ;;  %4240 = vst [vmem:[#allocation4 + $0xd8] sm:$0xf] %v4208_v38  ;;  %v11410_v55 = vld [vmem:[#allocation4 + $0x4c] sm:$0xf] }
 0x310   : > { %v4370_v17 = vrot.slane %v4369_v51, 4  ;;  %v4379_v29 = vor.u32 %v4378_v16, %v4374_v7  ;;  %v9876_v2 = vld [vmem:[#allocation2 + $0x3c8] sm:$0xf]  ;;  %v11310_v36 = vld [vmem:[#allocation2 + $0x3e8] sm:$0xf0] }
 0x311   : > { %v3821_v4 = vor.u32 %v3819_v40, %v13048_v24  ;;  %v3650_v5 = vmax.f32 %v3581_v34, 0.0  ;;  %3533 = vmatmul.bf16.gmra.mxu3 %v9837_v46  ;;  %v13052_v48 = vpop.f32.mrf.mxu0  ;;  %v3822_v27 = vrot.slane %v13048_v24, 4  ;;  %v10360_v50 = vld [vmem:[#allocation4 + $0x90] sm:$0xf]  ;;  %v5034_v34 = vld [vmem:[#allocation3 + $0xc] sm:$0xf] }
 0x312   : > { %v4375_v46 = vsel %vm11832_vm5, %v4370_v17, %v4374_v7  ;;  %v4380_v10 = vrot.slane %v4379_v29, 4  ;;  %v10326_v9 = vld [vmem:[#allocation4 + $0x6c] sm:$0xf0]  ;;  %v4115_v51 = vld [vmem:[#allocation3 + $0x38] sm:$0x1] }
 0x313   : > { %v4112_v49 = vsel %vm12939_vm8, %v3821_v4, %v4111_v54  ;;  %v3736_v59 = vpack.c.bf16 %v3650_v5, %v3650_v5  ;;  %v4209_v37 = vld [vmem:[#allocation3 + $0x28] sm:$0xf]  ;;  %4734 = vst [vmem:[#allocation4 + $0x94] sm:$0xf] %v4375_v46  ;;  %v10329_v54 = vor.u32 %v11410_v55, %v10326_v9  ;;  %v4275_v16 = vld [vmem:[#allocation3 + $0x24] sm:$0xf]  ;;  %v10361_v5 = vor.u32 %v11423_v20, %v10360_v50 }
 0x314   : > { %4113 = vst [vmem:[#allocation3 + $0x30] sm:$0xf] %v4112_v49  ;;  %v3494_v28 = vpop.f32.mrf.mxu3  ;;  %v4385_v24 = vsel %vm11832_vm5, %v4380_v10, %v4384_v13  ;;  %v4276_v38 = vld [vmem:[#allocation3 + $0x28] sm:$0xf]  ;;  %v4277_v17 = vld [vmem:[#allocation3 + $0x2c] sm:$0x1] }
 0x315   : > { %v3824_v57 = vshrl.u32 %v3736_v59, 16  ;;  %v3827_v42 = vshll.u32 %v3736_v59, 16  ;;  %v3495_v40 = vadd.f32 %v3494_v28, %v12723_v47  ;;  %4241 = vst [vmem:[#allocation4 + $0xfc] sm:$0xf] %v4209_v37  ;;  %v4387_v29 = vshrl.u32 %v4275_v16, 16  ;;  %8277 = vmatmul.bf16.gmra.mxu2 %v10329_v54 }
 0x316   : > { %4735 = vst [vmem:[#allocation4 + $0xb8] sm:$0xf] %v4385_v24  ;;  %v11305_v49 = vld [vmem:[#allocation2 + $0x3c4] sm:$0xf]  ;;  %v9870_v47 = vld [vmem:[#allocation2 + $0x3e4] sm:$0xf0]  ;;  %v9877_v59 = vor.u32 %v11310_v36, %v9876_v2  ;;  %8193 = vmatmul.bf16.gmra.mxu1 %v10361_v5 }
 0x317   : > { %v3826_v4 = vrot.slane %v3824_v57, 7  ;;  %v3584_v7 = vadd.f32 %v13022_v18, %v3495_v40  ;;  %v4390_v28 = vshll.u32 %v4275_v16, 16  ;;  %v4396_v55 = vshll.u32 %v4276_v38, 16  ;;  %v5035_v10 = vld [vmem:[#allocation3 + $0x10] sm:$0xf] }
 0x318   : > { %v4400_v46 = vshrl.u32 %v4276_v38, 16  ;;  %v4389_v37 = vrot.slane %v4387_v29, 4  ;;  %v4406_v57 = vshll.u32 %v4277_v17, 16  ;;  %5066 = vst [vmem:[#allocation4 + $0xc] sm:$0xf] %v5034_v34 }
 0x319   : > { %v3829_v9 = vor.u32 %v3827_v42, %v3826_v4  ;;  %v3831_v32 = vrot.slane %v3826_v4, 4  ;;  %v3651_v13 = vmax.f32 %v3584_v7, 0.0  ;;  %v13063_v60 = vpop.f32.mrf.mxu0  ;;  %v4392_v20 = vrot.slane %v4390_v28, 5  ;;  %5067 = vst [vmem:[#allocation4 + $0x30] sm:$0xf] %v5035_v10 }
 0x31a   : > { %v4398_v50 = vrot.slane %v4396_v55, 5  ;;  %v4402_v18 = vrot.slane %v4400_v46, 4  ;;  %v9873_v7 = vor.u32 %v11305_v49, %v9870_v47  ;;  %3627 = vmatmul.bf16.gmra.mxu0 %v9877_v59  ;;  %v4408_v29 = vrot.slane %v4406_v57, 5  ;;  %v11566_v55 = vld [vmem:[%s14793_s3 + $0xa8] sm:$0xff]  ;;  %v4118_v5 = vld [vmem:[#allocation3 + $0x3c] sm:$0xf] }
 0x31b   : > { %v3830_v40 = vsel %vm12959_vm12, %v3822_v27, %v3829_v9  ;;  %v4116_v2 = vsel %vm12984_vm13, %v3831_v32, %v4115_v51  ;;  %v3737_v36 = vpack.c.bf16 %v3651_v13, %v3651_v13  ;;  %v4210_v54 = vld [vmem:[#allocation3 + $0x30] sm:$0xf]  ;;  %v4393_v24 = vor.u32 %v4392_v20, %v4389_v37  ;;  %v11419_v46 = vld [vmem:[#allocation4 + $0x94] sm:$0xf]  ;;  %8355 = vmatpush.bf16.msrb.mxu3 %v11566_v55 }
 0x31c   : > { %4114 = vst [vmem:[#allocation3 + $0x34] sm:$0xf] %v3830_v40  ;;  %v3496_v42 = vpop.f32.mrf.mxu3  ;;  %v4403_v16 = vor.u32 %v4402_v18, %v4398_v50  ;;  %v4278_v34 = vld [vmem:[#allocation3 + $0x30] sm:$0xf]  ;;  %v13083_v37 = vld [vmem:[#allocation4 + $0xf8] sm:$0xf0] }
 0x31d   : > { %4117 = vst [vmem:[#allocation3 + $0x38] sm:$0x1] %v4116_v2  ;;  %v3833_v38 = vshrl.u32 %v3737_v36, 16  ;;  %v3497_v4 = vadd.f32 %v3496_v42, %v12752_v56  ;;  %v4394_v17 = vrot.slane %v4393_v24, 4  ;;  %v3836_v51 = vshll.u32 %v3737_v36, 16 }
 0x31e   : > { %v4404_v27 = vrot.slane %v4403_v16, 4  ;;  %4242 = vst [vmem:[#allocation4 + $0x120] sm:$0xf] %v4210_v54  ;;  %v4411_v47 = vshrl.u32 %v4278_v34, 16  ;;  %v10362_v9 = vld [vmem:[#allocation4 + $0xb4] sm:$0xf0] }
 0x31f   : > { %v13070_v32 = vrot.slane %v3833_v38, 7  ;;  %v3586_v28 = vadd.f32 %v13036_v12, %v3497_v4  ;;  %v4399_v56 = vsel %vm11832_vm5, %v4394_v17, %v4398_v50  ;;  %v13081_v12 = vld [vmem:[#allocation4 + $0xd8] sm:$0xf]  ;;  %v4414_v50 = vshll.u32 %v4278_v34, 16  ;;  %v11319_v38 = vld [vmem:[#allocation2 + $0x430] sm:$0xf0] }
 0x320   : > { %v4409_v49 = vsel %vm11832_vm5, %v4404_v27, %v4408_v29  ;;  %4736 = vst [vmem:[#allocation4 + $0xdc] sm:$0xf] %v4399_v56  ;;  %v4413_v20 = vrot.slane %v4411_v47, 4  ;;  %v13089_v2 = vld [vmem:[#allocation2 + $0x410] sm:$0xf]  ;;  %v1265_v54 = vshrl.u32 %v12743_v35, 16  ;;  %v10365_v24 = vor.u32 %v11419_v46, %v10362_v9 }
 0x321   : > { %v3838_v59 = vor.u32 %v3836_v51, %v13070_v32  ;;  %v3652_v13 = vmax.f32 %v3586_v28, 0.0  ;;  %3538 = vmatmul.bf16.gmra.mxu3 %v9873_v7  ;;  %4737 = vst [vmem:[#allocation4 + $0x100] sm:$0xf] %v4409_v49  ;;  %v13085_v10 = vpop.f32.mrf.mxu0  ;;  %v1268_v42 = vshll.u32 %v12743_v35, 16  ;;  %v4416_v4 = vrot.slane %v4414_v50, 5 }
 0x322   : > { %v3839_v34 = vrot.slane %v13070_v32, 4  ;;  %v10397_v27 = vor.u32 %v13083_v37, %v13081_v12  ;;  %v1267_v46 = vrot.slane %v1265_v54, 4  ;;  %v4122_v32 = vld [vmem:[#allocation3 + $0x44] sm:$0x1]  ;;  %v9906_v54 = vld [vmem:[#allocation2 + $0x42c] sm:$0xf0] }
 0x323   : > { %v4119_v18 = vsel %vm12939_vm8, %v3838_v59, %v4118_v5  ;;  %v3738_v57 = vpack.c.bf16 %v3652_v13, %v3652_v13  ;;  %v4211_v40 = vld [vmem:[#allocation3 + $0x34] sm:$0xf]  ;;  %v4417_v55 = vor.u32 %v4416_v4, %v4413_v20  ;;  %v333_v59 = vld [vmem:[%s11761_s20 + $0x1a8] sm:$0x3]  ;;  %v1270_v9 = vrot.slane %v1268_v42, 5 }
 0x324   : > { %v4279_v36 = vld [vmem:[#allocation3 + $0x34] sm:$0xf]  ;;  %4120 = vst [vmem:[#allocation3 + $0x3c] sm:$0xf] %v4119_v18  ;;  %v3499_v16 = vpop.f32.mrf.mxu3  ;;  %v4280_v51 = vld [vmem:[#allocation3 + $0x38] sm:$0x1]  ;;  %v9913_v13 = vor.u32 %v11319_v38, %v13089_v2 }
 0x325   : > { %v4420_v7 = vshll.u32 %v4279_v36, 16  ;;  %v3841_v17 = vshrl.u32 %v3738_v57, 16  ;;  %v3500_v29 = vadd.f32 %v3499_v16, %v12764_v25  ;;  %4243 = vst [vmem:[#allocation4 + $0x144] sm:$0xf] %v4211_v40  ;;  %v3844_v28 = vshll.u32 %v3738_v57, 16  ;;  %8282 = vmatmul.bf16.gmra.mxu2 %v10365_v24  ;;  %v11590_v25 = vld [vmem:[%s14793_s3 + $0x168] sm:$0xff] }
 0x326   : > { %v4424_v56 = vshrl.u32 %v4279_v36, 16  ;;  %v4418_v50 = vrot.slane %v4417_v55, 4  ;;  %v4430_v37 = vshll.u32 %v4280_v51, 16  ;;  %v1271_v40 = vor.u32 %v1270_v9, %v1267_v46  ;;  %v11314_v36 = vld [vmem:[#allocation2 + $0x40c] sm:$0xf]  ;;  %8622 = vmatpush.bf16.msrb.mxu2 %v11590_v25  ;;  %8198 = vmatmul.bf16.gmra.mxu1 %v10397_v27  ;;  %v11573_v27 = vld [vmem:[%s14793_s3 + $0xe0] sm:$0xff] }
 0x327   : > { %v4422_v5 = vrot.slane %v4420_v7, 5  ;;  %v3843_v49 = vrot.slane %v3841_v17, 7  ;;  %v3589_v47 = vadd.f32 %v13052_v48, %v3500_v29  ;;  %v11574_v48 = vld [vmem:[%s14793_s3 + $0xe8] sm:$0xff]  ;;  %v13110_v16 = vpack.c.bf16 %v333_v59, %v333_v59 }
 0x328   : > { %v4426_v12 = vrot.slane %v4424_v56, 4  ;;  %v1274_v38 = vshll.u32 %v12745_v3, 16  ;;  %8444 = vmatpush.bf16.msrb.mxu0 %v11574_v48  ;;  %v1272_v51 = vrot.slane %v1271_v40, 4  ;;  %v4125_v46 = vld [vmem:[#allocation3 + $0x48] sm:$0xf]  ;;  %v11564_v40 = vld [vmem:[%s14793_s3 + $0x98] sm:$0xff] }
 0x329   : > { %v3846_v20 = vor.u32 %v3844_v28, %v3843_v49  ;;  %v3848_v18 = vrot.slane %v3843_v49, 4  ;;  %v3653_v57 = vmax.f32 %v3589_v47, 0.0  ;;  %v13106_v42 = vpop.f32.mrf.mxu0  ;;  %v4423_v2 = vsel %vm11832_vm5, %v4418_v50, %v4422_v5  ;;  %v11565_v50 = vld [vmem:[%s14793_s3 + $0xa0] sm:$0xff] }
 0x32a   : > { %v4427_v24 = vor.u32 %v4426_v12, %v4422_v5  ;;  %4738 = vst [vmem:[#allocation4 + $0x124] sm:$0xf] %v4423_v2  ;;  %v4432_v5 = vrot.slane %v4430_v37, 5  ;;  %v1276_v56 = vrot.slane %v1274_v38, 5  ;;  %3632 = vmatmul.bf16.gmra.mxu0 %v9913_v13  ;;  %v1278_v13 = vshrl.u32 %v12745_v3, 16  ;;  %8356 = vmatpush.bf16.msrb.mxu3 %v11565_v50 }
 0x32b   : > { %v3847_v4 = vsel %vm12959_vm12, %v3839_v34, %v3846_v20  ;;  %v4123_v7 = vsel %vm12984_vm13, %v3848_v18, %v4122_v32  ;;  %v3739_v17 = vpack.c.bf16 %v3653_v57, %v3653_v57  ;;  %v4212_v29 = vld [vmem:[#allocation3 + $0x3c] sm:$0xf]  ;;  %v9909_v34 = vor.u32 %v11314_v36, %v9906_v54  ;;  %v11582_v32 = vld [vmem:[%s14793_s3 + $0x128] sm:$0xff]  ;;  %v11428_v2 = vld [vmem:[#allocation4 + $0xdc] sm:$0xf] }
 0x32c   : > { %4121 = vst [vmem:[#allocation3 + $0x40] sm:$0xf] %v3847_v4  ;;  %v3501_v28 = vpop.f32.mrf.mxu3  ;;  %v4428_v55 = vrot.slane %v4427_v24, 4  ;;  %v1284_v25 = vshll.u32 %v13110_v16, 16  ;;  %v9373_v20 = vrot.slane %v12743_v35, 9  ;;  %8533 = vmatpush.bf16.msrb.mxu1 %v11582_v32  ;;  %v1280_v18 = vrot.slane %v1278_v13, 4  ;;  %8445 = vmatpush.bf16.msrb.mxu0 %v11573_v27 }
 0x32d   : > { %4124 = vst [vmem:[#allocation3 + $0x44] sm:$0x1] %v4123_v7  ;;  %v3850_v49 = vshrl.u32 %v3739_v17, 16  ;;  %v3853_v47 = vshll.u32 %v3739_v17, 16  ;;  %v3502_v59 = vadd.f32 %v3501_v28, %v12767_v45  ;;  %v1277_v45 = vsel %vm11832_vm5, %v1272_v51, %v1276_v56  ;;  %v11572_v35 = vld [vmem:[%s14793_s3 + $0xd8] sm:$0xff]  ;;  %v11571_v32 = vld [vmem:[%s14793_s3 + $0xd0] sm:$0xff] }
 0x32e   : > { %v4433_v9 = vsel %vm11832_vm5, %v4428_v55, %v4432_v5  ;;  %4244 = vst [vmem:[#allocation4 + $0x168] sm:$0xf] %v4212_v29  ;;  %v1327_v57 = vrot.slane %v12745_v3, 5  ;;  %v1330_v48 = vrot.slane %v13110_v16, 5  ;;  %v1281_v3 = vor.u32 %v1280_v18, %v1276_v56  ;;  %v4281_v7 = vld [vmem:[#allocation3 + $0x3c] sm:$0xf]  ;;  %8357 = vmatpush.bf16.msrb.mxu3 %v11564_v40 }
 0x32f   : > { %v13132_v12 = vrot.slane %v3850_v49, 7  ;;  %v3591_v37 = vadd.f32 %v13063_v60, %v3502_v59  ;;  %4739 = vst [vmem:[#allocation4 + $0x148] sm:$0xf] %v4433_v9  ;;  %v10398_v60 = vld [vmem:[#allocation4 + $0xfc] sm:$0xf0]  ;;  %v1286_v38 = vrot.slane %v1284_v25, 5 }
 0x330   : > { %1320 = vst [vmem:[#allocation2 + $0x454] sm:$0xf] %v1277_v45  ;;  %v1328_v16 = vsel %vm11803_vm4, %v9373_v20, %v1327_v57  ;;  %v1329_v4 = vrot.slane %v1327_v57, 4  ;;  %v13152_v51 = vld [vmem:[#allocation4 + $0x120] sm:$0xf]  ;;  %v10401_v5 = vor.u32 %v11428_v2, %v10398_v60  ;;  %v1282_v56 = vrot.slane %v1281_v3, 4  ;;  %8446 = vmatpush.bf16.msrb.mxu0 %v11572_v35 }
 0x331   : > { %v3855_v36 = vor.u32 %v3853_v47, %v13132_v12  ;;  %v3654_v54 = vmax.f32 %v3591_v37, 0.0  ;;  %3543 = vmatmul.bf16.gmra.mxu3 %v9909_v34  ;;  %v13146_v24 = vpop.f32.mrf.mxu0  ;;  %v13154_v28 = vld [vmem:[#allocation4 + $0x140] sm:$0xf0]  ;;  %1364 = vst [vmem:[#allocation2 + $0x458] sm:$0xf] %v1328_v16  ;;  %v11563_v59 = vld [vmem:[%s14793_s3 + $0x90] sm:$0xff] }
 0x332   : > { %v1331_v47 = vsel %vm11803_vm4, %v1329_v4, %v1330_v48  ;;  %v4435_v34 = vshrl.u32 %v4281_v7, 16  ;;  %v4129_v27 = vld [vmem:[#allocation3 + $0x50] sm:$0x1]  ;;  %v10433_v45 = vor.u32 %v13154_v28, %v13152_v51  ;;  %v1287_v13 = vsel %vm11832_vm5, %v1282_v56, %v1286_v38  ;;  %8358 = vmatpush.bf16.msrb.mxu3 %v11563_v59  ;;  %v11562_v60 = vld [vmem:[%s14793_s3 + $0x88] sm:$0xff]  ;;  %v4762_v38 = vld [vmem:[#allocation3] sm:$0xe] }
 0x333   : > { %v4126_v17 = vsel %vm12939_vm8, %v3855_v36, %v4125_v46  ;;  %v3740_v29 = vpack.c.bf16 %v3654_v54, %v3654_v54  ;;  %v4213_v55 = vld [vmem:[#allocation3 + $0x40] sm:$0xf]  ;;  %1365 = vst [vmem:[#allocation2 + $0x47c] sm:$0xf] %v1331_v47  ;;  %v4438_v57 = vshll.u32 %v4281_v7, 16  ;;  %v3856_v54 = vrot.slane %v13132_v12, 4 }
 0x334   : > { %4127 = vst [vmem:[#allocation3 + $0x48] sm:$0xf] %v4126_v17  ;;  %v3504_v49 = vpop.f32.mrf.mxu3  ;;  %v4282_v50 = vld [vmem:[#allocation3 + $0x40] sm:$0xf]  ;;  %v4283_v37 = vld [vmem:[#allocation3 + $0x44] sm:$0x1]  ;;  %8447 = vmatpush.bf16.msrb.mxu0 %v11571_v32 }
 0x335   : > { %v3858_v46 = vshrl.u32 %v3740_v29, 16  ;;  %v3505_v9 = vadd.f32 %v3504_v49, %v12777_v33  ;;  %4245 = vst [vmem:[#allocation4 + $0x18c] sm:$0xf] %v4213_v55  ;;  %v3861_v20 = vshll.u32 %v3740_v29, 16  ;;  %v4437_v18 = vrot.slane %v4435_v34, 4  ;;  %8287 = vmatmul.bf16.gmra.mxu2 %v10401_v5 }
 0x336   : > { %1321 = vst [vmem:[#allocation2 + $0x478] sm:$0xf] %v1287_v13  ;;  %v4444_v48 = vshll.u32 %v4282_v50, 16  ;;  %v4448_v40 = vshrl.u32 %v4282_v50, 16  ;;  %v4454_v36 = vshll.u32 %v4283_v37, 16  ;;  %v4440_v7 = vrot.slane %v4438_v57, 5  ;;  %8359 = vmatpush.bf16.msrb.mxu3 %v11562_v60  ;;  %8203 = vmatmul.bf16.gmra.mxu1 %v10433_v45 }
 0x337   : > { %v3860_v25 = vrot.slane %v3858_v46, 7  ;;  %v3594_v33 = vadd.f32 %v13085_v10, %v3505_v9  ;;  %v11570_v10 = vld [vmem:[%s14793_s3 + $0xc8] sm:$0xff]  ;;  %v11323_v16 = vld [vmem:[#allocation2 + $0x454] sm:$0xf]  ;;  %v4763_v49 = vld [vmem:[#allocation3 + $0x4] sm:$0xf] }
 0x338   : > { %v4446_v17 = vrot.slane %v4444_v48, 5  ;;  %v4450_v29 = vrot.slane %v4448_v40, 4  ;;  %v9948_v55 = vld [vmem:[#allocation2 + $0x458] sm:$0xf]  ;;  %v13183_v56 = vld [vmem:[#allocation3 + $0x10] sm:$0xf]  ;;  %v4441_v59 = vor.u32 %v4440_v7, %v4437_v18  ;;  %8448 = vmatpush.bf16.msrb.mxu0 %v11570_v10 }
 0x339   : > { %v3863_v35 = vor.u32 %v3861_v20, %v3860_v25  ;;  %v3865_v2 = vrot.slane %v3860_v25, 4  ;;  %v3655_v3 = vmax.f32 %v3594_v33, 0.0  ;;  %v13177_v4 = vpop.f32.mrf.mxu0  ;;  %v4456_v46 = vrot.slane %v4454_v36, 5  ;;  %v4764_v9 = vld [vmem:[#allocation3 + $0x8] sm:$0x1]  ;;  %v11561_v45 = vld [vmem:[%s14793_s3 + $0x80] sm:$0xff] }
 0x33a   : > { %v4451_v34 = vor.u32 %v4450_v29, %v4446_v17  ;;  %v10238_v32 = vrot.slane %v4762_v38, 9  ;;  %v4765_v50 = vld [vmem:[#allocation3 + $0xc] sm:$0xe]  ;;  %v11328_v25 = vld [vmem:[#allocation2 + $0x478] sm:$0xf0]  ;;  %v4442_v57 = vrot.slane %v4441_v59, 4  ;;  %8360 = vmatpush.bf16.msrb.mxu3 %v11561_v45 }
 0x33b   : > { %v3864_v51 = vsel %vm12959_vm12, %v3856_v54, %v3863_v35  ;;  %v4130_v12 = vsel %vm12984_vm13, %v3865_v2, %v4129_v27  ;;  %v3741_v28 = vpack.c.bf16 %v3655_v3, %v3655_v3  ;;  %v4214_v5 = vld [vmem:[#allocation3 + $0x48] sm:$0xf]  ;;  %v9949_v33 = vor.u32 %v11328_v25, %v9948_v55  ;;  %v4132_v54 = vld [vmem:[#allocation3 + $0x54] sm:$0xf]  ;;  %v10434_v7 = vld [vmem:[#allocation4 + $0x144] sm:$0xf0] }
 0x33c   : > { %4128 = vst [vmem:[#allocation3 + $0x4c] sm:$0xf] %v3864_v51  ;;  %v3506_v47 = vpop.f32.mrf.mxu3  ;;  %v4452_v48 = vrot.slane %v4451_v34, 4  ;;  %v4860_v60 = vrot.slane %v4763_v49, 5  ;;  %v4447_v35 = vsel %vm11832_vm5, %v4442_v57, %v4446_v17  ;;  %v4863_v3 = vrot.slane %v4764_v9, 5 }
 0x33d   : > { %4131 = vst [vmem:[#allocation3 + $0x50] sm:$0x1] %v4130_v12  ;;  %v3867_v13 = vshrl.u32 %v3741_v28, 16  ;;  %v3870_v37 = vshll.u32 %v3741_v28, 16  ;;  %v3507_v27 = vadd.f32 %v3506_v47, %v12782_v63  ;;  %v9942_v20 = vld [vmem:[#allocation2 + $0x474] sm:$0xf0]  ;;  %3637 = vmatmul.bf16.gmra.mxu0 %v9949_v33 }
 0x33e   : > { %4246 = vst [vmem:[#allocation4 + $0x1b0] sm:$0xf] %v4214_v5  ;;  %v9945_v36 = vor.u32 %v11323_v16, %v9942_v20  ;;  %v11569_v63 = vld [vmem:[%s14793_s3 + $0xc0] sm:$0xff]  ;;  %v4457_v2 = vsel %vm11832_vm5, %v4452_v48, %v4456_v46  ;;  %v4867_v10 = vrot.slane %v13183_v56, 5  ;;  %v11437_v16 = vld [vmem:[#allocation4 + $0x124] sm:$0xf]  ;;  %v4861_v51 = vsel %vm11803_vm4, %v10238_v32, %v4860_v60 }
 0x33f   : > { %v13186_v18 = vrot.slane %v3867_v13, 7  ;;  %v3596_v40 = vadd.f32 %v13106_v42, %v3507_v27  ;;  %v4767_v42 = vld [vmem:[#allocation3 + $0x14] sm:$0x1]  ;;  %4740 = vst [vmem:[#allocation4 + $0x16c] sm:$0xf] %v4447_v35  ;;  %8449 = vmatpush.bf16.msrb.mxu0 %v11569_v63  ;;  %v10239_v12 = vrot.slane %v4765_v50, 9  ;;  %v10437_v34 = vor.u32 %v11437_v16, %v10434_v7 }
 0x340   : > { %v13203_v17 = vld [vmem:[#allocation4 + $0x188] sm:$0xf0]  ;;  %4741 = vst [vmem:[#allocation4 + $0x190] sm:$0xf] %v4457_v2  ;;  %v4862_v55 = vrot.slane %v4860_v60, 4  ;;  %v4869_v5 = vrot.slane %v4867_v10, 4 }
 0x341   : > { %v3872_v38 = vor.u32 %v3870_v37, %v13186_v18  ;;  %v3656_v29 = vmax.f32 %v3596_v40, 0.0  ;;  %3548 = vmatmul.bf16.gmra.mxu3 %v9945_v36  ;;  %v13205_v28 = vpop.f32.mrf.mxu0  ;;  %5002 = vst [vmem:[#allocation4 + $0x8] sm:$0xf] %v4861_v51  ;;  %v4870_v59 = vrot.slane %v4767_v42, 5  ;;  %v4284_v32 = vld [vmem:[#allocation3 + $0x48] sm:$0xf]  ;;  %v4868_v13 = vsel %vm11803_vm4, %v10239_v12, %v4867_v10 }
 0x342   : > { %v4864_v9 = vsel %vm11803_vm4, %v4862_v55, %v4863_v3  ;;  %v10468_v25 = vld [vmem:[#allocation4 + $0x168] sm:$0xf]  ;;  %v4136_v33 = vld [vmem:[#allocation3 + $0x5c] sm:$0x1]  ;;  %v4459_v40 = vshrl.u32 %v4284_v32, 16  ;;  %v4462_v36 = vshll.u32 %v4284_v32, 16 }
 0x343   : > { %v4133_v49 = vsel %vm12939_vm8, %v3872_v38, %v4132_v54  ;;  %v3742_v56 = vpack.c.bf16 %v3656_v29, %v3656_v29  ;;  %v4215_v47 = vld [vmem:[#allocation3 + $0x4c] sm:$0xf]  ;;  %v10469_v57 = vor.u32 %v13203_v17, %v10468_v25  ;;  %5003 = vst [vmem:[#allocation4 + $0x2c] sm:$0xf] %v4864_v9  ;;  %v4871_v45 = vsel %vm11803_vm4, %v4869_v5, %v4870_v59  ;;  %v5036_v63 = vld [vmem:[#allocation3 + $0x18] sm:$0xf] }
 0x344   : > { %4134 = vst [vmem:[#allocation3 + $0x54] sm:$0xf] %v4133_v49  ;;  %v3509_v46 = vpop.f32.mrf.mxu3  ;;  %v4285_v50 = vld [vmem:[#allocation3 + $0x4c] sm:$0xf]  ;;  %v4286_v48 = vld [vmem:[#allocation3 + $0x50] sm:$0x1] }
 0x345   : > { %v3875_v37 = vshrl.u32 %v3742_v56, 16  ;;  %v3878_v27 = vshll.u32 %v3742_v56, 16  ;;  %v3510_v20 = vadd.f32 %v3509_v46, %v12794_v11  ;;  %4247 = vst [vmem:[#allocation4 + $0x1d4] sm:$0xf] %v4215_v47  ;;  %v4468_v35 = vshll.u32 %v4285_v50, 16  ;;  %8292 = vmatmul.bf16.gmra.mxu2 %v10437_v34  ;;  %v11589_v38 = vld [vmem:[%s14793_s3 + $0x160] sm:$0xff] }
 0x346   : > { %v4472_v2 = vshrl.u32 %v4285_v50, 16  ;;  %5004 = vst [vmem:[#allocation4 + $0x50] sm:$0xf] %v4868_v13  ;;  %v3873_v11 = vrot.slane %v13186_v18, 4  ;;  %v4461_v3 = vrot.slane %v4459_v40, 4  ;;  %v4464_v42 = vrot.slane %v4462_v36, 5  ;;  %8623 = vmatpush.bf16.msrb.mxu2 %v11589_v38  ;;  %8208 = vmatmul.bf16.gmra.mxu1 %v10469_v57 }
 0x347   : > { %v3877_v60 = vrot.slane %v3875_v37, 7  ;;  %v3599_v54 = vadd.f32 %v13146_v24, %v3510_v20  ;;  %v4478_v10 = vshll.u32 %v4286_v48, 16  ;;  %v4470_v51 = vrot.slane %v4468_v35, 5  ;;  %v11402_v12 = vld [vmem:[#allocation4 + $0xc] sm:$0xf] }
 0x348   : > { %v10298_v17 = vld [vmem:[#allocation4 + $0x2c] sm:$0xf0]  ;;  %v4465_v55 = vor.u32 %v4464_v42, %v4461_v3  ;;  %v4474_v5 = vrot.slane %v4472_v2, 4  ;;  %5005 = vst [vmem:[#allocation4 + $0x74] sm:$0xf] %v4871_v45  ;;  %v11581_v36 = vld [vmem:[%s14793_s3 + $0x120] sm:$0xff] }
 0x349   : > { %v3880_v16 = vor.u32 %v3878_v27, %v3877_v60  ;;  %v3882_v7 = vrot.slane %v3877_v60, 4  ;;  %v3657_v29 = vmax.f32 %v3599_v54, 0.0  ;;  %v13222_v24 = vpop.f32.mrf.mxu0  ;;  %v10296_v47 = vld [vmem:[#allocation4 + $0x8] sm:$0xf]  ;;  %5068 = vst [vmem:[#allocation4 + $0x54] sm:$0xf] %v5036_v63  ;;  %v10301_v27 = vor.u32 %v11402_v12, %v10298_v17  ;;  %8534 = vmatpush.bf16.msrb.mxu1 %v11581_v36 }
 0x34a   : > { %v4768_v59 = vld [vmem:[#allocation3 + $0x18] sm:$0xe]  ;;  %v4466_v46 = vrot.slane %v4465_v55, 4  ;;  %v4475_v9 = vor.u32 %v4474_v5, %v4470_v51  ;;  %v4769_v32 = vld [vmem:[#allocation3 + $0x1c] sm:$0xf]  ;;  %v4480_v25 = vrot.slane %v4478_v10, 5 }
 0x34b   : > { %v3881_v18 = vsel %vm12959_vm12, %v3873_v11, %v3880_v16  ;;  %v4137_v49 = vsel %vm12984_vm13, %v3882_v7, %v4136_v33  ;;  %v3743_v56 = vpack.c.bf16 %v3657_v29, %v3657_v29  ;;  %v11406_v37 = vld [vmem:[#allocation4 + $0x28] sm:$0xf0]  ;;  %v5037_v20 = vld [vmem:[#allocation3 + $0x1c] sm:$0xf]  ;;  %v4216_v45 = vld [vmem:[#allocation3 + $0x54] sm:$0xf] }
 0x34c   : > { %4135 = vst [vmem:[#allocation3 + $0x58] sm:$0xf] %v3881_v18  ;;  %v3511_v34 = vpop.f32.mrf.mxu3  ;;  %v10297_v48 = vor.u32 %v11406_v37, %v10296_v47  ;;  %v4471_v33 = vsel %vm11832_vm5, %v4466_v46, %v4470_v51  ;;  %v4476_v40 = vrot.slane %v4475_v9, 4  ;;  %v10240_v63 = vrot.slane %v4768_v59, 9  ;;  %v4139_v35 = vld [vmem:[#allocation3 + $0x60] sm:$0xf] }
 0x34d   : > { %4138 = vst [vmem:[#allocation3 + $0x5c] sm:$0x1] %v4137_v49  ;;  %v3884_v50 = vshrl.u32 %v3743_v56, 16  ;;  %v3512_v13 = vadd.f32 %v3511_v34, %v12796_v58  ;;  %v3887_v57 = vshll.u32 %v3743_v56, 16  ;;  %v4874_v54 = vrot.slane %v4769_v32, 5  ;;  %8450 = vmatmul.bf16.vlgmr.msrb.gmra.mxu0 %v10301_v27 }
 0x34e   : > { %4742 = vst [vmem:[#allocation4 + $0x1b4] sm:$0xf] %v4471_v33  ;;  %v4481_v2 = vsel %vm11832_vm5, %v4476_v40, %v4480_v25  ;;  %v4770_v11 = vld [vmem:[#allocation3 + $0x20] sm:$0x1]  ;;  %v10470_v42 = vld [vmem:[#allocation4 + $0x18c] sm:$0xf0] }
 0x34f   : > { %v13234_v60 = vrot.slane %v3884_v50, 7  ;;  %v3601_v58 = vadd.f32 %v13177_v4, %v3512_v13  ;;  %4248 = vst [vmem:[#allocation4 + $0x1f8] sm:$0xf] %v4216_v45  ;;  %v4875_v38 = vsel %vm11803_vm4, %v10240_v63, %v4874_v54  ;;  %v11446_v4 = vld [vmem:[#allocation4 + $0x16c] sm:$0xf]  ;;  %v4876_v55 = vrot.slane %v4874_v54, 4 }
 0x350   : > { %4743 = vst [vmem:[#allocation4 + $0x1d8] sm:$0xf] %v4481_v2  ;;  %v10504_v16 = vld [vmem:[#allocation4 + $0x1b0] sm:$0xf]  ;;  %v11459_v7 = vld [vmem:[#allocation4 + $0x1d0] sm:$0xf0]  ;;  %v10473_v18 = vor.u32 %v11446_v4, %v10470_v42 }
 0x351   : > { %v3889_v3 = vor.u32 %v3887_v57, %v13234_v60  ;;  %v3658_v10 = vmax.f32 %v3601_v58, 0.0  ;;  %8361 = vmatmul.bf16.vlgmr.msrb.gmra.mxu3 %v10297_v48  ;;  %v13242_v29 = vpop.f32.mrf.mxu0  ;;  %5069 = vst [vmem:[#allocation4 + $0x78] sm:$0xf] %v5037_v20  ;;  %v4877_v5 = vrot.slane %v4770_v11, 5  ;;  %v4287_v56 = vld [vmem:[#allocation3 + $0x54] sm:$0xf]  ;;  %v10505_v34 = vor.u32 %v11459_v7, %v10504_v16 }
 0x352   : > { %5006 = vst [vmem:[#allocation4 + $0x98] sm:$0xf] %v4875_v38  ;;  %v4143_v50 = vld [vmem:[#allocation3 + $0x68] sm:$0x1]  ;;  %v4483_v13 = vshrl.u32 %v4287_v56, 16  ;;  %v4486_v37 = vshll.u32 %v4287_v56, 16 }
 0x353   : > { %v4140_v51 = vsel %vm12939_vm8, %v3889_v3, %v4139_v35  ;;  %v3744_v12 = vpack.c.bf16 %v3658_v10, %v3658_v10  ;;  %v4217_v17 = vld [vmem:[#allocation3 + $0x58] sm:$0xf]  ;;  %v4878_v32 = vsel %vm11803_vm4, %v4876_v55, %v4877_v5  ;;  %v5038_v57 = vld [vmem:[#allocation3 + $0x24] sm:$0xf]  ;;  %v3890_v58 = vrot.slane %v13234_v60, 4 }
 0x354   : > { %4141 = vst [vmem:[#allocation3 + $0x60] sm:$0xf] %v4140_v51  ;;  %v3514_v49 = vpop.f32.mrf.mxu3  ;;  %v4288_v47 = vld [vmem:[#allocation3 + $0x58] sm:$0xf]  ;;  %v4289_v9 = vld [vmem:[#allocation3 + $0x5c] sm:$0x1] }
 0x355   : > { %v3892_v59 = vshrl.u32 %v3744_v12, 16  ;;  %v3515_v46 = vadd.f32 %v3514_v49, %v12806_v1  ;;  %4249 = vst [vmem:[#allocation4 + $0x21c] sm:$0xf] %v4217_v17  ;;  %v4492_v27 = vshll.u32 %v4288_v47, 16  ;;  %v4496_v25 = vshrl.u32 %v4288_v47, 16  ;;  %8297 = vmatmul.bf16.gmra.mxu2 %v10473_v18 }
 0x356   : > { %v3895_v48 = vshll.u32 %v3744_v12, 16  ;;  %v4502_v40 = vshll.u32 %v4289_v9, 16  ;;  %5007 = vst [vmem:[#allocation4 + $0xbc] sm:$0xf] %v4878_v32  ;;  %v4485_v36 = vrot.slane %v4483_v13, 4  ;;  %v4488_v45 = vrot.slane %v4486_v37, 5  ;;  %8213 = vmatmul.bf16.gmra.mxu1 %v10505_v34 }
 0x357   : > { %v3894_v20 = vrot.slane %v3892_v59, 7  ;;  %v3604_v33 = vadd.f32 %v13205_v28, %v3515_v46  ;;  %v4494_v1 = vrot.slane %v4492_v27, 5  ;;  %v4498_v63 = vrot.slane %v4496_v25, 4  ;;  %v11415_v11 = vld [vmem:[#allocation4 + $0x70] sm:$0xf0] }
 0x358   : > { %v10334_v3 = vld [vmem:[#allocation4 + $0x74] sm:$0xf0]  ;;  %v4489_v10 = vor.u32 %v4488_v45, %v4485_v36  ;;  %v11411_v7 = vld [vmem:[#allocation4 + $0x54] sm:$0xf]  ;;  %v4504_v51 = vrot.slane %v4502_v40, 5 }
 0x359   : > { %v3897_v54 = vor.u32 %v3895_v48, %v3894_v20  ;;  %v3899_v35 = vrot.slane %v3894_v20, 4  ;;  %v3659_v2 = vmax.f32 %v3604_v33, 0.0  ;;  %v13251_v42 = vpop.f32.mrf.mxu0  ;;  %v4499_v38 = vor.u32 %v4498_v63, %v4494_v1  ;;  %v5039_v12 = vld [vmem:[#allocation3 + $0x28] sm:$0xf]  ;;  %5070 = vst [vmem:[#allocation4 + $0x9c] sm:$0xf] %v5038_v57 }
 0x35a   : > { %v4490_v17 = vrot.slane %v4489_v10, 4  ;;  %v4771_v5 = vld [vmem:[#allocation3 + $0x24] sm:$0xe]  ;;  %v4772_v56 = vld [vmem:[#allocation3 + $0x28] sm:$0xf]  ;;  %v10337_v46 = vor.u32 %v11411_v7, %v10334_v3 }
 0x35b   : > { %v3898_v28 = vsel %vm12959_vm12, %v3890_v58, %v3897_v54  ;;  %v4144_v4 = vsel %vm12984_vm13, %v3899_v35, %v4143_v50  ;;  %v3745_v16 = vpack.c.bf16 %v3659_v2, %v3659_v2  ;;  %v4500_v55 = vrot.slane %v4499_v38, 4  ;;  %v4146_v47 = vld [vmem:[#allocation3 + $0x6c] sm:$0xf]  ;;  %v10332_v59 = vld [vmem:[#allocation4 + $0x50] sm:$0xf] }
 0x35c   : > { %4142 = vst [vmem:[#allocation3 + $0x64] sm:$0xf] %v3898_v28  ;;  %v3516_v60 = vpop.f32.mrf.mxu3  ;;  %v4495_v9 = vsel %vm11832_vm5, %v4490_v17, %v4494_v1  ;;  %v4218_v50 = vld [vmem:[#allocation3 + $0x60] sm:$0xf]  ;;  %v10506_v27 = vld [vmem:[#allocation4 + $0x1d4] sm:$0xf0]  ;;  %v10333_v25 = vor.u32 %v11415_v11, %v10332_v59 }
 0x35d   : > { %4145 = vst [vmem:[#allocation3 + $0x68] sm:$0x1] %v4144_v4  ;;  %v3901_v18 = vshrl.u32 %v3745_v16, 16  ;;  %v3517_v49 = vadd.f32 %v3516_v60, %v12811_v53  ;;  %v4505_v32 = vsel %vm11832_vm5, %v4500_v55, %v4504_v51  ;;  %v3904_v37 = vshll.u32 %v3745_v16, 16  ;;  %8455 = vmatmul.bf16.gmra.mxu0 %v10337_v46  ;;  %v5040_v48 = vld [vmem:[#allocation3 + $0x30] sm:$0xf] }
 0x35e   : > { %5071 = vst [vmem:[#allocation4 + $0xc0] sm:$0xf] %v5039_v12  ;;  %v10241_v53 = vrot.slane %v4771_v5, 9  ;;  %v4881_v20 = vrot.slane %v4772_v56, 5  ;;  %v4773_v36 = vld [vmem:[#allocation3 + $0x2c] sm:$0x1] }
 0x35f   : > { %v13262_v13 = vrot.slane %v3901_v18, 7  ;;  %v3606_v34 = vadd.f32 %v13222_v24, %v3517_v49  ;;  %4744 = vst [vmem:[#allocation4 + $0x1fc] sm:$0xf] %v4495_v9  ;;  %v11455_v63 = vld [vmem:[#allocation4 + $0x1b4] sm:$0xf]  ;;  %v4884_v3 = vrot.slane %v4773_v36, 5 }
 0x360   : > { %4745 = vst [vmem:[#allocation4 + $0x220] sm:$0xf] %v4505_v32  ;;  %v4882_v45 = vsel %vm11803_vm4, %v10241_v53, %v4881_v20  ;;  %v4883_v1 = vrot.slane %v4881_v20, 4  ;;  %v10509_v35 = vor.u32 %v11455_v63, %v10506_v27  ;;  %v4290_v11 = vld [vmem:[#allocation3 + $0x60] sm:$0xf]  ;;  %v11588_v59 = vld [vmem:[%s14793_s3 + $0x158] sm:$0xff] }
 0x361   : > { %v3906_v33 = vor.u32 %v3904_v37, %v13262_v13  ;;  %v3660_v40 = vmax.f32 %v3606_v34, 0.0  ;;  %8366 = vmatmul.bf16.gmra.mxu3 %v10333_v25  ;;  %4250 = vst [vmem:[#allocation4 + $0x240] sm:$0xf] %v4218_v50  ;;  %v13270_v58 = vpop.f32.mrf.mxu0  ;;  %v11468_v38 = vld [vmem:[#allocation4 + $0x218] sm:$0xf0]  ;;  %v4507_v5 = vshrl.u32 %v4290_v11, 16  ;;  %8624 = vmatpush.bf16.msrb.mxu2 %v11588_v59 }
 0x362   : > { %5072 = vst [vmem:[#allocation4 + $0xe4] sm:$0xf] %v5040_v48  ;;  %v4150_v16 = vld [vmem:[#allocation3 + $0x74] sm:$0x1]  ;;  %v10540_v7 = vld [vmem:[#allocation4 + $0x1f8] sm:$0xf]  ;;  %v4885_v12 = vsel %vm11803_vm4, %v4883_v1, %v4884_v3 }
 0x363   : > { %v4147_v24 = vsel %vm12939_vm8, %v3906_v33, %v4146_v47  ;;  %v3746_v57 = vpack.c.bf16 %v3660_v40, %v3660_v40  ;;  %v4219_v54 = vld [vmem:[#allocation3 + $0x64] sm:$0xf]  ;;  %5008 = vst [vmem:[#allocation4 + $0xe0] sm:$0xf] %v4882_v45  ;;  %v4510_v18 = vshll.u32 %v4290_v11, 16  ;;  %v3907_v49 = vrot.slane %v13262_v13, 4 }
 0x364   : > { %4148 = vst [vmem:[#allocation3 + $0x6c] sm:$0xf] %v4147_v24  ;;  %v3519_v2 = vpop.f32.mrf.mxu3  ;;  %v4291_v51 = vld [vmem:[#allocation3 + $0x64] sm:$0xf]  ;;  %v4292_v55 = vld [vmem:[#allocation3 + $0x68] sm:$0x1]  ;;  %v10541_v56 = vor.u32 %v11468_v38, %v10540_v7 }
 0x365   : > { %v3909_v10 = vshrl.u32 %v3746_v57, 16  ;;  %v3520_v28 = vadd.f32 %v3519_v2, %v12818_v43  ;;  %4251 = vst [vmem:[#allocation4 + $0x264] sm:$0xf] %v4219_v54  ;;  %v3912_v4 = vshll.u32 %v3746_v57, 16  ;;  %8302 = vmatmul.bf16.gmra.mxu2 %v10509_v35  ;;  %v4516_v47 = vshll.u32 %v4291_v51, 16  ;;  %v11580_v11 = vld [vmem:[%s14793_s3 + $0x118] sm:$0xff] }
 0x366   : > { %v4520_v43 = vshrl.u32 %v4291_v51, 16  ;;  %v5041_v46 = vld [vmem:[#allocation3 + $0x34] sm:$0xf]  ;;  %v4509_v37 = vrot.slane %v4507_v5, 4  ;;  %5009 = vst [vmem:[#allocation4 + $0x104] sm:$0xf] %v4885_v12  ;;  %8218 = vmatmul.bf16.gmra.mxu1 %v10541_v56 }
 0x367   : > { %v3911_v60 = vrot.slane %v3909_v10, 7  ;;  %v3609_v17 = vadd.f32 %v13242_v29, %v3520_v28  ;;  %v10370_v29 = vld [vmem:[#allocation4 + $0xbc] sm:$0xf0]  ;;  %v4512_v27 = vrot.slane %v4510_v18, 5  ;;  %v4518_v34 = vrot.slane %v4516_v47, 5  ;;  %8535 = vmatpush.bf16.msrb.mxu1 %v11580_v11 }
 0x368   : > { %v4522_v25 = vrot.slane %v4520_v43, 4  ;;  %v4526_v53 = vshll.u32 %v4292_v55, 16  ;;  %v11424_v33 = vld [vmem:[#allocation4 + $0xb8] sm:$0xf0]  ;;  %5073 = vst [vmem:[#allocation4 + $0x108] sm:$0xf] %v5041_v46 }
 0x369   : > { %v3914_v9 = vor.u32 %v3912_v4, %v3911_v60  ;;  %v3916_v32 = vrot.slane %v3911_v60, 4  ;;  %v3661_v50 = vmax.f32 %v3609_v17, 0.0  ;;  %v10368_v36 = vld [vmem:[#allocation4 + $0x98] sm:$0xf]  ;;  %v11420_v45 = vld [vmem:[#allocation4 + $0x9c] sm:$0xf]  ;;  %v4513_v1 = vor.u32 %v4512_v27, %v4509_v37  ;;  %v13285_v2 = vpop.f32.mrf.mxu0 }
 0x36a   : > { %v4523_v24 = vor.u32 %v4522_v25, %v4518_v34  ;;  %v4775_v63 = vld [vmem:[#allocation3 + $0x34] sm:$0xf]  ;;  %v10373_v35 = vor.u32 %v11420_v45, %v10370_v29  ;;  %v4774_v3 = vld [vmem:[#allocation3 + $0x30] sm:$0xe]  ;;  %v4528_v4 = vrot.slane %v4526_v53, 5  ;;  %v10369_v12 = vor.u32 %v11424_v33, %v10368_v36 }
 0x36b   : > { %v3915_v13 = vsel %vm12959_vm12, %v3907_v49, %v3914_v9  ;;  %v4151_v20 = vsel %vm12984_vm13, %v3916_v32, %v4150_v16  ;;  %v3747_v48 = vpack.c.bf16 %v3661_v50, %v3661_v50  ;;  %v4514_v38 = vrot.slane %v4513_v1, 4  ;;  %v4220_v16 = vld [vmem:[#allocation3 + $0x6c] sm:$0xf]  ;;  %v4153_v17 = vld [vmem:[#allocation3 + $0x78] sm:$0xf] }
 0x36c   : > { %4149 = vst [vmem:[#allocation3 + $0x70] sm:$0xf] %v3915_v13  ;;  %v3521_v40 = vpop.f32.mrf.mxu3  ;;  %v4524_v28 = vrot.slane %v4523_v24, 4  ;;  %v4888_v60 = vrot.slane %v4775_v63, 5  ;;  %v10242_v18 = vrot.slane %v4774_v3, 9 }
 0x36d   : > { %4152 = vst [vmem:[#allocation3 + $0x74] sm:$0x1] %v4151_v20  ;;  %v3918_v57 = vshrl.u32 %v3747_v48, 16  ;;  %v3522_v54 = vadd.f32 %v3521_v40, %v12820_v22  ;;  %v3921_v10 = vshll.u32 %v3747_v48, 16  ;;  %v4776_v22 = vld [vmem:[#allocation3 + $0x38] sm:$0x1]  ;;  %8460 = vmatmul.bf16.gmra.mxu0 %v10373_v35  ;;  %v4519_v55 = vsel %vm11832_vm5, %v4514_v38, %v4518_v34 }
 0x36e   : > { %4252 = vst [vmem:[#allocation4 + $0x288] sm:$0xf] %v4220_v16  ;;  %v4529_v5 = vsel %vm11832_vm5, %v4524_v28, %v4528_v4  ;;  %v11464_v56 = vld [vmem:[#allocation4 + $0x1fc] sm:$0xf]  ;;  %v10542_v47 = vld [vmem:[#allocation4 + $0x21c] sm:$0xf0]  ;;  %v4889_v59 = vsel %vm11803_vm4, %v10242_v18, %v4888_v60 }
 0x36f   : > { %v13290_v7 = vrot.slane %v3918_v57, 7  ;;  %v3611_v51 = vadd.f32 %v13251_v42, %v3522_v54  ;;  %4746 = vst [vmem:[#allocation4 + $0x244] sm:$0xf] %v4519_v55  ;;  %v13298_v42 = vld [vmem:[#allocation4 + $0x260] sm:$0xf0]  ;;  %v4890_v46 = vrot.slane %v4888_v60, 4  ;;  %v10545_v27 = vor.u32 %v11464_v56, %v10542_v47 }
 0x370   : > { %4747 = vst [vmem:[#allocation4 + $0x268] sm:$0xf] %v4529_v5  ;;  %v4891_v9 = vrot.slane %v4776_v22, 5  ;;  %v10576_v37 = vld [vmem:[#allocation4 + $0x240] sm:$0xf] }
 0x371   : > { %v3923_v49 = vor.u32 %v3921_v10, %v13290_v7  ;;  %v3662_v43 = vmax.f32 %v3611_v51, 0.0  ;;  %8371 = vmatmul.bf16.gmra.mxu3 %v10369_v12  ;;  %5010 = vst [vmem:[#allocation4 + $0x128] sm:$0xf] %v4889_v59  ;;  %v4293_v25 = vld [vmem:[#allocation3 + $0x6c] sm:$0xf]  ;;  %v10577_v48 = vor.u32 %v13298_v42, %v10576_v37  ;;  %v13309_v3 = vpop.f32.mrf.mxu0  ;;  %v3924_v51 = vrot.slane %v13290_v7, 4 }
 0x372   : > { %v4892_v13 = vsel %vm11803_vm4, %v4890_v46, %v4891_v9  ;;  %v4157_v36 = vld [vmem:[#allocation3 + $0x80] sm:$0x1]  ;;  %v4531_v45 = vshrl.u32 %v4293_v25, 16  ;;  %v4534_v1 = vshll.u32 %v4293_v25, 16  ;;  %v5042_v57 = vld [vmem:[#allocation3 + $0x3c] sm:$0xf] }
 0x373   : > { %v4154_v32 = vsel %vm12939_vm8, %v3923_v49, %v4153_v17  ;;  %v3748_v50 = vpack.c.bf16 %v3662_v43, %v3662_v43  ;;  %v4221_v29 = vld [vmem:[#allocation3 + $0x70] sm:$0xf]  ;;  %5011 = vst [vmem:[#allocation4 + $0x14c] sm:$0xf] %v4892_v13  ;;  %v5043_v16 = vld [vmem:[#allocation3 + $0x40] sm:$0xf] }
 0x374   : > { %4155 = vst [vmem:[#allocation3 + $0x78] sm:$0xf] %v4154_v32  ;;  %v3524_v34 = vpop.f32.mrf.mxu3  ;;  %v4294_v53 = vld [vmem:[#allocation3 + $0x70] sm:$0xf]  ;;  %v4295_v40 = vld [vmem:[#allocation3 + $0x74] sm:$0x1] }
 0x375   : > { %v3926_v20 = vshrl.u32 %v3748_v50, 16  ;;  %v3525_v33 = vadd.f32 %v3524_v34, %v12830_v21  ;;  %4253 = vst [vmem:[#allocation4 + $0x2ac] sm:$0xf] %v4221_v29  ;;  %v4540_v24 = vshll.u32 %v4294_v53, 16  ;;  %v4544_v63 = vshrl.u32 %v4294_v53, 16  ;;  %8307 = vmatmul.bf16.gmra.mxu2 %v10545_v27 }
 0x376   : > { %v3929_v35 = vshll.u32 %v3748_v50, 16  ;;  %v4550_v10 = vshll.u32 %v4295_v40, 16  ;;  %v4533_v38 = vrot.slane %v4531_v45, 4  ;;  %v4536_v28 = vrot.slane %v4534_v1, 5  ;;  %v13315_v17 = vld [vmem:[%s14794_s4] ss:$0 sm:$0xff]  ;;  %8223 = vmatmul.bf16.gmra.mxu1 %v10577_v48 }
 0x377   : > { %v3928_v54 = vrot.slane %v3926_v20, 7  ;;  %v3614_v11 = vadd.f32 %v13270_v58, %v3525_v33  ;;  %v4542_v21 = vrot.slane %v4540_v24, 5  ;;  %v4546_v4 = vrot.slane %v4544_v63, 4  ;;  %v8184_v58 = vpop.f32.mrf.mxu1  ;;  %v11433_v55 = vld [vmem:[#allocation4 + $0x100] sm:$0xf0] }
 0x378   : > { %v11429_v5 = vld [vmem:[#allocation4 + $0xe4] sm:$0xf]  ;;  %v10406_v18 = vld [vmem:[#allocation4 + $0x104] sm:$0xf0]  ;;  %v4537_v49 = vor.u32 %v4536_v28, %v4533_v38  ;;  %5074 = vst [vmem:[#allocation4 + $0x12c] sm:$0xf] %v5042_v57 }
 0x379   : > { %v3931_v12 = vor.u32 %v3929_v35, %v3928_v54  ;;  %v3933_v22 = vrot.slane %v3928_v54, 4  ;;  %v3663_v60 = vmax.f32 %v3614_v11, 0.0  ;;  %v4547_v56 = vor.u32 %v4546_v4, %v4542_v21  ;;  %5075 = vst [vmem:[#allocation4 + $0x150] sm:$0xf] %v5043_v16  ;;  %v4777_v42 = vld [vmem:[#allocation3 + $0x3c] sm:$0xe]  ;;  %v13333_v38 = vpop.f32.mrf.mxu0 }
 0x37a   : > { %v4778_v59 = vld [vmem:[#allocation3 + $0x40] sm:$0xf]  ;;  %v4538_v9 = vrot.slane %v4537_v49, 4  ;;  %v4552_v50 = vrot.slane %v4550_v10, 5  ;;  %v10409_v27 = vor.u32 %v11429_v5, %v10406_v18  ;;  %v4779_v34 = vld [vmem:[#allocation3 + $0x44] sm:$0x1] }
 0x37b   : > { %v3932_v47 = vsel %vm12959_vm12, %v3924_v51, %v3931_v12  ;;  %v4158_v7 = vsel %vm12984_vm13, %v3933_v22, %v4157_v36  ;;  %v3749_v43 = vpack.c.bf16 %v3663_v60, %v3663_v60  ;;  %v4548_v32 = vrot.slane %v4547_v56, 4  ;;  %v10404_v25 = vld [vmem:[#allocation4 + $0xe0] sm:$0xf]  ;;  %v4160_v24 = vld [vmem:[#allocation3 + $0x84] sm:$0xf] }
 0x37c   : > { %4156 = vst [vmem:[#allocation3 + $0x7c] sm:$0xf] %v3932_v47  ;;  %v3526_v46 = vpop.f32.mrf.mxu3  ;;  %v4543_v53 = vsel %vm11832_vm5, %v4538_v9, %v4542_v21  ;;  %v4222_v20 = vld [vmem:[#allocation3 + $0x78] sm:$0xf]  ;;  %v10243_v33 = vrot.slane %v4777_v42, 9  ;;  %v4895_v40 = vrot.slane %v4778_v59, 5  ;;  %v10405_v1 = vor.u32 %v11433_v55, %v10404_v25 }
 0x37d   : > { %4159 = vst [vmem:[#allocation3 + $0x80] sm:$0x1] %v4158_v7  ;;  %v3935_v37 = vshrl.u32 %v3749_v43, 16  ;;  %v3527_v29 = vadd.f32 %v3526_v46, %v12835_v61  ;;  %v4553_v13 = vsel %vm11832_vm5, %v4548_v32, %v4552_v50  ;;  %v3938_v45 = vshll.u32 %v3749_v43, 16  ;;  %8465 = vmatmul.bf16.gmra.mxu0 %v10409_v27  ;;  %v10578_v11 = vld [vmem:[#allocation4 + $0x264] sm:$0xf0] }
 0x37e   : > { %4748 = vst [vmem:[#allocation4 + $0x28c] sm:$0xf] %v4543_v53  ;;  %v8185_v61 = vadd.f32 %v13315_v17, %v8184_v58  ;;  %v4896_v63 = vsel %vm11803_vm4, %v10243_v33, %v4895_v40  ;;  %v4897_v57 = vrot.slane %v4895_v40, 4  ;;  %v4898_v54 = vrot.slane %v4779_v34, 5  ;;  %v13335_v28 = vld [vmem:[#allocation4 + $0x2a8] sm:$0xf0] }
 0x37f   : > { %v13326_v36 = vrot.slane %v3935_v37, 7  ;;  %v3616_v48 = vadd.f32 %v13285_v2, %v3527_v29  ;;  %4749 = vst [vmem:[#allocation4 + $0x2b0] sm:$0xf] %v4553_v13  ;;  %v8186_v2 = vpop.f32.mrf.mxu1  ;;  %v8273_v4 = vpop.f32.mrf.mxu2  ;;  %v11473_v51 = vld [vmem:[#allocation4 + $0x244] sm:$0xf]  ;;  %v11587_v33 = vld [vmem:[%s14793_s3 + $0x150] sm:$0xff] }
 0x380   : > { %4254 = vst [vmem:[#allocation4 + $0x2d0] sm:$0xf] %v4222_v20  ;;  %v4899_v21 = vsel %vm11803_vm4, %v4897_v57, %v4898_v54  ;;  %v13341_v60 = vadd.f32 %v8273_v4, %v8185_v61  ;;  %v10581_v58 = vor.u32 %v11473_v51, %v10578_v11  ;;  %v10612_v55 = vld [vmem:[#allocation4 + $0x288] sm:$0xf]  ;;  %v4296_v18 = vld [vmem:[#allocation3 + $0x78] sm:$0xf]  ;;  %v8187_v53 = vadd.f32 %v13315_v17, %v8186_v2 }
 0x381   : > { %v3940_v35 = vor.u32 %v3938_v45, %v13326_v36  ;;  %v3664_v10 = vmax.f32 %v3616_v48, 0.0  ;;  %8376 = vmatmul.bf16.gmra.mxu3 %v10405_v1  ;;  %5012 = vst [vmem:[#allocation4 + $0x170] sm:$0xf] %v4896_v63  ;;  %v13343_v49 = vld [vmem:[#allocation3 + $0xc] sm:$0xf]  ;;  %v10613_v47 = vor.u32 %v13335_v28, %v10612_v55  ;;  %v3941_v42 = vrot.slane %v13326_v36, 4  ;;  %8625 = vmatpush.bf16.msrb.mxu2 %v11587_v33 }
 0x382   : > { %5013 = vst [vmem:[#allocation4 + $0x194] sm:$0xf] %v4899_v21  ;;  %v4164_v46 = vld [vmem:[#allocation3 + $0x8c] sm:$0x1]  ;;  %v4555_v32 = vshrl.u32 %v4296_v18, 16  ;;  %v4558_v50 = vshll.u32 %v4296_v18, 16 }
 0x383   : > { %v4161_v16 = vsel %vm12939_vm8, %v3940_v35, %v4160_v24  ;;  %v3750_v12 = vpack.c.bf16 %v3664_v10, %v3664_v10  ;;  %v4223_v22 = vld [vmem:[#allocation3 + $0x7c] sm:$0xf]  ;;  %v5044_v25 = vld [vmem:[#allocation3 + $0x48] sm:$0xf]  ;;  %v5045_v40 = vld [vmem:[#allocation3 + $0x4c] sm:$0xf] }
 0x384   : > { %4162 = vst [vmem:[#allocation3 + $0x84] sm:$0xf] %v4161_v16  ;;  %v3529_v5 = vpop.f32.mrf.mxu3  ;;  %v4297_v43 = vld [vmem:[#allocation3 + $0x7c] sm:$0xf]  ;;  %v4298_v9 = vld [vmem:[#allocation3 + $0x80] sm:$0x1] }
 0x385   : > { %v3943_v56 = vshrl.u32 %v3750_v12, 16  ;;  %v3530_v7 = vadd.f32 %v3529_v5, %v12838_v8  ;;  %4255 = vst [vmem:[#allocation4 + $0x2f4] sm:$0xf] %v4223_v22  ;;  %v3946_v59 = vshll.u32 %v3750_v12, 16  ;;  %v4564_v27 = vshll.u32 %v4297_v43, 16  ;;  %8312 = vmatmul.bf16.gmra.mxu2 %v10581_v58 }
 0x386   : > { %v4568_v34 = vshrl.u32 %v4297_v43, 16  ;;  %v4557_v13 = vrot.slane %v4555_v32, 4  ;;  %v4560_v8 = vrot.slane %v4558_v50, 5  ;;  %v4574_v20 = vshll.u32 %v4298_v9, 16  ;;  %v11442_v24 = vld [vmem:[#allocation4 + $0x148] sm:$0xf0]  ;;  %8228 = vmatmul.bf16.gmra.mxu1 %v10613_v47 }
 0x387   : > { %v3945_v37 = vrot.slane %v3943_v56, 7  ;;  %v3619_v29 = vadd.f32 %v13309_v3, %v3530_v7  ;;  %v4566_v1 = vrot.slane %v4564_v27, 5  ;;  %v5147_v3 = vshrl.u32 %v13343_v49, 16  ;;  %v13354_v61 = vpop.f32.mrf.mxu1  ;;  %v10442_v63 = vld [vmem:[#allocation4 + $0x14c] sm:$0xf0]  ;;  %v8275_v35 = vpop.f32.mrf.mxu2  ;;  %v11579_v9 = vld [vmem:[%s14793_s3 + $0x110] sm:$0xff] }
 0x388   : > { %v4561_v57 = vor.u32 %v4560_v8, %v4557_v13  ;;  %v4570_v54 = vrot.slane %v4568_v34, 4  ;;  %5076 = vst [vmem:[#allocation4 + $0x174] sm:$0xf] %v5044_v25  ;;  %v13360_v28 = vpop.f32.mrf.mxu0  ;;  %v4780_v21 = vld [vmem:[#allocation3 + $0x48] sm:$0xe]  ;;  %v5150_v16 = vshll.u32 %v13343_v49, 16  ;;  %v13365_v12 = vadd.f32 %v8275_v35, %v8187_v53  ;;  %8536 = vmatpush.bf16.msrb.mxu1 %v11579_v9 }
 0x389   : > { %v3948_v36 = vor.u32 %v3946_v59, %v3945_v37  ;;  %v3950_v45 = vrot.slane %v3945_v37, 4  ;;  %v3665_v48 = vmax.f32 %v3619_v29, 0.0  ;;  %5077 = vst [vmem:[#allocation4 + $0x198] sm:$0xf] %v5045_v40  ;;  %v4781_v4 = vld [vmem:[#allocation3 + $0x4c] sm:$0xf] }
 0x38a   : > { %v13363_v51 = vld [vmem:[#allocation3 + $0xc] sm:$0xe]  ;;  %v10440_v58 = vld [vmem:[#allocation4 + $0x128] sm:$0xf]  ;;  %v11438_v55 = vld [vmem:[#allocation4 + $0x12c] sm:$0xf]  ;;  %v4571_v18 = vor.u32 %v4570_v54, %v4566_v1 }
 0x38b   : > { %v3949_v11 = vsel %vm12959_vm12, %v3941_v42, %v3948_v36  ;;  %v4165_v10 = vsel %vm12984_vm13, %v3950_v45, %v4164_v46  ;;  %v3751_v2 = vpack.c.bf16 %v3665_v48, %v3665_v48  ;;  %v4562_v5 = vrot.slane %v4561_v57, 4  ;;  %v4782_v59 = vld [vmem:[#allocation3 + $0x50] sm:$0x1]  ;;  %v4224_v32 = vld [vmem:[#allocation3 + $0x84] sm:$0xf] }
 0x38c   : > { %4163 = vst [vmem:[#allocation3 + $0x88] sm:$0xf] %v3949_v11  ;;  %v3531_v22 = vpop.f32.mrf.mxu3  ;;  %v10445_v43 = vor.u32 %v11438_v55, %v10442_v63  ;;  %v4576_v42 = vrot.slane %v4574_v20, 5  ;;  %v4572_v46 = vrot.slane %v4571_v18, 4  ;;  %v10244_v50 = vrot.slane %v4780_v21, 9 }
 0x38d   : > { %4166 = vst [vmem:[#allocation3 + $0x8c] sm:$0x1] %v4165_v10  ;;  %v3952_v56 = vshrl.u32 %v3751_v2, 16  ;;  %v3532_v7 = vadd.f32 %v3531_v22, %v12841_v41  ;;  %v4567_v49 = vsel %vm11832_vm5, %v4562_v5, %v4566_v1  ;;  %v4902_v37 = vrot.slane %v4781_v4, 5  ;;  %v13373_v29 = vld [vmem:[#allocation3 + $0x10] sm:$0xf] }
 0x38e   : > { %v3955_v27 = vshll.u32 %v3751_v2, 16  ;;  %v10441_v34 = vor.u32 %v11442_v24, %v10440_v58  ;;  %4750 = vst [vmem:[#allocation4 + $0x2d4] sm:$0xf] %v4567_v49  ;;  %v4167_v25 = vld [vmem:[#allocation3 + $0x90] sm:$0xf]  ;;  %8470 = vmatmul.bf16.gmra.mxu0 %v10445_v43  ;;  %v4577_v53 = vsel %vm11832_vm5, %v4572_v46, %v4576_v42  ;;  %v4905_v20 = vrot.slane %v4782_v59, 5 }
 0x38f   : > { %v13375_v47 = vrot.slane %v3952_v56, 7  ;;  %v3621_v41 = vadd.f32 %v13333_v38, %v3532_v7  ;;  %4256 = vst [vmem:[#allocation4 + $0x318] sm:$0xf] %v4224_v32  ;;  %v4903_v13 = vsel %vm11803_vm4, %v10244_v50, %v4902_v37  ;;  %v4904_v8 = vrot.slane %v4902_v37, 4  ;;  %v10614_v36 = vld [vmem:[#allocation4 + $0x2ac] sm:$0xf0]  ;;  %v13389_v24 = vpop.f32.mrf.mxu1 }
 0x390   : > { %v10254_v33 = vrot.slane %v13363_v51, 9  ;;  %4751 = vst [vmem:[#allocation4 + $0x2f8] sm:$0xf] %v4577_v53  ;;  %v13384_v45 = vrot.slane %v5147_v3, 4  ;;  %v13386_v48 = vrot.slane %v5150_v16, 5  ;;  %v5156_v1 = vshll.u32 %v13373_v29, 16  ;;  %v13395_v11 = vpop.f32.mrf.mxu0 }
 0x391   : > { %v3957_v40 = vor.u32 %v3955_v27, %v13375_v47  ;;  %v3666_v38 = vmax.f32 %v3621_v41, 0.0  ;;  %8381 = vmatmul.bf16.gmra.mxu3 %v10441_v34  ;;  %v4906_v63 = vsel %vm11803_vm4, %v4904_v8, %v4905_v20  ;;  %5014 = vst [vmem:[#allocation4 + $0x1b8] sm:$0xf] %v4903_v13  ;;  %v11482_v54 = vld [vmem:[#allocation4 + $0x28c] sm:$0xf]  ;;  %v5160_v22 = vshrl.u32 %v13373_v29, 16 }
 0x392   : > { %5015 = vst [vmem:[#allocation4 + $0x1dc] sm:$0xf] %v4906_v63  ;;  %v10617_v3 = vor.u32 %v11482_v54, %v10614_v36  ;;  %v11495_v2 = vld [vmem:[#allocation4 + $0x2f0] sm:$0xf0]  ;;  %v4299_v4 = vld [vmem:[#allocation3 + $0x84] sm:$0xf]  ;;  %v8190_v56 = vadd.f32 %v13315_v17, %v13354_v61 }
 0x393   : > { %v4168_v57 = vsel %vm12939_vm8, %v3957_v40, %v4167_v25  ;;  %v3752_v35 = vpack.c.bf16 %v3666_v38, %v3666_v38  ;;  %v4225_v10 = vld [vmem:[#allocation3 + $0x88] sm:$0xf]  ;;  %v5046_v16 = vld [vmem:[#allocation3 + $0x54] sm:$0xf]  ;;  %v4171_v43 = vld [vmem:[#allocation3 + $0x98] sm:$0x1] }
 0x394   : > { %4169 = vst [vmem:[#allocation3 + $0x90] sm:$0xf] %v4168_v57  ;;  %v3534_v21 = vpop.f32.mrf.mxu3  ;;  %v10648_v55 = vld [vmem:[#allocation4 + $0x2d0] sm:$0xf]  ;;  %v13401_v42 = vld [vmem:[#allocation4 + $0x190] sm:$0xf0] }
 0x395   : > { %v3960_v58 = vshrl.u32 %v3752_v35, 16  ;;  %v3535_v5 = vadd.f32 %v3534_v21, %v12851_v6  ;;  %4257 = vst [vmem:[#allocation4 + $0x33c] sm:$0xf] %v4225_v10  ;;  %v4300_v18 = vld [vmem:[#allocation3 + $0x88] sm:$0xf]  ;;  %v3963_v7 = vshll.u32 %v3752_v35, 16  ;;  %8317 = vmatmul.bf16.gmra.mxu2 %v10617_v3  ;;  %v10649_v34 = vor.u32 %v11495_v2, %v10648_v55 }
 0x396   : > { %v4301_v59 = vld [vmem:[#allocation3 + $0x8c] sm:$0x1]  ;;  %v4579_v49 = vshrl.u32 %v4299_v4, 16  ;;  %v4582_v46 = vshll.u32 %v4299_v4, 16  ;;  %v5047_v9 = vld [vmem:[#allocation3 + $0x58] sm:$0xf] }
 0x397   : > { %v3962_v32 = vrot.slane %v3960_v58, 7  ;;  %v3624_v50 = vadd.f32 %v13360_v28, %v3535_v5  ;;  %v4588_v37 = vshll.u32 %v4300_v18, 16  ;;  %v4592_v27 = vshrl.u32 %v4300_v18, 16  ;;  %v4784_v41 = vld [vmem:[#allocation3 + $0x58] sm:$0xf]  ;;  %v13405_v36 = vpop.f32.mrf.mxu1  ;;  %8233 = vmatmul.bf16.gmra.mxu1 %v10649_v34 }
 0x398   : > { %v3958_v6 = vrot.slane %v13375_v47, 4  ;;  %v4581_v25 = vrot.slane %v4579_v49, 4  ;;  %v4584_v61 = vrot.slane %v4582_v46, 5  ;;  %v4783_v53 = vld [vmem:[#allocation3 + $0x54] sm:$0xe]  ;;  %v4598_v40 = vshll.u32 %v4301_v59, 16  ;;  %v8278_v35 = vpop.f32.mrf.mxu2  ;;  %v13411_v2 = vpop.f32.mrf.mxu0 }
 0x399   : > { %v3965_v13 = vor.u32 %v3963_v7, %v3962_v32  ;;  %v3967_v8 = vrot.slane %v3962_v32, 4  ;;  %v3667_v20 = vmax.f32 %v3624_v50, 0.0  ;;  %5078 = vst [vmem:[#allocation4 + $0x1bc] sm:$0xf] %v5046_v16  ;;  %v10476_v38 = vld [vmem:[#allocation4 + $0x170] sm:$0xf]  ;;  %v13416_v5 = vadd.f32 %v8278_v35, %v8190_v56 }
 0x39a   : > { %v4585_v63 = vor.u32 %v4584_v61, %v4581_v25  ;;  %v4590_v28 = vrot.slane %v4588_v37, 5  ;;  %v4594_v57 = vrot.slane %v4592_v27, 4  ;;  %v4909_v54 = vrot.slane %v4784_v41, 5  ;;  %v11447_v4 = vld [vmem:[#allocation4 + $0x174] sm:$0xf] }
 0x39b   : > { %v3966_v47 = vsel %vm12959_vm12, %v3958_v6, %v3965_v13  ;;  %v4172_v10 = vsel %vm12984_vm13, %v3967_v8, %v4171_v43  ;;  %v3753_v3 = vpack.c.bf16 %v3667_v20, %v3667_v20  ;;  %v10477_v21 = vor.u32 %v13401_v42, %v10476_v38  ;;  %v10478_v16 = vld [vmem:[#allocation4 + $0x194] sm:$0xf0]  ;;  %5079 = vst [vmem:[#allocation4 + $0x1e0] sm:$0xf] %v5047_v9  ;;  %v5048_v58 = vld [vmem:[#allocation3 + $0x60] sm:$0xf] }
 0x39c   : > { %v13414_v55 = vld [vmem:[#allocation3 + $0x14] sm:$0x1]  ;;  %4170 = vst [vmem:[#allocation3 + $0x94] sm:$0xf] %v3966_v47  ;;  %v3536_v18 = vpop.f32.mrf.mxu3  ;;  %v4586_v7 = vrot.slane %v4585_v63, 4  ;;  %v4595_v59 = vor.u32 %v4594_v57, %v4590_v28  ;;  %v10245_v46 = vrot.slane %v4783_v53, 9  ;;  %v10481_v37 = vor.u32 %v11447_v4, %v10478_v16 }
 0x39d   : > { %v4785_v49 = vld [vmem:[#allocation3 + $0x5c] sm:$0x1]  ;;  %4173 = vst [vmem:[#allocation3 + $0x98] sm:$0x1] %v4172_v10  ;;  %v3969_v43 = vshrl.u32 %v3753_v3, 16  ;;  %v3972_v32 = vshll.u32 %v3753_v3, 16  ;;  %v3537_v42 = vadd.f32 %v3536_v18, %v12856_v39 }
 0x39e   : > { %v4600_v50 = vrot.slane %v4598_v40, 5  ;;  %v4591_v9 = vsel %vm11832_vm5, %v4586_v7, %v4590_v28  ;;  %v4596_v27 = vrot.slane %v4595_v59, 4  ;;  %v4226_v56 = vld [vmem:[#allocation3 + $0x90] sm:$0xf]  ;;  %v4911_v41 = vrot.slane %v4909_v54, 4  ;;  %8475 = vmatmul.bf16.gmra.mxu0 %v10481_v37 }
 0x39f   : > { %5080 = vst [vmem:[#allocation4 + $0x204] sm:$0xf] %v5048_v58  ;;  %v13421_v6 = vld [vmem:[#allocation3 + $0x10] sm:$0xf]  ;;  %v13423_v25 = vrot.slane %v3969_v43, 7  ;;  %v3626_v61 = vadd.f32 %v13395_v11, %v3537_v42  ;;  %v4910_v34 = vsel %vm11803_vm4, %v10245_v46, %v4909_v54  ;;  %v4912_v39 = vrot.slane %v4785_v49, 5  ;;  %v13440_v35 = vpop.f32.mrf.mxu1 }
 0x3a0   : > { %4752 = vst [vmem:[#allocation4 + $0x31c] sm:$0xf] %v4591_v9  ;;  %v13428_v53 = vld [vmem:[#allocation3 + $0x14] sm:$0x1]  ;;  %v4174_v13 = vld [vmem:[#allocation3 + $0x9c] sm:$0xf]  ;;  %v4601_v20 = vsel %vm11832_vm5, %v4596_v27, %v4600_v50  ;;  %v8192_v54 = vadd.f32 %v13315_v17, %v13389_v24  ;;  %v8280_v3 = vpop.f32.mrf.mxu2  ;;  %v13448_v16 = vpop.f32.mrf.mxu0 }
 0x3a1   : > { %v10650_v8 = vld [vmem:[#allocation4 + $0x2f4] sm:$0xf0]  ;;  %4258 = vst [vmem:[#allocation4 + $0x360] sm:$0xf] %v4226_v56  ;;  %v5166_v40 = vshll.u32 %v13414_v55, 16  ;;  %v3974_v38 = vor.u32 %v3972_v32, %v13423_v25  ;;  %v3668_v11 = vmax.f32 %v3626_v61, 0.0  ;;  %8386 = vmatmul.bf16.gmra.mxu3 %v10477_v21  ;;  %v4913_v28 = vsel %vm11803_vm4, %v4911_v41, %v4912_v39 }
 0x3a2   : > { %v11491_v63 = vld [vmem:[#allocation4 + $0x2d4] sm:$0xf]  ;;  %4753 = vst [vmem:[#allocation4 + $0x340] sm:$0xf] %v4601_v20  ;;  %v13436_v57 = vld [vmem:[#allocation3 + $0x64] sm:$0xf]  ;;  %v13451_v24 = vadd.f32 %v8280_v3, %v8192_v54 }
 0x3a3   : > { %v13442_v47 = vld [vmem:[#allocation4 + $0x318] sm:$0xf]  ;;  %v13444_v10 = vld [vmem:[#allocation4 + $0x338] sm:$0xf0]  ;;  %5016 = vst [vmem:[#allocation4 + $0x200] sm:$0xf] %v4910_v34  ;;  %v4175_v21 = vsel %vm12939_vm8, %v3974_v38, %v4174_v13  ;;  %v3754_v4 = vpack.c.bf16 %v3668_v11, %v3668_v11  ;;  %v10653_v59 = vor.u32 %v11491_v63, %v10650_v8 }
 0x3a4   : > { %v4227_v58 = vld [vmem:[#allocation3 + $0x94] sm:$0xf]  ;;  %5017 = vst [vmem:[#allocation4 + $0x224] sm:$0xf] %v4913_v28  ;;  %v4786_v18 = vld [vmem:[#allocation3 + $0x60] sm:$0xe]  ;;  %v3539_v49 = vpop.f32.mrf.mxu3  ;;  %v10685_v37 = vor.u32 %v13444_v10, %v13442_v47 }
 0x3a5   : > { %v5692_v7 = vrot.slane %v13421_v6, 5  ;;  %4176 = vst [vmem:[#allocation3 + $0x9c] sm:$0xf] %v4175_v21  ;;  %v4302_v46 = vld [vmem:[#allocation3 + $0x90] sm:$0xf]  ;;  %v4916_v32 = vrot.slane %v13436_v57, 5  ;;  %v3540_v9 = vadd.f32 %v3539_v49, %v12863_v23  ;;  %8322 = vmatmul.bf16.gmra.mxu2 %v10653_v59 }
 0x3a6   : > { %v5049_v43 = vld [vmem:[#allocation3 + $0x64] sm:$0xf]  ;;  %v5695_v42 = vrot.slane %v13428_v53, 5  ;;  %v3977_v50 = vshrl.u32 %v3754_v4, 16  ;;  %4259 = vst [vmem:[#allocation4 + $0x384] sm:$0xf] %v4227_v58 }
 0x3a7   : > { %v4303_v27 = vld [vmem:[#allocation3 + $0x94] sm:$0xf]  ;;  %v3980_v56 = vshll.u32 %v3754_v4, 16  ;;  %v4304_v41 = vld [vmem:[#allocation3 + $0x98] sm:$0x1]  ;;  %v4603_v61 = vshrl.u32 %v4302_v46, 16  ;;  %v3629_v8 = vadd.f32 %v13411_v2, %v3540_v9  ;;  %v8195_v2 = vadd.f32 %v13315_v17, %v13405_v36  ;;  %8238 = vmatmul.bf16.gmra.mxu1 %v10685_v37 }
 0x3a8   : > { %v4606_v34 = vshll.u32 %v4302_v46, 16  ;;  %v10246_v39 = vrot.slane %v4786_v18, 9  ;;  %v3979_v13 = vrot.slane %v3977_v50, 7  ;;  %v4612_v20 = vshll.u32 %v4303_v27, 16  ;;  %v4178_v11 = vld [vmem:[#allocation3 + $0xa4] sm:$0x1]  ;;  %v8283_v49 = vpop.f32.mrf.mxu2 }
 0x3a9   : > { %v4616_v38 = vshrl.u32 %v4303_v27, 16  ;;  %v3975_v63 = vrot.slane %v13423_v25, 4  ;;  %v4605_v28 = vrot.slane %v4603_v61, 4  ;;  %v11586_v23 = vld [vmem:[%s14793_s3 + $0x148] sm:$0xff]  ;;  %v3669_v3 = vmax.f32 %v3629_v8, 0.0  ;;  %v13467_v25 = vpop.f32.mrf.mxu1  ;;  %v13473_v27 = vpop.f32.mrf.mxu0 }
 0x3aa   : > { %v4608_v57 = vrot.slane %v4606_v34, 5  ;;  %v4917_v54 = vsel %vm11803_vm4, %v10246_v39, %v4916_v32  ;;  %v3982_v47 = vor.u32 %v3980_v56, %v3979_v13  ;;  %v3984_v10 = vrot.slane %v3979_v13, 4  ;;  %5081 = vst [vmem:[#allocation4 + $0x228] sm:$0xf] %v5049_v43  ;;  %v10514_v4 = vld [vmem:[#allocation4 + $0x1dc] sm:$0xf0]  ;;  %8626 = vmatpush.bf16.msrb.mxu2 %v11586_v23 }
 0x3ab   : > { %v4622_v21 = vshll.u32 %v4304_v41, 16  ;;  %v4614_v18 = vrot.slane %v4612_v20, 5  ;;  %v4618_v59 = vrot.slane %v4616_v38, 4  ;;  %v3755_v9 = vpack.c.bf16 %v3669_v3, %v3669_v3  ;;  %v11460_v43 = vld [vmem:[#allocation4 + $0x1d8] sm:$0xf0] }
 0x3ac   : > { %v4609_v58 = vor.u32 %v4608_v57, %v4605_v28  ;;  %v3983_v46 = vsel %vm12959_vm12, %v3975_v63, %v3982_v47  ;;  %v4179_v50 = vsel %vm12984_vm13, %v3984_v10, %v4178_v11  ;;  %v4788_v56 = vld [vmem:[#allocation3 + $0x68] sm:$0x1]  ;;  %5018 = vst [vmem:[#allocation4 + $0x248] sm:$0xf] %v4917_v54  ;;  %v13477_v36 = vrot.slane %v5156_v1, 5  ;;  %v3541_v61 = vpop.f32.mrf.mxu3 }
 0x3ad   : > { %v13479_v41 = vadd.f32 %v8283_v49, %v8195_v2  ;;  %4177 = vst [vmem:[#allocation3 + $0xa0] sm:$0xf] %v3983_v46  ;;  %v11456_v34 = vld [vmem:[#allocation4 + $0x1bc] sm:$0xf]  ;;  %v4619_v13 = vor.u32 %v4618_v59, %v4614_v18  ;;  %v3986_v8 = vshrl.u32 %v3755_v9, 16  ;;  %v3542_v20 = vadd.f32 %v3541_v61, %v12865_v14  ;;  %v11578_v57 = vld [vmem:[%s14793_s3 + $0x108] sm:$0xff] }
 0x3ae   : > { %v4610_v39 = vrot.slane %v4609_v58, 4  ;;  %4180 = vst [vmem:[#allocation3 + $0xa4] sm:$0x1] %v4179_v50  ;;  %v10512_v38 = vld [vmem:[#allocation4 + $0x1b8] sm:$0xf]  ;;  %v10517_v63 = vor.u32 %v11456_v34, %v10514_v4  ;;  %v4624_v11 = vrot.slane %v4622_v21, 5  ;;  %8537 = vmatpush.bf16.msrb.mxu1 %v11578_v57  ;;  %v8197_v46 = vadd.f32 %v13315_v17, %v13440_v35 }
 0x3af   : > { %v4620_v1 = vrot.slane %v4619_v13, 4  ;;  %v4228_v23 = vld [vmem:[#allocation3 + $0x9c] sm:$0xf]  ;;  %v4918_v54 = vrot.slane %v4916_v32, 4  ;;  %v4919_v47 = vrot.slane %v4788_v56, 5  ;;  %v13487_v10 = vrot.slane %v3986_v8, 7 }
 0x3b0   : > { %v4615_v28 = vsel %vm11832_vm5, %v4610_v39, %v4614_v18  ;;  %v3989_v37 = vshll.u32 %v3755_v9, 16  ;;  %v4181_v3 = vld [vmem:[#allocation3 + $0xa8] sm:$0xf]  ;;  %v3631_v14 = vadd.f32 %v13448_v16, %v3542_v20  ;;  %v10513_v2 = vor.u32 %v11460_v43, %v10512_v38  ;;  %v10686_v21 = vld [vmem:[#allocation4 + $0x33c] sm:$0xf0]  ;;  %8480 = vmatmul.bf16.gmra.mxu0 %v10517_v63  ;;  %v8285_v29 = vpop.f32.mrf.mxu2 }
 0x3b1   : > { %4754 = vst [vmem:[#allocation4 + $0x364] sm:$0xf] %v4615_v28  ;;  %v4625_v4 = vsel %vm11832_vm5, %v4620_v1, %v4624_v11  ;;  %v4920_v58 = vsel %vm11803_vm4, %v4918_v54, %v4919_v47  ;;  %v5050_v32 = vld [vmem:[#allocation3 + $0x6c] sm:$0xf]  ;;  %v13496_v18 = vrot.slane %v5160_v22, 4  ;;  %v13501_v50 = vpop.f32.mrf.mxu1  ;;  %v5153_v56 = vor.u32 %v13386_v48, %v13384_v45  ;;  %v13507_v39 = vpop.f32.mrf.mxu0 }
 0x3b2   : > { %4260 = vst [vmem:[#allocation4 + $0x3a8] sm:$0xf] %v4228_v23  ;;  %v3991_v59 = vor.u32 %v3989_v37, %v13487_v10  ;;  %v3670_v16 = vmax.f32 %v3631_v14, 0.0  ;;  %8391 = vmatmul.bf16.gmra.mxu3 %v10513_v2  ;;  %v4790_v49 = vld [vmem:[#allocation3 + $0x70] sm:$0xf]  ;;  %v13511_v35 = vrot.slane %v5166_v40, 5  ;;  %v13513_v8 = vadd.f32 %v8285_v29, %v8197_v46 }
 0x3b3   : > { %4755 = vst [vmem:[#allocation4 + $0x388] sm:$0xf] %v4625_v4  ;;  %v11500_v9 = vld [vmem:[#allocation4 + $0x31c] sm:$0xf]  ;;  %v4789_v43 = vld [vmem:[#allocation3 + $0x6c] sm:$0xe]  ;;  %v8200_v1 = vadd.f32 %v13315_v17, %v13467_v25 }
 0x3b4   : > { %5019 = vst [vmem:[#allocation4 + $0x26c] sm:$0xf] %v4920_v58  ;;  %v4182_v22 = vsel %vm12939_vm8, %v3991_v59, %v4181_v3  ;;  %v3756_v61 = vpack.c.bf16 %v3670_v16, %v3670_v16  ;;  %v11513_v34 = vld [vmem:[#allocation4 + $0x380] sm:$0xf0]  ;;  %v4229_v13 = vld [vmem:[#allocation3 + $0xa0] sm:$0xf]  ;;  %v10689_v20 = vor.u32 %v11500_v9, %v10686_v21  ;;  %v3544_v38 = vpop.f32.mrf.mxu3 }
 0x3b5   : > { %5082 = vst [vmem:[#allocation4 + $0x24c] sm:$0xf] %v5050_v32  ;;  %v4305_v63 = vld [vmem:[#allocation3 + $0x9c] sm:$0xf]  ;;  %v4923_v11 = vrot.slane %v4790_v49, 5  ;;  %v13517_v28 = vrot.slane %v5692_v7, 4  ;;  %v3545_v55 = vadd.f32 %v3544_v38, %v12875_v30 }
 0x3b6   : > { %4183 = vst [vmem:[#allocation3 + $0xa8] sm:$0xf] %v4182_v22  ;;  %v3994_v57 = vshrl.u32 %v3756_v61, 16  ;;  %v10720_v23 = vld [vmem:[#allocation4 + $0x360] sm:$0xf]  ;;  %v3997_v54 = vshll.u32 %v3756_v61, 16  ;;  %8327 = vmatmul.bf16.gmra.mxu2 %v10689_v20 }
 0x3b7   : > { %4261 = vst [vmem:[#allocation4 + $0x3cc] sm:$0xf] %v4229_v13  ;;  %v4306_v40 = vld [vmem:[#allocation3 + $0xa0] sm:$0xf]  ;;  %v4627_v47 = vshrl.u32 %v4305_v63, 16  ;;  %v4630_v37 = vshll.u32 %v4305_v63, 16  ;;  %v3634_v21 = vadd.f32 %v13473_v27, %v3545_v55  ;;  %v10721_v25 = vor.u32 %v11513_v34, %v10720_v23 }
 0x3b8   : > { %v5051_v3 = vld [vmem:[#allocation3 + $0x70] sm:$0xf]  ;;  %v10247_v14 = vrot.slane %v4789_v43, 9  ;;  %v3996_v2 = vrot.slane %v3994_v57, 7  ;;  %v4307_v4 = vld [vmem:[#allocation3 + $0xa4] sm:$0x1]  ;;  %v8288_v57 = vpop.f32.mrf.mxu2 }
 0x3b9   : > { %v4636_v58 = vshll.u32 %v4306_v40, 16  ;;  %v4640_v32 = vshrl.u32 %v4306_v40, 16  ;;  %v4185_v59 = vld [vmem:[#allocation3 + $0xb0] sm:$0x1]  ;;  %v11469_v16 = vld [vmem:[#allocation4 + $0x220] sm:$0xf0]  ;;  %v13526_v27 = vpop.f32.mrf.mxu1  ;;  %8243 = vmatmul.bf16.gmra.mxu1 %v10721_v25 }
 0x3ba   : > { %v4629_v49 = vrot.slane %v4627_v47, 4  ;;  %v4632_v46 = vrot.slane %v4630_v37, 5  ;;  %v4924_v30 = vsel %vm11803_vm4, %v10247_v14, %v4923_v11  ;;  %v3992_v9 = vrot.slane %v13487_v10, 4  ;;  %v10550_v61 = vld [vmem:[#allocation4 + $0x224] sm:$0xf0] }
 0x3bb   : > { %v3999_v29 = vor.u32 %v3997_v54, %v3996_v2  ;;  %v4001_v22 = vrot.slane %v3996_v2, 4  ;;  %v3671_v43 = vmax.f32 %v3634_v21, 0.0  ;;  %5083 = vst [vmem:[#allocation4 + $0x270] sm:$0xf] %v5051_v3  ;;  %v4638_v38 = vrot.slane %v4636_v58, 5 }
 0x3bc   : > { %v4633_v13 = vor.u32 %v4632_v46, %v4629_v49  ;;  %v4642_v20 = vrot.slane %v4640_v32, 4  ;;  %v4646_v63 = vshll.u32 %v4307_v4, 16  ;;  %v4791_v34 = vld [vmem:[#allocation3 + $0x74] sm:$0x1]  ;;  %v4925_v40 = vrot.slane %v4923_v11, 4  ;;  %v3546_v3 = vpop.f32.mrf.mxu3  ;;  %v3638_v32 = vpop.f32.mrf.mxu0 }
 0x3bd   : > { %v4000_v23 = vsel %vm12959_vm12, %v3992_v9, %v3999_v29  ;;  %v4186_v55 = vsel %vm12984_vm13, %v4001_v22, %v4185_v59  ;;  %v3757_v10 = vpack.c.bf16 %v3671_v43, %v3671_v43  ;;  %5020 = vst [vmem:[#allocation4 + $0x290] sm:$0xf] %v4924_v30  ;;  %v5052_v54 = vld [vmem:[#allocation3 + $0x78] sm:$0xf]  ;;  %v5163_v47 = vor.u32 %v13496_v18, %v13477_v36  ;;  %v11465_v11 = vld [vmem:[#allocation4 + $0x204] sm:$0xf] }
 0x3be   : > { %v13534_v37 = vadd.f32 %v8288_v57, %v8200_v1  ;;  %4184 = vst [vmem:[#allocation3 + $0xac] sm:$0xf] %v4000_v23  ;;  %v10548_v14 = vld [vmem:[#allocation4 + $0x200] sm:$0xf]  ;;  %v4634_v2 = vrot.slane %v4633_v13, 4  ;;  %v4643_v21 = vor.u32 %v4642_v20, %v4638_v38  ;;  %v3547_v58 = vadd.f32 %v3546_v3, %v12884_v26 }
 0x3bf   : > { %4187 = vst [vmem:[#allocation3 + $0xb0] sm:$0x1] %v4186_v55  ;;  %v4003_v4 = vshrl.u32 %v3757_v10, 16  ;;  %v10549_v59 = vor.u32 %v11469_v16, %v10548_v14  ;;  %v4926_v49 = vrot.slane %v4791_v34, 5  ;;  %v10553_v46 = vor.u32 %v11465_v11, %v10550_v61  ;;  %v4230_v9 = vld [vmem:[#allocation3 + $0xa8] sm:$0xf] }
 0x3c0   : > { %v4639_v18 = vsel %vm11832_vm5, %v4634_v2, %v4638_v38  ;;  %v4644_v1 = vrot.slane %v4643_v21, 4  ;;  %v4648_v30 = vrot.slane %v4646_v63, 5  ;;  %5084 = vst [vmem:[#allocation4 + $0x294] sm:$0xf] %v5052_v54  ;;  %v4006_v22 = vshll.u32 %v3757_v10, 16 }
 0x3c1   : > { %v13539_v29 = vrot.slane %v4003_v4, 7  ;;  %v4188_v43 = vld [vmem:[#allocation3 + $0xb4] sm:$0xf]  ;;  %v3636_v25 = vadd.f32 %v13507_v39, %v3547_v58  ;;  %4756 = vst [vmem:[#allocation4 + $0x3ac] sm:$0xf] %v4639_v18  ;;  %v4927_v26 = vsel %vm11803_vm4, %v4925_v40, %v4926_v49  ;;  %8485 = vmatmul.bf16.gmra.mxu0 %v10553_v46  ;;  %v5154_v39 = vrot.slane %v5153_v56, 4  ;;  %v13552_v23 = vpop.f32.mrf.mxu1  ;;  %v8290_v40 = vpop.f32.mrf.mxu2 }
 0x3c2   : > { %v4649_v16 = vsel %vm11832_vm5, %v4644_v1, %v4648_v30  ;;  %4262 = vst [vmem:[#allocation4 + $0x3f0] sm:$0xf] %v4230_v9  ;;  %v5053_v61 = vld [vmem:[#allocation3 + $0x7c] sm:$0xf]  ;;  %v5101_v13 = vld [vmem:[#allocation3 + $0x18] sm:$0xf]  ;;  %8396 = vmatmul.bf16.gmra.mxu3 %v10549_v59  ;;  %v8202_v57 = vadd.f32 %v13315_v17, %v13501_v50  ;;  %v8205_v48 = vadd.f32 %v13315_v17, %v13526_v27 }
 0x3c3   : > { %v4008_v38 = vor.u32 %v4006_v22, %v13539_v29  ;;  %v11509_v20 = vld [vmem:[#allocation4 + $0x364] sm:$0xf]  ;;  %v10722_v63 = vld [vmem:[#allocation4 + $0x384] sm:$0xf0]  ;;  %v3672_v34 = vmax.f32 %v3636_v25, 0.0  ;;  %v13560_v2 = vrot.slane %v5163_v47, 4  ;;  %v5159_v59 = vsel %vm11832_vm5, %v5154_v39, %v13477_v36 }
 0x3c4   : > { %4757 = vst [vmem:[#allocation4 + $0x3d0] sm:$0xf] %v4649_v16  ;;  %v13554_v55 = vld [vmem:[#allocation4 + $0x3a8] sm:$0xf]  ;;  %v13556_v10 = vld [vmem:[#allocation4 + $0x3c8] sm:$0xf0]  ;;  %v13564_v50 = vadd.f32 %v8290_v40, %v8202_v57  ;;  %v10725_v56 = vor.u32 %v11509_v20, %v10722_v63  ;;  %v3549_v21 = vpop.f32.mrf.mxu3  ;;  %v13572_v46 = vpop.f32.mrf.mxu0 }
 0x3c5   : > { %5021 = vst [vmem:[#allocation4 + $0x2b4] sm:$0xf] %v4927_v26  ;;  %v4189_v54 = vsel %vm12939_vm8, %v4008_v38, %v4188_v43  ;;  %v3758_v3 = vpack.c.bf16 %v3672_v34, %v3672_v34  ;;  %v4231_v14 = vld [vmem:[#allocation3 + $0xac] sm:$0xf]  ;;  %v5171_v45 = vshrl.u32 %v5101_v13, 16  ;;  %v10757_v47 = vor.u32 %v13556_v10, %v13554_v55 }
 0x3c6   : > { %5085 = vst [vmem:[#allocation4 + $0x2b8] sm:$0xf] %v5053_v61  ;;  %v4308_v4 = vld [vmem:[#allocation3 + $0xa8] sm:$0xf]  ;;  %v4309_v58 = vld [vmem:[#allocation3 + $0xac] sm:$0xf]  ;;  %v3550_v49 = vadd.f32 %v3549_v21, %v12899_v19  ;;  %8332 = vmatmul.bf16.gmra.mxu2 %v10725_v56 }
 0x3c7   : > { %4190 = vst [vmem:[#allocation3 + $0xb4] sm:$0xf] %v4189_v54  ;;  %v4011_v11 = vshrl.u32 %v3758_v3, 16  ;;  %v4310_v17 = vld [vmem:[#allocation3 + $0xb0] sm:$0x1]  ;;  %v5174_v27 = vshll.u32 %v5101_v13, 16 }
 0x3c8   : > { %4263 = vst [vmem:[#allocation4 + $0x414] sm:$0xf] %v4231_v14  ;;  %v4651_v18 = vshrl.u32 %v4308_v4, 16  ;;  %v4654_v1 = vshll.u32 %v4308_v4, 16  ;;  %v4660_v30 = vshll.u32 %v4309_v58, 16  ;;  %v4664_v9 = vshrl.u32 %v4309_v58, 16 }
 0x3c9   : > { %v4013_v22 = vrot.slane %v4011_v11, 7  ;;  %v4014_v43 = vshll.u32 %v3758_v3, 16  ;;  %v3639_v25 = vadd.f32 %v3638_v32, %v3550_v49  ;;  %v4670_v26 = vshll.u32 %v4310_v17, 16  ;;  %v4192_v36 = vld [vmem:[#allocation3 + $0xbc] sm:$0x1]  ;;  %v11585_v13 = vld [vmem:[%s14793_s3 + $0x140] sm:$0xff]  ;;  %v13578_v57 = vpop.f32.mrf.mxu1  ;;  %v8293_v3 = vpop.f32.mrf.mxu2  ;;  %8248 = vmatmul.bf16.gmra.mxu1 %v10757_v47 }
 0x3ca   : > { %v4653_v16 = vrot.slane %v4651_v18, 4  ;;  %v4656_v61 = vrot.slane %v4654_v1, 5  ;;  %v4662_v38 = vrot.slane %v4660_v30, 5  ;;  %v4666_v20 = vrot.slane %v4664_v9, 4  ;;  %5562 = vst [vmem:[#allocation4 + $0x10] sm:$0xf] %v5159_v59  ;;  %8627 = vmatpush.bf16.msrb.mxu2 %v11585_v13 }
 0x3cb   : > { %v4009_v19 = vrot.slane %v13539_v29, 4  ;;  %v4016_v63 = vor.u32 %v4014_v43, %v4013_v22  ;;  %v4018_v34 = vrot.slane %v4013_v22, 4  ;;  %v3673_v39 = vmax.f32 %v3639_v25, 0.0  ;;  %v13580_v10 = vld [vmem:[#allocation3 + $0x1c] sm:$0xf]  ;;  %v11577_v22 = vld [vmem:[%s14793_s3 + $0x100] sm:$0xff] }
 0x3cc   : > { %v4657_v55 = vor.u32 %v4656_v61, %v4653_v16  ;;  %v4667_v32 = vor.u32 %v4666_v20, %v4662_v38  ;;  %v5173_v40 = vrot.slane %v5171_v45, 4  ;;  %v5176_v54 = vrot.slane %v5174_v27, 5  ;;  %v11478_v21 = vld [vmem:[#allocation4 + $0x268] sm:$0xf0]  ;;  %v10586_v58 = vld [vmem:[#allocation4 + $0x26c] sm:$0xf0]  ;;  %v3551_v45 = vpop.f32.mrf.mxu3  ;;  %v13593_v9 = vpop.f32.mrf.mxu0  ;;  %8538 = vmatpush.bf16.msrb.mxu1 %v11577_v22 }
 0x3cd   : > { %v4017_v29 = vsel %vm12959_vm12, %v4009_v19, %v4016_v63  ;;  %v4193_v14 = vsel %vm12984_vm13, %v4018_v34, %v4192_v36  ;;  %v3759_v56 = vpack.c.bf16 %v3673_v39, %v3673_v39  ;;  %v11474_v4 = vld [vmem:[#allocation4 + $0x24c] sm:$0xf]  ;;  %v5169_v59 = vsel %vm11832_vm5, %v13560_v2, %v13511_v35  ;;  %v10584_v49 = vld [vmem:[#allocation4 + $0x248] sm:$0xf]  ;;  %v5597_v36 = vld [vmem:[#allocation3 + $0x18] sm:$0xe] }
 0x3ce   : > { %v13590_v11 = vadd.f32 %v8293_v3, %v8205_v48  ;;  %4191 = vst [vmem:[#allocation3 + $0xb8] sm:$0xf] %v4017_v29  ;;  %v4658_v17 = vrot.slane %v4657_v55, 4  ;;  %v4668_v27 = vrot.slane %v4667_v32, 4  ;;  %v4672_v18 = vrot.slane %v4670_v26, 5 }
 0x3cf   : > { %4194 = vst [vmem:[#allocation3 + $0xbc] sm:$0x1] %v4193_v14  ;;  %v4020_v1 = vshrl.u32 %v3759_v56, 16  ;;  %v3552_v30 = vadd.f32 %v3551_v45, %v12917_v15  ;;  %v5693_v35 = vsel %vm11803_vm4, %v10254_v33, %v5692_v7  ;;  %v13604_v2 = vld [vmem:[#allocation3 + $0x20] sm:$0x1]  ;;  %v5180_v48 = vshll.u32 %v13580_v10, 16 }
 0x3d0   : > { %v4195_v47 = vld [vmem:[#allocation3 + $0xc0] sm:$0xf]  ;;  %v10589_v43 = vor.u32 %v11474_v4, %v10586_v58  ;;  %v4663_v15 = vsel %vm11832_vm5, %v4658_v17, %v4662_v38  ;;  %v4673_v25 = vsel %vm11832_vm5, %v4668_v27, %v4672_v18  ;;  %v4232_v26 = vld [vmem:[#allocation3 + $0xb4] sm:$0xf]  ;;  %5563 = vst [vmem:[#allocation4 + $0x34] sm:$0xf] %v5169_v59  ;;  %v5177_v6 = vor.u32 %v5176_v54, %v5173_v40 }
 0x3d1   : > { %v13611_v51 = vrot.slane %v4020_v1, 7  ;;  %v4023_v16 = vshll.u32 %v3759_v56, 16  ;;  %v10758_v33 = vld [vmem:[#allocation4 + $0x3cc] sm:$0xf0]  ;;  %v3641_v7 = vadd.f32 %v13572_v46, %v3552_v30  ;;  %v10585_v61 = vor.u32 %v11478_v21, %v10584_v49  ;;  %4758 = vst [vmem:[#allocation4 + $0x3f4] sm:$0xf] %v4663_v15  ;;  %v8295_v54 = vpop.f32.mrf.mxu2 }
 0x3d2   : > { %v13614_v20 = vld [vmem:[#allocation4 + $0x410] sm:$0xf0]  ;;  %8490 = vmatmul.bf16.gmra.mxu0 %v10589_v43  ;;  %4759 = vst [vmem:[#allocation4 + $0x418] sm:$0xf] %v4673_v25  ;;  %v5696_v38 = vsel %vm11803_vm4, %v13517_v28, %v5695_v42  ;;  %v13621_v19 = vld [vmem:[#allocation3 + $0x1c] sm:$0xf]  ;;  %v13634_v28 = vpop.f32.mrf.mxu1 }
 0x3d3   : > { %v4025_v63 = vor.u32 %v4023_v16, %v13611_v51  ;;  %v11518_v34 = vld [vmem:[#allocation4 + $0x3ac] sm:$0xf]  ;;  %v3674_v39 = vmax.f32 %v3641_v7, 0.0  ;;  %8401 = vmatmul.bf16.gmra.mxu3 %v10585_v61  ;;  %4264 = vst [vmem:[#allocation4 + $0x438] sm:$0xf] %v4232_v26  ;;  %v13624_v46 = vrot.slane %v5180_v48, 5 }
 0x3d4   : > { %v5184_v13 = vshrl.u32 %v13580_v10, 16  ;;  %v13630_v53 = vld [vmem:[%s14794_s4] ss:$0 sm:$0xff]  ;;  %v13636_v55 = vld [vmem:[#allocation4 + $0x3f0] sm:$0xf]  ;;  %v5178_v32 = vrot.slane %v5177_v6, 4  ;;  %v10761_v4 = vor.u32 %v11518_v34, %v10758_v33  ;;  %v8362_v59 = vpop.f32.mrf.mxu3  ;;  %v13651_v27 = vpop.f32.mrf.mxu0 }
 0x3d5   : > { %v8207_v42 = vadd.f32 %v13630_v53, %v13552_v23  ;;  %5834 = vst [vmem:[#allocation4 + $0x14] sm:$0xf] %v5693_v35  ;;  %v5190_v40 = vshll.u32 %v13604_v2, 16  ;;  %v4196_v10 = vsel %vm12939_vm8, %v4025_v63, %v4195_v47  ;;  %v3760_v3 = vpack.c.bf16 %v3674_v39, %v3674_v39  ;;  %v4233_v29 = vld [vmem:[#allocation3 + $0xb8] sm:$0xf] }
 0x3d6   : > { %5835 = vst [vmem:[#allocation4 + $0x38] sm:$0xf] %v5696_v38  ;;  %v10255_v14 = vrot.slane %v5597_v36, 9  ;;  %v5699_v56 = vrot.slane %v13621_v19, 5  ;;  %v8210_v23 = vadd.f32 %v13630_v53, %v13578_v57  ;;  %v10793_v58 = vor.u32 %v13614_v20, %v13636_v55  ;;  %v4311_v45 = vld [vmem:[#allocation3 + $0xb4] sm:$0xf]  ;;  %8337 = vmatmul.bf16.gmra.mxu2 %v10761_v4 }
 0x3d7   : > { %v13644_v21 = vadd.f32 %v8295_v54, %v8207_v42  ;;  %4197 = vst [vmem:[#allocation3 + $0xc0] sm:$0xf] %v4196_v10  ;;  %v4312_v52 = vld [vmem:[#allocation3 + $0xb8] sm:$0xf]  ;;  %v4028_v49 = vshrl.u32 %v3760_v3, 16  ;;  %v13649_v17 = vadd.f32 %v8362_v59, %v13341_v60  ;;  %v5183_v57 = vsel %vm11832_vm5, %v5178_v32, %v13624_v46 }
 0x3d8   : > { %4265 = vst [vmem:[#allocation4 + $0x45c] sm:$0xf] %v4233_v29  ;;  %v4313_v18 = vld [vmem:[#allocation3 + $0xbc] sm:$0x1]  ;;  %v5186_v1 = vrot.slane %v5184_v13, 4  ;;  %v4675_v30 = vshrl.u32 %v4311_v45, 16  ;;  %v5700_v15 = vsel %vm11803_vm4, %v10255_v14, %v5699_v56 }
 0x3d9   : > { %v4678_v22 = vshll.u32 %v4311_v45, 16  ;;  %v4684_v35 = vshll.u32 %v4312_v52, 16  ;;  %v4688_v2 = vshrl.u32 %v4312_v52, 16  ;;  %v13656_v48 = vld [vmem:[#allocation3 + $0x20] sm:$0x1]  ;;  %v4026_v47 = vrot.slane %v13611_v51, 4  ;;  %v8298_v42 = vpop.f32.mrf.mxu2  ;;  %8253 = vmatmul.bf16.gmra.mxu1 %v10793_v58 }
 0x3da   : > { %v4030_v43 = vrot.slane %v4028_v49, 7  ;;  %v4031_v60 = vshll.u32 %v3760_v3, 16  ;;  %v5104_v25 = vld [vmem:[#allocation3 + $0x24] sm:$0xf]  ;;  %v4199_v26 = vld [vmem:[#allocation3 + $0xc8] sm:$0x1]  ;;  %v5187_v38 = vor.u32 %v5186_v1, %v13624_v46  ;;  %v13662_v19 = vpop.f32.mrf.mxu1  ;;  %v13671_v29 = vadd.f32 %v8298_v42, %v8210_v23 }
 0x3db   : > { %v4677_v6 = vrot.slane %v4675_v30, 4  ;;  %v4680_v36 = vrot.slane %v4678_v22, 5  ;;  %v4686_v16 = vrot.slane %v4684_v35, 5  ;;  %v4694_v33 = vshll.u32 %v4313_v18, 16  ;;  %v11487_v51 = vld [vmem:[#allocation4 + $0x2b0] sm:$0xf0] }
 0x3dc   : > { %v4033_v7 = vor.u32 %v4031_v60, %v4030_v43  ;;  %v4035_v61 = vrot.slane %v4030_v43, 4  ;;  %v4690_v20 = vrot.slane %v4688_v2, 4  ;;  %v13664_v34 = vrot.slane %v5190_v40, 5  ;;  %5564 = vst [vmem:[#allocation4 + $0x58] sm:$0xf] %v5183_v57  ;;  %v8364_v40 = vpop.f32.mrf.mxu3  ;;  %v13676_v62 = vpop.f32.mrf.mxu0 }
 0x3dd   : > { %v4681_v63 = vor.u32 %v4680_v36, %v4677_v6  ;;  %v5702_v39 = vrot.slane %v13656_v48, 5  ;;  %v5195_v13 = vshrl.u32 %v5104_v25, 16  ;;  %v11483_v54 = vld [vmem:[#allocation4 + $0x294] sm:$0xf]  ;;  %v10622_v10 = vld [vmem:[#allocation4 + $0x2b4] sm:$0xf0]  ;;  %v13674_v0 = vadd.f32 %v8364_v40, %v13365_v12 }
 0x3de   : > { %v4034_v55 = vsel %vm12959_vm12, %v4026_v47, %v4033_v7  ;;  %v4200_v32 = vsel %vm12984_vm13, %v4035_v61, %v4199_v26  ;;  %v4691_v46 = vor.u32 %v4690_v20, %v4686_v16  ;;  %v5701_v3 = vrot.slane %v5699_v56, 4  ;;  %5836 = vst [vmem:[#allocation4 + $0x5c] sm:$0xf] %v5700_v15  ;;  %v10620_v14 = vld [vmem:[#allocation4 + $0x290] sm:$0xf] }
 0x3df   : > { %4198 = vst [vmem:[#allocation3 + $0xc4] sm:$0xf] %v4034_v55  ;;  %v4682_v4 = vrot.slane %v4681_v63, 4  ;;  %v4696_v59 = vrot.slane %v4694_v33, 5  ;;  %v5105_v45 = vld [vmem:[#allocation3 + $0x28] sm:$0xf]  ;;  %v10625_v23 = vor.u32 %v11483_v54, %v10622_v10  ;;  %v10621_v58 = vor.u32 %v11487_v51, %v10620_v14 }
 0x3e0   : > { %4201 = vst [vmem:[#allocation3 + $0xc8] sm:$0x1] %v4200_v32  ;;  %v4692_v52 = vrot.slane %v4691_v46, 4  ;;  %v4792_v49 = vld [vmem:[#allocation3 + $0x78] sm:$0xe]  ;;  %v5188_v18 = vrot.slane %v5187_v38, 4  ;;  %v8212_v15 = vadd.f32 %v13630_v53, %v13634_v28  ;;  %v5703_v38 = vsel %vm11803_vm4, %v5701_v3, %v5702_v39 }
 0x3e1   : > { %v13678_v56 = vld [vmem:[#allocation4 + $0x414] sm:$0xf0]  ;;  %v4687_v57 = vsel %vm11832_vm5, %v4682_v4, %v4686_v16  ;;  %v4793_v1 = vld [vmem:[#allocation3 + $0x7c] sm:$0xf]  ;;  %v4794_v30 = vld [vmem:[#allocation3 + $0x80] sm:$0x1] }
 0x3e2   : > { %v5106_v22 = vld [vmem:[#allocation3 + $0x2c] sm:$0x1]  ;;  %v5197_v35 = vrot.slane %v5195_v13, 4  ;;  %v5198_v2 = vshll.u32 %v5104_v25, 16  ;;  %v4697_v12 = vsel %vm11832_vm5, %v4692_v52, %v4696_v59  ;;  %4760 = vst [vmem:[#allocation4 + $0x43c] sm:$0xf] %v4687_v57  ;;  %8495 = vmatmul.bf16.gmra.mxu0 %v10625_v23  ;;  %v13688_v61 = vpop.f32.mrf.mxu1  ;;  %v5193_v28 = vsel %vm11832_vm5, %v5188_v18, %v13664_v34  ;;  %v8300_v13 = vpop.f32.mrf.mxu2 }
 0x3e3   : > { %v10248_v48 = vrot.slane %v4792_v49, 9  ;;  %v4930_v47 = vrot.slane %v4793_v1, 5  ;;  %v5054_v43 = vld [vmem:[#allocation3 + $0x84] sm:$0xf]  ;;  %4761 = vst [vmem:[#allocation4 + $0x460] sm:$0xf] %v4697_v12  ;;  %8406 = vmatmul.bf16.gmra.mxu3 %v10621_v58  ;;  %v13698_v46 = vadd.f32 %v8300_v13, %v8212_v15 }
 0x3e4   : > { %v5600_v60 = vld [vmem:[#allocation3 + $0x24] sm:$0xe]  ;;  %v5055_v26 = vld [vmem:[#allocation3 + $0x88] sm:$0xf]  ;;  %v5200_v6 = vrot.slane %v5198_v2, 5  ;;  %v5204_v36 = vshll.u32 %v5105_v45, 16  ;;  %v8367_v40 = vpop.f32.mrf.mxu3  ;;  %v13706_v59 = vpop.f32.mrf.mxu0 }
 0x3e5   : > { %v4931_v25 = vsel %vm11803_vm4, %v10248_v48, %v4930_v47  ;;  %v4932_v16 = vrot.slane %v4930_v47, 4  ;;  %v4933_v33 = vrot.slane %v4794_v30, 5  ;;  %5086 = vst [vmem:[#allocation4 + $0x2dc] sm:$0xf] %v5054_v43  ;;  %v5208_v7 = vshrl.u32 %v5105_v45, 16  ;;  %v11600_v34 = vld [vmem:[%s14793_s3 + $0x1b8] sm:$0xff] }
 0x3e6   : > { %v11527_v20 = vld [vmem:[#allocation4 + $0x3f4] sm:$0xf]  ;;  %5022 = vst [vmem:[#allocation4 + $0x2d8] sm:$0xf] %v4931_v25  ;;  %v5201_v51 = vor.u32 %v5200_v6, %v5197_v35  ;;  %v5206_v63 = vrot.slane %v5204_v36, 5  ;;  %v5214_v54 = vshll.u32 %v5106_v22, 16  ;;  %v13704_v4 = vadd.f32 %v8367_v40, %v13416_v5  ;;  %8709 = vmatpush.bf16.msra.mxu3 %v11600_v34 }
 0x3e7   : > { %v10797_v42 = vor.u32 %v11527_v20, %v13678_v56  ;;  %v4934_v55 = vsel %vm11803_vm4, %v4932_v16, %v4933_v33  ;;  %5087 = vst [vmem:[#allocation4 + $0x300] sm:$0xf] %v5055_v26  ;;  %v5210_v32 = vrot.slane %v5208_v7, 4  ;;  %v5601_v10 = vld [vmem:[#allocation3 + $0x28] sm:$0xf]  ;;  %v10256_v3 = vrot.slane %v5600_v60, 9 }
 0x3e8   : > { %5023 = vst [vmem:[#allocation4 + $0x2fc] sm:$0xf] %v4934_v55  ;;  %v5202_v39 = vrot.slane %v5201_v51, 4  ;;  %v5706_v14 = vrot.slane %v5601_v10, 5  ;;  %v5602_v52 = vld [vmem:[#allocation3 + $0x2c] sm:$0x1]  ;;  %v8215_v60 = vadd.f32 %v13630_v53, %v13662_v19 }
 0x3e9   : > { %5565 = vst [vmem:[#allocation4 + $0x7c] sm:$0xf] %v5193_v28  ;;  %v5211_v45 = vor.u32 %v5210_v32, %v5206_v63  ;;  %v5107_v49 = vld [vmem:[#allocation3 + $0x30] sm:$0xf]  ;;  %v11540_v18 = vld [vmem:[#allocation4 + $0x458] sm:$0xf0]  ;;  %8342 = vmatmul.bf16.gmra.mxu2 %v10797_v42 }
 0x3ea   : > { %5837 = vst [vmem:[#allocation4 + $0x80] sm:$0xf] %v5703_v38  ;;  %v5207_v56 = vsel %vm11832_vm5, %v5202_v39, %v5206_v63  ;;  %v5707_v23 = vsel %vm11803_vm4, %v10256_v3, %v5706_v14  ;;  %v5708_v57 = vrot.slane %v5706_v14, 4  ;;  %v5709_v1 = vrot.slane %v5602_v52, 5  ;;  %v10828_v35 = vld [vmem:[#allocation4 + $0x438] sm:$0xf]  ;;  %v13721_v15 = vpop.f32.mrf.mxu1  ;;  %v8303_v6 = vpop.f32.mrf.mxu2 }
 0x3eb   : > { %v5212_v30 = vrot.slane %v5211_v45, 4  ;;  %v5216_v5 = vrot.slane %v5214_v54, 5  ;;  %5566 = vst [vmem:[#allocation4 + $0xa0] sm:$0xf] %v5207_v56  ;;  %v5219_v22 = vshrl.u32 %v5107_v49, 16  ;;  %v11624_v2 = vld [vmem:[%s14795_s5 + $0x38] sm:$0xff]  ;;  %v10829_v48 = vor.u32 %v11540_v18, %v10828_v35 }
 0x3ec   : > { %v5710_v58 = vsel %vm11803_vm4, %v5708_v57, %v5709_v1  ;;  %5838 = vst [vmem:[#allocation4 + $0xa4] sm:$0xf] %v5707_v23  ;;  %v5222_v12 = vshll.u32 %v5107_v49, 16  ;;  %v5108_v43 = vld [vmem:[#allocation3 + $0x34] sm:$0xf]  ;;  %9108 = vmatpush.bf16.msra.mxu2 %v11624_v2  ;;  %v13723_v33 = vadd.f32 %v8303_v6, %v8215_v60  ;;  %v8369_v7 = vpop.f32.mrf.mxu3  ;;  %v11608_v38 = vld [vmem:[%s14793_s3 + $0x1f8] sm:$0xff]  ;;  %v13734_v13 = vpop.f32.mrf.mxu0 }
 0x3ed   : > { %v5217_v47 = vsel %vm11832_vm5, %v5212_v30, %v5216_v5  ;;  %5839 = vst [vmem:[#allocation4 + $0xc8] sm:$0xf] %v5710_v58  ;;  %v11492_v36 = vld [vmem:[#allocation4 + $0x2dc] sm:$0xf]  ;;  %v5221_v25 = vrot.slane %v5219_v22, 4  ;;  %v11616_v19 = vld [vmem:[%s14793_s3 + $0x238] sm:$0xff]  ;;  %8258 = vmatmul.bf16.gmra.mxu1 %v10829_v48  ;;  %v13732_v63 = vadd.f32 %v8369_v7, %v13451_v24  ;;  %8798 = vmatpush.bf16.msra.mxu0 %v11608_v38 }
 0x3ee   : > { %v10658_v26 = vld [vmem:[#allocation4 + $0x2fc] sm:$0xf0]  ;;  %5567 = vst [vmem:[#allocation4 + $0xc4] sm:$0xf] %v5217_v47  ;;  %v5224_v16 = vrot.slane %v5222_v12, 5  ;;  %v5228_v51 = vshll.u32 %v5108_v43, 16  ;;  %8887 = vmatpush.bf16.msra.mxu1 %v11616_v19  ;;  %v8217_v30 = vadd.f32 %v13630_v53, %v13688_v61 }
 0x3ef   : > { %v10656_v20 = vld [vmem:[#allocation4 + $0x2d8] sm:$0xf]  ;;  %v11496_v28 = vld [vmem:[#allocation4 + $0x2f8] sm:$0xf0]  ;;  %v10661_v42 = vor.u32 %v11492_v36, %v10658_v26  ;;  %v4795_v55 = vld [vmem:[#allocation3 + $0x84] sm:$0xe] }
 0x3f0   : > { %v4796_v32 = vld [vmem:[#allocation3 + $0x88] sm:$0xf]  ;;  %v4797_v54 = vld [vmem:[#allocation3 + $0x8c] sm:$0x1]  ;;  %v5225_v10 = vor.u32 %v5224_v16, %v5221_v25  ;;  %v10830_v40 = vld [vmem:[#allocation4 + $0x45c] sm:$0xf0]  ;;  %v10657_v52 = vor.u32 %v11496_v28, %v10656_v20 }
 0x3f1   : > { %v10249_v34 = vrot.slane %v4795_v55, 9  ;;  %v4937_v39 = vrot.slane %v4796_v32, 5  ;;  %v5056_v3 = vld [vmem:[#allocation3 + $0x90] sm:$0xf]  ;;  %v5230_v14 = vrot.slane %v5228_v51, 5  ;;  %v5232_v45 = vshrl.u32 %v5108_v43, 16 }
 0x3f2   : > { %v5057_v49 = vld [vmem:[#allocation3 + $0x94] sm:$0xf]  ;;  %5088 = vst [vmem:[#allocation4 + $0x324] sm:$0xf] %v5056_v3  ;;  %v5109_v24 = vld [vmem:[#allocation3 + $0x38] sm:$0x1]  ;;  %8500 = vmatmul.bf16.gmra.mxu0 %v10661_v42  ;;  %v13740_v5 = vpop.f32.mrf.mxu1  ;;  %v8305_v48 = vpop.f32.mrf.mxu2 }
 0x3f3   : > { %v4938_v18 = vsel %vm11803_vm4, %v10249_v34, %v4937_v39  ;;  %v4939_v56 = vrot.slane %v4937_v39, 4  ;;  %v4940_v23 = vrot.slane %v4797_v54, 5  ;;  %5089 = vst [vmem:[#allocation4 + $0x348] sm:$0xf] %v5057_v49  ;;  %v5226_v57 = vrot.slane %v5225_v10, 4  ;;  %8411 = vmatmul.bf16.gmra.mxu3 %v10657_v52 }
 0x3f4   : > { %5024 = vst [vmem:[#allocation4 + $0x320] sm:$0xf] %v4938_v18  ;;  %v5603_v1 = vld [vmem:[#allocation3 + $0x30] sm:$0xe]  ;;  %v11536_v22 = vld [vmem:[#allocation4 + $0x43c] sm:$0xf]  ;;  %v13746_v26 = vadd.f32 %v8305_v48, %v8217_v30  ;;  %v8372_v6 = vpop.f32.mrf.mxu3  ;;  %v13751_v20 = vpop.f32.mrf.mxu0 }
 0x3f5   : > { %v4941_v35 = vsel %vm11803_vm4, %v4939_v56, %v4940_v23  ;;  %v5231_v2 = vsel %vm11832_vm5, %v5226_v57, %v5230_v14  ;;  %v5234_v58 = vrot.slane %v5232_v45, 4  ;;  %v5604_v12 = vld [vmem:[#allocation3 + $0x34] sm:$0xf]  ;;  %v10833_v47 = vor.u32 %v11536_v22, %v10830_v40  ;;  %v5605_v60 = vld [vmem:[#allocation3 + $0x38] sm:$0x1] }
 0x3f6   : > { %5025 = vst [vmem:[#allocation4 + $0x344] sm:$0xf] %v4941_v35  ;;  %v5238_v43 = vshll.u32 %v5109_v24, 16  ;;  %v10257_v36 = vrot.slane %v5603_v1, 9  ;;  %v5713_v25 = vrot.slane %v5604_v12, 5  ;;  %v13749_v7 = vadd.f32 %v8372_v6, %v13479_v41 }
 0x3f7   : > { %v5235_v61 = vor.u32 %v5234_v58, %v5230_v14  ;;  %5568 = vst [vmem:[#allocation4 + $0xe8] sm:$0xf] %v5231_v2  ;;  %v5110_v16 = vld [vmem:[#allocation3 + $0x3c] sm:$0xf]  ;;  %v5716_v38 = vrot.slane %v5605_v60, 5  ;;  %v8220_v56 = vadd.f32 %v13630_v53, %v13721_v15 }
 0x3f8   : > { %v5240_v28 = vrot.slane %v5238_v43, 5  ;;  %v5111_v19 = vld [vmem:[#allocation3 + $0x40] sm:$0xf]  ;;  %v5243_v51 = vshrl.u32 %v5110_v16, 16  ;;  %v13753_v42 = vld [vmem:[#allocation3 + $0x18] sm:$0xf]  ;;  %v5714_v32 = vsel %vm11803_vm4, %v10257_v36, %v5713_v25 }
 0x3f9   : > { %v5236_v55 = vrot.slane %v5235_v61, 4  ;;  %v5715_v54 = vrot.slane %v5713_v25, 4  ;;  %v5246_v10 = vshll.u32 %v5110_v16, 16  ;;  %5840 = vst [vmem:[#allocation4 + $0xec] sm:$0xf] %v5714_v32  ;;  %v5252_v34 = vshll.u32 %v5111_v19, 16  ;;  %8347 = vmatmul.bf16.gmra.mxu2 %v10833_v47 }
 0x3fa   : > { %v5245_v40 = vrot.slane %v5243_v51, 4  ;;  %v11407_v41 = vld [vmem:[#allocation4 + $0x30] sm:$0xf0]  ;;  %v5112_v14 = vld [vmem:[#allocation3 + $0x44] sm:$0x1]  ;;  %v5980_v52 = vshrl.u32 %v13753_v42, 16  ;;  %v13765_v23 = vpop.f32.mrf.mxu1  ;;  %v8308_v22 = vpop.f32.mrf.mxu2 }
 0x3fb   : > { %v5241_v39 = vsel %vm11832_vm5, %v5236_v55, %v5240_v28  ;;  %v5717_v3 = vsel %vm11803_vm4, %v5715_v54, %v5716_v38  ;;  %v5248_v45 = vrot.slane %v5246_v10, 5  ;;  %v5983_v49 = vshll.u32 %v13753_v42, 16  ;;  %v10304_v57 = vld [vmem:[#allocation4 + $0x10] sm:$0xf]  ;;  %v5607_v30 = vld [vmem:[#allocation3 + $0x40] sm:$0xf] }
 0x3fc   : > { %5569 = vst [vmem:[#allocation4 + $0x10c] sm:$0xf] %v5241_v39  ;;  %v5254_v24 = vrot.slane %v5252_v34, 5  ;;  %v5256_v18 = vshrl.u32 %v5111_v19, 16  ;;  %v10305_v35 = vor.u32 %v11407_v41, %v10304_v57  ;;  %v11501_v2 = vld [vmem:[#allocation4 + $0x324] sm:$0xf]  ;;  %v13767_v43 = vadd.f32 %v8308_v22, %v8220_v56  ;;  %v8374_v60 = vpop.f32.mrf.mxu3  ;;  %v13772_v28 = vpop.f32.mrf.mxu0 }
 0x3fd   : > { %5841 = vst [vmem:[#allocation4 + $0x110] sm:$0xf] %v5717_v3  ;;  %v5249_v1 = vor.u32 %v5248_v45, %v5245_v40  ;;  %v10694_v58 = vld [vmem:[#allocation4 + $0x344] sm:$0xf0]  ;;  %v5262_v48 = vshll.u32 %v5112_v14, 16  ;;  %v5720_v25 = vrot.slane %v5607_v30, 5  ;;  %v13770_v16 = vadd.f32 %v8374_v60, %v13513_v8 }
 0x3fe   : > { %v5258_v12 = vrot.slane %v5256_v18, 4  ;;  %v5606_v47 = vld [vmem:[#allocation3 + $0x3c] sm:$0xe]  ;;  %v10692_v6 = vld [vmem:[#allocation4 + $0x320] sm:$0xf]  ;;  %8539 = vmatmul.bf16.vlgmr.msrb.gmra.mxu1 %v10305_v35  ;;  %v10697_v32 = vor.u32 %v11501_v2, %v10694_v58  ;;  %v13780_v30 = vrot.slane %v5980_v52, 4 }
 0x3ff   : > { %v11505_v61 = vld [vmem:[#allocation4 + $0x340] sm:$0xf0]  ;;  %v5250_v36 = vrot.slane %v5249_v1, 4  ;;  %v5608_v15 = vld [vmem:[#allocation3 + $0x44] sm:$0x1]  ;;  %v5264_v14 = vrot.slane %v5262_v48, 5 }
 0x400   : > { %v4798_v38 = vld [vmem:[#allocation3 + $0x90] sm:$0xe]  ;;  %v4799_v19 = vld [vmem:[#allocation3 + $0x94] sm:$0xf]  ;;  %v4800_v51 = vld [vmem:[#allocation3 + $0x98] sm:$0x1]  ;;  %v5259_v55 = vor.u32 %v5258_v12, %v5254_v24  ;;  %v10693_v39 = vor.u32 %v11505_v61, %v10692_v6 }
 0x401   : > { %v10250_v54 = vrot.slane %v4798_v38, 9  ;;  %v4944_v10 = vrot.slane %v4799_v19, 5  ;;  %v5058_v40 = vld [vmem:[#allocation3 + $0x9c] sm:$0xf]  ;;  %v5113_v34 = vld [vmem:[#allocation3 + $0x48] sm:$0xf]  ;;  %v5255_v8 = vsel %vm11832_vm5, %v5250_v36, %v5254_v24  ;;  %v8222_v24 = vadd.f32 %v13630_v53, %v13740_v5 }
 0x402   : > { %v13774_v41 = vld [vmem:[#allocation3 + $0x1c] sm:$0xf]  ;;  %v5059_v3 = vld [vmem:[#allocation3 + $0xa0] sm:$0xf]  ;;  %5090 = vst [vmem:[#allocation4 + $0x36c] sm:$0xf] %v5058_v40  ;;  %8505 = vmatmul.bf16.gmra.mxu0 %v10697_v32  ;;  %v13784_v12 = vpop.f32.mrf.mxu1  ;;  %v8310_v61 = vpop.f32.mrf.mxu2 }
 0x403   : > { %v10258_v45 = vrot.slane %v5606_v47, 9  ;;  %v4945_v18 = vsel %vm11803_vm4, %v10250_v54, %v4944_v10  ;;  %v4946_v56 = vrot.slane %v4944_v10, 4  ;;  %v4947_v57 = vrot.slane %v4800_v51, 5  ;;  %5091 = vst [vmem:[#allocation4 + $0x390] sm:$0xf] %v5059_v3  ;;  %8416 = vmatmul.bf16.gmra.mxu3 %v10693_v39 }
 0x404   : > { %v5260_v1 = vrot.slane %v5259_v55, 4  ;;  %v10306_v22 = vld [vmem:[#allocation4 + $0x34] sm:$0xf0]  ;;  %5026 = vst [vmem:[#allocation4 + $0x368] sm:$0xf] %v4945_v18  ;;  %v5722_v35 = vrot.slane %v5720_v25, 4  ;;  %v13795_v55 = vadd.f32 %v8310_v61, %v8222_v24  ;;  %v8377_v32 = vpop.f32.mrf.mxu3  ;;  %v8225_v61 = vadd.f32 %v13630_v53, %v13765_v23 }
 0x405   : > { %v5723_v2 = vrot.slane %v5608_v15, 5  ;;  %v5267_v58 = vshrl.u32 %v5113_v34, 16  ;;  %v4948_v48 = vsel %vm11803_vm4, %v4946_v56, %v4947_v57  ;;  %5570 = vst [vmem:[#allocation4 + $0x130] sm:$0xf] %v5255_v8  ;;  %v5721_v52 = vsel %vm11803_vm4, %v10258_v45, %v5720_v25  ;;  %v5114_v60 = vld [vmem:[#allocation3 + $0x4c] sm:$0xf] }
 0x406   : > { %v5265_v47 = vsel %vm11832_vm5, %v5260_v1, %v5264_v14  ;;  %v5115_v6 = vld [vmem:[#allocation3 + $0x50] sm:$0x1]  ;;  %v11403_v36 = vld [vmem:[#allocation4 + $0x14] sm:$0xf]  ;;  %5027 = vst [vmem:[#allocation4 + $0x38c] sm:$0xf] %v4948_v48  ;;  %v13802_v39 = vadd.f32 %v8377_v32, %v13534_v37  ;;  %v13808_v1 = vpop.f32.mrf.mxu0 }
 0x407   : > { %v5724_v5 = vsel %vm11803_vm4, %v5722_v35, %v5723_v2  ;;  %v5269_v15 = vrot.slane %v5267_v58, 4  ;;  %v5270_v38 = vshll.u32 %v5113_v34, 16  ;;  %v5609_v19 = vld [vmem:[#allocation3 + $0x48] sm:$0xe]  ;;  %v5989_v51 = vshll.u32 %v13774_v41, 16  ;;  %v11599_v25 = vld [vmem:[%s14793_s3 + $0x1b0] sm:$0xff] }
 0x408   : > { %5571 = vst [vmem:[#allocation4 + $0x154] sm:$0xf] %v5265_v47  ;;  %v5276_v54 = vshll.u32 %v5114_v60, 16  ;;  %v5280_v10 = vshrl.u32 %v5114_v60, 16  ;;  %v5993_v40 = vshrl.u32 %v13774_v41, 16  ;;  %v10309_v8 = vor.u32 %v11403_v36, %v10306_v22  ;;  %8710 = vmatpush.bf16.msra.mxu3 %v11599_v25  ;;  %v11623_v22 = vld [vmem:[%s14795_s5 + $0x30] sm:$0xff] }
 0x409   : > { %5842 = vst [vmem:[#allocation4 + $0x134] sm:$0xf] %v5721_v52  ;;  %v5272_v34 = vrot.slane %v5270_v38, 5  ;;  %v5610_v3 = vld [vmem:[#allocation3 + $0x4c] sm:$0xf]  ;;  %v5286_v18 = vshll.u32 %v5115_v6, 16  ;;  %9109 = vmatpush.bf16.msra.mxu2 %v11623_v22 }
 0x40a   : > { %5843 = vst [vmem:[#allocation4 + $0x158] sm:$0xf] %v5724_v5  ;;  %v5278_v14 = vrot.slane %v5276_v54, 5  ;;  %v5282_v45 = vrot.slane %v5280_v10, 4  ;;  %v13806_v56 = vrot.slane %v5983_v49, 5  ;;  %v10259_v35 = vrot.slane %v5609_v19, 9  ;;  %8628 = vmatmul.bf16.vlgmr.msrb.gmra.mxu2 %v10309_v8  ;;  %v13819_v36 = vpop.f32.mrf.mxu1  ;;  %v8313_v38 = vpop.f32.mrf.mxu2 }
 0x40b   : > { %v5933_v57 = vld [vmem:[#allocation3 + $0x20] sm:$0x1]  ;;  %v5273_v41 = vor.u32 %v5272_v34, %v5269_v15  ;;  %v5727_v37 = vrot.slane %v5610_v3, 5  ;;  %v13810_v2 = vrot.slane %v5989_v51, 5  ;;  %v11416_v58 = vld [vmem:[#allocation4 + $0x78] sm:$0xf0]  ;;  %v13825_v23 = vadd.f32 %v8313_v38, %v8225_v61 }
 0x40c   : > { %v5283_v24 = vor.u32 %v5282_v45, %v5278_v14  ;;  %v5867_v48 = vld [vmem:[#allocation3 + $0x18] sm:$0xf]  ;;  %v5995_v47 = vrot.slane %v5993_v40, 4  ;;  %v10340_v42 = vld [vmem:[#allocation4 + $0x58] sm:$0xf]  ;;  %v5999_v6 = vshll.u32 %v5933_v57, 16  ;;  %v5986_v40 = vor.u32 %v13806_v56, %v13780_v30  ;;  %v8379_v34 = vpop.f32.mrf.mxu3 }
 0x40d   : > { %v10730_v49 = vld [vmem:[#allocation4 + $0x38c] sm:$0xf0]  ;;  %v5274_v52 = vrot.slane %v5273_v41, 4  ;;  %v5728_v60 = vsel %vm11803_vm4, %v10259_v35, %v5727_v37  ;;  %v5288_v5 = vrot.slane %v5286_v18, 5  ;;  %v5611_v15 = vld [vmem:[#allocation3 + $0x50] sm:$0x1]  ;;  %v10341_v19 = vor.u32 %v11416_v58, %v10340_v42 }
 0x40e   : > { %5844 = vst [vmem:[#allocation4 + $0x17c] sm:$0xf] %v5728_v60  ;;  %v11510_v51 = vld [vmem:[#allocation4 + $0x36c] sm:$0xf]  ;;  %v5284_v25 = vrot.slane %v5283_v24, 4  ;;  %v5729_v54 = vrot.slane %v5727_v37, 4  ;;  %v5996_v18 = vor.u32 %v5995_v47, %v13810_v2  ;;  %v13835_v57 = vadd.f32 %v8379_v34, %v13564_v50 }
 0x40f   : > { %v5279_v32 = vsel %vm11832_vm5, %v5274_v52, %v5278_v14  ;;  %v5116_v10 = vld [vmem:[#allocation3 + $0x54] sm:$0xf]  ;;  %5899 = vst [vmem:[#allocation4 + $0x18] sm:$0xf] %v5867_v48  ;;  %v10728_v3 = vld [vmem:[#allocation4 + $0x368] sm:$0xf]  ;;  %8544 = vmatmul.bf16.gmra.mxu1 %v10341_v19  ;;  %v10733_v35 = vor.u32 %v11510_v51, %v10730_v49  ;;  %v13841_v19 = vpop.f32.mrf.mxu0 }
 0x410   : > { %v11514_v8 = vld [vmem:[#allocation4 + $0x388] sm:$0xf0]  ;;  %v11607_v45 = vld [vmem:[%s14793_s3 + $0x1f0] sm:$0xff]  ;;  %5572 = vst [vmem:[#allocation4 + $0x178] sm:$0xf] %v5279_v32  ;;  %v5291_v24 = vshrl.u32 %v5116_v10, 16  ;;  %v5289_v47 = vsel %vm11832_vm5, %v5284_v25, %v5288_v5  ;;  %v8227_v5 = vadd.f32 %v13630_v53, %v13784_v12 }
 0x411   : > { %v11615_v14 = vld [vmem:[%s14793_s3 + $0x230] sm:$0xff]  ;;  %v4801_v30 = vld [vmem:[#allocation3 + $0x9c] sm:$0xe]  ;;  %v4802_v56 = vld [vmem:[#allocation3 + $0xa0] sm:$0xf]  ;;  %8799 = vmatpush.bf16.msra.mxu0 %v11607_v45  ;;  %v6001_v48 = vrot.slane %v5999_v6, 5  ;;  %v10729_v42 = vor.u32 %v11514_v8, %v10728_v3 }
 0x412   : > { %v4803_v41 = vld [vmem:[#allocation3 + $0xa4] sm:$0x1]  ;;  %8888 = vmatpush.bf16.msra.mxu1 %v11615_v14  ;;  %v10251_v37 = vrot.slane %v4801_v30, 9  ;;  %v4951_v58 = vrot.slane %v4802_v56, 5  ;;  %v5060_v22 = vld [vmem:[#allocation3 + $0xa8] sm:$0xf]  ;;  %8510 = vmatmul.bf16.gmra.mxu0 %v10733_v35  ;;  %v8315_v8 = vpop.f32.mrf.mxu2 }
 0x413   : > { %v5061_v52 = vld [vmem:[#allocation3 + $0xac] sm:$0xf]  ;;  %5092 = vst [vmem:[#allocation4 + $0x3b4] sm:$0xf] %v5060_v22  ;;  %v5730_v60 = vrot.slane %v5611_v15, 5  ;;  %v4954_v49 = vrot.slane %v4803_v41, 5  ;;  %8421 = vmatmul.bf16.gmra.mxu3 %v10729_v42  ;;  %v13847_v15 = vpop.f32.mrf.mxu1 }
 0x414   : > { %v4952_v50 = vsel %vm11803_vm4, %v10251_v37, %v4951_v58  ;;  %v4953_v61 = vrot.slane %v4951_v58, 4  ;;  %5093 = vst [vmem:[#allocation4 + $0x3d8] sm:$0xf] %v5061_v52  ;;  %v5987_v38 = vrot.slane %v5986_v40, 4  ;;  %v5293_v51 = vrot.slane %v5291_v24, 4  ;;  %v8382_v12 = vpop.f32.mrf.mxu3 }
 0x415   : > { %5028 = vst [vmem:[#allocation4 + $0x3b0] sm:$0xf] %v4952_v50  ;;  %v5731_v6 = vsel %vm11803_vm4, %v5729_v54, %v5730_v60  ;;  %v5294_v32 = vshll.u32 %v5116_v10, 16  ;;  %v5997_v34 = vrot.slane %v5996_v18, 4  ;;  %v5117_v40 = vld [vmem:[#allocation3 + $0x58] sm:$0xf]  ;;  %v13854_v18 = vadd.f32 %v8315_v8, %v8227_v5 }
 0x416   : > { %v4955_v25 = vsel %vm11803_vm4, %v4953_v61, %v4954_v49  ;;  %5573 = vst [vmem:[#allocation4 + $0x19c] sm:$0xf] %v5289_v47  ;;  %v5868_v3 = vld [vmem:[#allocation3 + $0x1c] sm:$0xf]  ;;  %v11412_v45 = vld [vmem:[#allocation4 + $0x5c] sm:$0xf]  ;;  %v5992_v10 = vsel %vm11832_vm5, %v5987_v38, %v13810_v2  ;;  %v13859_v37 = vadd.f32 %v8382_v12, %v13590_v11  ;;  %v8230_v38 = vadd.f32 %v13630_v53, %v13819_v36 }
 0x417   : > { %v10342_v14 = vld [vmem:[#allocation4 + $0x7c] sm:$0xf0]  ;;  %5029 = vst [vmem:[#allocation4 + $0x3d4] sm:$0xf] %v4955_v25  ;;  %v5296_v30 = vrot.slane %v5294_v32, 5  ;;  %v5300_v54 = vshll.u32 %v5117_v40, 16  ;;  %v6002_v35 = vsel %vm11832_vm5, %v5997_v34, %v6001_v48  ;;  %v13867_v25 = vpop.f32.mrf.mxu0 }
 0x418   : > { %5845 = vst [vmem:[#allocation4 + $0x1a0] sm:$0xf] %v5731_v6  ;;  %v5118_v56 = vld [vmem:[#allocation3 + $0x5c] sm:$0x1]  ;;  %v5304_v41 = vshrl.u32 %v5117_v40, 16  ;;  %v10345_v42 = vor.u32 %v11412_v45, %v10342_v14 }
 0x419   : > { %v5297_v58 = vor.u32 %v5296_v30, %v5293_v51  ;;  %v5302_v22 = vrot.slane %v5300_v54, 5  ;;  %5900 = vst [vmem:[#allocation4 + $0x3c] sm:$0xf] %v5868_v3  ;;  %v5869_v24 = vld [vmem:[#allocation3 + $0x24] sm:$0xf]  ;;  %v5310_v60 = vshll.u32 %v5118_v56, 16 }
 0x41a   : > { %v5306_v52 = vrot.slane %v5304_v41, 4  ;;  %6395 = vst [vmem:[#allocation4 + $0x1c] sm:$0xf] %v5992_v10  ;;  %v5870_v2 = vld [vmem:[#allocation3 + $0x28] sm:$0xf]  ;;  %8633 = vmatmul.bf16.gmra.mxu2 %v10345_v42  ;;  %v8318_v34 = vpop.f32.mrf.mxu2 }
 0x41b   : > { %v5298_v47 = vrot.slane %v5297_v58, 4  ;;  %6396 = vst [vmem:[#allocation4 + $0x40] sm:$0xf] %v6002_v35  ;;  %v11425_v50 = vld [vmem:[#allocation4 + $0xc0] sm:$0xf0]  ;;  %v13865_v6 = vpop.f32.mrf.mxu1  ;;  %v5312_v45 = vrot.slane %v5310_v60, 5  ;;  %v13869_v30 = vadd.f32 %v8318_v34, %v8230_v38 }
 0x41c   : > { %v5307_v61 = vor.u32 %v5306_v52, %v5302_v22  ;;  %5901 = vst [vmem:[#allocation4 + $0x60] sm:$0xf] %v5869_v24  ;;  %v5934_v49 = vld [vmem:[#allocation3 + $0x24] sm:$0xf]  ;;  %v5935_v48 = vld [vmem:[#allocation3 + $0x28] sm:$0xf]  ;;  %v8384_v54 = vpop.f32.mrf.mxu3 }
 0x41d   : > { %v5303_v11 = vsel %vm11832_vm5, %v5298_v47, %v5302_v22  ;;  %5902 = vst [vmem:[#allocation4 + $0x84] sm:$0xf] %v5870_v2  ;;  %v10376_v51 = vld [vmem:[#allocation4 + $0xa0] sm:$0xf]  ;;  %v6004_v32 = vshrl.u32 %v5934_v49, 16  ;;  %v6007_v14 = vshll.u32 %v5934_v49, 16  ;;  %v13872_v41 = vadd.f32 %v8384_v54, %v13644_v21 }
 0x41e   : > { %5574 = vst [vmem:[#allocation4 + $0x1c0] sm:$0xf] %v5303_v11  ;;  %v10377_v5 = vor.u32 %v11425_v50, %v10376_v51  ;;  %v11519_v40 = vld [vmem:[#allocation4 + $0x3b4] sm:$0xf]  ;;  %v10766_v3 = vld [vmem:[#allocation4 + $0x3d4] sm:$0xf0] }
 0x41f   : > { %v5308_v8 = vrot.slane %v5307_v61, 4  ;;  %v10764_v10 = vld [vmem:[#allocation4 + $0x3b0] sm:$0xf]  ;;  %v11523_v12 = vld [vmem:[#allocation4 + $0x3d0] sm:$0xf0]  ;;  %v6006_v36 = vrot.slane %v6004_v32, 4  ;;  %v10769_v24 = vor.u32 %v11519_v40, %v10766_v3 }
 0x420   : > { %v6013_v56 = vshll.u32 %v5935_v48, 16  ;;  %8549 = vmatmul.bf16.gmra.mxu1 %v10377_v5  ;;  %v4804_v35 = vld [vmem:[#allocation3 + $0xa8] sm:$0xe]  ;;  %v4805_v58 = vld [vmem:[#allocation3 + $0xac] sm:$0xf]  ;;  %v6009_v47 = vrot.slane %v6007_v14, 5  ;;  %v10765_v60 = vor.u32 %v11523_v12, %v10764_v10  ;;  %v8232_v5 = vadd.f32 %v13630_v53, %v13847_v15 }
 0x421   : > { %v4806_v22 = vld [vmem:[#allocation3 + $0xb0] sm:$0x1]  ;;  %v10252_v42 = vrot.slane %v4804_v35, 9  ;;  %v4958_v52 = vrot.slane %v4805_v58, 5  ;;  %v5062_v2 = vld [vmem:[#allocation3 + $0xb4] sm:$0xf]  ;;  %v5313_v49 = vsel %vm11832_vm5, %v5308_v8, %v5312_v45 }
 0x422   : > { %v4961_v50 = vrot.slane %v4806_v22, 5  ;;  %v5063_v61 = vld [vmem:[#allocation3 + $0xb8] sm:$0xf]  ;;  %5094 = vst [vmem:[#allocation4 + $0x3fc] sm:$0xf] %v5062_v2  ;;  %8515 = vmatmul.bf16.gmra.mxu0 %v10769_v24  ;;  %v6010_v51 = vor.u32 %v6009_v47, %v6006_v36  ;;  %v6015_v32 = vrot.slane %v6013_v56, 5  ;;  %v8320_v54 = vpop.f32.mrf.mxu2  ;;  %v13891_v24 = vpop.f32.mrf.mxu0 }
 0x423   : > { %v4959_v21 = vsel %vm11803_vm4, %v10252_v42, %v4958_v52  ;;  %v4960_v11 = vrot.slane %v4958_v52, 4  ;;  %5095 = vst [vmem:[#allocation4 + $0x420] sm:$0xf] %v5063_v61  ;;  %v5936_v38 = vld [vmem:[#allocation3 + $0x2c] sm:$0x1]  ;;  %8426 = vmatmul.bf16.gmra.mxu3 %v10765_v60  ;;  %v13880_v40 = vpop.f32.mrf.mxu1  ;;  %v6017_v14 = vshrl.u32 %v5935_v48, 16  ;;  %v13884_v56 = vadd.f32 %v8320_v54, %v8232_v5 }
 0x424   : > { %5030 = vst [vmem:[#allocation4 + $0x3f8] sm:$0xf] %v4959_v21  ;;  %v5871_v34 = vld [vmem:[#allocation3 + $0x30] sm:$0xf]  ;;  %v10378_v3 = vld [vmem:[#allocation4 + $0xc4] sm:$0xf0]  ;;  %v8387_v35 = vpop.f32.mrf.mxu3 }
 0x425   : > { %v4962_v8 = vsel %vm11803_vm4, %v4960_v11, %v4961_v50  ;;  %5575 = vst [vmem:[#allocation4 + $0x1e4] sm:$0xf] %v5313_v49  ;;  %v6011_v45 = vrot.slane %v6010_v51, 4  ;;  %v11421_v10 = vld [vmem:[#allocation4 + $0xa4] sm:$0xf]  ;;  %v6023_v12 = vshll.u32 %v5936_v38, 16  ;;  %v13894_v48 = vadd.f32 %v8387_v35, %v13671_v29 }
 0x426   : > { %5031 = vst [vmem:[#allocation4 + $0x41c] sm:$0xf] %v4962_v8  ;;  %v5872_v36 = vld [vmem:[#allocation3 + $0x34] sm:$0xf]  ;;  %v11598_v53 = vld [vmem:[%s14793_s3 + $0x1a8] sm:$0xff]  ;;  %v6019_v58 = vrot.slane %v6017_v14, 4  ;;  %v10381_v2 = vor.u32 %v11421_v10, %v10378_v3 }
 0x427   : > { %v6016_v15 = vsel %vm11832_vm5, %v6011_v45, %v6015_v32  ;;  %5903 = vst [vmem:[#allocation4 + $0xa8] sm:$0xf] %v5871_v34  ;;  %v5937_v22 = vld [vmem:[#allocation3 + $0x30] sm:$0xf]  ;;  %v5938_v42 = vld [vmem:[#allocation3 + $0x34] sm:$0xf]  ;;  %8711 = vmatpush.bf16.msra.mxu3 %v11598_v53 }
 0x428   : > { %14920 = vst [vmem:[#allocation47_spill] sm:$0xff] %v13891_v24  ;;  %v6028_v52 = vshrl.u32 %v5937_v22, 16  ;;  %v6020_v47 = vor.u32 %v6019_v58, %v6015_v32  ;;  %v11434_v60 = vld [vmem:[#allocation4 + $0x108] sm:$0xf0]  ;;  %v6031_v61 = vshll.u32 %v5937_v22, 16  ;;  %v6037_v49 = vshll.u32 %v5938_v42, 16 }
 0x429   : > { %6397 = vst [vmem:[#allocation4 + $0x64] sm:$0xf] %v6016_v15  ;;  %v6041_v21 = vshrl.u32 %v5938_v42, 16  ;;  %v11622_v11 = vld [vmem:[%s14795_s5 + $0x28] sm:$0xff]  ;;  %v6025_v29 = vrot.slane %v6023_v12, 5  ;;  %v11593_v24 = vld [vmem:[%s14793_s3 + $0x180] sm:$0xff] }
 0x42a   : > { %5904 = vst [vmem:[#allocation4 + $0xcc] sm:$0xf] %v5872_v36  ;;  %v6030_v50 = vrot.slane %v6028_v52, 4  ;;  %8638 = vmatmul.bf16.gmra.mxu2 %v10381_v2  ;;  %v6021_v38 = vrot.slane %v6020_v47, 4  ;;  %v5939_v51 = vld [vmem:[#allocation3 + $0x38] sm:$0x1]  ;;  %v8323_v12 = vpop.f32.mrf.mxu2 }
 0x42b   : > { %v6033_v34 = vrot.slane %v6031_v61, 5  ;;  %v13899_v5 = vrot.slane %v6037_v49, 5  ;;  %v6043_v3 = vrot.slane %v6041_v21, 4  ;;  %v13904_v32 = vld [vmem:[%s14794_s4] ss:$0 sm:$0xff]  ;;  %v13908_v45 = vpop.f32.mrf.mxu1  ;;  %9110 = vmatpush.bf16.msra.mxu2 %v11622_v11  ;;  %v6047_v22 = vshll.u32 %v5939_v51, 16 }
 0x42c   : > { %v8235_v8 = vadd.f32 %v13904_v32, %v13865_v6  ;;  %v10412_v14 = vld [vmem:[#allocation4 + $0xe8] sm:$0xf]  ;;  %v6026_v54 = vsel %vm11832_vm5, %v6021_v38, %v6025_v29  ;;  %v5873_v10 = vld [vmem:[#allocation3 + $0x3c] sm:$0xf]  ;;  %v11528_v35 = vld [vmem:[#allocation4 + $0x3fc] sm:$0xf]  ;;  %v8389_v6 = vpop.f32.mrf.mxu3 }
 0x42d   : > { %v10413_v36 = vor.u32 %v11434_v60, %v10412_v14  ;;  %v10802_v53 = vld [vmem:[#allocation4 + $0x41c] sm:$0xf0]  ;;  %6398 = vst [vmem:[#allocation4 + $0x88] sm:$0xf] %v6026_v54  ;;  %v6034_v15 = vor.u32 %v6033_v34, %v6030_v50  ;;  %v6044_v58 = vor.u32 %v6043_v3, %v13899_v5  ;;  %v10800_v52 = vld [vmem:[#allocation4 + $0x3f8] sm:$0xf]  ;;  %v13922_v50 = vadd.f32 %v8389_v6, %v13698_v46  ;;  %v13930_v3 = vpop.f32.mrf.mxu0 }
 0x42e   : > { %v13913_v42 = vadd.f32 %v8323_v12, %v8235_v8  ;;  %v11532_v2 = vld [vmem:[#allocation4 + $0x418] sm:$0xf0]  ;;  %v11606_v47 = vld [vmem:[%s14793_s3 + $0x1e8] sm:$0xff]  ;;  %5905 = vst [vmem:[#allocation4 + $0xf0] sm:$0xf] %v5873_v10  ;;  %v11597_v61 = vld [vmem:[%s14793_s3 + $0x1a0] sm:$0xff]  ;;  %v10805_v11 = vor.u32 %v11528_v35, %v10802_v53 }
 0x42f   : > { %v11614_v60 = vld [vmem:[%s14793_s3 + $0x228] sm:$0xff]  ;;  %14921 = vst [vmem:[#allocation46_spill] sm:$0xff] %v13922_v50  ;;  %v11605_v49 = vld [vmem:[%s14793_s3 + $0x1e0] sm:$0xff]  ;;  %v4807_v21 = vld [vmem:[#allocation3 + $0xb4] sm:$0xe]  ;;  %8800 = vmatpush.bf16.msra.mxu0 %v11606_v47  ;;  %v6035_v51 = vrot.slane %v6034_v15, 4  ;;  %v10801_v46 = vor.u32 %v11532_v2, %v10800_v52  ;;  %8712 = vmatpush.bf16.msra.mxu3 %v11597_v61  ;;  %v8237_v47 = vadd.f32 %v13904_v32, %v13880_v40 }
 0x430   : > { %8554 = vmatmul.bf16.gmra.mxu1 %v10413_v36  ;;  %v4808_v38 = vld [vmem:[#allocation3 + $0xb8] sm:$0xf]  ;;  %v4809_v29 = vld [vmem:[#allocation3 + $0xbc] sm:$0x1]  ;;  %v6045_v34 = vrot.slane %v6044_v58, 4  ;;  %14922 = vst [vmem:[#allocation49_spill] sm:$0xff] %v13930_v3 }
 0x431   : > { %8889 = vmatpush.bf16.msra.mxu1 %v11614_v60  ;;  %v10253_v8 = vrot.slane %v4807_v21, 9  ;;  %v4965_v14 = vrot.slane %v4808_v38, 5  ;;  %v5064_v54 = vld [vmem:[#allocation3 + $0xc0] sm:$0xf]  ;;  %v5065_v10 = vld [vmem:[#allocation3 + $0xc4] sm:$0xf]  ;;  %v6040_v12 = vsel %vm11832_vm5, %v6035_v51, %v13899_v5 }
 0x432   : > { %8520 = vmatmul.bf16.gmra.mxu0 %v10805_v11  ;;  %5096 = vst [vmem:[#allocation4 + $0x444] sm:$0xf] %v5064_v54  ;;  %v6049_v36 = vrot.slane %v6047_v22, 5  ;;  %v5940_v35 = vld [vmem:[#allocation3 + $0x3c] sm:$0xf]  ;;  %v4968_v58 = vrot.slane %v4809_v29, 5  ;;  %v8325_v21 = vpop.f32.mrf.mxu2 }
 0x433   : > { %8431 = vmatmul.bf16.gmra.mxu3 %v10801_v46  ;;  %v4966_v53 = vsel %vm11803_vm4, %v10253_v8, %v4965_v14  ;;  %v4967_v15 = vrot.slane %v4965_v14, 4  ;;  %5097 = vst [vmem:[#allocation4 + $0x468] sm:$0xf] %v5065_v10  ;;  %v6052_v6 = vshrl.u32 %v5940_v35, 16  ;;  %v13937_v52 = vld [vmem:[#allocation3 + $0x18] sm:$0xe]  ;;  %v13943_v60 = vpop.f32.mrf.mxu1  ;;  %8801 = vmatpush.bf16.msra.mxu0 %v11605_v49  ;;  %v13949_v46 = vadd.f32 %v8325_v21, %v8237_v47 }
 0x434   : > { %v13939_v2 = vld [vmem:[#allocation3 + $0x1c] sm:$0xf]  ;;  %v10414_v5 = vld [vmem:[#allocation4 + $0x10c] sm:$0xf0]  ;;  %5032 = vst [vmem:[#allocation4 + $0x440] sm:$0xf] %v4966_v53  ;;  %v6050_v22 = vsel %vm11832_vm5, %v6045_v34, %v6049_v36 }
 0x435   : > { %v5941_v61 = vld [vmem:[#allocation3 + $0x40] sm:$0xf]  ;;  %v11430_v11 = vld [vmem:[#allocation4 + $0xec] sm:$0xf]  ;;  %v4969_v38 = vsel %vm11803_vm4, %v4967_v15, %v4968_v58  ;;  %6399 = vst [vmem:[#allocation4 + $0xac] sm:$0xf] %v6040_v12  ;;  %v8392_v40 = vpop.f32.mrf.mxu3 }
 0x436   : > { %v5874_v29 = vld [vmem:[#allocation3 + $0x40] sm:$0xf]  ;;  %v5942_v51 = vld [vmem:[#allocation3 + $0x44] sm:$0x1]  ;;  %5033 = vst [vmem:[#allocation4 + $0x464] sm:$0xf] %v4969_v38  ;;  %v13958_v54 = vadd.f32 %v8392_v40, %v13723_v33  ;;  %v10417_v15 = vor.u32 %v11430_v11, %v10414_v5 }
 0x437   : > { %v11596_v49 = vld [vmem:[%s14793_s3 + $0x198] sm:$0xff]  ;;  %v6054_v8 = vrot.slane %v6052_v6, 4  ;;  %v6055_v14 = vshll.u32 %v5940_v35, 16  ;;  %v11595_v10 = vld [vmem:[%s14793_s3 + $0x190] sm:$0xff]  ;;  %6400 = vst [vmem:[#allocation4 + $0xd0] sm:$0xf] %v6050_v22 }
 0x438   : > { %v11604_v34 = vld [vmem:[%s14793_s3 + $0x1d8] sm:$0xff]  ;;  %14923 = vst [vmem:[#allocation51_spill] sm:$0xff] %v13958_v54  ;;  %v11603_v12 = vld [vmem:[%s14793_s3 + $0x1d0] sm:$0xff]  ;;  %v6061_v36 = vshll.u32 %v5941_v61, 16  ;;  %v6065_v53 = vshrl.u32 %v5941_v61, 16  ;;  %8713 = vmatpush.bf16.msra.mxu3 %v11596_v49  ;;  %v6071_v35 = vshll.u32 %v5942_v51, 16  ;;  %v13968_v61 = vpop.f32.mrf.mxu0 }
 0x439   : > { %8802 = vmatpush.bf16.msra.mxu0 %v11604_v34  ;;  %5906 = vst [vmem:[#allocation4 + $0x114] sm:$0xf] %v5874_v29  ;;  %v6057_v58 = vrot.slane %v6055_v14, 5  ;;  %v5875_v6 = vld [vmem:[#allocation3 + $0x48] sm:$0xf]  ;;  %v10270_v33 = vrot.slane %v13937_v52, 9  ;;  %v8240_v29 = vadd.f32 %v13904_v32, %v13908_v45 }
 0x43a   : > { %v6525_v47 = vrot.slane %v13939_v2, 5  ;;  %v6063_v21 = vrot.slane %v6061_v36, 5  ;;  %v6067_v38 = vrot.slane %v6065_v53, 4  ;;  %8643 = vmatmul.bf16.gmra.mxu2 %v10417_v15  ;;  %v11443_v40 = vld [vmem:[#allocation4 + $0x150] sm:$0xf0]  ;;  %14924 = vst [vmem:[#allocation53_spill] sm:$0xff] %v13968_v61 }
 0x43b   : > { %v6058_v54 = vor.u32 %v6057_v58, %v6054_v8  ;;  %v5876_v3 = vld [vmem:[#allocation3 + $0x4c] sm:$0xf]  ;;  %5907 = vst [vmem:[#allocation4 + $0x138] sm:$0xf] %v5875_v6  ;;  %v6429_v22 = vld [vmem:[#allocation3 + $0x20] sm:$0x1]  ;;  %v13972_v51 = vpop.f32.mrf.mxu1  ;;  %v8328_v8 = vpop.f32.mrf.mxu2 }
 0x43c   : > { %v6068_v5 = vor.u32 %v6067_v38, %v6063_v21  ;;  %5908 = vst [vmem:[#allocation4 + $0x15c] sm:$0xf] %v5876_v3  ;;  %v5943_v11 = vld [vmem:[#allocation3 + $0x48] sm:$0xf]  ;;  %8714 = vmatpush.bf16.msra.mxu3 %v11595_v10  ;;  %v6073_v49 = vrot.slane %v6071_v35, 5  ;;  %v6527_v3 = vrot.slane %v6525_v47, 4  ;;  %v13974_v38 = vadd.f32 %v8328_v8, %v8240_v29 }
 0x43d   : > { %v10448_v52 = vld [vmem:[#allocation4 + $0x130] sm:$0xf]  ;;  %8803 = vmatpush.bf16.msra.mxu0 %v11603_v12  ;;  %v6059_v2 = vrot.slane %v6058_v54, 4  ;;  %v6076_v34 = vshrl.u32 %v5943_v11, 16  ;;  %v11537_v36 = vld [vmem:[#allocation4 + $0x444] sm:$0xf]  ;;  %v8394_v61 = vpop.f32.mrf.mxu3 }
 0x43e   : > { %v10449_v14 = vor.u32 %v11443_v40, %v10448_v52  ;;  %v10838_v53 = vld [vmem:[#allocation4 + $0x464] sm:$0xf0]  ;;  %v6069_v15 = vrot.slane %v6068_v5, 4  ;;  %v5944_v58 = vld [vmem:[#allocation3 + $0x4c] sm:$0xf]  ;;  %v6079_v6 = vshll.u32 %v5943_v11, 16  ;;  %v13985_v5 = vadd.f32 %v8394_v61, %v13746_v26 }
 0x43f   : > { %v11541_v45 = vld [vmem:[#allocation4 + $0x460] sm:$0xf0]  ;;  %v11594_v10 = vld [vmem:[%s14793_s3 + $0x188] sm:$0xff]  ;;  %v6064_v12 = vsel %vm11832_vm5, %v6059_v2, %v6063_v21  ;;  %v6078_v35 = vrot.slane %v6076_v34, 4  ;;  %v6528_v40 = vrot.slane %v6429_v22, 5  ;;  %v10841_v50 = vor.u32 %v11537_v36, %v10838_v53  ;;  %v11601_v21 = vld [vmem:[%s14793_s3 + $0x1c0] sm:$0xff] }
 0x440   : > { %v11602_v54 = vld [vmem:[%s14793_s3 + $0x1c8] sm:$0xff]  ;;  %8559 = vmatmul.bf16.gmra.mxu1 %v10449_v14  ;;  %14925 = vst [vmem:[#allocation52_spill] sm:$0xff] %v13985_v5  ;;  %v10836_v11 = vld [vmem:[#allocation4 + $0x440] sm:$0xf]  ;;  %v6074_v29 = vsel %vm11832_vm5, %v6069_v15, %v6073_v49  ;;  %v5945_v52 = vld [vmem:[#allocation3 + $0x50] sm:$0x1]  ;;  %8715 = vmatpush.bf16.msra.mxu3 %v11594_v10  ;;  %v6526_v49 = vsel %vm11803_vm4, %v10270_v33, %v6525_v47 }
 0x441   : > { %v6081_v8 = vrot.slane %v6079_v6, 5  ;;  %8804 = vmatpush.bf16.msra.mxu0 %v11602_v54  ;;  %6401 = vst [vmem:[#allocation4 + $0xf4] sm:$0xf] %v6064_v12  ;;  %v6085_v26 = vshll.u32 %v5944_v58, 16  ;;  %v6089_v22 = vshrl.u32 %v5944_v58, 16  ;;  %v10837_v61 = vor.u32 %v11541_v45, %v10836_v11  ;;  %v14003_v12 = vpop.f32.mrf.mxu0 }
 0x442   : > { %6402 = vst [vmem:[#allocation4 + $0x118] sm:$0xf] %v6074_v29  ;;  %8525 = vmatmul.bf16.gmra.mxu0 %v10841_v50  ;;  %v6095_v36 = vshll.u32 %v5945_v52, 16  ;;  %v5877_v53 = vld [vmem:[#allocation3 + $0x54] sm:$0xf]  ;;  %v6529_v15 = vsel %vm11803_vm4, %v6527_v3, %v6528_v40  ;;  %v8242_v58 = vadd.f32 %v13904_v32, %v13943_v60 }
 0x443   : > { %v6082_v2 = vor.u32 %v6081_v8, %v6078_v35  ;;  %v6087_v34 = vrot.slane %v6085_v26, 5  ;;  %v6091_v14 = vrot.slane %v6089_v22, 4  ;;  %8436 = vmatmul.bf16.gmra.mxu3 %v10837_v61  ;;  %5909 = vst [vmem:[#allocation4 + $0x180] sm:$0xf] %v5877_v53  ;;  %v5946_v10 = vld [vmem:[#allocation3 + $0x54] sm:$0xf]  ;;  %v14001_v45 = vpop.f32.mrf.mxu1  ;;  %v8330_v54 = vpop.f32.mrf.mxu2 }
 0x444   : > { %8716 = vmatpush.bf16.msra.mxu3 %v11593_v24  ;;  %v5612_v33 = vld [vmem:[#allocation3 + $0x54] sm:$0xe]  ;;  %v6100_v47 = vshrl.u32 %v5946_v10, 16  ;;  %6667 = vst [vmem:[#allocation4 + $0x20] sm:$0xf] %v6526_v49  ;;  %v6103_v11 = vshll.u32 %v5946_v10, 16  ;;  %v14007_v29 = vadd.f32 %v8330_v54, %v8242_v58 }
 0x445   : > { %v6083_v6 = vrot.slane %v6082_v2, 4  ;;  %8805 = vmatpush.bf16.msra.mxu0 %v11601_v21  ;;  %v6092_v50 = vor.u32 %v6091_v14, %v6087_v34  ;;  %14926 = vst [vmem:[#allocation43_spill] sm:$0xff] %v14003_v12  ;;  %v11439_v35 = vld [vmem:[#allocation4 + $0x134] sm:$0xf]  ;;  %v10450_v3 = vld [vmem:[#allocation4 + $0x154] sm:$0xf0]  ;;  %v8397_v60 = vpop.f32.mrf.mxu3 }
 0x446   : > { %6668 = vst [vmem:[#allocation4 + $0x44] sm:$0xf] %v6529_v15  ;;  %v5613_v52 = vld [vmem:[#allocation3 + $0x58] sm:$0xf]  ;;  %v5614_v24 = vld [vmem:[#allocation3 + $0x5c] sm:$0x1]  ;;  %v14010_v26 = vadd.f32 %v8397_v60, %v13767_v43  ;;  %v10453_v49 = vor.u32 %v11439_v35, %v10450_v3  ;;  %v8245_v60 = vadd.f32 %v13904_v32, %v13972_v51 }
 0x447   : > { %v6088_v40 = vsel %vm11832_vm5, %v6083_v6, %v6087_v34  ;;  %v6093_v8 = vrot.slane %v6092_v50, 4  ;;  %v6097_v21 = vrot.slane %v6095_v36, 5  ;;  %v10260_v22 = vrot.slane %v5612_v33, 9  ;;  %v11452_v14 = vld [vmem:[#allocation4 + $0x198] sm:$0xf0]  ;;  %v11621_v33 = vld [vmem:[%s14795_s5 + $0x20] sm:$0xff] }
 0x448   : > { %14927 = vst [vmem:[#allocation29_spill] sm:$0xff] %v14010_v26  ;;  %v5734_v61 = vrot.slane %v5613_v52, 5  ;;  %v6102_v2 = vrot.slane %v6100_v47, 4  ;;  %v5878_v53 = vld [vmem:[#allocation3 + $0x58] sm:$0xf]  ;;  %v5737_v58 = vrot.slane %v5614_v24, 5  ;;  %9111 = vmatpush.bf16.msra.mxu2 %v11621_v33 }
 0x449   : > { %6403 = vst [vmem:[#allocation4 + $0x13c] sm:$0xf] %v6088_v40  ;;  %v6098_v34 = vsel %vm11832_vm5, %v6093_v8, %v6097_v21  ;;  %v5947_v15 = vld [vmem:[#allocation3 + $0x58] sm:$0xf]  ;;  %v6105_v36 = vrot.slane %v6103_v11, 5  ;;  %v11613_v51 = vld [vmem:[%s14793_s3 + $0x220] sm:$0xff] }
 0x44a   : > { %v5735_v6 = vsel %vm11803_vm4, %v10260_v22, %v5734_v61  ;;  %v5736_v10 = vrot.slane %v5734_v61, 4  ;;  %6404 = vst [vmem:[#allocation4 + $0x160] sm:$0xf] %v6098_v34  ;;  %8648 = vmatmul.bf16.gmra.mxu2 %v10453_v49  ;;  %v10484_v43 = vld [vmem:[#allocation4 + $0x178] sm:$0xf]  ;;  %v6109_v47 = vshll.u32 %v5947_v15, 16  ;;  %8890 = vmatpush.bf16.msra.mxu1 %v11613_v51 }
 0x44b   : > { %5846 = vst [vmem:[#allocation4 + $0x1c4] sm:$0xf] %v5735_v6  ;;  %v5948_v50 = vld [vmem:[#allocation3 + $0x5c] sm:$0x1]  ;;  %v11408_v54 = vld [vmem:[#allocation4 + $0x38] sm:$0xf0]  ;;  %v6106_v3 = vor.u32 %v6105_v36, %v6102_v2  ;;  %v14023_v11 = vpop.f32.mrf.mxu1  ;;  %v8333_v8 = vpop.f32.mrf.mxu2  ;;  %v10485_v21 = vor.u32 %v11452_v14, %v10484_v43 }
 0x44c   : > { %v5738_v35 = vsel %vm11803_vm4, %v5736_v10, %v5737_v58  ;;  %5910 = vst [vmem:[#allocation4 + $0x1a4] sm:$0xf] %v5878_v53  ;;  %v6113_v40 = vshrl.u32 %v5947_v15, 16  ;;  %v10312_v52 = vld [vmem:[#allocation4 + $0x18] sm:$0xf]  ;;  %v6111_v24 = vrot.slane %v6109_v47, 5  ;;  %v14025_v6 = vadd.f32 %v8333_v8, %v8245_v60  ;;  %v14030_v36 = vpop.f32.mrf.mxu0 }
 0x44d   : > { %5847 = vst [vmem:[#allocation4 + $0x1e8] sm:$0xf] %v5738_v35  ;;  %v11404_v22 = vld [vmem:[#allocation4 + $0x1c] sm:$0xf]  ;;  %v10314_v61 = vld [vmem:[#allocation4 + $0x3c] sm:$0xf0]  ;;  %v8399_v53 = vpop.f32.mrf.mxu3  ;;  %v10313_v2 = vor.u32 %v11408_v54, %v10312_v52 }
 0x44e   : > { %v6115_v49 = vrot.slane %v6113_v40, 4  ;;  %v6119_v34 = vshll.u32 %v5948_v50, 16  ;;  %v5119_v15 = vld [vmem:[#allocation3 + $0x60] sm:$0xf]  ;;  %v5120_v10 = vld [vmem:[#allocation3 + $0x64] sm:$0xf]  ;;  %v14033_v14 = vadd.f32 %v8399_v53, %v13795_v55  ;;  %v10317_v35 = vor.u32 %v11404_v22, %v10314_v61 }
 0x44f   : > { %v6107_v58 = vrot.slane %v6106_v3, 4  ;;  %14928 = vst [vmem:[#allocation39_spill] sm:$0xff] %v14030_v36  ;;  %v5121_v43 = vld [vmem:[#allocation3 + $0x68] sm:$0x1]  ;;  %v5315_v33 = vshrl.u32 %v5119_v15, 16  ;;  %v5318_v50 = vshll.u32 %v5119_v15, 16 }
 0x450   : > { %8564 = vmatmul.bf16.gmra.mxu1 %v10485_v21  ;;  %14929 = vst [vmem:[#allocation44_spill] sm:$0xff] %v14033_v14  ;;  %v5324_v47 = vshll.u32 %v5120_v10, 16  ;;  %v5328_v54 = vshrl.u32 %v5120_v10, 16  ;;  %v6116_v60 = vor.u32 %v6115_v49, %v6111_v24  ;;  %v6430_v52 = vld [vmem:[#allocation3 + $0x24] sm:$0xe]  ;;  %v5334_v26 = vshll.u32 %v5121_v43, 16 }
 0x451   : > { %v6112_v40 = vsel %vm11832_vm5, %v6107_v58, %v6111_v24  ;;  %v14037_v8 = vld [vmem:[#allocation3 + $0x28] sm:$0xf]  ;;  %v5317_v3 = vrot.slane %v5315_v33, 4  ;;  %v5320_v36 = vrot.slane %v5318_v50, 5  ;;  %v5615_v55 = vld [vmem:[#allocation3 + $0x60] sm:$0xe]  ;;  %v8247_v24 = vadd.f32 %v13904_v32, %v14001_v45 }
 0x452   : > { %v5326_v21 = vrot.slane %v5324_v47, 5  ;;  %8806 = vmatmul.bf16.vlgmr.msra.gmra.mxu0 %v10317_v35  ;;  %v5330_v53 = vrot.slane %v5328_v54, 4  ;;  %v10486_v14 = vld [vmem:[#allocation4 + $0x19c] sm:$0xf0]  ;;  %v6117_v22 = vrot.slane %v6116_v60, 4  ;;  %v6121_v61 = vrot.slane %v6119_v34, 5 }
 0x453   : > { %8717 = vmatmul.bf16.vlgmr.msra.gmra.mxu3 %v10313_v2  ;;  %v5321_v15 = vor.u32 %v5320_v36, %v5317_v3  ;;  %6405 = vst [vmem:[#allocation4 + $0x184] sm:$0xf] %v6112_v40  ;;  %v10271_v51 = vrot.slane %v6430_v52, 9  ;;  %v14041_v49 = vpop.f32.mrf.mxu1  ;;  %v10261_v58 = vrot.slane %v5615_v55, 9  ;;  %v5879_v33 = vld [vmem:[#allocation3 + $0x60] sm:$0xf]  ;;  %v8335_v47 = vpop.f32.mrf.mxu2 }
 0x454   : > { %v5331_v10 = vor.u32 %v5330_v53, %v5326_v21  ;;  %v5949_v50 = vld [vmem:[#allocation3 + $0x60] sm:$0xf]  ;;  %v6532_v43 = vrot.slane %v14037_v8, 5  ;;  %v5336_v54 = vrot.slane %v5334_v26, 5  ;;  %v6122_v2 = vsel %vm11832_vm5, %v6117_v22, %v6121_v61  ;;  %5911 = vst [vmem:[#allocation4 + $0x1c8] sm:$0xf] %v5879_v33 }
 0x455   : > { %v5322_v35 = vrot.slane %v5321_v15, 4  ;;  %v6124_v34 = vshrl.u32 %v5949_v50, 16  ;;  %v14046_v36 = vadd.f32 %v8335_v47, %v8247_v24  ;;  %v5616_v60 = vld [vmem:[#allocation3 + $0x64] sm:$0xf]  ;;  %v5617_v52 = vld [vmem:[#allocation3 + $0x68] sm:$0x1] }
 0x456   : > { %v8402_v40 = vpop.f32.mrf.mxu3  ;;  %v5332_v45 = vrot.slane %v5331_v10, 4  ;;  %v6127_v3 = vshll.u32 %v5949_v50, 16  ;;  %v11448_v55 = vld [vmem:[#allocation4 + $0x17c] sm:$0xf]  ;;  %v5741_v26 = vrot.slane %v5616_v60, 5  ;;  %v5744_v15 = vrot.slane %v5617_v52, 5  ;;  %v14055_v50 = vpop.f32.mrf.mxu0 }
 0x457   : > { %v14049_v53 = vadd.f32 %v8402_v40, %v13825_v23  ;;  %v5327_v8 = vsel %vm11832_vm5, %v5322_v35, %v5326_v21  ;;  %6406 = vst [vmem:[#allocation4 + $0x1a8] sm:$0xf] %v6122_v2  ;;  %v10489_v22 = vor.u32 %v11448_v55, %v10486_v14  ;;  %v11461_v61 = vld [vmem:[#allocation4 + $0x1e0] sm:$0xf0]  ;;  %v5880_v10 = vld [vmem:[#allocation3 + $0x64] sm:$0xf] }
 0x458   : > { %v5337_v24 = vsel %vm11832_vm5, %v5332_v45, %v5336_v54  ;;  %5576 = vst [vmem:[#allocation4 + $0x208] sm:$0xf] %v5327_v8  ;;  %v5950_v33 = vld [vmem:[#allocation3 + $0x64] sm:$0xf]  ;;  %v6432_v47 = vld [vmem:[#allocation3 + $0x2c] sm:$0x1]  ;;  %v5742_v23 = vsel %vm11803_vm4, %v10261_v58, %v5741_v26  ;;  %v6533_v54 = vsel %vm11803_vm4, %v10271_v51, %v6532_v43 }
 0x459   : > { %14930 = vst [vmem:[#allocation45_spill] sm:$0xff] %v14049_v53  ;;  %v5743_v40 = vrot.slane %v5741_v26, 4  ;;  %v6126_v21 = vrot.slane %v6124_v34, 4  ;;  %v6129_v35 = vrot.slane %v6127_v3, 5  ;;  %v10520_v2 = vld [vmem:[#allocation4 + $0x1c0] sm:$0xf]  ;;  %v8250_v34 = vadd.f32 %v13904_v32, %v14023_v11 }
 0x45a   : > { %14931 = vst [vmem:[#allocation31_spill] sm:$0xff] %v14055_v50  ;;  %8653 = vmatmul.bf16.gmra.mxu2 %v10489_v22  ;;  %v5951_v14 = vld [vmem:[#allocation3 + $0x68] sm:$0x1]  ;;  %v6133_v60 = vshll.u32 %v5950_v33, 16  ;;  %v6137_v52 = vshrl.u32 %v5950_v33, 16  ;;  %v6534_v33 = vrot.slane %v6532_v43, 4  ;;  %v10521_v53 = vor.u32 %v11461_v61, %v10520_v2 }
 0x45b   : > { %5577 = vst [vmem:[#allocation4 + $0x22c] sm:$0xf] %v5337_v24  ;;  %v10348_v45 = vld [vmem:[#allocation4 + $0x60] sm:$0xf]  ;;  %v11417_v55 = vld [vmem:[#allocation4 + $0x80] sm:$0xf0]  ;;  %v5745_v24 = vsel %vm11803_vm4, %v5743_v40, %v5744_v15  ;;  %v6130_v58 = vor.u32 %v6129_v35, %v6126_v21  ;;  %v14065_v3 = vpop.f32.mrf.mxu1 }
 0x45c   : > { %5848 = vst [vmem:[#allocation4 + $0x20c] sm:$0xf] %v5742_v23  ;;  %v10350_v8 = vld [vmem:[#allocation4 + $0x84] sm:$0xf0]  ;;  %v6135_v26 = vrot.slane %v6133_v60, 5  ;;  %v6139_v22 = vrot.slane %v6137_v52, 4  ;;  %v8338_v23 = vpop.f32.mrf.mxu2 }
 0x45d   : > { %5912 = vst [vmem:[#allocation4 + $0x1ec] sm:$0xf] %v5880_v10  ;;  %v6131_v51 = vrot.slane %v6130_v58, 4  ;;  %v6143_v50 = vshll.u32 %v5951_v14, 16  ;;  %v6535_v12 = vrot.slane %v6432_v47, 5  ;;  %v14067_v5 = vadd.f32 %v8338_v23, %v8250_v34 }
 0x45e   : > { %5849 = vst [vmem:[#allocation4 + $0x230] sm:$0xf] %v5745_v24  ;;  %v8404_v15 = vpop.f32.mrf.mxu3  ;;  %v10349_v10 = vor.u32 %v11417_v55, %v10348_v45  ;;  %v5122_v40 = vld [vmem:[#allocation3 + $0x6c] sm:$0xf]  ;;  %v5123_v21 = vld [vmem:[#allocation3 + $0x70] sm:$0xf]  ;;  %v6140_v11 = vor.u32 %v6139_v22, %v6135_v26 }
 0x45f   : > { %6669 = vst [vmem:[#allocation4 + $0x68] sm:$0xf] %v6533_v54  ;;  %v5124_v35 = vld [vmem:[#allocation3 + $0x74] sm:$0x1]  ;;  %v14070_v24 = vadd.f32 %v8404_v15, %v13854_v18  ;;  %v11413_v60 = vld [vmem:[#allocation4 + $0x64] sm:$0xf]  ;;  %v6136_v47 = vsel %vm11832_vm5, %v6131_v51, %v6135_v26  ;;  %v6536_v54 = vsel %vm11803_vm4, %v6534_v33, %v6535_v12  ;;  %v8252_v33 = vadd.f32 %v13904_v32, %v14041_v49 }
 0x460   : > { %8569 = vmatmul.bf16.gmra.mxu1 %v10521_v53  ;;  %v5339_v43 = vshrl.u32 %v5122_v40, 16  ;;  %v5342_v52 = vshll.u32 %v5122_v40, 16  ;;  %v5348_v61 = vshll.u32 %v5123_v21, 16  ;;  %v10353_v2 = vor.u32 %v11413_v60, %v10350_v8  ;;  %v6433_v45 = vld [vmem:[#allocation3 + $0x30] sm:$0xe]  ;;  %v14078_v40 = vpop.f32.mrf.mxu0 }
 0x461   : > { %14932 = vst [vmem:[#allocation40_spill] sm:$0xff] %v14070_v24  ;;  %v5352_v14 = vshrl.u32 %v5123_v21, 16  ;;  %v14076_v55 = vld [vmem:[#allocation3 + $0x34] sm:$0xf]  ;;  %v5358_v18 = vshll.u32 %v5124_v35, 16  ;;  %v6141_v23 = vrot.slane %v6140_v11, 4 }
 0x462   : > { %v5341_v58 = vrot.slane %v5339_v43, 4  ;;  %v5344_v53 = vrot.slane %v5342_v52, 5  ;;  %v5350_v34 = vrot.slane %v5348_v61, 5  ;;  %8811 = vmatmul.bf16.gmra.mxu0 %v10353_v2  ;;  %v6145_v15 = vrot.slane %v6143_v50, 5  ;;  %v10522_v8 = vld [vmem:[#allocation4 + $0x1e4] sm:$0xf0] }
 0x463   : > { %v5354_v22 = vrot.slane %v5352_v14, 4  ;;  %8722 = vmatmul.bf16.gmra.mxu3 %v10349_v10  ;;  %v5618_v26 = vld [vmem:[#allocation3 + $0x6c] sm:$0xe]  ;;  %6407 = vst [vmem:[#allocation4 + $0x1cc] sm:$0xf] %v6136_v47  ;;  %v10272_v51 = vrot.slane %v6433_v45, 9  ;;  %v14083_v60 = vpop.f32.mrf.mxu1 }
 0x464   : > { %v5345_v21 = vor.u32 %v5344_v53, %v5341_v58  ;;  %v6146_v11 = vsel %vm11832_vm5, %v6141_v23, %v6145_v15  ;;  %v5881_v50 = vld [vmem:[#allocation3 + $0x6c] sm:$0xf]  ;;  %6670 = vst [vmem:[#allocation4 + $0x8c] sm:$0xf] %v6536_v54  ;;  %v8340_v52 = vpop.f32.mrf.mxu2  ;;  %v5360_v61 = vrot.slane %v5358_v18, 5  ;;  %v10262_v12 = vrot.slane %v5618_v26, 9 }
 0x465   : > { %v5355_v35 = vor.u32 %v5354_v22, %v5350_v34  ;;  %v5952_v43 = vld [vmem:[#allocation3 + $0x6c] sm:$0xf]  ;;  %6408 = vst [vmem:[#allocation4 + $0x1f0] sm:$0xf] %v6146_v11  ;;  %v14087_v47 = vadd.f32 %v8340_v52, %v8252_v33  ;;  %v5619_v49 = vld [vmem:[#allocation3 + $0x70] sm:$0xf] }
 0x466   : > { %v5346_v10 = vrot.slane %v5345_v21, 4  ;;  %v6148_v2 = vshrl.u32 %v5952_v43, 16  ;;  %v6151_v14 = vshll.u32 %v5952_v43, 16  ;;  %v8407_v45 = vpop.f32.mrf.mxu3  ;;  %v5620_v53 = vld [vmem:[#allocation3 + $0x74] sm:$0x1]  ;;  %v5748_v23 = vrot.slane %v5619_v49, 5 }
 0x467   : > { %v5356_v58 = vrot.slane %v5355_v35, 4  ;;  %v11457_v22 = vld [vmem:[#allocation4 + $0x1c4] sm:$0xf]  ;;  %v14090_v24 = vadd.f32 %v8407_v45, %v13869_v30  ;;  %v5751_v15 = vrot.slane %v5620_v53, 5  ;;  %5913 = vst [vmem:[#allocation4 + $0x210] sm:$0xf] %v5881_v50  ;;  %v8255_v49 = vadd.f32 %v13904_v32, %v14065_v3 }
 0x468   : > { %v5351_v54 = vsel %vm11832_vm5, %v5346_v10, %v5350_v34  ;;  %v10525_v18 = vor.u32 %v11457_v22, %v10522_v8  ;;  %v5882_v33 = vld [vmem:[#allocation3 + $0x70] sm:$0xf]  ;;  %v10386_v11 = vld [vmem:[#allocation4 + $0xcc] sm:$0xf0]  ;;  %v5749_v26 = vsel %vm11803_vm4, %v10262_v12, %v5748_v23  ;;  %v5750_v30 = vrot.slane %v5748_v23, 4  ;;  %v11620_v8 = vld [vmem:[%s14795_s5 + $0x18] sm:$0xff] }
 0x469   : > { %14933 = vst [vmem:[#allocation48_spill] sm:$0xff] %v14090_v24  ;;  %v5361_v21 = vsel %vm11832_vm5, %v5356_v58, %v5360_v61  ;;  %v5953_v35 = vld [vmem:[#allocation3 + $0x70] sm:$0xf]  ;;  %v6150_v43 = vrot.slane %v6148_v2, 4  ;;  %v6153_v52 = vrot.slane %v6151_v14, 5  ;;  %v14934_v10 = vrot.slane %v14076_v55, 5  ;;  %9112 = vmatpush.bf16.msra.mxu2 %v11620_v8 }
 0x46a   : > { %5578 = vst [vmem:[#allocation4 + $0x250] sm:$0xf] %v5351_v54  ;;  %8658 = vmatmul.bf16.gmra.mxu2 %v10525_v18  ;;  %v11470_v34 = vld [vmem:[#allocation4 + $0x228] sm:$0xf0]  ;;  %v6157_v50 = vshll.u32 %v5953_v35, 16  ;;  %v5752_v12 = vsel %vm11803_vm4, %v5750_v30, %v5751_v15  ;;  %v6161_v58 = vshrl.u32 %v5953_v35, 16  ;;  %v14111_v18 = vpop.f32.mrf.mxu0 }
 0x46b   : > { %5579 = vst [vmem:[#allocation4 + $0x274] sm:$0xf] %v5361_v21  ;;  %v6540_v61 = vsel %vm11803_vm4, %v10272_v51, %v14934_v10  ;;  %v11422_v45 = vld [vmem:[#allocation4 + $0xac] sm:$0xf]  ;;  %v5954_v2 = vld [vmem:[#allocation3 + $0x74] sm:$0x1]  ;;  %v6154_v14 = vor.u32 %v6153_v52, %v6150_v43  ;;  %v14109_v53 = vpop.f32.mrf.mxu1 }
 0x46c   : > { %5850 = vst [vmem:[#allocation4 + $0x254] sm:$0xf] %v5749_v26  ;;  %v10556_v22 = vld [vmem:[#allocation4 + $0x208] sm:$0xf]  ;;  %v11426_v54 = vld [vmem:[#allocation4 + $0xc8] sm:$0xf0]  ;;  %v8343_v51 = vpop.f32.mrf.mxu2  ;;  %v10389_v30 = vor.u32 %v11422_v45, %v10386_v11 }
 0x46d   : > { %5914 = vst [vmem:[#allocation4 + $0x234] sm:$0xf] %v5882_v33  ;;  %v6159_v23 = vrot.slane %v6157_v50, 5  ;;  %v10557_v21 = vor.u32 %v11470_v34, %v10556_v22  ;;  %v6163_v26 = vrot.slane %v6161_v58, 4  ;;  %v14113_v15 = vld [vmem:[#allocation3 + $0x38] sm:$0x1]  ;;  %v14115_v33 = vadd.f32 %v8343_v51, %v8255_v49 }
 0x46e   : > { %5851 = vst [vmem:[#allocation4 + $0x278] sm:$0xf] %v5752_v12  ;;  %v8409_v35 = vpop.f32.mrf.mxu3  ;;  %v11612_v3 = vld [vmem:[%s14793_s3 + $0x218] sm:$0xff]  ;;  %v6167_v8 = vshll.u32 %v5954_v2, 16  ;;  %v5127_v34 = vld [vmem:[#allocation3 + $0x80] sm:$0x1] }
 0x46f   : > { %14935 = vst [vmem:[#allocation50_spill] sm:$0xff] %v14111_v18  ;;  %v5125_v43 = vld [vmem:[#allocation3 + $0x78] sm:$0xf]  ;;  %v5126_v52 = vld [vmem:[#allocation3 + $0x7c] sm:$0xf]  ;;  %v14121_v50 = vadd.f32 %v8409_v35, %v13884_v56  ;;  %v6155_v58 = vrot.slane %v6154_v14, 4  ;;  %8891 = vmatpush.bf16.msra.mxu1 %v11612_v3  ;;  %v6164_v45 = vor.u32 %v6163_v26, %v6159_v23 }
 0x470   : > { %6671 = vst [vmem:[#allocation4 + $0xb0] sm:$0xf] %v6540_v61  ;;  %8574 = vmatmul.bf16.gmra.mxu1 %v10557_v21  ;;  %v5363_v10 = vshrl.u32 %v5125_v43, 16  ;;  %v5366_v12 = vshll.u32 %v5125_v43, 16  ;;  %v10384_v61 = vld [vmem:[#allocation4 + $0xa8] sm:$0xf] }
 0x471   : > { %14936 = vst [vmem:[#allocation33_spill] sm:$0xff] %v14121_v50  ;;  %v5372_v49 = vshll.u32 %v5126_v52, 16  ;;  %v5376_v22 = vshrl.u32 %v5126_v52, 16  ;;  %v5382_v11 = vshll.u32 %v5127_v34, 16  ;;  %v10385_v51 = vor.u32 %v11426_v54, %v10384_v61  ;;  %v5621_v35 = vld [vmem:[#allocation3 + $0x78] sm:$0xe] }
 0x472   : > { %v5365_v24 = vrot.slane %v5363_v10, 4  ;;  %v5368_v18 = vrot.slane %v5366_v12, 5  ;;  %v6160_v2 = vsel %vm11832_vm5, %v6155_v58, %v6159_v23  ;;  %8816 = vmatmul.bf16.gmra.mxu0 %v10389_v30  ;;  %v14937_v50 = vrot.slane %v14076_v55, 5  ;;  %v10558_v3 = vld [vmem:[#allocation4 + $0x22c] sm:$0xf0] }
 0x473   : > { %v5374_v21 = vrot.slane %v5372_v49, 5  ;;  %v5378_v56 = vrot.slane %v5376_v22, 4  ;;  %v6542_v14 = vrot.slane %v14113_v15, 5  ;;  %8727 = vmatmul.bf16.gmra.mxu3 %v10385_v51  ;;  %v5384_v34 = vrot.slane %v5382_v11, 5  ;;  %v14130_v12 = vpop.f32.mrf.mxu1  ;;  %6409 = vst [vmem:[#allocation4 + $0x214] sm:$0xf] %v6160_v2 }
 0x474   : > { %v6541_v43 = vrot.slane %v14937_v50, 4  ;;  %v5369_v52 = vor.u32 %v5368_v18, %v5365_v24  ;;  %v6165_v26 = vrot.slane %v6164_v45, 4  ;;  %v6169_v54 = vrot.slane %v6167_v8, 5  ;;  %v5883_v30 = vld [vmem:[#allocation3 + $0x78] sm:$0xf]  ;;  %v8345_v61 = vpop.f32.mrf.mxu2  ;;  %v14136_v45 = vpop.f32.mrf.mxu0 }
 0x475   : > { %v8257_v10 = vadd.f32 %v13904_v32, %v14083_v60  ;;  %v5379_v23 = vor.u32 %v5378_v56, %v5374_v21  ;;  %v5955_v58 = vld [vmem:[#allocation3 + $0x78] sm:$0xf]  ;;  %v10263_v50 = vrot.slane %v5621_v35, 9  ;;  %5915 = vst [vmem:[#allocation4 + $0x258] sm:$0xf] %v5883_v30 }
 0x476   : > { %v5370_v55 = vrot.slane %v5369_v52, 4  ;;  %v6170_v15 = vsel %vm11832_vm5, %v6165_v26, %v6169_v54  ;;  %v6172_v24 = vshrl.u32 %v5955_v58, 16  ;;  %v8412_v8 = vpop.f32.mrf.mxu3  ;;  %v5622_v22 = vld [vmem:[#allocation3 + $0x7c] sm:$0xf]  ;;  %v5623_v60 = vld [vmem:[#allocation3 + $0x80] sm:$0x1] }
 0x477   : > { %v14134_v18 = vadd.f32 %v8345_v61, %v8257_v10  ;;  %v5380_v49 = vrot.slane %v5379_v23, 4  ;;  %v6175_v11 = vshll.u32 %v5955_v58, 16  ;;  %v11466_v51 = vld [vmem:[#allocation4 + $0x20c] sm:$0xf]  ;;  %v14139_v2 = vadd.f32 %v8412_v8, %v13913_v42  ;;  %6410 = vst [vmem:[#allocation4 + $0x238] sm:$0xf] %v6170_v15 }
 0x478   : > { %v5375_v56 = vsel %vm11832_vm5, %v5370_v55, %v5374_v21  ;;  %v5755_v35 = vrot.slane %v5622_v22, 5  ;;  %v5758_v52 = vrot.slane %v5623_v60, 5  ;;  %v10561_v26 = vor.u32 %v11466_v51, %v10558_v3  ;;  %v11479_v54 = vld [vmem:[#allocation4 + $0x270] sm:$0xf0]  ;;  %v5884_v23 = vld [vmem:[#allocation3 + $0x7c] sm:$0xf] }
 0x479   : > { %v5385_v10 = vsel %vm11832_vm5, %v5380_v49, %v5384_v34  ;;  %5580 = vst [vmem:[#allocation4 + $0x298] sm:$0xf] %v5375_v56  ;;  %v5956_v30 = vld [vmem:[#allocation3 + $0x7c] sm:$0xf]  ;;  %v6174_v61 = vrot.slane %v6172_v24, 4  ;;  %v6177_v8 = vrot.slane %v6175_v11, 5  ;;  %v6543_v3 = vsel %vm11803_vm4, %v6541_v43, %v6542_v14 }
 0x47a   : > { %5581 = vst [vmem:[#allocation4 + $0x2bc] sm:$0xf] %v5385_v10  ;;  %v5756_v58 = vsel %vm11803_vm4, %v10263_v50, %v5755_v35  ;;  %v5757_v42 = vrot.slane %v5755_v35, 4  ;;  %8663 = vmatmul.bf16.gmra.mxu2 %v10561_v26  ;;  %v5957_v21 = vld [vmem:[#allocation3 + $0x80] sm:$0x1]  ;;  %v6181_v55 = vshll.u32 %v5956_v30, 16  ;;  %v8452_v34 = vadd.f32 %v13593_v9, %v13649_v17 }
 0x47b   : > { %5852 = vst [vmem:[#allocation4 + $0x29c] sm:$0xf] %v5756_v58  ;;  %v6185_v15 = vshrl.u32 %v5956_v30, 16  ;;  %v6178_v22 = vor.u32 %v6177_v8, %v6174_v61  ;;  %v8260_v50 = vadd.f32 %v13904_v32, %v14109_v53  ;;  %v8540_v24 = vpop.f32.mrf.mxu1  ;;  %v10592_v60 = vld [vmem:[#allocation4 + $0x250] sm:$0xf]  ;;  %v6191_v17 = vshll.u32 %v5957_v21, 16 }
 0x47c   : > { %v5759_v49 = vsel %vm11803_vm4, %v5757_v42, %v5758_v52  ;;  %5916 = vst [vmem:[#allocation4 + $0x27c] sm:$0xf] %v5884_v23  ;;  %v11435_v11 = vld [vmem:[#allocation4 + $0x110] sm:$0xf0]  ;;  %v6183_v51 = vrot.slane %v6181_v55, 5  ;;  %v8348_v35 = vpop.f32.mrf.mxu2  ;;  %v14155_v26 = vadd.f32 %v8540_v24, %v8452_v34  ;;  %v10593_v43 = vor.u32 %v11479_v54, %v10592_v60 }
 0x47d   : > { %5853 = vst [vmem:[#allocation4 + $0x2c0] sm:$0xf] %v5759_v49  ;;  %v6187_v56 = vrot.slane %v6185_v15, 4  ;;  %v10422_v14 = vld [vmem:[#allocation4 + $0x114] sm:$0xf0]  ;;  %v6179_v9 = vrot.slane %v6178_v22, 4  ;;  %v14157_v52 = vadd.f32 %v8348_v35, %v8260_v50  ;;  %v14164_v49 = vpop.f32.mrf.mxu0 }
 0x47e   : > { %6672 = vst [vmem:[#allocation4 + $0xd4] sm:$0xf] %v6543_v3  ;;  %v8414_v10 = vpop.f32.mrf.mxu3  ;;  %v5128_v23 = vld [vmem:[#allocation3 + $0x84] sm:$0xf]  ;;  %v5129_v30 = vld [vmem:[#allocation3 + $0x88] sm:$0xf] }
 0x47f   : > { %v5130_v32 = vld [vmem:[#allocation3 + $0x8c] sm:$0x1]  ;;  %v6188_v53 = vor.u32 %v6187_v56, %v6183_v51  ;;  %v14160_v58 = vadd.f32 %v8414_v10, %v13949_v46  ;;  %v5387_v61 = vshrl.u32 %v5128_v23, 16  ;;  %v5390_v8 = vshll.u32 %v5128_v23, 16  ;;  %v10420_v54 = vld [vmem:[#allocation4 + $0xf0] sm:$0xf] }
 0x480   : > { %8579 = vmatmul.bf16.gmra.mxu1 %v10593_v43  ;;  %v11431_v42 = vld [vmem:[#allocation4 + $0xf4] sm:$0xf]  ;;  %v5396_v55 = vshll.u32 %v5129_v30, 16  ;;  %v5400_v34 = vshrl.u32 %v5129_v30, 16  ;;  %v5406_v21 = vshll.u32 %v5130_v32, 16  ;;  %v6184_v3 = vsel %vm11832_vm5, %v6179_v9, %v6183_v51 }
 0x481   : > { %v10425_v15 = vor.u32 %v11431_v42, %v10422_v14  ;;  %v10421_v22 = vor.u32 %v11435_v11, %v10420_v54  ;;  %v5389_v50 = vrot.slane %v5387_v61, 4  ;;  %v5392_v24 = vrot.slane %v5390_v8, 5  ;;  %v10594_v10 = vld [vmem:[#allocation4 + $0x274] sm:$0xf0]  ;;  %v5624_v23 = vld [vmem:[#allocation3 + $0x84] sm:$0xe] }
 0x482   : > { %v5398_v60 = vrot.slane %v5396_v55, 5  ;;  %v5402_v46 = vrot.slane %v5400_v34, 4  ;;  %v6189_v56 = vrot.slane %v6188_v53, 4  ;;  %v6193_v35 = vrot.slane %v6191_v17, 5  ;;  %6411 = vst [vmem:[#allocation4 + $0x25c] sm:$0xf] %v6184_v3 }
 0x483   : > { %8821 = vmatmul.bf16.gmra.mxu0 %v10425_v15  ;;  %v8454_v43 = vadd.f32 %v13651_v27, %v13674_v0  ;;  %8732 = vmatmul.bf16.gmra.mxu3 %v10421_v22  ;;  %v5393_v14 = vor.u32 %v5392_v24, %v5389_v50  ;;  %v11666_v51 = vld [vmem:[%s14794_s4] ss:$0 sm:$0xff]  ;;  %v8542_v9 = vpop.f32.mrf.mxu1  ;;  %v5408_v32 = vrot.slane %v5406_v21, 5  ;;  %v5885_v53 = vld [vmem:[#allocation3 + $0x84] sm:$0xf]  ;;  %v10264_v22 = vrot.slane %v5624_v23, 9 }
 0x484   : > { %v8262_v11 = vadd.f32 %v11666_v51, %v14130_v12  ;;  %v5403_v30 = vor.u32 %v5402_v46, %v5398_v60  ;;  %v6194_v17 = vsel %vm11832_vm5, %v6189_v56, %v6193_v35  ;;  %v5958_v42 = vld [vmem:[#allocation3 + $0x84] sm:$0xf]  ;;  %v8350_v27 = vpop.f32.mrf.mxu2  ;;  %v5625_v12 = vld [vmem:[#allocation3 + $0x88] sm:$0xf]  ;;  %v5626_v3 = vld [vmem:[#allocation3 + $0x8c] sm:$0x1] }
 0x485   : > { %v14174_v0 = vadd.f32 %v8542_v9, %v8454_v43  ;;  %v5394_v61 = vrot.slane %v5393_v14, 4  ;;  %6412 = vst [vmem:[#allocation4 + $0x280] sm:$0xf] %v6194_v17  ;;  %v6196_v8 = vshrl.u32 %v5958_v42, 16  ;;  %v6199_v55 = vshll.u32 %v5958_v42, 16 }
 0x486   : > { %v14176_v54 = vadd.f32 %v8350_v27, %v8262_v11  ;;  %v8417_v15 = vpop.f32.mrf.mxu3  ;;  %v5404_v34 = vrot.slane %v5403_v30, 4  ;;  %v11475_v21 = vld [vmem:[#allocation4 + $0x254] sm:$0xf]  ;;  %v5762_v46 = vrot.slane %v5625_v12, 5  ;;  %v5765_v56 = vrot.slane %v5626_v3, 5 }
 0x487   : > { %v14179_v50 = vadd.f32 %v8417_v15, %v13974_v38  ;;  %v5399_v24 = vsel %vm11832_vm5, %v5394_v61, %v5398_v60  ;;  %5917 = vst [vmem:[#allocation4 + $0x2a0] sm:$0xf] %v5885_v53  ;;  %v10597_v35 = vor.u32 %v11475_v21, %v10594_v10  ;;  %v5886_v14 = vld [vmem:[#allocation3 + $0x88] sm:$0xf]  ;;  %v11444_v11 = vld [vmem:[#allocation4 + $0x158] sm:$0xf0]  ;;  %v8457_v53 = vadd.f32 %v13676_v62, %v13704_v4 }
 0x488   : > { %v5409_v43 = vsel %vm11832_vm5, %v5404_v34, %v5408_v32  ;;  %5582 = vst [vmem:[#allocation4 + $0x2e0] sm:$0xf] %v5399_v24  ;;  %v5959_v51 = vld [vmem:[#allocation3 + $0x88] sm:$0xf]  ;;  %v5763_v23 = vsel %vm11803_vm4, %v10264_v22, %v5762_v46  ;;  %v5764_v38 = vrot.slane %v5762_v46, 4  ;;  %v6198_v9 = vrot.slane %v6196_v8, 4  ;;  %v14190_v32 = vpop.f32.mrf.mxu0 }
 0x489   : > { %5583 = vst [vmem:[#allocation4 + $0x304] sm:$0xf] %v5409_v43  ;;  %v6201_v30 = vrot.slane %v6199_v55, 5  ;;  %v11488_v60 = vld [vmem:[#allocation4 + $0x2b8] sm:$0xf0]  ;;  %v6205_v17 = vshll.u32 %v5959_v51, 16 }
 0x48a   : > { %8668 = vmatmul.bf16.gmra.mxu2 %v10597_v35  ;;  %5854 = vst [vmem:[#allocation4 + $0x2e4] sm:$0xf] %v5763_v23  ;;  %v11619_v10 = vld [vmem:[%s14795_s5 + $0x10] sm:$0xff]  ;;  %v5766_v27 = vsel %vm11803_vm4, %v5764_v38, %v5765_v56  ;;  %v5960_v61 = vld [vmem:[#allocation3 + $0x8c] sm:$0x1]  ;;  %v6209_v55 = vshrl.u32 %v5959_v51, 16 }
 0x48b   : > { %v10456_v42 = vld [vmem:[#allocation4 + $0x138] sm:$0xf]  ;;  %5918 = vst [vmem:[#allocation4 + $0x2c4] sm:$0xf] %v5886_v14  ;;  %v6202_v8 = vor.u32 %v6201_v30, %v6198_v9  ;;  %9113 = vmatpush.bf16.msra.mxu2 %v11619_v10  ;;  %v6207_v12 = vrot.slane %v6205_v17, 5  ;;  %v6215_v23 = vshll.u32 %v5960_v61, 16 }
 0x48c   : > { %v8545_v15 = vpop.f32.mrf.mxu1  ;;  %v10628_v34 = vld [vmem:[#allocation4 + $0x298] sm:$0xf]  ;;  %5855 = vst [vmem:[#allocation4 + $0x308] sm:$0xf] %v5766_v27  ;;  %v11440_v24 = vld [vmem:[#allocation4 + $0x13c] sm:$0xf]  ;;  %v10457_v35 = vor.u32 %v11444_v11, %v10456_v42 }
 0x48d   : > { %v8629_v3 = vpop.f32.mrf.mxu2  ;;  %v14196_v22 = vadd.f32 %v8545_v15, %v8457_v53  ;;  %v10629_v21 = vor.u32 %v11488_v60, %v10628_v34  ;;  %v10458_v46 = vld [vmem:[#allocation4 + $0x15c] sm:$0xf0]  ;;  %v6211_v62 = vrot.slane %v6209_v55, 4  ;;  %v11611_v43 = vld [vmem:[%s14793_s3 + $0x210] sm:$0xff]  ;;  %v6203_v10 = vrot.slane %v6202_v8, 4 }
 0x48e   : > { %v14199_v4 = vadd.f32 %v8629_v3, %v14155_v26  ;;  %v8419_v56 = vpop.f32.mrf.mxu3  ;;  %v5131_v14 = vld [vmem:[#allocation3 + $0x90] sm:$0xf]  ;;  %v5132_v51 = vld [vmem:[#allocation3 + $0x94] sm:$0xf]  ;;  %v5133_v9 = vld [vmem:[#allocation3 + $0x98] sm:$0x1]  ;;  %v10461_v17 = vor.u32 %v11440_v24, %v10458_v46  ;;  %8892 = vmatpush.bf16.msra.mxu1 %v11611_v43 }
 0x48f   : > { %v14205_v38 = vadd.f32 %v8419_v56, %v14007_v29  ;;  %v5411_v30 = vshrl.u32 %v5131_v14, 16  ;;  %v5414_v60 = vshll.u32 %v5131_v14, 16  ;;  %v5420_v26 = vshll.u32 %v5132_v51, 16  ;;  %v6437_v42 = vld [vmem:[#allocation3 + $0x40] sm:$0xf] }
 0x490   : > { %8584 = vmatmul.bf16.gmra.mxu1 %v10629_v21  ;;  %v5424_v53 = vshrl.u32 %v5132_v51, 16  ;;  %v6212_v11 = vor.u32 %v6211_v62, %v6207_v12  ;;  %v5430_v15 = vshll.u32 %v5133_v9, 16  ;;  %v6208_v61 = vsel %vm11832_vm5, %v6203_v10, %v6207_v12  ;;  %v6436_v34 = vld [vmem:[#allocation3 + $0x3c] sm:$0xe]  ;;  %v11484_v8 = vld [vmem:[#allocation4 + $0x29c] sm:$0xf]  ;;  %v14211_v12 = vpop.f32.mrf.mxu0 }
 0x491   : > { %v5413_v27 = vrot.slane %v5411_v30, 4  ;;  %v5416_v55 = vrot.slane %v5414_v60, 5  ;;  %v8459_v29 = vadd.f32 %v13706_v59, %v13732_v63  ;;  %v5422_v3 = vrot.slane %v5420_v26, 5  ;;  %v10630_v24 = vld [vmem:[#allocation4 + $0x2bc] sm:$0xf0] }
 0x492   : > { %v5426_v21 = vrot.slane %v5424_v53, 4  ;;  %v6213_v56 = vrot.slane %v6212_v11, 4  ;;  %v6217_v62 = vrot.slane %v6215_v23, 5  ;;  %v6546_v43 = vrot.slane %v6437_v42, 5  ;;  %v5627_v9 = vld [vmem:[#allocation3 + $0x90] sm:$0xe] }
 0x493   : > { %8826 = vmatmul.bf16.gmra.mxu0 %v10461_v17  ;;  %8737 = vmatmul.bf16.gmra.mxu3 %v10457_v35  ;;  %v5417_v46 = vor.u32 %v5416_v55, %v5413_v27  ;;  %6413 = vst [vmem:[#allocation4 + $0x2a4] sm:$0xf] %v6208_v61  ;;  %v10273_v30 = vrot.slane %v6436_v34, 9  ;;  %v5432_v63 = vrot.slane %v5430_v15, 5  ;;  %v6438_v35 = vld [vmem:[#allocation3 + $0x44] sm:$0x1]  ;;  %v10633_v53 = vor.u32 %v11484_v8, %v10630_v24 }
 0x494   : > { %v8547_v14 = vpop.f32.mrf.mxu1  ;;  %v5427_v51 = vor.u32 %v5426_v21, %v5422_v3  ;;  %v6218_v17 = vsel %vm11832_vm5, %v6213_v56, %v6217_v62  ;;  %v14217_v26 = vld [vmem:[#allocation3 + $0x4c] sm:$0xf]  ;;  %v5628_v27 = vld [vmem:[#allocation3 + $0x94] sm:$0xf]  ;;  %v5629_v55 = vld [vmem:[#allocation3 + $0x98] sm:$0x1] }
 0x495   : > { %v8631_v60 = vpop.f32.mrf.mxu2  ;;  %v14213_v10 = vadd.f32 %v8547_v14, %v8459_v29  ;;  %v5418_v59 = vrot.slane %v5417_v46, 4  ;;  %v6548_v61 = vrot.slane %v6546_v43, 4  ;;  %v10265_v29 = vrot.slane %v5627_v9, 9  ;;  %6414 = vst [vmem:[#allocation4 + $0x2c8] sm:$0xf] %v6218_v17 }
 0x496   : > { %v14220_v23 = vadd.f32 %v8631_v60, %v14174_v0  ;;  %v8422_v11 = vpop.f32.mrf.mxu3  ;;  %v5428_v42 = vrot.slane %v5427_v51, 4  ;;  %v5769_v21 = vrot.slane %v5628_v27, 5  ;;  %v11497_v46 = vld [vmem:[#allocation4 + $0x300] sm:$0xf0]  ;;  %v5772_v8 = vrot.slane %v5629_v55, 5 }
 0x497   : > { %v14223_v34 = vadd.f32 %v8422_v11, %v14025_v6  ;;  %v5423_v15 = vsel %vm11832_vm5, %v5418_v59, %v5422_v3  ;;  %v6547_v24 = vsel %vm11803_vm4, %v10273_v30, %v6546_v43  ;;  %v6549_v56 = vrot.slane %v6438_v35, 5  ;;  %v11453_v62 = vld [vmem:[#allocation4 + $0x1a0] sm:$0xf0]  ;;  %v6443_v51 = vld [vmem:[#allocation3 + $0x58] sm:$0xf] }
 0x498   : > { %v5433_v0 = vsel %vm11832_vm5, %v5428_v42, %v5432_v63  ;;  %5584 = vst [vmem:[#allocation4 + $0x328] sm:$0xf] %v5423_v15  ;;  %v5770_v6 = vsel %vm11803_vm4, %v10265_v29, %v5769_v21  ;;  %v5771_v14 = vrot.slane %v5769_v21, 4  ;;  %v6553_v3 = vrot.slane %v14217_v26, 5  ;;  %v6439_v60 = vld [vmem:[#allocation3 + $0x48] sm:$0xe] }
 0x499   : > { %5585 = vst [vmem:[#allocation4 + $0x34c] sm:$0xf] %v5433_v0  ;;  %v6550_v9 = vsel %vm11803_vm4, %v6548_v61, %v6549_v56  ;;  %v6441_v59 = vld [vmem:[#allocation3 + $0x50] sm:$0x1]  ;;  %v8462_v43 = vadd.f32 %v13734_v13, %v13749_v7  ;;  %v10664_v30 = vld [vmem:[#allocation4 + $0x2e0] sm:$0xf] }
 0x49a   : > { %8673 = vmatmul.bf16.gmra.mxu2 %v10633_v53  ;;  %5856 = vst [vmem:[#allocation4 + $0x32c] sm:$0xf] %v5770_v6  ;;  %v10492_v63 = vld [vmem:[#allocation4 + $0x180] sm:$0xf]  ;;  %v11449_v17 = vld [vmem:[#allocation4 + $0x184] sm:$0xf]  ;;  %v5773_v11 = vsel %vm11803_vm4, %v5771_v14, %v5772_v8  ;;  %v10665_v42 = vor.u32 %v11497_v46, %v10664_v30  ;;  %v14245_v46 = vpop.f32.mrf.mxu0 }
 0x49b   : > { %v10494_v35 = vld [vmem:[#allocation4 + $0x1a4] sm:$0xf0]  ;;  %6673 = vst [vmem:[#allocation4 + $0xf8] sm:$0xf] %v6547_v24  ;;  %v6442_v53 = vld [vmem:[#allocation3 + $0x54] sm:$0xe]  ;;  %v10493_v0 = vor.u32 %v11453_v62, %v10492_v63 }
 0x49c   : > { %5857 = vst [vmem:[#allocation4 + $0x350] sm:$0xf] %v5773_v11  ;;  %v6560_v27 = vrot.slane %v6443_v51, 5  ;;  %v10274_v15 = vrot.slane %v6439_v60, 9  ;;  %v6555_v29 = vrot.slane %v6553_v3, 4  ;;  %v6556_v13 = vrot.slane %v6441_v59, 5 }
 0x49d   : > { %v8550_v26 = vpop.f32.mrf.mxu1  ;;  %v8634_v55 = vpop.f32.mrf.mxu2  ;;  %6674 = vst [vmem:[#allocation4 + $0x11c] sm:$0xf] %v6550_v9  ;;  %v10497_v56 = vor.u32 %v11449_v17, %v10494_v35  ;;  %v5134_v8 = vld [vmem:[#allocation3 + $0x9c] sm:$0xf]  ;;  %v5135_v24 = vld [vmem:[#allocation3 + $0xa0] sm:$0xf] }
 0x49e   : > { %v14240_v61 = vadd.f32 %v8550_v26, %v8462_v43  ;;  %v14243_v7 = vadd.f32 %v8634_v55, %v14196_v22  ;;  %v8424_v21 = vpop.f32.mrf.mxu3  ;;  %v6444_v6 = vld [vmem:[#allocation3 + $0x5c] sm:$0x1]  ;;  %v5136_v51 = vld [vmem:[#allocation3 + $0xa4] sm:$0x1]  ;;  %v5435_v9 = vshrl.u32 %v5134_v8, 16  ;;  %v5438_v60 = vshll.u32 %v5134_v8, 16 }
 0x49f   : > { %v14248_v14 = vadd.f32 %v8424_v21, %v14046_v36  ;;  %v5444_v43 = vshll.u32 %v5135_v24, 16  ;;  %v5448_v59 = vshrl.u32 %v5135_v24, 16  ;;  %v6554_v22 = vsel %vm11803_vm4, %v10274_v15, %v6553_v3  ;;  %v10666_v15 = vld [vmem:[#allocation4 + $0x304] sm:$0xf0]  ;;  %v5630_v24 = vld [vmem:[#allocation3 + $0x9c] sm:$0xe] }
 0x4a0   : > { %8589 = vmatmul.bf16.gmra.mxu1 %v10665_v42  ;;  %v10275_v30 = vrot.slane %v6442_v53, 9  ;;  %v6562_v62 = vrot.slane %v6560_v27, 4  ;;  %v5437_v63 = vrot.slane %v5435_v9, 4  ;;  %v5440_v17 = vrot.slane %v5438_v60, 5  ;;  %6675 = vst [vmem:[#allocation4 + $0x140] sm:$0xf] %v6554_v22 }
 0x4a1   : > { %v5446_v35 = vrot.slane %v5444_v43, 5  ;;  %v6557_v11 = vsel %vm11803_vm4, %v6555_v29, %v6556_v13  ;;  %v5450_v26 = vrot.slane %v5448_v59, 4  ;;  %v5454_v36 = vshll.u32 %v5136_v51, 16  ;;  %v5631_v9 = vld [vmem:[#allocation3 + $0xa0] sm:$0xf] }
 0x4a2   : > { %v6561_v42 = vsel %vm11803_vm4, %v10275_v30, %v6560_v27  ;;  %v6563_v55 = vrot.slane %v6444_v6, 5  ;;  %v8464_v21 = vadd.f32 %v13751_v20, %v13770_v16  ;;  %v5441_v3 = vor.u32 %v5440_v17, %v5437_v63  ;;  %6676 = vst [vmem:[#allocation4 + $0x164] sm:$0xf] %v6557_v11  ;;  %v6445_v27 = vld [vmem:[#allocation3 + $0x60] sm:$0xe] }
 0x4a3   : > { %8831 = vmatmul.bf16.gmra.mxu0 %v10497_v56  ;;  %8742 = vmatmul.bf16.gmra.mxu3 %v10493_v0  ;;  %v5451_v8 = vor.u32 %v5450_v26, %v5446_v35  ;;  %6677 = vst [vmem:[#allocation4 + $0x188] sm:$0xf] %v6561_v42  ;;  %v5456_v0 = vrot.slane %v5454_v36, 5  ;;  %v5632_v60 = vld [vmem:[#allocation3 + $0xa4] sm:$0x1]  ;;  %v10266_v30 = vrot.slane %v5630_v24, 9  ;;  %v14272_v26 = vpop.f32.mrf.mxu0 }
 0x4a4   : > { %v6564_v29 = vsel %vm11803_vm4, %v6562_v62, %v6563_v55  ;;  %v5442_v51 = vrot.slane %v5441_v3, 4  ;;  %v11493_v43 = vld [vmem:[#allocation4 + $0x2e4] sm:$0xf]  ;;  %v5776_v62 = vrot.slane %v5631_v9, 5  ;;  %v6446_v17 = vld [vmem:[#allocation3 + $0x64] sm:$0xf]  ;;  %v8467_v3 = vadd.f32 %v13772_v28, %v13802_v39 }
 0x4a5   : > { %v8552_v53 = vpop.f32.mrf.mxu1  ;;  %v8636_v13 = vpop.f32.mrf.mxu2  ;;  %v5452_v16 = vrot.slane %v5451_v8, 4  ;;  %6678 = vst [vmem:[#allocation4 + $0x1ac] sm:$0xf] %v6564_v29  ;;  %v10669_v63 = vor.u32 %v11493_v43, %v10666_v15  ;;  %v10276_v11 = vrot.slane %v6445_v27, 9  ;;  %v5779_v42 = vrot.slane %v5632_v60, 5  ;;  %v11610_v9 = vld [vmem:[%s14793_s3 + $0x208] sm:$0xff] }
 0x4a6   : > { %v14260_v56 = vadd.f32 %v8552_v53, %v8464_v21  ;;  %v14263_v6 = vadd.f32 %v8636_v13, %v14213_v10  ;;  %v8427_v20 = vpop.f32.mrf.mxu3  ;;  %v5447_v22 = vsel %vm11832_vm5, %v5442_v51, %v5446_v35  ;;  %v5778_v36 = vrot.slane %v5776_v62, 4  ;;  %v11506_v35 = vld [vmem:[#allocation4 + $0x348] sm:$0xf0]  ;;  %v11618_v21 = vld [vmem:[%s14795_s5 + $0x8] sm:$0xff]  ;;  %v10700_v29 = vld [vmem:[#allocation4 + $0x328] sm:$0xf]  ;;  %8893 = vmatpush.bf16.msra.mxu1 %v11610_v9 }
 0x4a7   : > { %v14266_v59 = vadd.f32 %v8427_v20, %v14067_v5  ;;  %v5457_v10 = vsel %vm11832_vm5, %v5452_v16, %v5456_v0  ;;  %5586 = vst [vmem:[#allocation4 + $0x370] sm:$0xf] %v5447_v22  ;;  %v5777_v5 = vsel %vm11803_vm4, %v10266_v30, %v5776_v62  ;;  %v6567_v55 = vrot.slane %v6446_v17, 5  ;;  %v6447_v15 = vld [vmem:[#allocation3 + $0x68] sm:$0x1]  ;;  %9114 = vmatpush.bf16.msra.mxu2 %v11618_v21 }
 0x4a8   : > { %5587 = vst [vmem:[#allocation4 + $0x394] sm:$0xf] %v5457_v10  ;;  %v5780_v53 = vsel %vm11803_vm4, %v5778_v36, %v5779_v42  ;;  %v10701_v20 = vor.u32 %v11506_v35, %v10700_v29  ;;  %v11462_v16 = vld [vmem:[#allocation4 + $0x1e8] sm:$0xf0]  ;;  %v10530_v0 = vld [vmem:[#allocation4 + $0x1ec] sm:$0xf0] }
 0x4a9   : > { %5858 = vst [vmem:[#allocation4 + $0x374] sm:$0xf] %v5777_v5  ;;  %v6568_v8 = vsel %vm11803_vm4, %v10276_v11, %v6567_v55  ;;  %v6569_v13 = vrot.slane %v6567_v55, 4  ;;  %v5137_v60 = vld [vmem:[#allocation3 + $0xa8] sm:$0xf]  ;;  %v6570_v22 = vrot.slane %v6447_v15, 5 }
 0x4aa   : > { %8678 = vmatmul.bf16.gmra.mxu2 %v10669_v63  ;;  %5859 = vst [vmem:[#allocation4 + $0x398] sm:$0xf] %v5780_v53  ;;  %v5138_v43 = vld [vmem:[#allocation3 + $0xac] sm:$0xf]  ;;  %v11458_v62 = vld [vmem:[#allocation4 + $0x1cc] sm:$0xf] }
 0x4ab   : > { %6679 = vst [vmem:[#allocation4 + $0x1d0] sm:$0xf] %v6568_v8  ;;  %v5139_v63 = vld [vmem:[#allocation3 + $0xb0] sm:$0x1]  ;;  %v5459_v10 = vshrl.u32 %v5137_v60, 16  ;;  %v5462_v17 = vshll.u32 %v5137_v60, 16  ;;  %v10533_v5 = vor.u32 %v11458_v62, %v10530_v0  ;;  %v6571_v42 = vsel %vm11803_vm4, %v6569_v13, %v6570_v22  ;;  %v14298_v15 = vpop.f32.mrf.mxu0 }
 0x4ac   : > { %v10528_v11 = vld [vmem:[#allocation4 + $0x1c8] sm:$0xf]  ;;  %v5472_v36 = vshrl.u32 %v5138_v43, 16  ;;  %v8469_v8 = vadd.f32 %v13808_v1, %v13835_v57  ;;  %v5633_v29 = vld [vmem:[#allocation3 + $0xa8] sm:$0xe] }
 0x4ad   : > { %v8555_v24 = vpop.f32.mrf.mxu1  ;;  %v8639_v51 = vpop.f32.mrf.mxu2  ;;  %v10529_v55 = vor.u32 %v11462_v16, %v10528_v11  ;;  %v5461_v35 = vrot.slane %v5459_v10, 4  ;;  %v5464_v21 = vrot.slane %v5462_v17, 5  ;;  %6680 = vst [vmem:[#allocation4 + $0x1f4] sm:$0xf] %v6571_v42  ;;  %v10702_v16 = vld [vmem:[#allocation4 + $0x34c] sm:$0xf0] }
 0x4ae   : > { %v14285_v27 = vadd.f32 %v8555_v24, %v8467_v3  ;;  %v14288_v28 = vadd.f32 %v8639_v51, %v14240_v61  ;;  %v8429_v39 = vpop.f32.mrf.mxu3  ;;  %v5468_v61 = vshll.u32 %v5138_v43, 16  ;;  %v5478_v3 = vshll.u32 %v5139_v63, 16  ;;  %v5634_v62 = vld [vmem:[#allocation3 + $0xac] sm:$0xf]  ;;  %v5635_v63 = vld [vmem:[#allocation3 + $0xb0] sm:$0x1] }
 0x4af   : > { %v14294_v30 = vadd.f32 %v8429_v39, %v14087_v47  ;;  %v5474_v47 = vrot.slane %v5472_v36, 4  ;;  %v5465_v24 = vor.u32 %v5464_v21, %v5461_v35  ;;  %v10267_v1 = vrot.slane %v5633_v29, 9  ;;  %v11502_v57 = vld [vmem:[#allocation4 + $0x32c] sm:$0xf]  ;;  %v11515_v10 = vld [vmem:[#allocation4 + $0x390] sm:$0xf0] }
 0x4b0   : > { %8594 = vmatmul.bf16.gmra.mxu1 %v10701_v20  ;;  %v5470_v53 = vrot.slane %v5468_v61, 5  ;;  %v5480_v9 = vrot.slane %v5478_v3, 5  ;;  %v5786_v61 = vrot.slane %v5635_v63, 5  ;;  %v10705_v36 = vor.u32 %v11502_v57, %v10702_v16  ;;  %v5887_v42 = vld [vmem:[#allocation3 + $0x90] sm:$0xf] }
 0x4b1   : > { %v5466_v39 = vrot.slane %v5465_v24, 4  ;;  %5919 = vst [vmem:[#allocation4 + $0x2e8] sm:$0xf] %v5887_v42  ;;  %v5140_v57 = vld [vmem:[#allocation3 + $0xb4] sm:$0xf] }
 0x4b2   : > { %v5475_v20 = vor.u32 %v5474_v47, %v5470_v53  ;;  %v14316_v47 = vld [vmem:[#allocation3 + $0x70] sm:$0xf] }
 0x4b3   : > { %8836 = vmatmul.bf16.gmra.mxu0 %v10533_v5  ;;  %8747 = vmatmul.bf16.gmra.mxu3 %v10529_v55  ;;  %v5471_v11 = vsel %vm11832_vm5, %v5466_v39, %v5470_v53  ;;  %v5783_v5 = vrot.slane %v5634_v62, 5  ;;  %v5961_v55 = vld [vmem:[#allocation3 + $0x90] sm:$0xf]  ;;  %v8472_v53 = vadd.f32 %v13841_v19, %v13859_v37  ;;  %v14322_v16 = vpop.f32.mrf.mxu0  ;;  %v6448_v62 = vld [vmem:[#allocation3 + $0x6c] sm:$0xe]  ;;  %v6574_v19 = vrot.slane %v14316_v47, 5 }
 0x4b4   : > { %v5476_v22 = vrot.slane %v5475_v20, 4  ;;  %5588 = vst [vmem:[#allocation4 + $0x3b8] sm:$0xf] %v5471_v11  ;;  %v6220_v3 = vshrl.u32 %v5961_v55, 16  ;;  %v11471_v20 = vld [vmem:[#allocation4 + $0x230] sm:$0xf0] }
 0x4b5   : > { %v8557_v51 = vpop.f32.mrf.mxu1  ;;  %v8641_v0 = vpop.f32.mrf.mxu2  ;;  %v5784_v35 = vsel %vm11803_vm4, %v10267_v1, %v5783_v5  ;;  %v5785_v21 = vrot.slane %v5783_v5, 4  ;;  %v10564_v1 = vld [vmem:[#allocation4 + $0x210] sm:$0xf]  ;;  %v5142_v11 = vld [vmem:[#allocation3 + $0xbc] sm:$0x1] }
 0x4b6   : > { %v14302_v13 = vadd.f32 %v8557_v51, %v8469_v8  ;;  %v14305_v60 = vadd.f32 %v8641_v0, %v14260_v56  ;;  %v8432_v43 = vpop.f32.mrf.mxu3  ;;  %v5481_v56 = vsel %vm11832_vm5, %v5476_v22, %v5480_v9  ;;  %5860 = vst [vmem:[#allocation4 + $0x3bc] sm:$0xf] %v5784_v35  ;;  %v10736_v8 = vld [vmem:[#allocation4 + $0x370] sm:$0xf]  ;;  %v10566_v0 = vld [vmem:[#allocation4 + $0x234] sm:$0xf0] }
 0x4b7   : > { %v14308_v17 = vadd.f32 %v8432_v43, %v14115_v33  ;;  %5589 = vst [vmem:[#allocation4 + $0x3dc] sm:$0xf] %v5481_v56  ;;  %v6223_v33 = vshll.u32 %v5961_v55, 16  ;;  %v5787_v24 = vsel %vm11803_vm4, %v5785_v21, %v5786_v61  ;;  %v10737_v51 = vor.u32 %v11515_v10, %v10736_v8  ;;  %v5141_v10 = vld [vmem:[#allocation3 + $0xb8] sm:$0xf] }
 0x4b8   : > { %5861 = vst [vmem:[#allocation4 + $0x3e0] sm:$0xf] %v5787_v24  ;;  %v6222_v43 = vrot.slane %v6220_v3, 4  ;;  %v11467_v61 = vld [vmem:[#allocation4 + $0x214] sm:$0xf]  ;;  %v5486_v56 = vshll.u32 %v5140_v57, 16 }
 0x4b9   : > { %v6225_v22 = vrot.slane %v6223_v33, 5  ;;  %v5492_v42 = vshll.u32 %v5141_v10, 16  ;;  %v10569_v55 = vor.u32 %v11467_v61, %v10566_v0  ;;  %v5496_v35 = vshrl.u32 %v5141_v10, 16  ;;  %v6450_v3 = vld [vmem:[#allocation3 + $0x74] sm:$0x1] }
 0x4ba   : > { %8683 = vmatmul.bf16.gmra.mxu2 %v10705_v36  ;;  %v5483_v36 = vshrl.u32 %v5140_v57, 16  ;;  %v5502_v21 = vshll.u32 %v5142_v11, 16  ;;  %v10277_v33 = vrot.slane %v6448_v62, 9  ;;  %v5636_v24 = vld [vmem:[#allocation3 + $0xb4] sm:$0xe] }
 0x4bb   : > { %v5494_v8 = vrot.slane %v5492_v42, 5  ;;  %v10738_v0 = vld [vmem:[#allocation4 + $0x394] sm:$0xf0]  ;;  %v6226_v62 = vor.u32 %v6225_v22, %v6222_v43  ;;  %v10268_v61 = vrot.slane %v5636_v24, 9  ;;  %v5637_v22 = vld [vmem:[#allocation3 + $0xb8] sm:$0xf] }
 0x4bc   : > { %v5485_v47 = vrot.slane %v5483_v36, 4  ;;  %v5504_v11 = vrot.slane %v5502_v21, 5  ;;  %v5962_v36 = vld [vmem:[#allocation3 + $0x94] sm:$0xf]  ;;  %v14342_v21 = vpop.f32.mrf.mxu0 }
 0x4bd   : > { %v8560_v29 = vpop.f32.mrf.mxu1  ;;  %v8644_v39 = vpop.f32.mrf.mxu2 }
 0x4be   : > { %v14324_v9 = vadd.f32 %v8560_v29, %v8472_v53  ;;  %v14328_v37 = vadd.f32 %v8644_v39, %v14285_v27  ;;  %v8434_v63 = vpop.f32.mrf.mxu3  ;;  %v10565_v27 = vor.u32 %v11471_v20, %v10564_v1  ;;  %v5488_v53 = vrot.slane %v5486_v56, 5  ;;  %v5963_v56 = vld [vmem:[#allocation3 + $0x98] sm:$0x1] }
 0x4bf   : > { %v14331_v5 = vadd.f32 %v8434_v63, %v14134_v18  ;;  %v5498_v29 = vrot.slane %v5496_v35, 4  ;;  %v6575_v18 = vsel %vm11803_vm4, %v10277_v33, %v6574_v19  ;;  %v8474_v39 = vadd.f32 %v13867_v25, %v13872_v41  ;;  %v11511_v63 = vld [vmem:[#allocation4 + $0x374] sm:$0xf] }
 0x4c0   : > { %8599 = vmatmul.bf16.gmra.mxu1 %v10737_v51  ;;  %v5888_v51 = vld [vmem:[#allocation3 + $0x94] sm:$0xf]  ;;  %v5489_v57 = vor.u32 %v5488_v53, %v5485_v47  ;;  %v6577_v20 = vrot.slane %v6450_v3, 5  ;;  %v6229_v33 = vshll.u32 %v5962_v36, 16  ;;  %6681 = vst [vmem:[#allocation4 + $0x218] sm:$0xf] %v6575_v18  ;;  %v10741_v41 = vor.u32 %v11511_v63, %v10738_v0 }
 0x4c1   : > { %14938 = vst [vmem:[#allocation41_spill] sm:$0xff] %v14331_v5  ;;  %v5499_v10 = vor.u32 %v5498_v29, %v5494_v8  ;;  %v6233_v5 = vshrl.u32 %v5962_v36, 16  ;;  %v5638_v3 = vld [vmem:[#allocation3 + $0xbc] sm:$0x1]  ;;  %v6576_v47 = vrot.slane %v6574_v19, 4  ;;  %v6227_v18 = vrot.slane %v6226_v62, 4 }
 0x4c2   : > { %5920 = vst [vmem:[#allocation4 + $0x30c] sm:$0xf] %v5888_v51  ;;  %v5490_v35 = vrot.slane %v5489_v57, 4  ;;  %v11524_v53 = vld [vmem:[#allocation4 + $0x3d8] sm:$0xf0]  ;;  %v5790_v51 = vrot.slane %v5637_v22, 5 }
 0x4c3   : > { %8841 = vmatmul.bf16.gmra.mxu0 %v10569_v55  ;;  %8752 = vmatmul.bf16.gmra.mxu3 %v10565_v27  ;;  %v5500_v43 = vrot.slane %v5499_v10, 4  ;;  %v6235_v63 = vrot.slane %v6233_v5, 4  ;;  %v6239_v0 = vshll.u32 %v5963_v56, 16  ;;  %v6578_v5 = vsel %vm11803_vm4, %v6576_v47, %v6577_v20  ;;  %v10602_v22 = vld [vmem:[#allocation4 + $0x27c] sm:$0xf0] }
 0x4c4   : > { %v5495_v29 = vsel %vm11832_vm5, %v5490_v35, %v5494_v8  ;;  %v5791_v19 = vsel %vm11803_vm4, %v10268_v61, %v5790_v51  ;;  %v5792_v57 = vrot.slane %v5790_v51, 4  ;;  %v11617_v8 = vld [vmem:[%s14795_s5] sm:$0xff]  ;;  %v14939_v61 = vld [vmem:[#allocation47_spill] sm:$0xff]  ;;  %6682 = vst [vmem:[#allocation4 + $0x23c] sm:$0xf] %v6578_v5 }
 0x4c5   : > { %v8562_v1 = vpop.f32.mrf.mxu1  ;;  %v8646_v42 = vpop.f32.mrf.mxu2  ;;  %5590 = vst [vmem:[#allocation4 + $0x400] sm:$0xf] %v5495_v29  ;;  %v8477_v56 = vadd.f32 %v14939_v61, %v13894_v48  ;;  %9115 = vmatpush.bf16.msra.mxu2 %v11617_v8  ;;  %v6241_v47 = vrot.slane %v6239_v0, 5  ;;  %v5145_v0 = vld [vmem:[#allocation3 + $0xc8] sm:$0x1] }
 0x4c6   : > { %v14337_v55 = vadd.f32 %v8562_v1, %v8474_v39  ;;  %v14340_v25 = vadd.f32 %v8646_v42, %v14302_v13  ;;  %v8437_v27 = vpop.f32.mrf.mxu3  ;;  %v5505_v13 = vsel %vm11832_vm5, %v5500_v43, %v5504_v11  ;;  %v6231_v39 = vrot.slane %v6229_v33, 5  ;;  %5862 = vst [vmem:[#allocation4 + $0x404] sm:$0xf] %v5791_v19  ;;  %v6451_v11 = vld [vmem:[#allocation3 + $0x78] sm:$0xe] }
 0x4c7   : > { %v14345_v24 = vadd.f32 %v8437_v27, %v14157_v52  ;;  %5591 = vst [vmem:[#allocation4 + $0x424] sm:$0xf] %v5505_v13  ;;  %v5793_v1 = vrot.slane %v5638_v3, 5  ;;  %v6452_v52 = vld [vmem:[#allocation3 + $0x7c] sm:$0xf]  ;;  %v10278_v51 = vrot.slane %v6451_v11, 9 }
 0x4c8   : > { %v6232_v62 = vsel %vm11832_vm5, %v6227_v18, %v6231_v39  ;;  %v6236_v10 = vor.u32 %v6235_v63, %v6231_v39  ;;  %v6581_v36 = vrot.slane %v6452_v52, 5  ;;  %v10772_v42 = vld [vmem:[#allocation4 + $0x3b8] sm:$0xf]  ;;  %v6453_v33 = vld [vmem:[#allocation3 + $0x80] sm:$0x1] }
 0x4c9   : > { %v5794_v35 = vsel %vm11803_vm4, %v5792_v57, %v5793_v1  ;;  %6415 = vst [vmem:[#allocation4 + $0x2ec] sm:$0xf] %v6232_v62  ;;  %v10773_v27 = vor.u32 %v11524_v53, %v10772_v42  ;;  %v11480_v43 = vld [vmem:[#allocation4 + $0x278] sm:$0xf0]  ;;  %v11609_v53 = vld [vmem:[%s14793_s3 + $0x200] sm:$0xff]  ;;  %v6584_v19 = vrot.slane %v6453_v33, 5 }
 0x4ca   : > { %8688 = vmatmul.bf16.gmra.mxu2 %v10741_v41  ;;  %5863 = vst [vmem:[#allocation4 + $0x428] sm:$0xf] %v5794_v35  ;;  %v6237_v3 = vrot.slane %v6236_v10, 4  ;;  %v6583_v48 = vrot.slane %v6581_v36, 4  ;;  %v5143_v39 = vld [vmem:[#allocation3 + $0xc0] sm:$0xf]  ;;  %8894 = vmatpush.bf16.msra.mxu1 %v11609_v53  ;;  %v6582_v61 = vsel %vm11803_vm4, %v10278_v51, %v6581_v36 }
 0x4cb   : > { %v5144_v63 = vld [vmem:[#allocation3 + $0xc4] sm:$0xf]  ;;  %v11476_v1 = vld [vmem:[#allocation4 + $0x25c] sm:$0xf]  ;;  %v5507_v52 = vshrl.u32 %v5143_v39, 16  ;;  %v5510_v8 = vshll.u32 %v5143_v39, 16 }
 0x4cc   : > { %v10600_v62 = vld [vmem:[#allocation4 + $0x258] sm:$0xf]  ;;  %v10605_v10 = vor.u32 %v11476_v1, %v10602_v22  ;;  %v5516_v5 = vshll.u32 %v5144_v63, 16  ;;  %v5520_v11 = vshrl.u32 %v5144_v63, 16  ;;  %v6585_v33 = vsel %vm11803_vm4, %v6583_v48, %v6584_v19  ;;  %v14940_v22 = vld [vmem:[#allocation46_spill] sm:$0xff] }
 0x4cd   : > { %v8565_v41 = vpop.f32.mrf.mxu1  ;;  %v8649_v29 = vpop.f32.mrf.mxu2  ;;  %v10601_v42 = vor.u32 %v11480_v43, %v10600_v62  ;;  %v5512_v35 = vrot.slane %v5510_v8, 5  ;;  %6683 = vst [vmem:[#allocation4 + $0x260] sm:$0xf] %v6582_v61  ;;  %v5639_v53 = vld [vmem:[#allocation3 + $0xc0] sm:$0xe] }
 0x4ce   : > { %v14364_v20 = vadd.f32 %v8565_v41, %v8477_v56  ;;  %v14367_v18 = vadd.f32 %v8649_v29, %v14324_v9  ;;  %v8439_v13 = vpop.f32.mrf.mxu3  ;;  %v6242_v9 = vsel %vm11832_vm5, %v6237_v3, %v6241_v47  ;;  %v14379_v56 = vpop.f32.mrf.mxu0  ;;  %v5518_v41 = vrot.slane %v5516_v5, 5  ;;  %v14941_v29 = vld [vmem:[#allocation49_spill] sm:$0xff]  ;;  %6684 = vst [vmem:[#allocation4 + $0x284] sm:$0xf] %v6585_v33  ;;  %v5640_v8 = vld [vmem:[#allocation3 + $0xc4] sm:$0xf] }
 0x4cf   : > { %v14373_v57 = vadd.f32 %v8439_v13, %v14176_v54  ;;  %v5509_v54 = vrot.slane %v5507_v52, 4  ;;  %v5526_v3 = vshll.u32 %v5145_v0, 16  ;;  %6416 = vst [vmem:[#allocation4 + $0x310] sm:$0xf] %v6242_v9  ;;  %v8479_v47 = vadd.f32 %v14941_v29, %v14940_v22  ;;  %v10774_v63 = vld [vmem:[#allocation4 + $0x3dc] sm:$0xf0] }
 0x4d0   : > { %8604 = vmatmul.bf16.gmra.mxu1 %v10773_v27  ;;  %v5522_v27 = vrot.slane %v5520_v11, 4  ;;  %v5641_v9 = vld [vmem:[#allocation3 + $0xc8] sm:$0x1]  ;;  %v11520_v62 = vld [vmem:[#allocation4 + $0x3bc] sm:$0xf]  ;;  %v10269_v61 = vrot.slane %v5639_v53, 9 }
 0x4d1   : > { %v5513_v13 = vor.u32 %v5512_v35, %v5509_v54  ;;  %v5528_v52 = vrot.slane %v5526_v3, 5  ;;  %v10777_v54 = vor.u32 %v11520_v62, %v10774_v63  ;;  %v5889_v35 = vld [vmem:[#allocation3 + $0x9c] sm:$0xf]  ;;  %v5800_v22 = vrot.slane %v5641_v9, 5 }
 0x4d2   : > { %v5523_v51 = vor.u32 %v5522_v27, %v5518_v41  ;;  %v5964_v33 = vld [vmem:[#allocation3 + $0x9c] sm:$0xf]  ;;  %5921 = vst [vmem:[#allocation4 + $0x330] sm:$0xf] %v5889_v35 }
 0x4d3   : > { %8846 = vmatmul.bf16.gmra.mxu0 %v10605_v10  ;;  %8757 = vmatmul.bf16.gmra.mxu3 %v10601_v42  ;;  %v5514_v48 = vrot.slane %v5513_v13, 4  ;;  %v11533_v10 = vld [vmem:[#allocation4 + $0x420] sm:$0xf0]  ;;  %v5797_v42 = vrot.slane %v5640_v8, 5  ;;  %v6247_v29 = vshll.u32 %v5964_v33, 16 }
 0x4d4   : > { %v5524_v0 = vrot.slane %v5523_v51, 4  ;;  %v14944_v13 = vld [vmem:[#allocation53_spill] sm:$0xff] }
 0x4d5   : > { %v8567_v36 = vpop.f32.mrf.mxu1  ;;  %v8651_v43 = vpop.f32.mrf.mxu2  ;;  %v5519_v11 = vsel %vm11832_vm5, %v5514_v48, %v5518_v41  ;;  %v5798_v27 = vsel %vm11803_vm4, %v10269_v61, %v5797_v42  ;;  %v5799_v3 = vrot.slane %v5797_v42, 4  ;;  %v10808_v51 = vld [vmem:[#allocation4 + $0x400] sm:$0xf]  ;;  %v6249_v62 = vrot.slane %v6247_v29, 5 }
 0x4d6   : > { %v14385_v39 = vadd.f32 %v8567_v36, %v8479_v47  ;;  %v14388_v19 = vadd.f32 %v8651_v43, %v14337_v55  ;;  %v8718_v1 = vpop.f32.mrf.mxu3  ;;  %v5529_v55 = vsel %vm11832_vm5, %v5524_v0, %v5528_v52  ;;  %5592 = vst [vmem:[#allocation4 + $0x448] sm:$0xf] %v5519_v11  ;;  %v14399_v41 = vpop.f32.mrf.mxu0  ;;  %v14943_v47 = vld [vmem:[#allocation51_spill] sm:$0xff]  ;;  %v6454_v43 = vld [vmem:[#allocation3 + $0x84] sm:$0xe]  ;;  %v10809_v48 = vor.u32 %v11533_v10, %v10808_v51 }
 0x4d7   : > { %v14391_v5 = vadd.f32 %v8718_v1, %v14199_v4  ;;  %5593 = vst [vmem:[#allocation4 + $0x46c] sm:$0xf] %v5529_v55  ;;  %v6244_v4 = vshrl.u32 %v5964_v33, 16  ;;  %v8482_v36 = vadd.f32 %v14944_v13, %v14943_v47  ;;  %v5801_v53 = vsel %vm11803_vm4, %v5799_v3, %v5800_v22  ;;  %v10638_v1 = vld [vmem:[#allocation4 + $0x2c4] sm:$0xf0] }
 0x4d8   : > { %14942 = vst [vmem:[#allocation54_spill] sm:$0xff] %v14388_v19  ;;  %v6455_v0 = vld [vmem:[#allocation3 + $0x88] sm:$0xf]  ;;  %v6456_v11 = vld [vmem:[#allocation3 + $0x8c] sm:$0x1]  ;;  %v10279_v33 = vrot.slane %v6454_v43, 9 }
 0x4d9   : > { %5864 = vst [vmem:[#allocation4 + $0x44c] sm:$0xf] %v5798_v27  ;;  %v6246_v9 = vrot.slane %v6244_v4, 4  ;;  %v6588_v61 = vrot.slane %v6455_v0, 5  ;;  %v11489_v55 = vld [vmem:[#allocation4 + $0x2c0] sm:$0xf0] }
 0x4da   : > { %8693 = vmatmul.bf16.gmra.mxu2 %v10777_v54  ;;  %5865 = vst [vmem:[#allocation4 + $0x470] sm:$0xf] %v5801_v53  ;;  %v11485_v10 = vld [vmem:[#allocation4 + $0x2a4] sm:$0xf]  ;;  %v6591_v3 = vrot.slane %v6456_v11, 5 }
 0x4db   : > { %v6590_v27 = vrot.slane %v6588_v61, 4  ;;  %v10636_v22 = vld [vmem:[#allocation4 + $0x2a0] sm:$0xf]  ;;  %v10641_v47 = vor.u32 %v11485_v10, %v10638_v1  ;;  %v5890_v13 = vld [vmem:[#allocation3 + $0xa0] sm:$0xf]  ;;  %v6589_v29 = vsel %vm11803_vm4, %v10279_v33, %v6588_v61 }
 0x4dc   : > { %v5965_v4 = vld [vmem:[#allocation3 + $0xa0] sm:$0xf]  ;;  %5922 = vst [vmem:[#allocation4 + $0x354] sm:$0xf] %v5890_v13  ;;  %v5966_v53 = vld [vmem:[#allocation3 + $0xa4] sm:$0x1] }
 0x4dd   : > { %v8570_v63 = vpop.f32.mrf.mxu1  ;;  %v8654_v52 = vpop.f32.mrf.mxu2  ;;  %v6592_v51 = vsel %vm11803_vm4, %v6590_v27, %v6591_v3  ;;  %v6257_v43 = vshrl.u32 %v5965_v4, 16  ;;  %6685 = vst [vmem:[#allocation4 + $0x2a8] sm:$0xf] %v6589_v29  ;;  %v6263_v33 = vshll.u32 %v5966_v53, 16  ;;  %v6457_v3 = vld [vmem:[#allocation3 + $0x90] sm:$0xe] }
 0x4de   : > { %v14405_v8 = vadd.f32 %v8570_v63, %v8482_v36  ;;  %v14408_v42 = vadd.f32 %v8654_v52, %v14364_v20  ;;  %v8720_v54 = vpop.f32.mrf.mxu3  ;;  %v10637_v36 = vor.u32 %v11489_v55, %v10636_v22  ;;  %v6250_v20 = vor.u32 %v6249_v62, %v6246_v9  ;;  %v14946_v63 = vld [vmem:[#allocation52_spill] sm:$0xff]  ;;  %6686 = vst [vmem:[#allocation4 + $0x2cc] sm:$0xf] %v6592_v51  ;;  %v14419_v61 = vpop.f32.mrf.mxu0  ;;  %v10810_v62 = vld [vmem:[#allocation4 + $0x424] sm:$0xf0] }
 0x4df   : > { %v14411_v35 = vadd.f32 %v8720_v54, %v14220_v23  ;;  %v6253_v23 = vshll.u32 %v5965_v4, 16  ;;  %v6259_v11 = vrot.slane %v6257_v43, 4  ;;  %v11529_v22 = vld [vmem:[#allocation4 + $0x404] sm:$0xf]  ;;  %v10280_v53 = vrot.slane %v6457_v3, 9 }
 0x4e0   : > { %14945 = vst [vmem:[#allocation55_spill] sm:$0xff] %v14408_v42  ;;  %8609 = vmatmul.bf16.gmra.mxu1 %v10809_v48  ;;  %v14947_v48 = vld [vmem:[#allocation43_spill] sm:$0xff]  ;;  %v6251_v55 = vrot.slane %v6250_v20, 4  ;;  %v10813_v29 = vor.u32 %v11529_v22, %v10810_v62  ;;  %v6459_v20 = vld [vmem:[#allocation3 + $0x98] sm:$0x1] }
 0x4e1   : > { %v8484_v0 = vadd.f32 %v14947_v48, %v14946_v63  ;;  %v6255_v52 = vrot.slane %v6253_v23, 5  ;;  %v6265_v23 = vrot.slane %v6263_v33, 5  ;;  %v14950_v63 = vld [vmem:[#allocation39_spill] sm:$0xff]  ;;  %v10844_v62 = vld [vmem:[#allocation4 + $0x448] sm:$0xf] }
 0x4e2   : > { %v10674_v3 = vld [vmem:[#allocation4 + $0x30c] sm:$0xf0] }
 0x4e3   : > { %8851 = vmatmul.bf16.gmra.mxu0 %v10641_v47  ;;  %8762 = vmatmul.bf16.gmra.mxu3 %v10637_v36  ;;  %v6256_v13 = vsel %vm11832_vm5, %v6251_v55, %v6255_v52  ;;  %v6260_v4 = vor.u32 %v6259_v11, %v6255_v52  ;;  %v6458_v36 = vld [vmem:[#allocation3 + $0x94] sm:$0xf]  ;;  %v6598_v11 = vrot.slane %v6459_v20, 5  ;;  %v10672_v20 = vld [vmem:[#allocation4 + $0x2e8] sm:$0xf] }
 0x4e4   : > { %6417 = vst [vmem:[#allocation4 + $0x334] sm:$0xf] %v6256_v13  ;;  %v6595_v43 = vrot.slane %v6458_v36, 5 }
 0x4e5   : > { %v8572_v1 = vpop.f32.mrf.mxu1  ;;  %v8656_v54 = vpop.f32.mrf.mxu2  ;;  %v6261_v51 = vrot.slane %v6260_v4, 4 }
 0x4e6   : > { %v8573_v9 = vadd.f32 %v8572_v1, %v8484_v0  ;;  %v14422_v10 = vadd.f32 %v8656_v54, %v14385_v39  ;;  %v8723_v27 = vpop.f32.mrf.mxu3  ;;  %v14949_v39 = vld [vmem:[#allocation29_spill] sm:$0xff]  ;;  %v11542_v0 = vld [vmem:[#allocation4 + $0x468] sm:$0xf0]  ;;  %v6596_v1 = vsel %vm11803_vm4, %v10280_v53, %v6595_v43  ;;  %v6597_v52 = vrot.slane %v6595_v43, 4  ;;  %v14442_v36 = vpop.f32.mrf.mxu0  ;;  %v5891_v43 = vld [vmem:[#allocation3 + $0xa8] sm:$0xf] }
 0x4e7   : > { %v14425_v47 = vadd.f32 %v8723_v27, %v14243_v7  ;;  %v8487_v48 = vadd.f32 %v14950_v63, %v14949_v39  ;;  %v6266_v7 = vsel %vm11832_vm5, %v6261_v51, %v6265_v23  ;;  %v10845_v27 = vor.u32 %v11542_v0, %v10844_v62  ;;  %6687 = vst [vmem:[#allocation4 + $0x2f0] sm:$0xf] %v6596_v1  ;;  %v11494_v23 = vld [vmem:[#allocation4 + $0x2ec] sm:$0xf]  ;;  %v5967_v39 = vld [vmem:[#allocation3 + $0xa8] sm:$0xf] }
 0x4e8   : > { %14948 = vst [vmem:[#allocation36_spill] sm:$0xff] %v14422_v10  ;;  %v6599_v22 = vsel %vm11803_vm4, %v6597_v52, %v6598_v11  ;;  %v10677_v53 = vor.u32 %v11494_v23, %v10674_v3  ;;  %v6271_v0 = vshll.u32 %v5967_v39, 16  ;;  %v6460_v23 = vld [vmem:[#allocation3 + $0x9c] sm:$0xe] }
 0x4e9   : > { %6418 = vst [vmem:[#allocation4 + $0x358] sm:$0xf] %v6266_v7  ;;  %v14953_v7 = vld [vmem:[#allocation31_spill] sm:$0xff] }
 0x4ea   : > { %8698 = vmatmul.bf16.gmra.mxu2 %v10813_v29  ;;  %v11498_v29 = vld [vmem:[#allocation4 + $0x308] sm:$0xf0]  ;;  %6688 = vst [vmem:[#allocation4 + $0x314] sm:$0xf] %v6599_v22  ;;  %v6273_v11 = vrot.slane %v6271_v0, 5 }
 0x4eb   : > { %v10673_v63 = vor.u32 %v11498_v29, %v10672_v20  ;;  %5923 = vst [vmem:[#allocation4 + $0x378] sm:$0xf] %v5891_v43  ;;  %v5892_v43 = vld [vmem:[#allocation3 + $0xac] sm:$0xf] }
 0x4ec   : > { %5924 = vst [vmem:[#allocation4 + $0x39c] sm:$0xf] %v5892_v43 }
 0x4ed   : > { %v8575_v54 = vpop.f32.mrf.mxu1  ;;  %v8659_v55 = vpop.f32.mrf.mxu2 }
 0x4ee   : > { %v14435_v33 = vadd.f32 %v8575_v54, %v8487_v48  ;;  %v14440_v13 = vadd.f32 %v8659_v55, %v14405_v8  ;;  %v8725_v4 = vpop.f32.mrf.mxu3  ;;  %v6268_v48 = vshrl.u32 %v5967_v39, 16  ;;  %v14952_v8 = vld [vmem:[#allocation44_spill] sm:$0xff]  ;;  %v10846_v55 = vld [vmem:[#allocation4 + $0x46c] sm:$0xf0]  ;;  %v5968_v39 = vld [vmem:[#allocation3 + $0xac] sm:$0xf] }
 0x4ef   : > { %v14445_v51 = vadd.f32 %v8725_v4, %v14263_v6  ;;  %v8489_v1 = vadd.f32 %v14953_v7, %v14952_v8  ;;  %v11538_v4 = vld [vmem:[#allocation4 + $0x44c] sm:$0xf]  ;;  %v6277_v0 = vshll.u32 %v5968_v39, 16  ;;  %v6281_v8 = vshrl.u32 %v5968_v39, 16 }
 0x4f0   : > { %14951 = vst [vmem:[#allocation42_spill] sm:$0xff] %v14440_v13  ;;  %8614 = vmatmul.bf16.gmra.mxu1 %v10845_v27  ;;  %v6270_v52 = vrot.slane %v6268_v48, 4  ;;  %v10849_v20 = vor.u32 %v11538_v4, %v10846_v55  ;;  %v5969_v48 = vld [vmem:[#allocation3 + $0xb0] sm:$0x1] }
 0x4f1   : > { %v6287_v55 = vshll.u32 %v5969_v48, 16  ;;  %v10710_v42 = vld [vmem:[#allocation4 + $0x354] sm:$0xf0] }
 0x4f2   : > { %v6274_v22 = vor.u32 %v6273_v11, %v6270_v52  ;;  %v6461_v11 = vld [vmem:[#allocation3 + $0xa0] sm:$0xf] }
 0x4f3   : > { %8856 = vmatmul.bf16.gmra.mxu0 %v10677_v53  ;;  %8767 = vmatmul.bf16.gmra.mxu3 %v10673_v63  ;;  %v11409_v53 = vld [vmem:[#allocation4 + $0x40] sm:$0xf0]  ;;  %v14456_v63 = vpop.f32.mrf.mxu0  ;;  %v6602_v4 = vrot.slane %v6461_v11, 5 }
 0x4f4   : > { %v6275_v52 = vrot.slane %v6274_v22, 4 }
 0x4f5   : > { %v8577_v54 = vpop.f32.mrf.mxu1  ;;  %v8661_v62 = vpop.f32.mrf.mxu2  ;;  %v6604_v48 = vrot.slane %v6602_v4, 4 }
 0x4f6   : > { %v14449_v6 = vadd.f32 %v8577_v54, %v8489_v1  ;;  %v14451_v27 = vadd.f32 %v8661_v62, %v8573_v9  ;;  %v8728_v3 = vpop.f32.mrf.mxu3  ;;  %v14955_v9 = vld [vmem:[#allocation45_spill] sm:$0xff]  ;;  %v6279_v54 = vrot.slane %v6277_v0, 5  ;;  %v6283_v62 = vrot.slane %v6281_v8, 4  ;;  %v11507_v0 = vld [vmem:[#allocation4 + $0x350] sm:$0xf0] }
 0x4f7   : > { %v14454_v29 = vadd.f32 %v8728_v3, %v14288_v28  ;;  %v8492_v7 = vadd.f32 %v14078_v40, %v14955_v9  ;;  %v10320_v1 = vld [vmem:[#allocation4 + $0x20] sm:$0xf]  ;;  %v10281_v28 = vrot.slane %v6460_v23, 9  ;;  %v6462_v3 = vld [vmem:[#allocation3 + $0xa4] sm:$0x1] }
 0x4f8   : > { %14954 = vst [vmem:[#allocation56_spill] sm:$0xff] %v14451_v27  ;;  %v10321_v13 = vor.u32 %v11409_v53, %v10320_v1  ;;  %v6284_v39 = vor.u32 %v6283_v62, %v6279_v54  ;;  %v6605_v8 = vrot.slane %v6462_v3, 5  ;;  %v10708_v1 = vld [vmem:[#allocation4 + $0x330] sm:$0xf]  ;;  %v14960_v3 = vld [vmem:[#allocation50_spill] sm:$0xff] }
 0x4f9   : > { %v6603_v40 = vsel %vm11803_vm4, %v10281_v28, %v6602_v4  ;;  %v14957_v28 = vld [vmem:[#allocation5_spill] sm:$0xff] }
 0x4fa   : > { %8703 = vmatmul.bf16.gmra.mxu2 %v10849_v20  ;;  %v6280_v20 = vsel %vm11832_vm5, %v6275_v52, %v6279_v54  ;;  %v6285_v9 = vrot.slane %v6284_v39, 4  ;;  %6689 = vst [vmem:[#allocation4 + $0x338] sm:$0xf] %v6603_v40  ;;  %v6606_v11 = vsel %vm11803_vm4, %v6604_v48, %v6605_v8  ;;  %v8996_v54 = vunpack.c.l.b16 %v14957_v28  ;;  %v6463_v48 = vld [vmem:[#allocation3 + $0xa8] sm:$0xe] }
 0x4fb   : > { %6419 = vst [vmem:[#allocation4 + $0x37c] sm:$0xf] %v6280_v20 }
 0x4fc   : > { %6690 = vst [vmem:[#allocation4 + $0x35c] sm:$0xf] %v6606_v11  ;;  %v14962_v11 = vld [vmem:[#allocation48_spill] sm:$0xff] }
 0x4fd   : > { %v8580_v27 = vpop.f32.mrf.mxu1  ;;  %v8664_v10 = vpop.f32.mrf.mxu2 }
 0x4fe   : > { %v8581_v43 = vadd.f32 %v8580_v27, %v8492_v7  ;;  %v14465_v22 = vadd.f32 %v8664_v10, %v14435_v33  ;;  %v8730_v23 = vpop.f32.mrf.mxu3  ;;  %v11503_v27 = vld [vmem:[#allocation4 + $0x334] sm:$0xf]  ;;  %v6289_v7 = vrot.slane %v6287_v55, 5  ;;  %v10709_v10 = vor.u32 %v11507_v0, %v10708_v1  ;;  %v14959_v55 = vld [vmem:[#allocation40_spill] sm:$0xff] }
 0x4ff   : > { %v14468_v53 = vadd.f32 %v8730_v23, %v14305_v60  ;;  %v10713_v52 = vor.u32 %v11503_v27, %v10710_v42  ;;  %v14476_v60 = vpop.f32.mrf.mxu0  ;;  %v8494_v4 = vadd.f32 %v14960_v3, %v14959_v55  ;;  %v6464_v27 = vld [vmem:[#allocation3 + $0xac] sm:$0xf] }
 0x500   : > { %14956 = vst [vmem:[#allocation57_spill] sm:$0xff] %v14465_v22  ;;  %8895 = vmatmul.bf16.vlgmr.msra.gmra.mxu1 %v10321_v13  ;;  %v6290_v33 = vsel %vm11832_vm5, %v6285_v9, %v6289_v7  ;;  %v14958_v13 = vld [vmem:[#allocation6_spill] sm:$0xff]  ;;  %v6465_v9 = vld [vmem:[#allocation3 + $0xb0] sm:$0x1]  ;;  %v10282_v7 = vrot.slane %v6463_v48, 9  ;;  %v6609_v1 = vrot.slane %v6464_v27, 5 }
 0x501   : > { %v8997_v62 = vunpack.c.l.b16 %v14958_v13  ;;  %6420 = vst [vmem:[#allocation4 + $0x3a0] sm:$0xf] %v6290_v33  ;;  %v6612_v28 = vrot.slane %v6465_v9, 5  ;;  %v10356_v13 = vld [vmem:[#allocation4 + $0x68] sm:$0xf] }
 0x502   : > { %v6610_v33 = vsel %vm11803_vm4, %v10282_v7, %v6609_v1  ;;  %v11512_v48 = vld [vmem:[#allocation4 + $0x37c] sm:$0xf]  ;;  %v5894_v7 = vld [vmem:[#allocation3 + $0xb8] sm:$0xf] }
 0x503   : > { %8861 = vmatmul.bf16.gmra.mxu0 %v10713_v52  ;;  %8772 = vmatmul.bf16.gmra.mxu3 %v10709_v10  ;;  %v9028_v23 = vpack.c.b16 %v8997_v62, %v8996_v54  ;;  %v11418_v52 = vld [vmem:[#allocation4 + $0x88] sm:$0xf0]  ;;  %v8497_v10 = vadd.f32 %v14136_v45, %v14962_v11  ;;  %6691 = vst [vmem:[#allocation4 + $0x380] sm:$0xf] %v6610_v33  ;;  %v5893_v9 = vld [vmem:[#allocation3 + $0xb4] sm:$0xf] }
 0x504   : > { %v10357_v3 = vor.u32 %v11418_v52, %v10356_v13  ;;  %5925 = vst [vmem:[#allocation4 + $0x3c0] sm:$0xf] %v5893_v9  ;;  %v5972_v33 = vld [vmem:[#allocation3 + $0xbc] sm:$0x1] }
 0x505   : > { %v8582_v42 = vpop.f32.mrf.mxu1  ;;  %v8666_v20 = vpop.f32.mrf.mxu2  ;;  %5926 = vst [vmem:[#allocation4 + $0x3e4] sm:$0xf] %v5894_v7  ;;  %v14964_v13 = vld [vmem:[#allocation33_spill] sm:$0xff] }
 0x506   : > { %v8583_v39 = vadd.f32 %v8582_v42, %v8494_v4  ;;  %v14481_v40 = vadd.f32 %v8666_v20, %v14449_v6  ;;  %v8733_v0 = vpop.f32.mrf.mxu3  ;;  %v6611_v6 = vrot.slane %v6609_v1, 4  ;;  %v11516_v4 = vld [vmem:[#allocation4 + $0x398] sm:$0xf0] }
 0x507   : > { %v14484_v8 = vadd.f32 %v8733_v0, %v14328_v37  ;;  %v14490_v62 = vpop.f32.mrf.mxu0  ;;  %v10744_v0 = vld [vmem:[#allocation4 + $0x378] sm:$0xf]  ;;  %v5970_v1 = vld [vmem:[#allocation3 + $0xb4] sm:$0xf] }
 0x508   : > { %14961 = vst [vmem:[#allocation58_spill] sm:$0xff] %v14481_v40  ;;  %v10746_v42 = vld [vmem:[#allocation4 + $0x39c] sm:$0xf0]  ;;  %v6613_v20 = vsel %vm11803_vm4, %v6611_v6, %v6612_v28  ;;  %v10745_v11 = vor.u32 %v11516_v4, %v10744_v0  ;;  %v6292_v6 = vshrl.u32 %v5970_v1, 16 }
 0x509   : > { %6692 = vst [vmem:[#allocation4 + $0x3a4] sm:$0xf] %v6613_v20  ;;  %v10749_v52 = vor.u32 %v11512_v48, %v10746_v42 }
 0x50a   : > { %9116 = vmatmul.bf16.vlgmr.msra.gmra.mxu2 %v9028_v23  ;;  %v6294_v4 = vrot.slane %v6292_v6, 4  ;;  %v6468_v6 = vld [vmem:[#allocation3 + $0xbc] sm:$0x1] }
 0x50d   : > { %v8585_v54 = vpop.f32.mrf.mxu1  ;;  %v8669_v37 = vpop.f32.mrf.mxu2 }
 0x50e   : > { %v14492_v55 = vadd.f32 %v8585_v54, %v8497_v10  ;;  %v14496_v45 = vadd.f32 %v8669_v37, %v8581_v43  ;;  %v8735_v23 = vpop.f32.mrf.mxu3  ;;  %v5971_v10 = vld [vmem:[#allocation3 + $0xb8] sm:$0xf]  ;;  %v6295_v43 = vshll.u32 %v5970_v1, 16  ;;  %v8499_v37 = vadd.f32 %v14164_v49, %v14964_v13  ;;  %v6466_v13 = vld [vmem:[#allocation3 + $0xb4] sm:$0xe] }
 0x50f   : > { %v14499_v27 = vadd.f32 %v8735_v23, %v14340_v25  ;;  %v6301_v28 = vshll.u32 %v5971_v10, 16  ;;  %v6305_v54 = vshrl.u32 %v5971_v10, 16  ;;  %v14966_v25 = vld [vmem:[#allocation8_spill] sm:$0xff] }
 0x510   : > { %14963 = vst [vmem:[#allocation47_spill] sm:$0xff] %v14496_v45  ;;  %8900 = vmatmul.bf16.gmra.mxu1 %v10357_v3  ;;  %v14965_v3 = vld [vmem:[#allocation7_spill] sm:$0xff]  ;;  %v8999_v23 = vunpack.c.l.b16 %v14966_v25  ;;  %v6311_v45 = vshll.u32 %v5972_v33, 16  ;;  %v6297_v42 = vrot.slane %v6295_v43, 5 }
 0x511   : > { %v8998_v20 = vunpack.c.l.b16 %v14965_v3  ;;  %v6303_v0 = vrot.slane %v6301_v28, 5  ;;  %v6307_v48 = vrot.slane %v6305_v54, 4  ;;  %v14509_v3 = vpop.f32.mrf.mxu0  ;;  %v10283_v54 = vrot.slane %v6466_v13, 9  ;;  %v5973_v13 = vld [vmem:[#allocation3 + $0xc0] sm:$0xf] }
 0x512   : > { %v6298_v1 = vor.u32 %v6297_v42, %v6294_v4  ;;  %v6313_v33 = vrot.slane %v6311_v45, 5  ;;  %v6619_v4 = vrot.slane %v6468_v6, 5  ;;  %v5975_v6 = vld [vmem:[#allocation3 + $0xc8] sm:$0x1] }
 0x513   : > { %8866 = vmatmul.bf16.gmra.mxu0 %v10749_v52  ;;  %8777 = vmatmul.bf16.gmra.mxu3 %v10745_v11  ;;  %v6308_v10 = vor.u32 %v6307_v48, %v6303_v0  ;;  %v9029_v49 = vpack.c.b16 %v8999_v23, %v8998_v20  ;;  %v6467_v11 = vld [vmem:[#allocation3 + $0xb8] sm:$0xf]  ;;  %v8502_v20 = vadd.f32 %v14190_v32, %v14139_v2  ;;  %v10392_v48 = vld [vmem:[#allocation4 + $0xb0] sm:$0xf]  ;;  %v11525_v2 = vld [vmem:[#allocation4 + $0x3e0] sm:$0xf0] }
 0x514   : > { %v6299_v25 = vrot.slane %v6298_v1, 4  ;;  %v5895_v32 = vld [vmem:[#allocation3 + $0xc0] sm:$0xf] }
 0x515   : > { %v8587_v9 = vpop.f32.mrf.mxu1  ;;  %v8671_v7 = vpop.f32.mrf.mxu2  ;;  %v6309_v52 = vrot.slane %v6308_v10, 4  ;;  %5927 = vst [vmem:[#allocation4 + $0x408] sm:$0xf] %v5895_v32 }
 0x516   : > { %v14505_v40 = vadd.f32 %v8587_v9, %v8499_v37  ;;  %v14507_v22 = vadd.f32 %v8671_v7, %v8583_v39  ;;  %v6304_v43 = vsel %vm11832_vm5, %v6299_v25, %v6303_v0  ;;  %v6616_v37 = vrot.slane %v6467_v11, 5  ;;  %v11427_v39 = vld [vmem:[#allocation4 + $0xd0] sm:$0xf0]  ;;  %v10780_v25 = vld [vmem:[#allocation4 + $0x3c0] sm:$0xf] }
 0x517   : > { %v6314_v28 = vsel %vm11832_vm5, %v6309_v52, %v6313_v33  ;;  %6421 = vst [vmem:[#allocation4 + $0x3c4] sm:$0xf] %v6304_v43  ;;  %v10393_v7 = vor.u32 %v11427_v39, %v10392_v48  ;;  %v5974_v52 = vld [vmem:[#allocation3 + $0xc4] sm:$0xf]  ;;  %v10781_v11 = vor.u32 %v11525_v2, %v10780_v25  ;;  %v6316_v43 = vshrl.u32 %v5973_v13, 16 }
 0x518   : > { %14967 = vst [vmem:[#allocation46_spill] sm:$0xff] %v14507_v22  ;;  %v6617_v45 = vsel %vm11803_vm4, %v10283_v54, %v6616_v37  ;;  %v6618_v23 = vrot.slane %v6616_v37, 4  ;;  %v14969_v54 = vld [vmem:[#allocation9_spill] sm:$0xff]  ;;  %v6469_v22 = vld [vmem:[#allocation3 + $0xc0] sm:$0xe] }
 0x519   : > { %6422 = vst [vmem:[#allocation4 + $0x3e8] sm:$0xf] %v6314_v28  ;;  %v14526_v33 = vpop.f32.mrf.mxu0  ;;  %v6319_v28 = vshll.u32 %v5973_v13, 16  ;;  %v9000_v37 = vunpack.c.l.b16 %v14969_v54 }
 0x51a   : > { %9121 = vmatmul.bf16.gmra.mxu2 %v9029_v49  ;;  %6693 = vst [vmem:[#allocation4 + $0x3c8] sm:$0xf] %v6617_v45  ;;  %v6620_v1 = vsel %vm11803_vm4, %v6618_v23, %v6619_v4  ;;  %v5896_v49 = vld [vmem:[#allocation3 + $0xc4] sm:$0xf]  ;;  %v6325_v23 = vshll.u32 %v5974_v52, 16  ;;  %v6329_v4 = vshrl.u32 %v5974_v52, 16 }
 0x51b   : > { %6694 = vst [vmem:[#allocation4 + $0x3ec] sm:$0xf] %v6620_v1 }
 0x51c   : > { %5928 = vst [vmem:[#allocation4 + $0x42c] sm:$0xf] %v5896_v49  ;;  %v6327_v2 = vrot.slane %v6325_v23, 5  ;;  %v6331_v32 = vrot.slane %v6329_v4, 4  ;;  %v6335_v49 = vshll.u32 %v5975_v6, 16 }
 0x51d   : > { %v8590_v42 = vpop.f32.mrf.mxu1  ;;  %v8674_v0 = vpop.f32.mrf.mxu2 }
 0x51e   : > { %v14519_v9 = vadd.f32 %v8590_v42, %v8502_v20  ;;  %v14524_v10 = vadd.f32 %v8674_v0, %v14492_v55  ;;  %v14970_v55 = vld [vmem:[#allocation10_spill] sm:$0xff]  ;;  %v11521_v20 = vld [vmem:[#allocation4 + $0x3c4] sm:$0xf]  ;;  %v8504_v42 = vadd.f32 %v14211_v12, %v14160_v58  ;;  %v6318_v0 = vrot.slane %v6316_v43, 4 }
 0x51f   : > { %v9001_v39 = vunpack.c.l.b16 %v14970_v55  ;;  %v6332_v52 = vor.u32 %v6331_v32, %v6327_v2  ;;  %v6337_v12 = vrot.slane %v6335_v49, 5  ;;  %v10816_v32 = vld [vmem:[#allocation4 + $0x408] sm:$0xf] }
 0x520   : > { %14968 = vst [vmem:[#allocation49_spill] sm:$0xff] %v14524_v10  ;;  %8905 = vmatmul.bf16.gmra.mxu1 %v10393_v7  ;;  %v10782_v45 = vld [vmem:[#allocation4 + $0x3e4] sm:$0xf0]  ;;  %v6321_v7 = vrot.slane %v6319_v28, 5  ;;  %v6471_v28 = vld [vmem:[#allocation3 + $0xc8] sm:$0x1] }
 0x521   : > { %v10785_v48 = vor.u32 %v11521_v20, %v10782_v45  ;;  %v9030_v10 = vpack.c.b16 %v9001_v39, %v9000_v37  ;;  %v6333_v58 = vrot.slane %v6332_v52, 4  ;;  %v10284_v20 = vrot.slane %v6469_v22, 9  ;;  %v11436_v45 = vld [vmem:[#allocation4 + $0x118] sm:$0xf0]  ;;  %v10428_v22 = vld [vmem:[#allocation4 + $0xf8] sm:$0xf] }
 0x522   : > { %v6322_v54 = vor.u32 %v6321_v7, %v6318_v0  ;;  %v8507_v37 = vadd.f32 %v14245_v46, %v14179_v50  ;;  %v10429_v0 = vor.u32 %v11436_v45, %v10428_v22  ;;  %v5897_v50 = vld [vmem:[#allocation3 + $0xcc] sm:$0xf]  ;;  %v5898_v46 = vld [vmem:[#allocation3 + $0xd0] sm:$0xf]  ;;  %v14972_v52 = vld [vmem:[#allocation14_spill] sm:$0xff] }
 0x523   : > { %8782 = vmatmul.bf16.gmra.mxu3 %v10781_v11  ;;  %8871 = vmatmul.bf16.gmra.mxu0 %v10785_v48  ;;  %v6470_v11 = vld [vmem:[#allocation3 + $0xc4] sm:$0xf]  ;;  %v6338_v23 = vsel %vm11832_vm5, %v6333_v58, %v6337_v12  ;;  %5929 = vst [vmem:[#allocation4 + $0x450] sm:$0xf] %v5897_v50  ;;  %v9003_v58 = vunpack.c.l.b16 %v14972_v52  ;;  %v5978_v22 = vld [vmem:[#allocation3 + $0xd4] sm:$0x1] }
 0x524   : > { %v6323_v19 = vrot.slane %v6322_v54, 4  ;;  %v6623_v6 = vrot.slane %v6470_v11, 5  ;;  %6424 = vst [vmem:[#allocation4 + $0x430] sm:$0xf] %v6338_v23 }
 0x525   : > { %v8592_v1 = vpop.f32.mrf.mxu1  ;;  %v8676_v13 = vpop.f32.mrf.mxu2  ;;  %5930 = vst [vmem:[#allocation4 + $0x474] sm:$0xf] %v5898_v46 }
 0x526   : > { %v8593_v25 = vadd.f32 %v8592_v1, %v8504_v42  ;;  %v14533_v55 = vadd.f32 %v8676_v13, %v14505_v40  ;;  %v6328_v43 = vsel %vm11832_vm5, %v6323_v19, %v6327_v2  ;;  %v14539_v40 = vpop.f32.mrf.mxu0  ;;  %v6624_v39 = vsel %vm11803_vm4, %v10284_v20, %v6623_v6  ;;  %v11534_v2 = vld [vmem:[#allocation4 + $0x428] sm:$0xf0]  ;;  %v14971_v13 = vld [vmem:[#allocation13_spill] sm:$0xff] }
 0x527   : > { %6423 = vst [vmem:[#allocation4 + $0x40c] sm:$0xf] %v6328_v43  ;;  %v6625_v4 = vrot.slane %v6623_v6, 4  ;;  %v6626_v19 = vrot.slane %v6471_v28, 5  ;;  %v10817_v49 = vor.u32 %v11534_v2, %v10816_v32  ;;  %v9002_v54 = vunpack.c.l.b16 %v14971_v13 }
 0x528   : > { %6695 = vst [vmem:[#allocation4 + $0x410] sm:$0xf] %v6624_v39  ;;  %v8509_v43 = vadd.f32 %v14272_v26, %v14205_v38  ;;  %v11445_v39 = vld [vmem:[#allocation4 + $0x160] sm:$0xf0]  ;;  %v10464_v38 = vld [vmem:[#allocation4 + $0x140] sm:$0xf] }
 0x529   : > { %v6627_v7 = vsel %vm11803_vm4, %v6625_v4, %v6626_v19  ;;  %v8512_v4 = vadd.f32 %v14298_v15, %v14223_v34  ;;  %v5976_v19 = vld [vmem:[#allocation3 + $0xcc] sm:$0xf]  ;;  %v10465_v50 = vor.u32 %v11445_v39, %v10464_v38  ;;  %v14974_v39 = vld [vmem:[#allocation18_spill] sm:$0xff] }
 0x52a   : > { %9126 = vmatmul.bf16.gmra.mxu2 %v9030_v10  ;;  %6696 = vst [vmem:[#allocation4 + $0x434] sm:$0xf] %v6627_v7  ;;  %v6340_v26 = vshrl.u32 %v5976_v19, 16  ;;  %v10852_v46 = vld [vmem:[#allocation4 + $0x450] sm:$0xf] }
 0x52b   : > { %v10818_v11 = vld [vmem:[#allocation4 + $0x42c] sm:$0xf0] }
 0x52c   : > { %v11543_v32 = vld [vmem:[#allocation4 + $0x470] sm:$0xf0] }
 0x52d   : > { %v8595_v42 = vpop.f32.mrf.mxu1  ;;  %v8679_v10 = vpop.f32.mrf.mxu2  ;;  %v10853_v15 = vor.u32 %v11543_v32, %v10852_v46  ;;  %v10500_v32 = vld [vmem:[#allocation4 + $0x188] sm:$0xf] }
 0x52e   : > { %v8596_v48 = vadd.f32 %v8595_v42, %v8507_v37  ;;  %v14548_v1 = vadd.f32 %v8679_v10, %v14519_v9  ;;  %v11530_v12 = vld [vmem:[#allocation4 + $0x40c] sm:$0xf]  ;;  %v14554_v20 = vpop.f32.mrf.mxu0  ;;  %v9031_v37 = vpack.c.b16 %v9003_v58, %v9002_v54  ;;  %v5977_v42 = vld [vmem:[#allocation3 + $0xd0] sm:$0xf]  ;;  %v6343_v10 = vshll.u32 %v5976_v19, 16 }
 0x52f   : > { %v10821_v9 = vor.u32 %v11530_v12, %v10818_v11  ;;  %v6353_v7 = vshrl.u32 %v5977_v42, 16  ;;  %v6342_v54 = vrot.slane %v6340_v26, 4  ;;  %v9005_v19 = vunpack.c.l.b16 %v14974_v39 }
 0x530   : > { %8910 = vmatmul.bf16.gmra.mxu1 %v10429_v0  ;;  %v6349_v0 = vshll.u32 %v5977_v42, 16  ;;  %v6345_v52 = vrot.slane %v6343_v10, 5  ;;  %v8522_v39 = vadd.f32 %v14399_v41, %v14308_v17  ;;  %v11472_v41 = vld [vmem:[#allocation4 + $0x238] sm:$0xf0] }
 0x531   : > { %v6355_v34 = vrot.slane %v6353_v7, 4 }
 0x532   : > { %v6351_v58 = vrot.slane %v6349_v0, 5  ;;  %v6346_v11 = vor.u32 %v6345_v52, %v6342_v54 }
 0x533   : > { %8787 = vmatmul.bf16.gmra.mxu3 %v10817_v49  ;;  %8876 = vmatmul.bf16.gmra.mxu0 %v10821_v9 }
 0x535   : > { %v8597_v28 = vpop.f32.mrf.mxu1  ;;  %v8681_v6 = vpop.f32.mrf.mxu2 }
 0x536   : > { %v8598_v45 = vadd.f32 %v8597_v28, %v8509_v43  ;;  %v14556_v23 = vadd.f32 %v8681_v6, %v8593_v25  ;;  %v6359_v25 = vshll.u32 %v5978_v22, 16  ;;  %v6356_v43 = vor.u32 %v6355_v34, %v6351_v58  ;;  %v14973_v6 = vld [vmem:[#allocation17_spill] sm:$0xff]  ;;  %v14570_v26 = vpop.f32.mrf.mxu0 }
 0x537   : > { %v6347_v28 = vrot.slane %v6346_v11, 4  ;;  %v14976_v11 = vld [vmem:[#allocation22_spill] sm:$0xff] }
 0x538   : > { %v6361_v9 = vrot.slane %v6359_v25, 5  ;;  %v6357_v42 = vrot.slane %v6356_v43, 4  ;;  %v9007_v43 = vunpack.c.l.b16 %v14976_v11 }
 0x53a   : > { %9131 = vmatmul.bf16.gmra.mxu2 %v9031_v37  ;;  %v9004_v37 = vunpack.c.l.b16 %v14973_v6  ;;  %v6362_v38 = vsel %vm11832_vm5, %v6357_v42, %v6361_v9  ;;  %v10536_v42 = vld [vmem:[#allocation4 + $0x1d0] sm:$0xf] }
 0x53b   : > { %6426 = vst [vmem:[#allocation4 + $0x478] sm:$0xf] %v6362_v38 }
 0x53d   : > { %v8600_v2 = vpop.f32.mrf.mxu1  ;;  %v8684_v49 = vpop.f32.mrf.mxu2 }
 0x53e   : > { %v8601_v13 = vadd.f32 %v8600_v2, %v8512_v4  ;;  %v14560_v12 = vadd.f32 %v8684_v49, %v8596_v48  ;;  %v8514_v4 = vadd.f32 %v14322_v16, %v14248_v14  ;;  %v6352_v48 = vsel %vm11832_vm5, %v6347_v28, %v6351_v58  ;;  %v14578_v34 = vpop.f32.mrf.mxu0 }
 0x53f   : > { %6425 = vst [vmem:[#allocation4 + $0x454] sm:$0xf] %v6352_v48  ;;  %v9032_v2 = vpack.c.b16 %v9005_v19, %v9004_v37  ;;  %v8517_v14 = vadd.f32 %v14342_v21, %v14266_v59  ;;  %v8519_v59 = vadd.f32 %v14379_v56, %v14294_v30  ;;  %v14977_v30 = vld [vmem:[#allocation25_spill] sm:$0xff] }
 0x540   : > { %8915 = vmatmul.bf16.gmra.mxu1 %v10465_v50  ;;  %v11454_v50 = vld [vmem:[#allocation4 + $0x1a8] sm:$0xf0]  ;;  %v9008_v56 = vunpack.c.l.b16 %v14977_v30 }
 0x541   : > { %v10501_v54 = vor.u32 %v11454_v50, %v10500_v32 }
 0x542   : > { %v10854_v25 = vld [vmem:[#allocation4 + $0x474] sm:$0xf0] }
 0x543   : > { %8792 = vmatmul.bf16.gmra.mxu3 %v10853_v15 }
 0x545   : > { %v8602_v22 = vpop.f32.mrf.mxu1  ;;  %v8686_v10 = vpop.f32.mrf.mxu2 }
 0x546   : > { %v8603_v0 = vadd.f32 %v8602_v22, %v8514_v4  ;;  %v14572_v7 = vadd.f32 %v8686_v10, %v8598_v45  ;;  %v11539_v16 = vld [vmem:[#allocation4 + $0x454] sm:$0xf]  ;;  %v14975_v45 = vld [vmem:[#allocation21_spill] sm:$0xff]  ;;  %v14978_v10 = vld [vmem:[#allocation26_spill] sm:$0xff] }
 0x547   : > { %v10857_v52 = vor.u32 %v11539_v16, %v10854_v25  ;;  %v9006_v15 = vunpack.c.l.b16 %v14975_v45  ;;  %v8527_v25 = vadd.f32 %v14442_v36, %v14345_v24  ;;  %v11481_v36 = vld [vmem:[#allocation4 + $0x280] sm:$0xf0] }
 0x549   : > { %8881 = vmatmul.bf16.gmra.mxu0 %v10857_v52  ;;  %v9033_v37 = vpack.c.b16 %v9007_v43, %v9006_v15  ;;  %v14981_v43 = vld [vmem:[#allocation28_spill] sm:$0xff] }
 0x54a   : > { %9136 = vmatmul.bf16.gmra.mxu2 %v9032_v2  ;;  %v9009_v2 = vunpack.c.l.b16 %v14978_v10 }
 0x54c   : > { %v9034_v17 = vpack.c.b16 %v9009_v2, %v9008_v56  ;;  %v14983_v56 = vld [vmem:[#allocation32_spill] sm:$0xff] }
 0x54d   : > { %v8605_v46 = vpop.f32.mrf.mxu1  ;;  %v8689_v44 = vpop.f32.mrf.mxu2 }
 0x54e   : > { %v8606_v49 = vadd.f32 %v8605_v46, %v8517_v14  ;;  %v14576_v58 = vadd.f32 %v8689_v44, %v8601_v13  ;;  %v11463_v13 = vld [vmem:[#allocation4 + $0x1f0] sm:$0xf0] }
 0x54f   : > { %v10537_v22 = vor.u32 %v11463_v13, %v10536_v42 }
 0x550   : > { %8920 = vmatmul.bf16.gmra.mxu1 %v10501_v54 }
 0x555   : > { %v8607_v21 = vpop.f32.mrf.mxu1  ;;  %v8691_v9 = vpop.f32.mrf.mxu2 }
 0x556   : > { %v8608_v28 = vadd.f32 %v8607_v21, %v8519_v59  ;;  %v14584_v6 = vadd.f32 %v8691_v9, %v8603_v0  ;;  %v14979_v0 = vld [vmem:[#allocation41_spill] sm:$0xff]  ;;  %v9011_v59 = vunpack.c.l.b16 %v14981_v43  ;;  %v8529_v21 = vadd.f32 %v14456_v63, %v14373_v57 }
 0x557   : > { %v8524_v50 = vadd.f32 %v14419_v61, %v14979_v0  ;;  %v14980_v61 = vld [vmem:[#allocation27_spill] sm:$0xff]  ;;  %v9013_v57 = vunpack.c.l.b16 %v14983_v56 }
 0x558   : > { %v9010_v11 = vunpack.c.l.b16 %v14980_v61 }
 0x55a   : > { %9141 = vmatmul.bf16.gmra.mxu2 %v9033_v37  ;;  %v9035_v24 = vpack.c.b16 %v9011_v59, %v9010_v11  ;;  %v8810_v11 = vadd.f32 %v14490_v62, %v14411_v35  ;;  %v10680_v62 = vld [vmem:[#allocation4 + $0x2f0] sm:$0xf] }
 0x55d   : > { %v8610_v19 = vpop.f32.mrf.mxu1  ;;  %v8694_v4 = vpop.f32.mrf.mxu2 }
 0x55e   : > { %v8611_v48 = vadd.f32 %v8610_v19, %v8522_v39  ;;  %v14588_v38 = vadd.f32 %v8694_v4, %v8606_v49  ;;  %v10572_v49 = vld [vmem:[#allocation4 + $0x218] sm:$0xf]  ;;  %v10608_v19 = vld [vmem:[#allocation4 + $0x260] sm:$0xf] }
 0x55f   : > { %v10573_v45 = vor.u32 %v11472_v41, %v10572_v49  ;;  %v10609_v4 = vor.u32 %v11481_v36, %v10608_v19  ;;  %v14634_v19 = vpop.f32.mrf.mxu0 }
 0x560   : > { %8925 = vmatmul.bf16.gmra.mxu1 %v10537_v22  ;;  %v14982_v22 = vld [vmem:[#allocation30_spill] sm:$0xff] }
 0x561   : > { %v9012_v30 = vunpack.c.l.b16 %v14982_v22 }
 0x563   : > { %v9036_v0 = vpack.c.b16 %v9013_v57, %v9012_v30 }
 0x565   : > { %v8612_v14 = vpop.f32.mrf.mxu1  ;;  %v8696_v16 = vpop.f32.mrf.mxu2 }
 0x566   : > { %v8613_v46 = vadd.f32 %v8612_v14, %v8524_v50  ;;  %v14594_v32 = vadd.f32 %v8696_v16, %v8608_v28  ;;  %v14615_v50 = vld [vmem:[%s14796_s6] ss:$0 sm:$0xff]  ;;  %v11490_v14 = vld [vmem:[#allocation4 + $0x2c8] sm:$0xf0]  ;;  %v8808_v16 = vadd.f32 %v14476_v60, %v14391_v5  ;;  %v14985_v5 = vld [vmem:[#allocation35_spill] sm:$0xff] }
 0x567   : > { %v9015_v60 = vunpack.c.l.b16 %v14985_v5  ;;  %v8818_v5 = vadd.f32 %v14539_v40, %v14454_v29  ;;  %v8820_v29 = vadd.f32 %v14554_v20, %v14468_v53  ;;  %v10752_v20 = vld [vmem:[#allocation4 + $0x380] sm:$0xf] }
 0x56a   : > { %9146 = vmatmul.bf16.gmra.mxu2 %v9034_v17  ;;  %v10644_v17 = vld [vmem:[#allocation4 + $0x2a8] sm:$0xf] }
 0x56d   : > { %v8615_v44 = vpop.f32.mrf.mxu1  ;;  %v8699_v54 = vpop.f32.mrf.mxu2 }
 0x56e   : > { %v8616_v52 = vadd.f32 %v8615_v44, %v8527_v25  ;;  %v14598_v15 = vadd.f32 %v8699_v54, %v8611_v48  ;;  %v10645_v25 = vor.u32 %v11490_v14, %v10644_v17 }
 0x570   : > { %8930 = vmatmul.bf16.gmra.mxu1 %v10573_v45  ;;  %v14984_v45 = vld [vmem:[#allocation34_spill] sm:$0xff] }
 0x571   : > { %v9014_v61 = vunpack.c.l.b16 %v14984_v45  ;;  %v11508_v45 = vld [vmem:[#allocation4 + $0x358] sm:$0xf0] }
 0x575   : > { %v8617_v9 = vpop.f32.mrf.mxu1  ;;  %v8701_v28 = vpop.f32.mrf.mxu2 }
 0x576   : > { %v8618_v37 = vadd.f32 %v8617_v9, %v8529_v21  ;;  %v14604_v13 = vadd.f32 %v8701_v28, %v8613_v46  ;;  %v9037_v28 = vpack.c.b16 %v9015_v60, %v9014_v61 }
 0x57a   : > { %9151 = vmatmul.bf16.gmra.mxu2 %v9035_v24 }
 0x57d   : > { %v8896_v39 = vpop.f32.mrf.mxu1  ;;  %v8704_v42 = vpop.f32.mrf.mxu2 }
 0x57e   : > { %v14606_v48 = vadd.f32 %v8704_v42, %v8616_v52  ;;  %v8897_v44 = vadd.f32 %v8896_v39, %v8808_v16  ;;  %v11499_v39 = vld [vmem:[#allocation4 + $0x310] sm:$0xf0]  ;;  %v8813_v42 = vadd.f32 %v14509_v3, %v14425_v47  ;;  %v14987_v16 = vld [vmem:[#allocation38_spill] sm:$0xff]  ;;  %v8815_v47 = vadd.f32 %v14526_v33, %v14445_v51  ;;  %v10716_v33 = vld [vmem:[#allocation4 + $0x338] sm:$0xf] }
 0x57f   : > { %v10681_v22 = vor.u32 %v11499_v39, %v10680_v62  ;;  %v9017_v17 = vunpack.c.l.b16 %v14987_v16  ;;  %v14989_v39 = vld [vmem:[#allocation12_spill] sm:$0xff] }
 0x580   : > { %8935 = vmatmul.bf16.gmra.mxu1 %v10609_v4 }
 0x585   : > { %v8898_v63 = vpop.f32.mrf.mxu1  ;;  %v8706_v10 = vpop.f32.mrf.mxu2 }
 0x586   : > { %v14610_v2 = vadd.f32 %v8706_v10, %v8618_v37  ;;  %v8899_v21 = vadd.f32 %v8898_v63, %v8810_v11  ;;  %v14632_v37 = vpop.f32.mrf.mxu3  ;;  %v10717_v11 = vor.u32 %v11508_v45, %v10716_v33 }
 0x58a   : > { %9156 = vmatmul.bf16.gmra.mxu2 %v9036_v0  ;;  %v14986_v0 = vld [vmem:[#allocation37_spill] sm:$0xff] }
 0x58b   : > { %v9016_v14 = vunpack.c.l.b16 %v14986_v0  ;;  %v11517_v0 = vld [vmem:[#allocation4 + $0x3a0] sm:$0xf0] }
 0x58d   : > { %v8901_v46 = vpop.f32.mrf.mxu1  ;;  %v9117_v41 = vpop.f32.mrf.mxu2 }
 0x58e   : > { %v9118_v49 = vadd.f32 %v14615_v50, %v9117_v41  ;;  %v8902_v30 = vadd.f32 %v8901_v46, %v8813_v42  ;;  %v14640_v63 = vpop.f32.mrf.mxu3  ;;  %v9019_v42 = vunpack.c.l.b16 %v14989_v39 }
 0x590   : > { %8940 = vmatmul.bf16.gmra.mxu1 %v10645_v25  ;;  %v9197_v54 = vadd.f32 %v9118_v49, %v8897_v44  ;;  %v14647_v25 = vpop.f32.mrf.mxu0  ;;  %v9038_v49 = vpack.c.b16 %v9017_v17, %v9016_v14  ;;  %v8823_v14 = vadd.f32 %v14570_v26, %v14484_v8  ;;  %v10753_v17 = vor.u32 %v11517_v0, %v10752_v20 }
 0x591   : > { %v8825_v26 = vadd.f32 %v14578_v34, %v14499_v27  ;;  %v10788_v34 = vld [vmem:[#allocation4 + $0x3c8] sm:$0xf] }
 0x592   : > { %v9229_v52 = vmax.f32 %v9197_v54, 0.0 }
 0x594   : > { %9261 = vst [vmem:[%s14624_s26] sm:$0xff] %v9229_v52 }
 0x595   : > { %v8903_v43 = vpop.f32.mrf.mxu1  ;;  %v9119_v59 = vpop.f32.mrf.mxu2 }
 0x596   : > { %v9120_v9 = vadd.f32 %v14615_v50, %v9119_v59  ;;  %v8904_v46 = vadd.f32 %v8903_v43, %v8815_v47  ;;  %v14650_v61 = vpop.f32.mrf.mxu3 }
 0x598   : > { %v9198_v24 = vadd.f32 %v9120_v9, %v8899_v21  ;;  %v14656_v21 = vpop.f32.mrf.mxu0 }
 0x59a   : > { %v9230_v36 = vmax.f32 %v9198_v24, 0.0  ;;  %9161 = vmatmul.bf16.gmra.mxu2 %v9037_v28  ;;  %v14988_v24 = vld [vmem:[#allocation11_spill] sm:$0xff] }
 0x59c   : > { %9262 = vst [vmem:[%s14624_s26 + $0x8] sm:$0xff] %v9230_v36  ;;  %v9018_v36 = vunpack.c.l.b16 %v14988_v24  ;;  %v11526_v24 = vld [vmem:[#allocation4 + $0x3e8] sm:$0xf0] }
 0x59d   : > { %v8906_v35 = vpop.f32.mrf.mxu1  ;;  %v9122_v4 = vpop.f32.mrf.mxu2 }
 0x59e   : > { %v9123_v56 = vadd.f32 %v14615_v50, %v9122_v4  ;;  %v8907_v59 = vadd.f32 %v8906_v35, %v8818_v5  ;;  %v14663_v62 = vpop.f32.mrf.mxu3 }
 0x5a0   : > { %8945 = vmatmul.bf16.gmra.mxu1 %v10681_v22  ;;  %v9199_v57 = vadd.f32 %v9123_v56, %v8902_v30  ;;  %v9039_v30 = vpack.c.b16 %v9019_v42, %v9018_v36  ;;  %v10789_v42 = vor.u32 %v11526_v24, %v10788_v34 }
 0x5a2   : > { %v9231_v10 = vmax.f32 %v9199_v57, 0.0  ;;  %v14666_v57 = vpop.f32.mrf.mxu0 }
 0x5a4   : > { %9263 = vst [vmem:[%s14624_s26 + $0x10] sm:$0xff] %v9231_v10 }
 0x5a5   : > { %v8908_v3 = vpop.f32.mrf.mxu1  ;;  %v9124_v41 = vpop.f32.mrf.mxu2 }
 0x5a6   : > { %v9125_v44 = vadd.f32 %v14615_v50, %v9124_v41  ;;  %v8909_v4 = vadd.f32 %v8908_v3, %v8820_v29  ;;  %v14672_v41 = vpop.f32.mrf.mxu3 }
 0x5a8   : > { %v9200_v54 = vadd.f32 %v9125_v44, %v8904_v46 }
 0x5aa   : > { %v9232_v52 = vmax.f32 %v9200_v54, 0.0  ;;  %9166 = vmatmul.bf16.gmra.mxu2 %v9038_v49  ;;  %v14990_v49 = vld [vmem:[#allocation15_spill] sm:$0xff]  ;;  %v14676_v8 = vpop.f32.mrf.mxu0 }
 0x5ab   : > { %v9020_v54 = vunpack.c.l.b16 %v14990_v49 }
 0x5ac   : > { %9264 = vst [vmem:[%s14624_s26 + $0x18] sm:$0xff] %v9232_v52  ;;  %v14991_v52 = vld [vmem:[#allocation16_spill] sm:$0xff] }
 0x5ad   : > { %v8911_v51 = vpop.f32.mrf.mxu1  ;;  %v9127_v60 = vpop.f32.mrf.mxu2  ;;  %v9021_v45 = vunpack.c.l.b16 %v14991_v52 }
 0x5ae   : > { %v9128_v43 = vadd.f32 %v14615_v50, %v9127_v60  ;;  %v8912_v47 = vadd.f32 %v8911_v51, %v8823_v14 }
 0x5b0   : > { %8950 = vmatmul.bf16.gmra.mxu1 %v10717_v11  ;;  %v9201_v9 = vadd.f32 %v9128_v43, %v8907_v59  ;;  %v9040_v11 = vpack.c.b16 %v9021_v45, %v9020_v54  ;;  %v8739_v59 = vadd.f32 %v14632_v37, %v14367_v18  ;;  %v14992_v18 = vld [vmem:[#allocation54_spill] sm:$0xff] }
 0x5b1   : > { %v8741_v37 = vadd.f32 %v14640_v63, %v14992_v18 }
 0x5b2   : > { %v9233_v28 = vmax.f32 %v9201_v9, 0.0  ;;  %v14684_v9 = vpop.f32.mrf.mxu3  ;;  %v8828_v36 = vadd.f32 %v14634_v19, %v8739_v59  ;;  %v14688_v29 = vpop.f32.mrf.mxu0  ;;  %v14994_v19 = vld [vmem:[#allocation20_spill] sm:$0xff] }
 0x5b3   : > { %v8830_v14 = vadd.f32 %v14647_v25, %v8741_v37  ;;  %v14997_v37 = vld [vmem:[#allocation23_spill] sm:$0xff] }
 0x5b4   : > { %9265 = vst [vmem:[%s14624_s26 + $0x20] sm:$0xff] %v9233_v28 }
 0x5b5   : > { %v8913_v40 = vpop.f32.mrf.mxu1  ;;  %v9129_v35 = vpop.f32.mrf.mxu2 }
 0x5b6   : > { %v9130_v22 = vadd.f32 %v14615_v50, %v9129_v35  ;;  %v8914_v33 = vadd.f32 %v8913_v40, %v8825_v26  ;;  %v14995_v26 = vld [vmem:[#allocation55_spill] sm:$0xff] }
 0x5b7   : > { %v8744_v25 = vadd.f32 %v14650_v61, %v14995_v26 }
 0x5b8   : > { %v9202_v56 = vadd.f32 %v9130_v22, %v8909_v4 }
 0x5b9   : > { %v8833_v59 = vadd.f32 %v14656_v21, %v8744_v25  ;;  %v14998_v21 = vld [vmem:[#allocation24_spill] sm:$0xff] }
 0x5ba   : > { %v9234_v10 = vmax.f32 %v9202_v56, 0.0  ;;  %9171 = vmatmul.bf16.gmra.mxu2 %v9039_v30  ;;  %v14993_v30 = vld [vmem:[#allocation19_spill] sm:$0xff]  ;;  %v14695_v0 = vpop.f32.mrf.mxu3 }
 0x5bb   : > { %v9022_v56 = vunpack.c.l.b16 %v14993_v30 }
 0x5bc   : > { %9266 = vst [vmem:[%s14624_s26 + $0x28] sm:$0xff] %v9234_v10  ;;  %v9023_v10 = vunpack.c.l.b16 %v14994_v19 }
 0x5bd   : > { %v8916_v53 = vpop.f32.mrf.mxu1  ;;  %v9132_v16 = vpop.f32.mrf.mxu2 }
 0x5be   : > { %v9133_v3 = vadd.f32 %v14615_v50, %v9132_v16  ;;  %v8917_v40 = vadd.f32 %v8916_v53, %v8828_v36  ;;  %v6472_v16 = vld [vmem:[#allocation3 + $0xcc] sm:$0xe]  ;;  %v6473_v53 = vld [vmem:[#allocation3 + $0xd0] sm:$0xf]  ;;  %v9041_v49 = vpack.c.b16 %v9023_v10, %v9022_v56 }
 0x5c0   : > { %8955 = vmatmul.bf16.gmra.mxu1 %v10753_v17  ;;  %v9203_v46 = vadd.f32 %v9133_v3, %v8912_v47  ;;  %v6474_v47 = vld [vmem:[#allocation3 + $0xd4] sm:$0x1]  ;;  %v10285_v3 = vrot.slane %v6472_v16, 9 }
 0x5c1   : > { %v6633_v54 = vrot.slane %v6474_v47, 5 }
 0x5c2   : > { %v9235_v44 = vmax.f32 %v9203_v46, 0.0  ;;  %v6630_v46 = vrot.slane %v6473_v53, 5  ;;  %v8755_v24 = vpop.f32.mrf.mxu3  ;;  %v14999_v53 = vld [vmem:[#allocation42_spill] sm:$0xff] }
 0x5c4   : > { %9267 = vst [vmem:[%s14624_s26 + $0x30] sm:$0xff] %v9235_v44  ;;  %v6631_v52 = vsel %vm11803_vm4, %v10285_v3, %v6630_v46  ;;  %v6632_v45 = vrot.slane %v6630_v46, 4 }
 0x5c5   : > { %v8918_v5 = vpop.f32.mrf.mxu1  ;;  %v9134_v51 = vpop.f32.mrf.mxu2  ;;  %6697 = vst [vmem:[#allocation4 + $0x458] sm:$0xf] %v6631_v52 }
 0x5c6   : > { %v9135_v60 = vadd.f32 %v14615_v50, %v9134_v51  ;;  %v8919_v44 = vadd.f32 %v8918_v5, %v8830_v14  ;;  %v14704_v51 = vpop.f32.mrf.mxu0 }
 0x5c8   : > { %v9204_v43 = vadd.f32 %v9135_v60, %v8914_v33  ;;  %v6634_v60 = vsel %vm11803_vm4, %v6632_v45, %v6633_v54  ;;  %v15000_v45 = vld [vmem:[#allocation56_spill] sm:$0xff] }
 0x5c9   : > { %6698 = vst [vmem:[#allocation4 + $0x47c] sm:$0xf] %v6634_v60  ;;  %v15001_v60 = vld [vmem:[#allocation59_spill] sm:$0xff] }
 0x5ca   : > { %v9236_v28 = vmax.f32 %v9204_v43, 0.0  ;;  %9176 = vmatmul.bf16.gmra.mxu2 %v9040_v11  ;;  %v11535_v11 = vld [vmem:[#allocation4 + $0x430] sm:$0xf0]  ;;  %v8758_v16 = vpop.f32.mrf.mxu3 }
 0x5cc   : > { %9268 = vst [vmem:[%s14624_s26 + $0x38] sm:$0xff] %v9236_v28  ;;  %v10824_v28 = vld [vmem:[#allocation4 + $0x410] sm:$0xf]  ;;  %v10860_v47 = vld [vmem:[#allocation4 + $0x458] sm:$0xf] }
 0x5cd   : > { %v8921_v27 = vpop.f32.mrf.mxu1  ;;  %v9137_v39 = vpop.f32.mrf.mxu2  ;;  %v10825_v61 = vor.u32 %v11535_v11, %v10824_v28  ;;  %v15002_v11 = vld [vmem:[#allocation60_spill] sm:$0xff] }
 0x5ce   : > { %v9138_v35 = vadd.f32 %v14615_v50, %v9137_v39  ;;  %v8922_v34 = vadd.f32 %v8921_v27, %v8833_v59  ;;  %v9027_v59 = vunpack.c.l.b16 %v15002_v11 }
 0x5d0   : > { %8960 = vmatmul.bf16.gmra.mxu1 %v10789_v42  ;;  %v9205_v4 = vadd.f32 %v9138_v35, %v8917_v40  ;;  %v14996_v42 = vld [vmem:[#allocation36_spill] sm:$0xff]  ;;  %v8844_v35 = vpop.f32.mrf.mxu0 }
 0x5d1   : > { %v8746_v31 = vadd.f32 %v14663_v62, %v14996_v42  ;;  %v8749_v62 = vadd.f32 %v14672_v41, %v14999_v53  ;;  %v11544_v3 = vld [vmem:[#allocation4 + $0x478] sm:$0xf0]  ;;  %v8751_v41 = vadd.f32 %v14684_v9, %v15000_v45  ;;  %v15003_v42 = vld [vmem:[#allocation57_spill] sm:$0xff]  ;;  %v15006_v45 = vld [vmem:[#allocation46_spill] sm:$0xff] }
 0x5d2   : > { %v9237_v22 = vmax.f32 %v9205_v4, 0.0  ;;  %v9024_v4 = vunpack.c.l.b16 %v14997_v37  ;;  %v8760_v25 = vpop.f32.mrf.mxu3  ;;  %v8754_v9 = vadd.f32 %v14695_v0, %v15003_v42 }
 0x5d3   : > { %v8835_v30 = vadd.f32 %v14666_v57, %v8746_v31 }
 0x5d4   : > { %9269 = vst [vmem:[%s14624_s26 + $0x40] sm:$0xff] %v9237_v22  ;;  %v9025_v22 = vunpack.c.l.b16 %v14998_v21  ;;  %v8843_v37 = vadd.f32 %v14704_v51, %v8754_v9 }
 0x5d5   : > { %v8923_v20 = vpop.f32.mrf.mxu1  ;;  %v9139_v17 = vpop.f32.mrf.mxu2 }
 0x5d6   : > { %v9140_v63 = vadd.f32 %v14615_v50, %v9139_v17  ;;  %v8924_v27 = vadd.f32 %v8923_v20, %v8835_v30  ;;  %v9042_v14 = vpack.c.b16 %v9025_v22, %v9024_v4  ;;  %v15004_v30 = vld [vmem:[#allocation58_spill] sm:$0xff] }
 0x5d8   : > { %v9206_v33 = vadd.f32 %v9140_v63, %v8919_v44  ;;  %v10861_v44 = vor.u32 %v11544_v3, %v10860_v47  ;;  %v8847_v57 = vpop.f32.mrf.mxu0  ;;  %v8838_v63 = vadd.f32 %v14676_v8, %v8749_v62  ;;  %v8840_v8 = vadd.f32 %v14688_v29, %v8751_v41  ;;  %v15005_v47 = vld [vmem:[#allocation47_spill] sm:$0xff] }
 0x5d9   : > { %v8759_v3 = vadd.f32 %v8758_v16, %v15005_v47  ;;  %v8761_v41 = vadd.f32 %v8760_v25, %v15006_v45 }
 0x5da   : > { %v9238_v5 = vmax.f32 %v9206_v33, 0.0  ;;  %9181 = vmatmul.bf16.gmra.mxu2 %v9041_v49 }
 0x5dc   : > { %9270 = vst [vmem:[%s14624_s26 + $0x48] sm:$0xff] %v9238_v5  ;;  %v9026_v5 = vunpack.c.l.b16 %v15001_v60 }
 0x5dd   : > { %v8926_v43 = vpop.f32.mrf.mxu1  ;;  %v9142_v36 = vpop.f32.mrf.mxu2 }
 0x5de   : > { %v9143_v39 = vadd.f32 %v14615_v50, %v9142_v36  ;;  %v8927_v54 = vadd.f32 %v8926_v43, %v8838_v63 }
 0x5e0   : > { %8965 = vmatmul.bf16.gmra.mxu1 %v10825_v61  ;;  %v9207_v40 = vadd.f32 %v9143_v39, %v8922_v34  ;;  %v8849_v43 = vpop.f32.mrf.mxu0  ;;  %v9043_v39 = vpack.c.b16 %v9027_v59, %v9026_v5 }
 0x5e1   : > { %v8850_v5 = vadd.f32 %v8849_v43, %v8761_v41 }
 0x5e2   : > { %v9239_v18 = vmax.f32 %v9207_v40, 0.0 }
 0x5e4   : > { %9271 = vst [vmem:[%s14624_s26 + $0x50] sm:$0xff] %v9239_v18  ;;  %v8763_v18 = vpop.f32.mrf.mxu3 }
 0x5e5   : > { %v8928_v56 = vpop.f32.mrf.mxu1  ;;  %v9144_v19 = vpop.f32.mrf.mxu2 }
 0x5e6   : > { %v9145_v10 = vadd.f32 %v14615_v50, %v9144_v19  ;;  %v8929_v61 = vadd.f32 %v8928_v56, %v8840_v8  ;;  %v8756_v56 = vadd.f32 %v8755_v24, %v15004_v30  ;;  %v15007_v8 = vld [vmem:[#allocation49_spill] sm:$0xff] }
 0x5e8   : > { %v9208_v17 = vadd.f32 %v9145_v10, %v8924_v27  ;;  %v8852_v19 = vpop.f32.mrf.mxu0  ;;  %v8845_v0 = vadd.f32 %v8844_v35, %v8756_v56 }
 0x5ea   : > { %v9240_v46 = vmax.f32 %v9208_v17, 0.0  ;;  %9186 = vmatmul.bf16.gmra.mxu2 %v9042_v14 }
 0x5ec   : > { %9272 = vst [vmem:[%s14624_s26 + $0x58] sm:$0xff] %v9240_v46  ;;  %v8765_v53 = vpop.f32.mrf.mxu3 }
 0x5ed   : > { %v8931_v49 = vpop.f32.mrf.mxu1  ;;  %v9147_v20 = vpop.f32.mrf.mxu2 }
 0x5ee   : > { %v9148_v52 = vadd.f32 %v14615_v50, %v9147_v20  ;;  %v8932_v21 = vadd.f32 %v8931_v49, %v8843_v37  ;;  %v8848_v49 = vadd.f32 %v8847_v57, %v8759_v3 }
 0x5f0   : > { %8970 = vmatmul.bf16.gmra.mxu1 %v10861_v44  ;;  %v9209_v26 = vadd.f32 %v9148_v52, %v8927_v54  ;;  %v8854_v44 = vpop.f32.mrf.mxu0 }
 0x5f2   : > { %v9241_v33 = vmax.f32 %v9209_v26, 0.0 }
 0x5f4   : > { %9273 = vst [vmem:[%s14624_s26 + $0x60] sm:$0xff] %v9241_v33  ;;  %v8768_v52 = vpop.f32.mrf.mxu3 }
 0x5f5   : > { %v8933_v28 = vpop.f32.mrf.mxu1  ;;  %v9149_v36 = vpop.f32.mrf.mxu2 }
 0x5f6   : > { %v9150_v34 = vadd.f32 %v14615_v50, %v9149_v36  ;;  %v8934_v17 = vadd.f32 %v8933_v28, %v8845_v0  ;;  %v8764_v28 = vadd.f32 %v8763_v18, %v15007_v8 }
 0x5f8   : > { %v9210_v31 = vadd.f32 %v9150_v34, %v8929_v61  ;;  %v8857_v60 = vpop.f32.mrf.mxu0 }
 0x5fa   : > { %v9242_v40 = vmax.f32 %v9210_v31, 0.0  ;;  %9191 = vmatmul.bf16.gmra.mxu2 %v9043_v39  ;;  %v8853_v39 = vadd.f32 %v8852_v19, %v8764_v28  ;;  %v8769_v19 = vadd.f32 %v8768_v52, %v14548_v1 }
 0x5fc   : > { %9274 = vst [vmem:[%s14624_s26 + $0x68] sm:$0xff] %v9242_v40  ;;  %v8770_v61 = vpop.f32.mrf.mxu3  ;;  %v8766_v40 = vadd.f32 %v8765_v53, %v14533_v55 }
 0x5fd   : > { %v8936_v29 = vpop.f32.mrf.mxu1  ;;  %v9152_v4 = vpop.f32.mrf.mxu2  ;;  %v8771_v47 = vadd.f32 %v8770_v61, %v14556_v23 }
 0x5fe   : > { %v9153_v22 = vadd.f32 %v14615_v50, %v9152_v4  ;;  %v8937_v54 = vadd.f32 %v8936_v29, %v8848_v49 }
 0x600   : > { %v9211_v27 = vadd.f32 %v9153_v22, %v8932_v21  ;;  %v8859_v9 = vpop.f32.mrf.mxu0  ;;  %v8855_v21 = vadd.f32 %v8854_v44, %v8766_v40 }
 0x602   : > { %v9243_v10 = vmax.f32 %v9211_v27, 0.0 }
 0x604   : > { %9275 = vst [vmem:[%s14624_s26 + $0x70] sm:$0xff] %v9243_v10  ;;  %v8773_v4 = vpop.f32.mrf.mxu3 }
 0x605   : > { %v8938_v14 = vpop.f32.mrf.mxu1  ;;  %v9154_v62 = vpop.f32.mrf.mxu2 }
 0x606   : > { %v9155_v51 = vadd.f32 %v14615_v50, %v9154_v62  ;;  %v8939_v59 = vadd.f32 %v8938_v14, %v8850_v5  ;;  %v8858_v14 = vadd.f32 %v8857_v60, %v8769_v19 }
 0x608   : > { %v9212_v46 = vadd.f32 %v9155_v51, %v8934_v17  ;;  %v8862_v27 = vpop.f32.mrf.mxu0 }
 0x60a   : > { %v9244_v63 = vmax.f32 %v9212_v46, 0.0 }
 0x60c   : > { %9276 = vst [vmem:[%s14624_s26 + $0x78] sm:$0xff] %v9244_v63  ;;  %v8775_v55 = vpop.f32.mrf.mxu3  ;;  %v8860_v63 = vadd.f32 %v8859_v9, %v8771_v47 }
 0x60d   : > { %v8941_v24 = vpop.f32.mrf.mxu1  ;;  %v9157_v20 = vpop.f32.mrf.mxu2 }
 0x60e   : > { %v9158_v35 = vadd.f32 %v14615_v50, %v9157_v20  ;;  %v8942_v31 = vadd.f32 %v8941_v24, %v8853_v39 }
 0x610   : > { %v9213_v26 = vadd.f32 %v9158_v35, %v8937_v54  ;;  %v8864_v46 = vpop.f32.mrf.mxu0  ;;  %v8774_v35 = vadd.f32 %v8773_v4, %v14560_v12 }
 0x612   : > { %v9245_v33 = vmax.f32 %v9213_v26, 0.0  ;;  %v8863_v26 = vadd.f32 %v8862_v27, %v8774_v35 }
 0x614   : > { %9277 = vst [vmem:[%s14624_s26 + $0x80] sm:$0xff] %v9245_v33  ;;  %v8778_v54 = vpop.f32.mrf.mxu3 }
 0x615   : > { %v8943_v16 = vpop.f32.mrf.mxu1  ;;  %v9159_v11 = vpop.f32.mrf.mxu2  ;;  %v8779_v39 = vadd.f32 %v8778_v54, %v14576_v58 }
 0x616   : > { %v9160_v57 = vadd.f32 %v14615_v50, %v9159_v11  ;;  %v8944_v30 = vadd.f32 %v8943_v16, %v8855_v21  ;;  %v8776_v16 = vadd.f32 %v8775_v55, %v14572_v7 }
 0x618   : > { %v9214_v36 = vadd.f32 %v9160_v57, %v8939_v59  ;;  %v8867_v41 = vpop.f32.mrf.mxu0  ;;  %v8865_v8 = vadd.f32 %v8864_v46, %v8776_v16 }
 0x61a   : > { %v9246_v34 = vmax.f32 %v9214_v36, 0.0 }
 0x61c   : > { %9278 = vst [vmem:[%s14624_s26 + $0x88] sm:$0xff] %v9246_v34  ;;  %v8780_v59 = vpop.f32.mrf.mxu3 }
 0x61d   : > { %v8946_v42 = vpop.f32.mrf.mxu1  ;;  %v9162_v25 = vpop.f32.mrf.mxu2 }
 0x61e   : > { %v9163_v43 = vadd.f32 %v14615_v50, %v9162_v25  ;;  %v8947_v17 = vadd.f32 %v8946_v42, %v8858_v14 }
 0x620   : > { %v9215_v37 = vadd.f32 %v9163_v43, %v8942_v31  ;;  %v8869_v12 = vpop.f32.mrf.mxu0  ;;  %v8868_v31 = vadd.f32 %v8867_v41, %v8779_v39 }
 0x622   : > { %v9247_v29 = vmax.f32 %v9215_v37, 0.0  ;;  %v8781_v37 = vadd.f32 %v8780_v59, %v14584_v6 }
 0x624   : > { %9279 = vst [vmem:[%s14624_s26 + $0x90] sm:$0xff] %v9247_v29  ;;  %v8783_v9 = vpop.f32.mrf.mxu3 }
 0x625   : > { %v8948_v18 = vpop.f32.mrf.mxu1  ;;  %v9164_v22 = vpop.f32.mrf.mxu2  ;;  %v8784_v27 = vadd.f32 %v8783_v9, %v14588_v38 }
 0x626   : > { %v9165_v56 = vadd.f32 %v14615_v50, %v9164_v22  ;;  %v8949_v24 = vadd.f32 %v8948_v18, %v8860_v63  ;;  %v8870_v22 = vadd.f32 %v8869_v12, %v8781_v37 }
 0x628   : > { %v9216_v10 = vadd.f32 %v9165_v56, %v8944_v30  ;;  %v8872_v29 = vpop.f32.mrf.mxu0 }
 0x629   : > { %v8873_v6 = vadd.f32 %v8872_v29, %v8784_v27 }
 0x62a   : > { %v9248_v0 = vmax.f32 %v9216_v10, 0.0 }
 0x62c   : > { %9280 = vst [vmem:[%s14624_s26 + $0x98] sm:$0xff] %v9248_v0  ;;  %v8785_v30 = vpop.f32.mrf.mxu3 }
 0x62d   : > { %v8951_v62 = vpop.f32.mrf.mxu1  ;;  %v9167_v53 = vpop.f32.mrf.mxu2  ;;  %v8786_v47 = vadd.f32 %v8785_v30, %v14594_v32 }
 0x62e   : > { %v9168_v51 = vadd.f32 %v14615_v50, %v9167_v53  ;;  %v8952_v60 = vadd.f32 %v8951_v62, %v8863_v26 }
 0x630   : > { %v9217_v3 = vadd.f32 %v9168_v51, %v8947_v17  ;;  %v8874_v0 = vpop.f32.mrf.mxu0 }
 0x631   : > { %v8875_v63 = vadd.f32 %v8874_v0, %v8786_v47 }
 0x632   : > { %v9249_v44 = vmax.f32 %v9217_v3, 0.0 }
 0x634   : > { %9281 = vst [vmem:[%s14624_s26 + $0xa0] sm:$0xff] %v9249_v44  ;;  %v8788_v51 = vpop.f32.mrf.mxu3 }
 0x635   : > { %v8953_v1 = vpop.f32.mrf.mxu1  ;;  %v9169_v49 = vpop.f32.mrf.mxu2 }
 0x636   : > { %v9170_v20 = vadd.f32 %v14615_v50, %v9169_v49  ;;  %v8954_v36 = vadd.f32 %v8953_v1, %v8865_v8 }
 0x638   : > { %v9218_v52 = vadd.f32 %v9170_v20, %v8949_v24  ;;  %v8877_v44 = vpop.f32.mrf.mxu0  ;;  %v8789_v20 = vadd.f32 %v8788_v51, %v14598_v15 }
 0x63a   : > { %v9250_v45 = vmax.f32 %v9218_v52, 0.0 }
 0x63c   : > { %9282 = vst [vmem:[%s14624_s26 + $0xa8] sm:$0xff] %v9250_v45  ;;  %v8790_v35 = vpop.f32.mrf.mxu3  ;;  %v8878_v45 = vadd.f32 %v8877_v44, %v8789_v20 }
 0x63d   : > { %v9172_v23 = vpop.f32.mrf.mxu2  ;;  %v8956_v33 = vpop.f32.mrf.mxu1 }
 0x63e   : > { %v9173_v5 = vadd.f32 %v14615_v50, %v9172_v23  ;;  %v8957_v43 = vadd.f32 %v8956_v33, %v8868_v31 }
 0x640   : > { %v9219_v11 = vadd.f32 %v9173_v5, %v8952_v60  ;;  %v8879_v23 = vpop.f32.mrf.mxu0  ;;  %v8791_v60 = vadd.f32 %v8790_v35, %v14604_v13 }
 0x642   : > { %v9251_v57 = vmax.f32 %v9219_v11, 0.0  ;;  %v8880_v59 = vadd.f32 %v8879_v23, %v8791_v60 }
 0x644   : > { %9283 = vst [vmem:[%s14624_s26 + $0xb0] sm:$0xff] %v9251_v57  ;;  %v8793_v11 = vpop.f32.mrf.mxu3 }
 0x645   : > { %v9174_v28 = vpop.f32.mrf.mxu2  ;;  %v8958_v34 = vpop.f32.mrf.mxu1  ;;  %v8794_v12 = vadd.f32 %v8793_v11, %v14606_v48 }
 0x646   : > { %v9175_v61 = vadd.f32 %v14615_v50, %v9174_v28  ;;  %v8959_v56 = vadd.f32 %v8958_v34, %v8870_v22 }
 0x648   : > { %v9220_v42 = vadd.f32 %v9175_v61, %v8954_v36  ;;  %v8882_v28 = vpop.f32.mrf.mxu0 }
 0x649   : > { %v8883_v39 = vadd.f32 %v8882_v28, %v8794_v12 }
 0x64a   : > { %v9252_v25 = vmax.f32 %v9220_v42, 0.0 }
 0x64c   : > { %9284 = vst [vmem:[%s14624_s26 + $0xb8] sm:$0xff] %v9252_v25  ;;  %v8795_v42 = vpop.f32.mrf.mxu3 }
 0x64d   : > { %v9177_v7 = vpop.f32.mrf.mxu2  ;;  %v8961_v21 = vpop.f32.mrf.mxu1  ;;  %v8796_v31 = vadd.f32 %v8795_v42, %v14610_v2 }
 0x64e   : > { %v9178_v40 = vadd.f32 %v14615_v50, %v9177_v7  ;;  %v8962_v53 = vadd.f32 %v8961_v21, %v8873_v6 }
 0x650   : > { %v9221_v4 = vadd.f32 %v9178_v40, %v8957_v43  ;;  %v8884_v43 = vpop.f32.mrf.mxu0 }
 0x651   : > { %v8885_v29 = vadd.f32 %v8884_v43, %v8796_v31 }
 0x652   : > { %v9253_v18 = vmax.f32 %v9221_v4, 0.0 }
 0x654   : > { %9285 = vst [vmem:[%s14624_s26 + $0xc0] sm:$0xff] %v9253_v18 }
 0x655   : > { %v9179_v58 = vpop.f32.mrf.mxu2  ;;  %v8963_v62 = vpop.f32.mrf.mxu1 }
 0x656   : > { %v9180_v19 = vadd.f32 %v14615_v50, %v9179_v58  ;;  %v8964_v49 = vadd.f32 %v8963_v62, %v8875_v63 }
 0x658   : > { %v9222_v10 = vadd.f32 %v9180_v19, %v8959_v56 }
 0x65a   : > { %v9254_v14 = vmax.f32 %v9222_v10, 0.0 }
 0x65c   : > { %9286 = vst [vmem:[%s14624_s26 + $0xc8] sm:$0xff] %v9254_v14 }
 0x65d   : > { %v9182_v55 = vpop.f32.mrf.mxu2  ;;  %v8966_v38 = vpop.f32.mrf.mxu1 }
 0x65e   : > { %v9183_v17 = vadd.f32 %v14615_v50, %v9182_v55  ;;  %v8967_v32 = vadd.f32 %v8966_v38, %v8878_v45 }
 0x660   : > { %v9223_v3 = vadd.f32 %v9183_v17, %v8962_v53 }
 0x662   : > { %v9255_v46 = vmax.f32 %v9223_v3, 0.0 }
 0x664   : > { %9287 = vst [vmem:[%s14624_s26 + $0xd0] sm:$0xff] %v9255_v46 }
 0x665   : > { %v9184_v1 = vpop.f32.mrf.mxu2  ;;  %v8968_v33 = vpop.f32.mrf.mxu1 }
 0x666   : > { %v9185_v24 = vadd.f32 %v14615_v50, %v9184_v1  ;;  %v8969_v57 = vadd.f32 %v8968_v33, %v8880_v59 }
 0x668   : > { %v9224_v54 = vadd.f32 %v9185_v24, %v8964_v49 }
 0x66a   : > { %v9256_v52 = vmax.f32 %v9224_v54, 0.0 }
 0x66c   : > { %9288 = vst [vmem:[%s14624_s26 + $0xd8] sm:$0xff] %v9256_v52 }
 0x66d   : > { %v9187_v41 = vpop.f32.mrf.mxu2  ;;  %v8971_v61 = vpop.f32.mrf.mxu1 }
 0x66e   : > { %v9188_v26 = vadd.f32 %v14615_v50, %v9187_v41  ;;  %v8972_v25 = vadd.f32 %v8971_v61, %v8883_v39 }
 0x670   : > { %v9225_v5 = vadd.f32 %v9188_v26, %v8967_v32 }
 0x672   : > { %v9257_v16 = vmax.f32 %v9225_v5, 0.0 }
 0x674   : > { %9289 = vst [vmem:[%s14624_s26 + $0xe0] sm:$0xff] %v9257_v16 }
 0x675   : > { %v9189_v15 = vpop.f32.mrf.mxu2  ;;  %v8973_v37 = vpop.f32.mrf.mxu1 }
 0x676   : > { %v9190_v8 = vadd.f32 %v14615_v50, %v9189_v15  ;;  %v8974_v4 = vadd.f32 %v8973_v37, %v8885_v29 }
 0x678   : > { %v9226_v36 = vadd.f32 %v9190_v8, %v8969_v57 }
 0x67a   : > { %v9258_v34 = vmax.f32 %v9226_v36, 0.0 }
 0x67c   : > { %9290 = vst [vmem:[%s14624_s26 + $0xe8] sm:$0xff] %v9258_v34 }
 0x67d   : > { %v9192_v13 = vpop.f32.mrf.mxu2 }
 0x67e   : > { %v9193_v9 = vadd.f32 %v14615_v50, %v9192_v13 }
 0x680   : > { %v9227_v7 = vadd.f32 %v9193_v9, %v8972_v25 }
 0x682   : > { %v9259_v40 = vmax.f32 %v9227_v7, 0.0 }
 0x684   : > { %9291 = vst [vmem:[%s14624_s26 + $0xf0] sm:$0xff] %v9259_v40 }
 0x685   : > { %v9194_v48 = vpop.f32.mrf.mxu2 }
 0x686   : > { %v9195_v21 = vadd.f32 %v14615_v50, %v9194_v48 }
 0x688   : > { %v9228_v18 = vadd.f32 %v9195_v21, %v8974_v4 }
 0x68a   : > { %v9260_v22 = vmax.f32 %v9228_v18, 0.0 }
 0x68c   : > { %9292 = vst [vmem:[%s14624_s26 + $0xf8] sm:$0xff] %v9260_v22 }
 0x68d PF: > { %s17_s24 = sadd.s32 1, %s11673_s24  }
 0x68e   : > { %p14_p4 = scmp.ge.s32.totalorder %s17_s24, 4  }
 0x690   :  { %16 = sbr.rel (!%p14_p4) target bundleno = 1 (0x1), region = 80 }

</bundles_post_ra>
